<compile_context>
chip_gen: v6e
topology: v6e:2x2x1
jax: 0.10.0
libtpu: 0.0.40
codegen_flags: <defaults>
</compile_context>

<pallas_src>
import jax
import jax.numpy as jnp
from jax.experimental import pallas as pl
from jax.experimental.pallas import tpu as pltpu


_VMEM_LIMIT = 32 * 1024 * 1024  # <= v7x's 64 MiB physical VMEM, ample headroom


# ----------------------------------------------------------------------------
# Kernel 1: fused conv1 + relu + conv2 + relu + 2x2 max-pool.
# One batch element per grid step; grid axis is "parallel" (v7x megacore).
# ----------------------------------------------------------------------------
def _conv_pool_kernel(p1_ref, w1_ref, b1_ref, w2_ref, b2_ref, out_ref, c2_ref):
    # conv1 as an im2col matmul: [26*32, 9] @ [9, 32]  (W padded 26 -> 32 in the
    # wrapper so the reshape to (h, w, c) below stays sublane-tile aligned).
    y1 = jnp.dot(p1_ref[...], w1_ref[...], preferred_element_type=jnp.float32)
    y1 = jnp.maximum(y1 + b1_ref[...], 0.0)            # [832, 32] f32
    y1 = y1.reshape(26, 32, 32)                        # [h, w_pad, cin]

    # conv2 via in-kernel im2col: 9 shifted slices of the VMEM-resident y1,
    # each a [576, 32] @ [32, 64] MXU matmul accumulated in f32.
    acc = jnp.zeros((576, 64), jnp.float32)
    for dh in range(3):
        for dw in range(3):
            sl = y1[dh:dh + 24, dw:dw + 24, :].reshape(576, 32)
            acc = acc + jnp.dot(sl.astype(jnp.bfloat16),
                                w2_ref[dh * 3 + dw],
                                preferred_element_type=jnp.float32)
    acc = jnp.maximum(acc + b2_ref[...], 0.0)          # [576, 64] f32, rows = (h, w)

    # Fused 2x2 max-pool (f32 epilogue).  W-pool via stride-2 sublane loads,
    # H-pool over the 12 row-pair blocks.
    c2_ref[...] = acc
    wp = jnp.maximum(c2_ref[pl.ds(0, 288, 2), :],      # even w columns
                     c2_ref[pl.ds(1, 288, 2), :])      # odd  w columns -> [288, 64]
    for ph in range(12):
        top = wp[24 * ph:24 * ph + 12, :]              # h = 2*ph
        bot = wp[24 * ph + 12:24 * ph + 24, :]         # h = 2*ph + 1
        out_ref[pl.ds(12 * ph, 12), :] = jnp.maximum(top, bot).astype(out_ref.dtype)


def conv_pool_pallas(p1, w1r, b1r, w2r, b2r, batch):
    return pl.pallas_call(
        _conv_pool_kernel,
        out_shape=jax.ShapeDtypeStruct((batch * 144, 64), jnp.bfloat16),
        grid=(batch,),
        in_specs=[
            pl.BlockSpec((832, 9), lambda b: (b, 0)),        # conv1 patches (per batch)
            pl.BlockSpec((9, 32), lambda b: (0, 0)),         # w1 (resident)
            pl.BlockSpec((1, 32), lambda b: (0, 0)),         # b1
            pl.BlockSpec((9, 32, 64), lambda b: (0, 0, 0)),  # w2 (resident)
            pl.BlockSpec((1, 64), lambda b: (0, 0)),         # b2
        ],
        out_specs=pl.BlockSpec((144, 64), lambda b: (b, 0)),
        scratch_shapes=[pltpu.VMEM((576, 64), jnp.float32)],
        compiler_params=pltpu.CompilerParams(
            dimension_semantics=("parallel",),
            vmem_limit_bytes=_VMEM_LIMIT),
    )(p1, w1r, b1r, w2r, b2r)


# ----------------------------------------------------------------------------
# Kernel 2: fused fc1 + relu + fc2, K-tiled over the 9216 contraction so the
# bf16 weight chunks are double-buffered and their DMA overlaps the MXU.
# ----------------------------------------------------------------------------
def _fc_kernel(f_ref, w1_ref, b1_ref, w2_ref, b2_ref, o_ref, acc_ref):
    k = pl.program_id(0)

    @pl.when(k == 0)
    def _():
        acc_ref[...] = jnp.zeros_like(acc_ref)

    acc_ref[...] += jnp.dot(f_ref[...], w1_ref[...],
                            preferred_element_type=jnp.float32)

    @pl.when(k == pl.num_programs(0) - 1)
    def _():
        h = jnp.maximum(acc_ref[...] + b1_ref[...], 0.0)          # fc1 + relu (f32)
        logits = jnp.dot(h.astype(jnp.bfloat16), w2_ref[...],
                         preferred_element_type=jnp.float32) + b2_ref[...]
        o_ref[...] = logits                                        # [B, 128] f32


def fc_pallas(f, wf1, bf1, wf2p, bf2p, *, block_k=2304):
    batch, kdim = f.shape
    nk = kdim // block_k
    return pl.pallas_call(
        _fc_kernel,
        out_shape=jax.ShapeDtypeStruct((batch, 128), jnp.float32),
        grid=(nk,),
        in_specs=[
            pl.BlockSpec((batch, block_k), lambda k: (0, k)),  # activations
            pl.BlockSpec((block_k, 128), lambda k: (k, 0)),    # fc1 weight chunk
            pl.BlockSpec((1, 128), lambda k: (0, 0)),          # fc1 bias
            pl.BlockSpec((128, 128), lambda k: (0, 0)),        # fc2 weight (padded)
            pl.BlockSpec((1, 128), lambda k: (0, 0)),          # fc2 bias (padded)
        ],
        out_specs=pl.BlockSpec((batch, 128), lambda k: (0, 0)),
        scratch_shapes=[pltpu.VMEM((batch, 128), jnp.float32)],
        compiler_params=pltpu.CompilerParams(
            dimension_semantics=("arbitrary",),
            vmem_limit_bytes=_VMEM_LIMIT),
    )(f, wf1, bf1, wf2p, bf2p)


# ----------------------------------------------------------------------------
# Glue (layout plumbing only; conv1's tiny 9-wide im2col on the 28x28 input)
# ----------------------------------------------------------------------------
def _im2col_conv1(x):
    """x: [B, 28, 28] -> conv1 patches [B*26*32, 9], W padded 26 -> 32."""
    B = x.shape[0]
    cols = [x[:, dh:dh + 26, dw:dw + 26] for dh in range(3) for dw in range(3)]
    p = jnp.stack(cols, axis=-1)                          # [B, 26, 26, 9]
    p = jnp.pad(p, ((0, 0), (0, 0), (0, 6), (0, 0)))      # [B, 26, 32, 9]
    return p.reshape(B * 26 * 32, 9)


def classifier_forward(x_nchw, params):
    B = x_nchw.shape[0]
    x = x_nchw[:, 0, :, :].astype(jnp.float32)            # [B, 28, 28] (Cin = 1)

    # Weight prep: HWIO conv weights flattened; bf16 for MXU, f32 biases.
    w1r = params["w1"].reshape(9, 32).astype(jnp.bfloat16)
    b1r = params["b1"].reshape(1, 32).astype(jnp.float32)
    w2r = params["w2"].reshape(9, 32, 64).astype(jnp.bfloat16)
    b2r = params["b2"].reshape(1, 64).astype(jnp.float32)
    wf1 = params["wf1"].astype(jnp.bfloat16)
    bf1 = params["bf1"].reshape(1, 128).astype(jnp.float32)
    wf2p = jnp.zeros((128, 128), jnp.bfloat16).at[:, :10].set(
        params["wf2"].astype(jnp.bfloat16))
    bf2p = jnp.zeros((1, 128), jnp.float32).at[0, :10].set(
        params["bf2"].astype(jnp.float32))

    p1 = _im2col_conv1(x).astype(jnp.bfloat16)             # [B*832, 9]

    pooled = conv_pool_pallas(p1, w1r, b1r, w2r, b2r, B)   # [B*144, 64] bf16
    feats = pooled.reshape(B, 144 * 64)                    # flatten in (H, W, C) order

    logits_padded = fc_pallas(feats, wf1, bf1, wf2p, bf2p) # [B, 128] f32
    return logits_padded[:, :10]                           # drop fc2 padding


def init_params(key):
    ks = jax.random.split(key, 8)
    scale = 0.05
    return {
        "w1": jax.random.normal(ks[0], (3, 3, 1, 32), jnp.float32) * scale,
        "b1": jax.random.normal(ks[1], (32,), jnp.float32) * scale,
        "w2": jax.random.normal(ks[2], (3, 3, 32, 64), jnp.float32) * scale,
        "b2": jax.random.normal(ks[3], (64,), jnp.float32) * scale,
        "wf1": jax.random.normal(ks[4], (9216, 128), jnp.float32) * scale,
        "bf1": jax.random.normal(ks[5], (128,), jnp.float32) * scale,
        "wf2": jax.random.normal(ks[6], (128, 10), jnp.float32) * scale,
        "bf2": jax.random.normal(ks[7], (10,), jnp.float32) * scale,
    }


if __name__ == "__main__":
    key = jax.random.PRNGKey(0)
    pkey, xkey = jax.random.split(key)
    params = init_params(pkey)

    # forward() implies 28x28 single-channel input (9216 = 64 * 12 * 12).
    x = jax.random.normal(xkey, (2, 1, 28, 28), jnp.float32)

    logits = jax.jit(classifier_forward)(x, params)
    logits = jax.block_until_ready(logits)

    assert logits.shape == (2, 10), logits.shape
    assert bool(jnp.all(jnp.isfinite(logits)))
    print("KERNEL_OK")
</pallas_src>

<mosaic_0001>
module attributes {stable_mosaic.version = 11 : i64} {
  func.func @_conv_pool_kernel(%arg0: i32, %arg1: memref<832x9xbf16, #tpu.memory_space<vmem>>, %arg2: memref<9x32xbf16, #tpu.memory_space<vmem>>, %arg3: memref<1x32xf32, #tpu.memory_space<vmem>>, %arg4: memref<9x32x64xbf16, #tpu.memory_space<vmem>>, %arg5: memref<1x64xf32, #tpu.memory_space<vmem>>, %arg6: memref<144x64xbf16, #tpu.memory_space<vmem>>, %arg7: memref<576x64xf32, #tpu.memory_space<vmem>>) attributes {dimension_semantics = [#tpu.dimension_semantics<parallel>], iteration_bounds = array<i64: 2>, scalar_prefetch = 0 : i64, scratch_operands = 1 : i64, tpu.core_type = #tpu.core_type<tc>, window_params = [{transform_indices = @transform_0, window_bounds = array<i64: 832, 9>}, {pipeline_mode = #tpu.pipeline_mode<synchronous>, transform_indices = @transform_1, window_bounds = array<i64: 9, 32>}, {pipeline_mode = #tpu.pipeline_mode<synchronous>, transform_indices = @transform_2, window_bounds = array<i64: 1, 32>}, {pipeline_mode = #tpu.pipeline_mode<synchronous>, transform_indices = @transform_3, window_bounds = array<i64: 9, 32, 64>}, {pipeline_mode = #tpu.pipeline_mode<synchronous>, transform_indices = @transform_4, window_bounds = array<i64: 1, 64>}, {transform_indices = @transform_5, window_bounds = array<i64: 144, 64>}]} {
    %c0 = arith.constant 0 : index
    %c0_0 = arith.constant 0 : index
    %0 = vector.load %arg1[%c0, %c0_0] : memref<832x9xbf16, #tpu.memory_space<vmem>>, vector<832x9xbf16>
    %c0_1 = arith.constant 0 : index
    %c0_2 = arith.constant 0 : index
    %1 = vector.load %arg2[%c0_1, %c0_2] : memref<9x32xbf16, #tpu.memory_space<vmem>>, vector<9x32xbf16>
    %cst = arith.constant dense<0.000000e+00> : vector<832x32xf32>
    %2 = tpu.matmul %0, %1, %cst {dimension_numbers = #tpu.dot_dimension_numbers<[1], [0], [0], [1], [0, 0, 1, 1], [], []>} : vector<832x9xbf16>, vector<9x32xbf16>, vector<832x32xf32> -> vector<832x32xf32>
    %c0_3 = arith.constant 0 : index
    %c0_4 = arith.constant 0 : index
    %3 = vector.load %arg3[%c0_3, %c0_4] : memref<1x32xf32, #tpu.memory_space<vmem>>, vector<1x32xf32>
    %4 = vector.broadcast %3 : vector<1x32xf32> to vector<832x32xf32>
    %5 = arith.addf %2, %4 : vector<832x32xf32>
    %cst_5 = arith.constant 0.000000e+00 : f32
    %6 = vector.broadcast %cst_5 : f32 to vector<832x32xf32>
    %7 = arith.maximumf %5, %6 : vector<832x32xf32>
    %8 = vector.shape_cast %7 : vector<832x32xf32> to vector<26x32x32xf32>
    %cst_6 = arith.constant 0.000000e+00 : f32
    %9 = vector.broadcast %cst_6 : f32 to vector<576x64xf32>
    %10 = vector.extract_strided_slice %8 {offsets = [0, 0, 0], sizes = [24, 24, 32], strides = [1, 1, 1]} : vector<26x32x32xf32> to vector<24x24x32xf32>
    %11 = vector.shape_cast %10 : vector<24x24x32xf32> to vector<576x32xf32>
    %12 = arith.truncf %11 : vector<576x32xf32> to vector<576x32xbf16>
    %c0_7 = arith.constant 0 : index
    %c0_8 = arith.constant 0 : index
    %c0_9 = arith.constant 0 : index
    %13 = vector.load %arg4[%c0_7, %c0_8, %c0_9] : memref<9x32x64xbf16, #tpu.memory_space<vmem>>, vector<1x32x64xbf16>
    %14 = vector.shape_cast %13 : vector<1x32x64xbf16> to vector<32x64xbf16>
    %cst_10 = arith.constant dense<0.000000e+00> : vector<576x64xf32>
    %15 = tpu.matmul %12, %14, %cst_10 {dimension_numbers = #tpu.dot_dimension_numbers<[1], [0], [0], [1], [0, 0, 1, 1], [], []>} : vector<576x32xbf16>, vector<32x64xbf16>, vector<576x64xf32> -> vector<576x64xf32>
    %16 = arith.addf %9, %15 : vector<576x64xf32>
    %17 = vector.extract_strided_slice %8 {offsets = [0, 1, 0], sizes = [24, 24, 32], strides = [1, 1, 1]} : vector<26x32x32xf32> to vector<24x24x32xf32>
    %18 = vector.shape_cast %17 : vector<24x24x32xf32> to vector<576x32xf32>
    %19 = arith.truncf %18 : vector<576x32xf32> to vector<576x32xbf16>
    %c1 = arith.constant 1 : index
    %c0_11 = arith.constant 0 : index
    %c0_12 = arith.constant 0 : index
    %20 = vector.load %arg4[%c1, %c0_11, %c0_12] : memref<9x32x64xbf16, #tpu.memory_space<vmem>>, vector<1x32x64xbf16>
    %21 = vector.shape_cast %20 : vector<1x32x64xbf16> to vector<32x64xbf16>
    %cst_13 = arith.constant dense<0.000000e+00> : vector<576x64xf32>
    %22 = tpu.matmul %19, %21, %cst_13 {dimension_numbers = #tpu.dot_dimension_numbers<[1], [0], [0], [1], [0, 0, 1, 1], [], []>} : vector<576x32xbf16>, vector<32x64xbf16>, vector<576x64xf32> -> vector<576x64xf32>
    %23 = arith.addf %16, %22 : vector<576x64xf32>
    %24 = vector.extract_strided_slice %8 {offsets = [0, 2, 0], sizes = [24, 24, 32], strides = [1, 1, 1]} : vector<26x32x32xf32> to vector<24x24x32xf32>
    %25 = vector.shape_cast %24 : vector<24x24x32xf32> to vector<576x32xf32>
    %26 = arith.truncf %25 : vector<576x32xf32> to vector<576x32xbf16>
    %c2 = arith.constant 2 : index
    %c0_14 = arith.constant 0 : index
    %c0_15 = arith.constant 0 : index
    %27 = vector.load %arg4[%c2, %c0_14, %c0_15] : memref<9x32x64xbf16, #tpu.memory_space<vmem>>, vector<1x32x64xbf16>
    %28 = vector.shape_cast %27 : vector<1x32x64xbf16> to vector<32x64xbf16>
    %cst_16 = arith.constant dense<0.000000e+00> : vector<576x64xf32>
    %29 = tpu.matmul %26, %28, %cst_16 {dimension_numbers = #tpu.dot_dimension_numbers<[1], [0], [0], [1], [0, 0, 1, 1], [], []>} : vector<576x32xbf16>, vector<32x64xbf16>, vector<576x64xf32> -> vector<576x64xf32>
    %30 = arith.addf %23, %29 : vector<576x64xf32>
    %31 = vector.extract_strided_slice %8 {offsets = [1, 0, 0], sizes = [24, 24, 32], strides = [1, 1, 1]} : vector<26x32x32xf32> to vector<24x24x32xf32>
    %32 = vector.shape_cast %31 : vector<24x24x32xf32> to vector<576x32xf32>
    %33 = arith.truncf %32 : vector<576x32xf32> to vector<576x32xbf16>
    %c3 = arith.constant 3 : index
    %c0_17 = arith.constant 0 : index
    %c0_18 = arith.constant 0 : index
    %34 = vector.load %arg4[%c3, %c0_17, %c0_18] : memref<9x32x64xbf16, #tpu.memory_space<vmem>>, vector<1x32x64xbf16>
    %35 = vector.shape_cast %34 : vector<1x32x64xbf16> to vector<32x64xbf16>
    %cst_19 = arith.constant dense<0.000000e+00> : vector<576x64xf32>
    %36 = tpu.matmul %33, %35, %cst_19 {dimension_numbers = #tpu.dot_dimension_numbers<[1], [0], [0], [1], [0, 0, 1, 1], [], []>} : vector<576x32xbf16>, vector<32x64xbf16>, vector<576x64xf32> -> vector<576x64xf32>
    %37 = arith.addf %30, %36 : vector<576x64xf32>
    %38 = vector.extract_strided_slice %8 {offsets = [1, 1, 0], sizes = [24, 24, 32], strides = [1, 1, 1]} : vector<26x32x32xf32> to vector<24x24x32xf32>
    %39 = vector.shape_cast %38 : vector<24x24x32xf32> to vector<576x32xf32>
    %40 = arith.truncf %39 : vector<576x32xf32> to vector<576x32xbf16>
    %c4 = arith.constant 4 : index
    %c0_20 = arith.constant 0 : index
    %c0_21 = arith.constant 0 : index
    %41 = vector.load %arg4[%c4, %c0_20, %c0_21] : memref<9x32x64xbf16, #tpu.memory_space<vmem>>, vector<1x32x64xbf16>
    %42 = vector.shape_cast %41 : vector<1x32x64xbf16> to vector<32x64xbf16>
    %cst_22 = arith.constant dense<0.000000e+00> : vector<576x64xf32>
    %43 = tpu.matmul %40, %42, %cst_22 {dimension_numbers = #tpu.dot_dimension_numbers<[1], [0], [0], [1], [0, 0, 1, 1], [], []>} : vector<576x32xbf16>, vector<32x64xbf16>, vector<576x64xf32> -> vector<576x64xf32>
    %44 = arith.addf %37, %43 : vector<576x64xf32>
    %45 = vector.extract_strided_slice %8 {offsets = [1, 2, 0], sizes = [24, 24, 32], strides = [1, 1, 1]} : vector<26x32x32xf32> to vector<24x24x32xf32>
    %46 = vector.shape_cast %45 : vector<24x24x32xf32> to vector<576x32xf32>
    %47 = arith.truncf %46 : vector<576x32xf32> to vector<576x32xbf16>
    %c5 = arith.constant 5 : index
    %c0_23 = arith.constant 0 : index
    %c0_24 = arith.constant 0 : index
    %48 = vector.load %arg4[%c5, %c0_23, %c0_24] : memref<9x32x64xbf16, #tpu.memory_space<vmem>>, vector<1x32x64xbf16>
    %49 = vector.shape_cast %48 : vector<1x32x64xbf16> to vector<32x64xbf16>
    %cst_25 = arith.constant dense<0.000000e+00> : vector<576x64xf32>
    %50 = tpu.matmul %47, %49, %cst_25 {dimension_numbers = #tpu.dot_dimension_numbers<[1], [0], [0], [1], [0, 0, 1, 1], [], []>} : vector<576x32xbf16>, vector<32x64xbf16>, vector<576x64xf32> -> vector<576x64xf32>
    %51 = arith.addf %44, %50 : vector<576x64xf32>
    %52 = vector.extract_strided_slice %8 {offsets = [2, 0, 0], sizes = [24, 24, 32], strides = [1, 1, 1]} : vector<26x32x32xf32> to vector<24x24x32xf32>
    %53 = vector.shape_cast %52 : vector<24x24x32xf32> to vector<576x32xf32>
    %54 = arith.truncf %53 : vector<576x32xf32> to vector<576x32xbf16>
    %c6 = arith.constant 6 : index
    %c0_26 = arith.constant 0 : index
    %c0_27 = arith.constant 0 : index
    %55 = vector.load %arg4[%c6, %c0_26, %c0_27] : memref<9x32x64xbf16, #tpu.memory_space<vmem>>, vector<1x32x64xbf16>
    %56 = vector.shape_cast %55 : vector<1x32x64xbf16> to vector<32x64xbf16>
    %cst_28 = arith.constant dense<0.000000e+00> : vector<576x64xf32>
    %57 = tpu.matmul %54, %56, %cst_28 {dimension_numbers = #tpu.dot_dimension_numbers<[1], [0], [0], [1], [0, 0, 1, 1], [], []>} : vector<576x32xbf16>, vector<32x64xbf16>, vector<576x64xf32> -> vector<576x64xf32>
    %58 = arith.addf %51, %57 : vector<576x64xf32>
    %59 = vector.extract_strided_slice %8 {offsets = [2, 1, 0], sizes = [24, 24, 32], strides = [1, 1, 1]} : vector<26x32x32xf32> to vector<24x24x32xf32>
    %60 = vector.shape_cast %59 : vector<24x24x32xf32> to vector<576x32xf32>
    %61 = arith.truncf %60 : vector<576x32xf32> to vector<576x32xbf16>
    %c7 = arith.constant 7 : index
    %c0_29 = arith.constant 0 : index
    %c0_30 = arith.constant 0 : index
    %62 = vector.load %arg4[%c7, %c0_29, %c0_30] : memref<9x32x64xbf16, #tpu.memory_space<vmem>>, vector<1x32x64xbf16>
    %63 = vector.shape_cast %62 : vector<1x32x64xbf16> to vector<32x64xbf16>
    %cst_31 = arith.constant dense<0.000000e+00> : vector<576x64xf32>
    %64 = tpu.matmul %61, %63, %cst_31 {dimension_numbers = #tpu.dot_dimension_numbers<[1], [0], [0], [1], [0, 0, 1, 1], [], []>} : vector<576x32xbf16>, vector<32x64xbf16>, vector<576x64xf32> -> vector<576x64xf32>
    %65 = arith.addf %58, %64 : vector<576x64xf32>
    %66 = vector.extract_strided_slice %8 {offsets = [2, 2, 0], sizes = [24, 24, 32], strides = [1, 1, 1]} : vector<26x32x32xf32> to vector<24x24x32xf32>
    %67 = vector.shape_cast %66 : vector<24x24x32xf32> to vector<576x32xf32>
    %68 = arith.truncf %67 : vector<576x32xf32> to vector<576x32xbf16>
    %c8 = arith.constant 8 : index
    %c0_32 = arith.constant 0 : index
    %c0_33 = arith.constant 0 : index
    %69 = vector.load %arg4[%c8, %c0_32, %c0_33] : memref<9x32x64xbf16, #tpu.memory_space<vmem>>, vector<1x32x64xbf16>
    %70 = vector.shape_cast %69 : vector<1x32x64xbf16> to vector<32x64xbf16>
    %cst_34 = arith.constant dense<0.000000e+00> : vector<576x64xf32>
    %71 = tpu.matmul %68, %70, %cst_34 {dimension_numbers = #tpu.dot_dimension_numbers<[1], [0], [0], [1], [0, 0, 1, 1], [], []>} : vector<576x32xbf16>, vector<32x64xbf16>, vector<576x64xf32> -> vector<576x64xf32>
    %72 = arith.addf %65, %71 : vector<576x64xf32>
    %c0_35 = arith.constant 0 : index
    %c0_36 = arith.constant 0 : index
    %73 = vector.load %arg5[%c0_35, %c0_36] : memref<1x64xf32, #tpu.memory_space<vmem>>, vector<1x64xf32>
    %74 = vector.broadcast %73 : vector<1x64xf32> to vector<576x64xf32>
    %75 = arith.addf %72, %74 : vector<576x64xf32>
    %cst_37 = arith.constant 0.000000e+00 : f32
    %76 = vector.broadcast %cst_37 : f32 to vector<576x64xf32>
    %77 = arith.maximumf %75, %76 : vector<576x64xf32>
    %c0_38 = arith.constant 0 : index
    %c0_39 = arith.constant 0 : index
    %78 = vector.load %arg7[%c0_38, %c0_39] : memref<576x64xf32, #tpu.memory_space<vmem>>, vector<576x64xf32>
    tpu.vector_store %arg7[%c0_38, %c0_39], %77 {strides = array<i32>} : memref<576x64xf32, #tpu.memory_space<vmem>>, vector<576x64xf32>,
    %c0_40 = arith.constant 0 : index
    %c0_41 = arith.constant 0 : index
    %79 = tpu.strided_load %arg7[%c0_40, %c0_41] {strides = array<i32: 2, 1>} : memref<576x64xf32, #tpu.memory_space<vmem>>, vector<288x64xf32>
    %c1_42 = arith.constant 1 : index
    %c0_43 = arith.constant 0 : index
    %80 = tpu.strided_load %arg7[%c1_42, %c0_43] {strides = array<i32: 2, 1>} : memref<576x64xf32, #tpu.memory_space<vmem>>, vector<288x64xf32>
    %81 = arith.maximumf %79, %80 : vector<288x64xf32>
    %82 = vector.extract_strided_slice %81 {offsets = [0, 0], sizes = [12, 64], strides = [1, 1]} : vector<288x64xf32> to vector<12x64xf32>
    %83 = vector.extract_strided_slice %81 {offsets = [12, 0], sizes = [12, 64], strides = [1, 1]} : vector<288x64xf32> to vector<12x64xf32>
    %84 = arith.maximumf %82, %83 : vector<12x64xf32>
    %85 = arith.truncf %84 : vector<12x64xf32> to vector<12x64xbf16>
    %c0_44 = arith.constant 0 : index
    %c0_45 = arith.constant 0 : index
    %86 = vector.load %arg6[%c0_44, %c0_45] : memref<144x64xbf16, #tpu.memory_space<vmem>>, vector<12x64xbf16>
    tpu.vector_store %arg6[%c0_44, %c0_45], %85 {strides = array<i32>} : memref<144x64xbf16, #tpu.memory_space<vmem>>, vector<12x64xbf16>,
    %87 = vector.extract_strided_slice %81 {offsets = [24, 0], sizes = [12, 64], strides = [1, 1]} : vector<288x64xf32> to vector<12x64xf32>
    %88 = vector.extract_strided_slice %81 {offsets = [36, 0], sizes = [12, 64], strides = [1, 1]} : vector<288x64xf32> to vector<12x64xf32>
    %89 = arith.maximumf %87, %88 : vector<12x64xf32>
    %90 = arith.truncf %89 : vector<12x64xf32> to vector<12x64xbf16>
    %c12 = arith.constant 12 : index
    %c0_46 = arith.constant 0 : index
    %91 = vector.load %arg6[%c12, %c0_46] : memref<144x64xbf16, #tpu.memory_space<vmem>>, vector<12x64xbf16>
    tpu.vector_store %arg6[%c12, %c0_46], %90 {strides = array<i32>} : memref<144x64xbf16, #tpu.memory_space<vmem>>, vector<12x64xbf16>,
    %92 = vector.extract_strided_slice %81 {offsets = [48, 0], sizes = [12, 64], strides = [1, 1]} : vector<288x64xf32> to vector<12x64xf32>
    %93 = vector.extract_strided_slice %81 {offsets = [60, 0], sizes = [12, 64], strides = [1, 1]} : vector<288x64xf32> to vector<12x64xf32>
    %94 = arith.maximumf %92, %93 : vector<12x64xf32>
    %95 = arith.truncf %94 : vector<12x64xf32> to vector<12x64xbf16>
    %c24 = arith.constant 24 : index
    %c0_47 = arith.constant 0 : index
    %96 = vector.load %arg6[%c24, %c0_47] : memref<144x64xbf16, #tpu.memory_space<vmem>>, vector<12x64xbf16>
    tpu.vector_store %arg6[%c24, %c0_47], %95 {strides = array<i32>} : memref<144x64xbf16, #tpu.memory_space<vmem>>, vector<12x64xbf16>,
    %97 = vector.extract_strided_slice %81 {offsets = [72, 0], sizes = [12, 64], strides = [1, 1]} : vector<288x64xf32> to vector<12x64xf32>
    %98 = vector.extract_strided_slice %81 {offsets = [84, 0], sizes = [12, 64], strides = [1, 1]} : vector<288x64xf32> to vector<12x64xf32>
    %99 = arith.maximumf %97, %98 : vector<12x64xf32>
    %100 = arith.truncf %99 : vector<12x64xf32> to vector<12x64xbf16>
    %c36 = arith.constant 36 : index
    %c0_48 = arith.constant 0 : index
    %101 = vector.load %arg6[%c36, %c0_48] : memref<144x64xbf16, #tpu.memory_space<vmem>>, vector<12x64xbf16>
    tpu.vector_store %arg6[%c36, %c0_48], %100 {strides = array<i32>} : memref<144x64xbf16, #tpu.memory_space<vmem>>, vector<12x64xbf16>,
    %102 = vector.extract_strided_slice %81 {offsets = [96, 0], sizes = [12, 64], strides = [1, 1]} : vector<288x64xf32> to vector<12x64xf32>
    %103 = vector.extract_strided_slice %81 {offsets = [108, 0], sizes = [12, 64], strides = [1, 1]} : vector<288x64xf32> to vector<12x64xf32>
    %104 = arith.maximumf %102, %103 : vector<12x64xf32>
    %105 = arith.truncf %104 : vector<12x64xf32> to vector<12x64xbf16>
    %c48 = arith.constant 48 : index
    %c0_49 = arith.constant 0 : index
    %106 = vector.load %arg6[%c48, %c0_49] : memref<144x64xbf16, #tpu.memory_space<vmem>>, vector<12x64xbf16>
    tpu.vector_store %arg6[%c48, %c0_49], %105 {strides = array<i32>} : memref<144x64xbf16, #tpu.memory_space<vmem>>, vector<12x64xbf16>,
    %107 = vector.extract_strided_slice %81 {offsets = [120, 0], sizes = [12, 64], strides = [1, 1]} : vector<288x64xf32> to vector<12x64xf32>
    %108 = vector.extract_strided_slice %81 {offsets = [132, 0], sizes = [12, 64], strides = [1, 1]} : vector<288x64xf32> to vector<12x64xf32>
    %109 = arith.maximumf %107, %108 : vector<12x64xf32>
    %110 = arith.truncf %109 : vector<12x64xf32> to vector<12x64xbf16>
    %c60 = arith.constant 60 : index
    %c0_50 = arith.constant 0 : index
    %111 = vector.load %arg6[%c60, %c0_50] : memref<144x64xbf16, #tpu.memory_space<vmem>>, vector<12x64xbf16>
    tpu.vector_store %arg6[%c60, %c0_50], %110 {strides = array<i32>} : memref<144x64xbf16, #tpu.memory_space<vmem>>, vector<12x64xbf16>,
    %112 = vector.extract_strided_slice %81 {offsets = [144, 0], sizes = [12, 64], strides = [1, 1]} : vector<288x64xf32> to vector<12x64xf32>
    %113 = vector.extract_strided_slice %81 {offsets = [156, 0], sizes = [12, 64], strides = [1, 1]} : vector<288x64xf32> to vector<12x64xf32>
    %114 = arith.maximumf %112, %113 : vector<12x64xf32>
    %115 = arith.truncf %114 : vector<12x64xf32> to vector<12x64xbf16>
    %c72 = arith.constant 72 : index
    %c0_51 = arith.constant 0 : index
    %116 = vector.load %arg6[%c72, %c0_51] : memref<144x64xbf16, #tpu.memory_space<vmem>>, vector<12x64xbf16>
    tpu.vector_store %arg6[%c72, %c0_51], %115 {strides = array<i32>} : memref<144x64xbf16, #tpu.memory_space<vmem>>, vector<12x64xbf16>,
    %117 = vector.extract_strided_slice %81 {offsets = [168, 0], sizes = [12, 64], strides = [1, 1]} : vector<288x64xf32> to vector<12x64xf32>
    %118 = vector.extract_strided_slice %81 {offsets = [180, 0], sizes = [12, 64], strides = [1, 1]} : vector<288x64xf32> to vector<12x64xf32>
    %119 = arith.maximumf %117, %118 : vector<12x64xf32>
    %120 = arith.truncf %119 : vector<12x64xf32> to vector<12x64xbf16>
    %c84 = arith.constant 84 : index
    %c0_52 = arith.constant 0 : index
    %121 = vector.load %arg6[%c84, %c0_52] : memref<144x64xbf16, #tpu.memory_space<vmem>>, vector<12x64xbf16>
    tpu.vector_store %arg6[%c84, %c0_52], %120 {strides = array<i32>} : memref<144x64xbf16, #tpu.memory_space<vmem>>, vector<12x64xbf16>,
    %122 = vector.extract_strided_slice %81 {offsets = [192, 0], sizes = [12, 64], strides = [1, 1]} : vector<288x64xf32> to vector<12x64xf32>
    %123 = vector.extract_strided_slice %81 {offsets = [204, 0], sizes = [12, 64], strides = [1, 1]} : vector<288x64xf32> to vector<12x64xf32>
    %124 = arith.maximumf %122, %123 : vector<12x64xf32>
    %125 = arith.truncf %124 : vector<12x64xf32> to vector<12x64xbf16>
    %c96 = arith.constant 96 : index
    %c0_53 = arith.constant 0 : index
    %126 = vector.load %arg6[%c96, %c0_53] : memref<144x64xbf16, #tpu.memory_space<vmem>>, vector<12x64xbf16>
    tpu.vector_store %arg6[%c96, %c0_53], %125 {strides = array<i32>} : memref<144x64xbf16, #tpu.memory_space<vmem>>, vector<12x64xbf16>,
    %127 = vector.extract_strided_slice %81 {offsets = [216, 0], sizes = [12, 64], strides = [1, 1]} : vector<288x64xf32> to vector<12x64xf32>
    %128 = vector.extract_strided_slice %81 {offsets = [228, 0], sizes = [12, 64], strides = [1, 1]} : vector<288x64xf32> to vector<12x64xf32>
    %129 = arith.maximumf %127, %128 : vector<12x64xf32>
    %130 = arith.truncf %129 : vector<12x64xf32> to vector<12x64xbf16>
    %c108 = arith.constant 108 : index
    %c0_54 = arith.constant 0 : index
    %131 = vector.load %arg6[%c108, %c0_54] : memref<144x64xbf16, #tpu.memory_space<vmem>>, vector<12x64xbf16>
    tpu.vector_store %arg6[%c108, %c0_54], %130 {strides = array<i32>} : memref<144x64xbf16, #tpu.memory_space<vmem>>, vector<12x64xbf16>,
    %132 = vector.extract_strided_slice %81 {offsets = [240, 0], sizes = [12, 64], strides = [1, 1]} : vector<288x64xf32> to vector<12x64xf32>
    %133 = vector.extract_strided_slice %81 {offsets = [252, 0], sizes = [12, 64], strides = [1, 1]} : vector<288x64xf32> to vector<12x64xf32>
    %134 = arith.maximumf %132, %133 : vector<12x64xf32>
    %135 = arith.truncf %134 : vector<12x64xf32> to vector<12x64xbf16>
    %c120 = arith.constant 120 : index
    %c0_55 = arith.constant 0 : index
    %136 = vector.load %arg6[%c120, %c0_55] : memref<144x64xbf16, #tpu.memory_space<vmem>>, vector<12x64xbf16>
    tpu.vector_store %arg6[%c120, %c0_55], %135 {strides = array<i32>} : memref<144x64xbf16, #tpu.memory_space<vmem>>, vector<12x64xbf16>,
    %137 = vector.extract_strided_slice %81 {offsets = [264, 0], sizes = [12, 64], strides = [1, 1]} : vector<288x64xf32> to vector<12x64xf32>
    %138 = vector.extract_strided_slice %81 {offsets = [276, 0], sizes = [12, 64], strides = [1, 1]} : vector<288x64xf32> to vector<12x64xf32>
    %139 = arith.maximumf %137, %138 : vector<12x64xf32>
    %140 = arith.truncf %139 : vector<12x64xf32> to vector<12x64xbf16>
    %c132 = arith.constant 132 : index
    %c0_56 = arith.constant 0 : index
    %141 = vector.load %arg6[%c132, %c0_56] : memref<144x64xbf16, #tpu.memory_space<vmem>>, vector<12x64xbf16>
    tpu.vector_store %arg6[%c132, %c0_56], %140 {strides = array<i32>} : memref<144x64xbf16, #tpu.memory_space<vmem>>, vector<12x64xbf16>,
    return
  }
  func.func @transform_0(%arg0: i32) -> (i32, i32) {
    %c0_i32 = arith.constant 0 : i32
    %c0_i32_0 = arith.constant 0 : i32
    return %arg0, %c0_i32 : i32, i32
  }
  func.func @transform_1(%arg0: i32) -> (i32, i32) {
    %c0_i32 = arith.constant 0 : i32
    %c0_i32_0 = arith.constant 0 : i32
    %c0_i32_1 = arith.constant 0 : i32
    return %c0_i32, %c0_i32_0 : i32, i32
  }
  func.func @transform_2(%arg0: i32) -> (i32, i32) {
    %c0_i32 = arith.constant 0 : i32
    %c0_i32_0 = arith.constant 0 : i32
    %c0_i32_1 = arith.constant 0 : i32
    return %c0_i32, %c0_i32_0 : i32, i32
  }
  func.func @transform_3(%arg0: i32) -> (i32, i32, i32) {
    %c0_i32 = arith.constant 0 : i32
    %c0_i32_0 = arith.constant 0 : i32
    %c0_i32_1 = arith.constant 0 : i32
    %c0_i32_2 = arith.constant 0 : i32
    return %c0_i32, %c0_i32_0, %c0_i32_1 : i32, i32, i32
  }
  func.func @transform_4(%arg0: i32) -> (i32, i32) {
    %c0_i32 = arith.constant 0 : i32
    %c0_i32_0 = arith.constant 0 : i32
    %c0_i32_1 = arith.constant 0 : i32
    return %c0_i32, %c0_i32_0 : i32, i32
  }
  func.func @transform_5(%arg0: i32) -> (i32, i32) {
    %c0_i32 = arith.constant 0 : i32
    %c0_i32_0 = arith.constant 0 : i32
    return %arg0, %c0_i32 : i32, i32
  }
}

module attributes {stable_mosaic.version = 11 : i64} {
  func.func @_fc_kernel(%arg0: i32, %arg1: memref<2x2304xbf16, #tpu.memory_space<vmem>>, %arg2: memref<2304x128xbf16, #tpu.memory_space<vmem>>, %arg3: memref<1x128xf32, #tpu.memory_space<vmem>>, %arg4: memref<128x128xbf16, #tpu.memory_space<vmem>>, %arg5: memref<1x128xf32, #tpu.memory_space<vmem>>, %arg6: memref<2x128xf32, #tpu.memory_space<vmem>>, %arg7: memref<2x128xf32, #tpu.memory_space<vmem>>) attributes {dimension_semantics = [#tpu.dimension_semantics<arbitrary>], iteration_bounds = array<i64: 4>, scalar_prefetch = 0 : i64, scratch_operands = 1 : i64, tpu.core_type = #tpu.core_type<tc>, window_params = [{transform_indices = @transform_0, window_bounds = array<i64: 2, 2304>}, {transform_indices = @transform_1, window_bounds = array<i64: 2304, 128>}, {pipeline_mode = #tpu.pipeline_mode<synchronous>, transform_indices = @transform_2, window_bounds = array<i64: 1, 128>}, {pipeline_mode = #tpu.pipeline_mode<synchronous>, transform_indices = @transform_3, window_bounds = array<i64: 128, 128>}, {pipeline_mode = #tpu.pipeline_mode<synchronous>, transform_indices = @transform_4, window_bounds = array<i64: 1, 128>}, {pipeline_mode = #tpu.pipeline_mode<synchronous>, transform_indices = @transform_5, window_bounds = array<i64: 2, 128>}]} {
    %c0_i32 = arith.constant 0 : i32
    %0 = arith.cmpi eq, %arg0, %c0_i32 : i32
    %1 = arith.extui %0 : i1 to i32
    %c0_i32_0 = arith.constant 0 : i32
    %2 = arith.cmpi ne, %1, %c0_i32_0 : i32
    scf.if %2 {
      %cst_9 = arith.constant 0.000000e+00 : f32
      %12 = vector.broadcast %cst_9 : f32 to vector<2x128xf32>
      %c0_10 = arith.constant 0 : index
      %c0_11 = arith.constant 0 : index
      %13 = vector.load %arg7[%c0_10, %c0_11] : memref<2x128xf32, #tpu.memory_space<vmem>>, vector<2x128xf32>
      tpu.vector_store %arg7[%c0_10, %c0_11], %12 {strides = array<i32>} : memref<2x128xf32, #tpu.memory_space<vmem>>, vector<2x128xf32>,
    } else {
    }
    %c0 = arith.constant 0 : index
    %c0_1 = arith.constant 0 : index
    %3 = vector.load %arg7[%c0, %c0_1] : memref<2x128xf32, #tpu.memory_space<vmem>>, vector<2x128xf32>
    %c0_2 = arith.constant 0 : index
    %c0_3 = arith.constant 0 : index
    %4 = vector.load %arg1[%c0_2, %c0_3] : memref<2x2304xbf16, #tpu.memory_space<vmem>>, vector<2x2304xbf16>
    %c0_4 = arith.constant 0 : index
    %c0_5 = arith.constant 0 : index
    %5 = vector.load %arg2[%c0_4, %c0_5] : memref<2304x128xbf16, #tpu.memory_space<vmem>>, vector<2304x128xbf16>
    %cst = arith.constant dense<0.000000e+00> : vector<2x128xf32>
    %6 = tpu.matmul %4, %5, %cst {dimension_numbers = #tpu.dot_dimension_numbers<[1], [0], [0], [1], [0, 0, 1, 1], [], []>} : vector<2x2304xbf16>, vector<2304x128xbf16>, vector<2x128xf32> -> vector<2x128xf32>
    %7 = arith.addf %3, %6 : vector<2x128xf32>
    %c0_6 = arith.constant 0 : index
    %c0_7 = arith.constant 0 : index
    %8 = vector.load %arg7[%c0_6, %c0_7] : memref<2x128xf32, #tpu.memory_space<vmem>>, vector<2x128xf32>
    tpu.vector_store %arg7[%c0_6, %c0_7], %7 {strides = array<i32>} : memref<2x128xf32, #tpu.memory_space<vmem>>, vector<2x128xf32>,
    %c3_i32 = arith.constant 3 : i32
    %9 = arith.cmpi eq, %arg0, %c3_i32 : i32
    %10 = arith.extui %9 : i1 to i32
    %c0_i32_8 = arith.constant 0 : i32
    %11 = arith.cmpi ne, %10, %c0_i32_8 : i32
    scf.if %11 {
      %c0_9 = arith.constant 0 : index
      %c0_10 = arith.constant 0 : index
      %12 = vector.load %arg7[%c0_9, %c0_10] : memref<2x128xf32, #tpu.memory_space<vmem>>, vector<2x128xf32>
      %c0_11 = arith.constant 0 : index
      %c0_12 = arith.constant 0 : index
      %13 = vector.load %arg3[%c0_11, %c0_12] : memref<1x128xf32, #tpu.memory_space<vmem>>, vector<1x128xf32>
      %14 = vector.broadcast %13 : vector<1x128xf32> to vector<2x128xf32>
      %15 = arith.addf %12, %14 : vector<2x128xf32>
      %cst_13 = arith.constant 0.000000e+00 : f32
      %16 = vector.broadcast %cst_13 : f32 to vector<2x128xf32>
      %17 = arith.maximumf %15, %16 : vector<2x128xf32>
      %18 = arith.truncf %17 : vector<2x128xf32> to vector<2x128xbf16>
      %c0_14 = arith.constant 0 : index
      %c0_15 = arith.constant 0 : index
      %19 = vector.load %arg4[%c0_14, %c0_15] : memref<128x128xbf16, #tpu.memory_space<vmem>>, vector<128x128xbf16>
      %cst_16 = arith.constant dense<0.000000e+00> : vector<2x128xf32>
      %20 = tpu.matmul %18, %19, %cst_16 {dimension_numbers = #tpu.dot_dimension_numbers<[1], [0], [0], [1], [0, 0, 1, 1], [], []>} : vector<2x128xbf16>, vector<128x128xbf16>, vector<2x128xf32> -> vector<2x128xf32>
      %c0_17 = arith.constant 0 : index
      %c0_18 = arith.constant 0 : index
      %21 = vector.load %arg5[%c0_17, %c0_18] : memref<1x128xf32, #tpu.memory_space<vmem>>, vector<1x128xf32>
      %22 = vector.broadcast %21 : vector<1x128xf32> to vector<2x128xf32>
      %23 = arith.addf %20, %22 : vector<2x128xf32>
      %c0_19 = arith.constant 0 : index
      %c0_20 = arith.constant 0 : index
      %24 = vector.load %arg6[%c0_19, %c0_20] : memref<2x128xf32, #tpu.memory_space<vmem>>, vector<2x128xf32>
      tpu.vector_store %arg6[%c0_19, %c0_20], %23 {strides = array<i32>} : memref<2x128xf32, #tpu.memory_space<vmem>>, vector<2x128xf32>,
    } else {
    }
    return
  }
  func.func @transform_0(%arg0: i32) -> (i32, i32) {
    %c0_i32 = arith.constant 0 : i32
    %c0_i32_0 = arith.constant 0 : i32
    return %c0_i32, %arg0 : i32, i32
  }
  func.func @transform_1(%arg0: i32) -> (i32, i32) {
    %c0_i32 = arith.constant 0 : i32
    %c0_i32_0 = arith.constant 0 : i32
    return %arg0, %c0_i32 : i32, i32
  }
  func.func @transform_2(%arg0: i32) -> (i32, i32) {
    %c0_i32 = arith.constant 0 : i32
    %c0_i32_0 = arith.constant 0 : i32
    %c0_i32_1 = arith.constant 0 : i32
    return %c0_i32, %c0_i32_0 : i32, i32
  }
  func.func @transform_3(%arg0: i32) -> (i32, i32) {
    %c0_i32 = arith.constant 0 : i32
    %c0_i32_0 = arith.constant 0 : i32
    %c0_i32_1 = arith.constant 0 : i32
    return %c0_i32, %c0_i32_0 : i32, i32
  }
  func.func @transform_4(%arg0: i32) -> (i32, i32) {
    %c0_i32 = arith.constant 0 : i32
    %c0_i32_0 = arith.constant 0 : i32
    %c0_i32_1 = arith.constant 0 : i32
    return %c0_i32, %c0_i32_0 : i32, i32
  }
  func.func @transform_5(%arg0: i32) -> (i32, i32) {
    %c0_i32 = arith.constant 0 : i32
    %c0_i32_0 = arith.constant 0 : i32
    %c0_i32_1 = arith.constant 0 : i32
    return %c0_i32, %c0_i32_0 : i32, i32
  }
}

</mosaic_0001>

<bundles_post_ra>
// kernel: classifier_forward.3
= control target key start
LH: loop header
LB: loop body
LE: loop exit
PB: predicated region body
PF: predicated region fallthrough
CT: control target
= control target key end

     0   :  { %10 = vsyncpa [#allocation4], 0  ;;  %s2716_s18 = smov 0   ;;  %s2958_s0 = inlined_call_operand.vmem [shape: bf16[2,9216], index: 0, kind: input, shape index: {}]   ;;  %s2959_s1 = inlined_call_operand.vmem [shape: bf16[9216,128], index: 1, kind: input, shape index: {}]   ;;  %s2960_s2 = inlined_call_operand.vmem [shape: f32[1,128], index: 2, kind: input, shape index: {}]   ;;  %s2961_s3 = inlined_call_operand.vmem [shape: bf16[128,128], index: 3, kind: input, shape index: {}]   ;;  %s2962_s4 = inlined_call_operand.vmem [shape: f32[1,128], index: 4, kind: input, shape index: {}]   ;;  %s2963_s5 = inlined_call_operand.hbm [shape: f32[2,128], index: 5, kind: output, shape index: {}]  }
   0x1 LB: > { %s2722_s19 = sadd.s32 4294967295, %s2679_s18   ;;  %p2082_p0 = scmp.ge.s32.totalorder %s2679_s18, 1  ;;  %s2679_s18 = sphi %s2716_s18, %s16_s18  }
   0x2   : > { %p194_p1 = scmp.lt.s32.totalorder %s2679_s18, 5 }
   0x4   : > { %p195_p2 = pnand %p2082_p0, %p194_p1 }
   0x5   : > { %s221_s20 = smul.u32 (!%p195_p2), 18, %s2722_s19  ;;  %p2084_p5 = scmp.ne.s32.totalorder (!%p195_p2), %s2722_s19, 0 }
   0x6   : > { %198 = sbr.rel (%p195_p2) target bundleno = 631 (0x277), region = 40 }
   0x7   : > { %s226_s21 = smul.u32 (!%p195_p2), 288, %s2722_s19  ;;  %p222_p3 = scmp.lt.s32.totalorder (!%p195_p2), %s221_s20, 71 }
   0x9   : > { %p227_p4 = scmp.lt.s32.totalorder (!%p195_p2), %s226_s21, 1151 }
   0xb   : > { %s2965_s20 = smov (!%p222_p3, %s221_s20), 71  ;;  %s2967_s21 = smov (!%p227_p4, %s226_s21), 1151 }
   0xc   : > { %s2731_s24 = scalar_lea.vmem %s2958_s0, %s2965_s20  ;;  %s2083_s25 = sshll.u32 %s2967_s21, 2 }
   0xd   : > { %s2736_s28 = scalar_lea.vmem %s2959_s1, %s2083_s25  ;;  %236 = sbr.rel (%p2084_p5) target bundleno = 20 (0x14), region = 44 }
  0x12   : > { %v2681_v0 = vmov 0.0  }
  0x13   : > { %237 = vst [vmem:[#allocation2] sm:$0x3] %v2681_v0 }
  0x14 PF: > { %v2491_v1 = vld [vmem:[%s2736_s28 + $0x78] sm:$0xff]   ;;  %v2495_v5 = vld [vmem:[%s2736_s28 + $0x70] sm:$0xff]   ;;  %v2499_v9 = vld [vmem:[%s2736_s28 + $0x68] sm:$0xff]   ;;  %v537_v30 = vlaneseq  ;;  %v2682_v36 = vmov 1966171168   ;;  %p2230_p6 = scmp.ne.s32.totalorder %s2722_s19, 3 }
  0x15   : > { %v2492_v2 = vld [vmem:[%s2736_s28 + $0xf8] sm:$0xff]   ;;  %2245 = vmatprep.subr.bf16.mxu0 %v2491_v1  ;;  %v2496_v6 = vld [vmem:[%s2736_s28 + $0xf0] sm:$0xff]   ;;  %v2500_v10 = vld [vmem:[%s2736_s28 + $0xe8] sm:$0xff]   ;;  %v535_v37 = vunpack.c.l.s4 %v2682_v36 }
  0x16   : > { %v2493_v3 = vld [vmem:[%s2736_s28 + $0x38] sm:$0xff]   ;;  %2267 = vmatprep.subr.bf16.mxu1 %v2492_v2  ;;  %v2497_v7 = vld [vmem:[%s2736_s28 + $0x30] sm:$0xff]   ;;  %v2501_v11 = vld [vmem:[%s2736_s28 + $0x28] sm:$0xff]   ;;  %v538_v34 = vshrl.u32 %v537_v30, 7 }
  0x17   : > { %v2494_v4 = vld [vmem:[%s2736_s28 + $0xb8] sm:$0xff]   ;;  %2246 = vmatpush3.bf16.msra.mxu0 %v2493_v3  ;;  %v2498_v8 = vld [vmem:[%s2736_s28 + $0xb0] sm:$0xff]   ;;  %v2502_v12 = vld [vmem:[%s2736_s28 + $0xa8] sm:$0xff]   ;;  %v536_v40 = vunpack.c.0.s8 %v535_v37 }
  0x18   : > { %2268 = vmatpush3.bf16.msra.mxu1 %v2494_v4  ;;  %2247 = vmatprep.subr.bf16.mxu0 %v2495_v5  ;;  %v2503_v13 = vld [vmem:[%s2736_s28 + $0x60] sm:$0xff]   ;;  %v2507_v17 = vld [vmem:[%s2736_s28 + $0x58] sm:$0xff]   ;;  %v2511_v21 = vld [vmem:[%s2736_s28 + $0x50] sm:$0xff]  }
  0x19   : > { %2269 = vmatprep.subr.bf16.mxu1 %v2496_v6  ;;  %v2504_v14 = vld [vmem:[%s2736_s28 + $0xe0] sm:$0xff]   ;;  %v2508_v18 = vld [vmem:[%s2736_s28 + $0xd8] sm:$0xff]   ;;  %v2512_v22 = vld [vmem:[%s2736_s28 + $0xd0] sm:$0xff]   ;;  %v2774_v42 = vsub.s32 %v536_v40, %v538_v34 }
  0x1a   : > { %v2505_v15 = vld [vmem:[%s2736_s28 + $0x20] sm:$0xff]   ;;  %v2509_v19 = vld [vmem:[%s2736_s28 + $0x18] sm:$0xff]   ;;  %v2513_v23 = vld [vmem:[%s2736_s28 + $0x10] sm:$0xff]  }
  0x1b   : > { %2248 = vmatpush3.bf16.msra.mxu0 %v2497_v7  ;;  %v2506_v16 = vld [vmem:[%s2736_s28 + $0xa0] sm:$0xff]   ;;  %v2510_v20 = vld [vmem:[%s2736_s28 + $0x98] sm:$0xff]   ;;  %v2514_v24 = vld [vmem:[%s2736_s28 + $0x90] sm:$0xff]  }
  0x1c   : > { %2270 = vmatpush3.bf16.msra.mxu1 %v2498_v8  ;;  %2249 = vmatprep.subr.bf16.mxu0 %v2499_v9  ;;  %v2515_v25 = vld [vmem:[%s2736_s28 + $0x48] sm:$0xff]   ;;  %v2519_v29 = vld [vmem:[%s2736_s28 + $0x40] sm:$0xff]   ;;  %v2524_v35 = vld [vmem:[%s2736_s28 + $0x178] sm:$0xff]  }
  0x1d   : > { %2271 = vmatprep.subr.bf16.mxu1 %v2500_v10  ;;  %v2516_v26 = vld [vmem:[%s2736_s28 + $0xc8] sm:$0xff]   ;;  %v2520_v31 = vld [vmem:[%s2736_s28 + $0xc0] sm:$0xff]   ;;  %v2526_v41 = vld [vmem:[%s2736_s28 + $0x1f8] sm:$0xff]  }
  0x1e   : > { %v2517_v27 = vld [vmem:[%s2736_s28 + $0x8] sm:$0xff]   ;;  %v2521_v32 = vld [vmem:[%s2736_s28] sm:$0xff]   ;;  %v2525_v49 = vld [vmem:[%s2736_s28 + $0x138] sm:$0xff]  }
  0x1f   : > { %2250 = vmatpush3.bf16.msra.mxu0 %v2501_v11  ;;  %v2518_v28 = vld [vmem:[%s2736_s28 + $0x88] sm:$0xff]   ;;  %v2522_v33 = vld [vmem:[%s2736_s28 + $0x80] sm:$0xff]   ;;  %v2528_v52 = vld [vmem:[%s2736_s28 + $0x170] sm:$0xff]  }
  0x20   : > { %2272 = vmatpush3.bf16.msra.mxu1 %v2502_v12  ;;  %2251 = vmatprep.subr.bf16.mxu0 %v2503_v13  ;;  %v239_v38 = vld [vmem:[%s2731_s24] sm:$0xff]  ;;  %v2527_v54 = vld [vmem:[%s2736_s28 + $0x1b8] sm:$0xff]   ;;  %v2530_v55 = vld [vmem:[%s2736_s28 + $0x1f0] sm:$0xff]  }
  0x21   : > { %2273 = vmatprep.subr.bf16.mxu1 %v2504_v14  ;;  %v533_v39 = vcombine.high %v239_v38, %v239_v38  ;;  %v540_v43 = vrot.slane %v239_v38, %v2774_v42  ;;  %v2529_v57 = vld [vmem:[%s2736_s28 + $0x130] sm:$0xff]   ;;  %v2532_v58 = vld [vmem:[%s2736_s28 + $0x168] sm:$0xff]   ;;  %v2536_v62 = vld [vmem:[%s2736_s28 + $0x160] sm:$0xff]  }
  0x22   : > { %v2531_v59 = vld [vmem:[%s2736_s28 + $0x1b0] sm:$0xff]   ;;  %v2534_v60 = vld [vmem:[%s2736_s28 + $0x1e8] sm:$0xff]   ;;  %v2538_v0 = vld [vmem:[%s2736_s28 + $0x1e0] sm:$0xff]  }
  0x23   : > { %2252 = vmatpush3.bf16.msra.mxu0 %v2505_v15  ;;  %v2778_v44 = vrot.slane %v533_v39, %v2774_v42  ;;  %v548_v45 = vcombine.high %v540_v43, %v540_v43  ;;  %v556_v46 = vrot.slane %v540_v43, %v2774_v42  ;;  %v2533_v61 = vld [vmem:[%s2736_s28 + $0x128] sm:$0xff]   ;;  %v2537_v1 = vld [vmem:[%s2736_s28 + $0x120] sm:$0xff]   ;;  %v2540_v2 = vld [vmem:[%s2736_s28 + $0x158] sm:$0xff]  }
  0x24   : > { %2274 = vmatpush3.bf16.msra.mxu1 %v2506_v16  ;;  %2253 = vmatprep.subr.bf16.mxu0 %v2507_v17  ;;  %v2535_v63 = vld [vmem:[%s2736_s28 + $0x1a8] sm:$0xff]   ;;  %v2539_v3 = vld [vmem:[%s2736_s28 + $0x1a0] sm:$0xff]   ;;  %v2542_v4 = vld [vmem:[%s2736_s28 + $0x1d8] sm:$0xff]  }
  0x25   : > { %2275 = vmatprep.subr.bf16.mxu1 %v2508_v18  ;;  %v549_v47 = vcombine.high %v2778_v44, %v2778_v44  ;;  %v570_v48 = vrot.slane %v548_v45, %v2774_v42  ;;  %v578_v51 = vcombine.high %v556_v46, %v556_v46  ;;  %v2541_v5 = vld [vmem:[%s2736_s28 + $0x118] sm:$0xff]   ;;  %v2544_v6 = vld [vmem:[%s2736_s28 + $0x150] sm:$0xff]   ;;  %v2548_v10 = vld [vmem:[%s2736_s28 + $0x148] sm:$0xff]   ;;  %v563_v18 = vrot.slane %v2778_v44, %v2774_v42 }
  0x26   : > { %v2543_v7 = vld [vmem:[%s2736_s28 + $0x198] sm:$0xff]   ;;  %v2546_v8 = vld [vmem:[%s2736_s28 + $0x1d0] sm:$0xff]   ;;  %v2550_v12 = vld [vmem:[%s2736_s28 + $0x1c8] sm:$0xff]  }
  0x27   : > { %2254 = vmatpush3.bf16.msra.mxu0 %v2509_v19  ;;  %v577_v50 = vrot.slane %v549_v47, %v2774_v42  ;;  %1567 = vmatprep.mubr.bf16.mxu0 %v570_v48  ;;  %v580_v53 = vcombine.high %v570_v48, %v570_v48  ;;  %v2545_v9 = vld [vmem:[%s2736_s28 + $0x110] sm:$0xff]   ;;  %v2549_v13 = vld [vmem:[%s2736_s28 + $0x108] sm:$0xff]   ;;  %v2552_v14 = vld [vmem:[%s2736_s28 + $0x140] sm:$0xff]  }
  0x28   : > { %2276 = vmatpush3.bf16.msra.mxu1 %v2510_v20  ;;  %2255 = vmatprep.subr.bf16.mxu0 %v2511_v21  ;;  %v2547_v11 = vld [vmem:[%s2736_s28 + $0x190] sm:$0xff]   ;;  %v2551_v15 = vld [vmem:[%s2736_s28 + $0x188] sm:$0xff]   ;;  %v2554_v16 = vld [vmem:[%s2736_s28 + $0x1c0] sm:$0xff]  }
  0x29   : > { %2277 = vmatprep.subr.bf16.mxu1 %v2512_v22  ;;  %v581_v56 = vcombine.high %v577_v50, %v577_v50  ;;  %1607 = vmatprep.mubr.bf16.mxu1 %v580_v53  ;;  %v2553_v17 = vld [vmem:[%s2736_s28 + $0x100] sm:$0xff]   ;;  %v2556_v19 = vld [vmem:[%s2736_s28 + $0x278] sm:$0xff]   ;;  %v2566_v30 = vld [vmem:[%s2736_s28 + $0x2e8] sm:$0xff]  }
  0x2a   : > { %v2555_v20 = vld [vmem:[%s2736_s28 + $0x180] sm:$0xff]   ;;  %v2558_v21 = vld [vmem:[%s2736_s28 + $0x2f8] sm:$0xff]   ;;  %v2576_v40 = vld [vmem:[%s2736_s28 + $0x250] sm:$0xff]  }
  0x2b   : > { %2256 = vmatpush3.bf16.msra.mxu0 %v2513_v23  ;;  %v2557_v22 = vld [vmem:[%s2736_s28 + $0x238] sm:$0xff]   ;;  %v579_v23 = vcombine.high %v563_v18, %v563_v18  ;;  %v2570_v34 = vld [vmem:[%s2736_s28 + $0x2e0] sm:$0xff]   ;;  %v2578_v43 = vld [vmem:[%s2736_s28 + $0x2d0] sm:$0xff]  }
  0x2c   : > { %2278 = vmatpush3.bf16.msra.mxu1 %v2514_v24  ;;  %2257 = vmatprep.subr.bf16.mxu0 %v2515_v25  ;;  %v2560_v24 = vld [vmem:[%s2736_s28 + $0x270] sm:$0xff]   ;;  %v2559_v25 = vld [vmem:[%s2736_s28 + $0x2b8] sm:$0xff]   ;;  %v2571_v37 = vld [vmem:[%s2736_s28 + $0x2a0] sm:$0xff]  }
  0x2d   : > { %2279 = vmatprep.subr.bf16.mxu1 %v2516_v26  ;;  %v2562_v26 = vld [vmem:[%s2736_s28 + $0x2f0] sm:$0xff]   ;;  %v2572_v36 = vld [vmem:[%s2736_s28 + $0x258] sm:$0xff]   ;;  %v240_v45 = vld [vmem:[%s2731_s24 + $0x8] sm:$0xff] }
  0x2e   : > { %v2574_v38 = vld [vmem:[%s2736_s28 + $0x2d8] sm:$0xff]   ;;  %v2577_v44 = vld [vmem:[%s2736_s28 + $0x210] sm:$0xff]   ;;  %v589_v47 = vrot.slane %v240_v45, %v2774_v42  ;;  %v582_v48 = vcombine.high %v240_v45, %v240_v45  ;;  %v2581_v53 = vld [vmem:[%s2736_s28 + $0x208] sm:$0xff]  }
  0x2f   : > { %2258 = vmatpush3.bf16.msra.mxu0 %v2517_v27  ;;  %v2561_v27 = vld [vmem:[%s2736_s28 + $0x230] sm:$0xff]   ;;  %v2573_v39 = vld [vmem:[%s2736_s28 + $0x218] sm:$0xff]   ;;  %v2627_v45 = vld [vmem:[%s2736_s28 + $0x460] sm:$0xff]  }
  0x30   : > { %2280 = vmatpush3.bf16.msra.mxu1 %v2518_v28  ;;  %2259 = vmatprep.subr.bf16.mxu0 %v2519_v29  ;;  %v2564_v28 = vld [vmem:[%s2736_s28 + $0x268] sm:$0xff]   ;;  %v2563_v29 = vld [vmem:[%s2736_s28 + $0x2b0] sm:$0xff]  }
  0x31   : > { %2281 = vmatprep.subr.bf16.mxu1 %v2520_v31  ;;  %v2565_v31 = vld [vmem:[%s2736_s28 + $0x228] sm:$0xff]  }
  0x33   : > { %2260 = vmatpush3.bf16.msra.mxu0 %v2521_v32  ;;  %v2568_v32 = vld [vmem:[%s2736_s28 + $0x260] sm:$0xff]  }
  0x34   : > { %2282 = vmatpush3.bf16.msra.mxu1 %v2522_v33  ;;  %2289 = vmatprep.subr.bf16.mxu0 %v2524_v35  ;;  %v2567_v33 = vld [vmem:[%s2736_s28 + $0x2a8] sm:$0xff]   ;;  %v2569_v35 = vld [vmem:[%s2736_s28 + $0x220] sm:$0xff]  }
  0x35   : > { %2311 = vmatprep.subr.bf16.mxu1 %v2526_v41  ;;  %v2575_v41 = vld [vmem:[%s2736_s28 + $0x298] sm:$0xff]  }
  0x36   : > { %1568 = vmatmul.mubr.bf16.vlgmr.msra.gmra.mxu0 %v556_v46  ;;  %v2580_v46 = vld [vmem:[%s2736_s28 + $0x248] sm:$0xff]  }
  0x37   : > { %2290 = vmatpush3.bf16.msra.mxu0 %v2525_v49  ;;  %1608 = vmatmul.mubr.bf16.vlgmr.msra.gmra.mxu1 %v578_v51  ;;  %v2579_v49 = vld [vmem:[%s2736_s28 + $0x290] sm:$0xff]   ;;  %v597_v51 = vcombine.high %v589_v47, %v589_v47 }
  0x38   : > { %2291 = vmatprep.subr.bf16.mxu0 %v2528_v52  ;;  %2312 = vmatpush3.bf16.msra.mxu1 %v2527_v54  ;;  %v2846_v52 = vrot.slane %v582_v48, %v2774_v42  ;;  %v2584_v54 = vld [vmem:[%s2736_s28 + $0x240] sm:$0xff]   ;;  %v2629_v48 = vld [vmem:[%s2736_s28 + $0x458] sm:$0xff]  }
  0x39   : > { %1647 = vmatprep.mubr.bf16.mxu0 %v577_v50  ;;  %2313 = vmatprep.subr.bf16.mxu1 %v2530_v55  ;;  %v2582_v50 = vld [vmem:[%s2736_s28 + $0x2c8] sm:$0xff]   ;;  %v619_v55 = vrot.slane %v597_v51, %v2774_v42  ;;  %v2632_v51 = vld [vmem:[%s2736_s28 + $0x410] sm:$0xff]  }
  0x3a   : > { %1687 = vmatprep.mubr.bf16.mxu1 %v581_v56  ;;  %v2583_v56 = vld [vmem:[%s2736_s28 + $0x288] sm:$0xff]  }
  0x3b   : > { %2292 = vmatpush3.bf16.msra.mxu0 %v2529_v57  ;;  %v598_v57 = vcombine.high %v2846_v52, %v2846_v52 }
  0x3c   : > { %2293 = vmatprep.subr.bf16.mxu0 %v2532_v58  ;;  %2314 = vmatpush3.bf16.msra.mxu1 %v2531_v59  ;;  %v2586_v58 = vld [vmem:[%s2736_s28 + $0x2c0] sm:$0xff]   ;;  %v629_v59 = vcombine.high %v619_v55, %v619_v55 }
  0x3d   : > { %2315 = vmatprep.subr.bf16.mxu1 %v2534_v60  ;;  %v2585_v60 = vld [vmem:[%s2736_s28 + $0x200] sm:$0xff]  }
  0x3f   : > { %2294 = vmatpush3.bf16.msra.mxu0 %v2533_v61  ;;  %v605_v61 = vrot.slane %v589_v47, %v2774_v42  ;;  %v2628_v47 = vld [vmem:[%s2736_s28 + $0x420] sm:$0xff]  }
  0x40   : > { %2295 = vmatprep.subr.bf16.mxu0 %v2536_v62  ;;  %2316 = vmatpush3.bf16.msra.mxu1 %v2535_v63  ;;  %v2588_v62 = vld [vmem:[%s2736_s28 + $0x378] sm:$0xff]   ;;  %v2587_v63 = vld [vmem:[%s2736_s28 + $0x280] sm:$0xff]  }
  0x41   : > { %2317 = vmatprep.subr.bf16.mxu1 %v2538_v0  ;;  %v626_v0 = vrot.slane %v598_v57, %v2774_v42 }
  0x43   : > { %2296 = vmatpush3.bf16.msra.mxu0 %v2537_v1  ;;  %v2590_v1 = vld [vmem:[%s2736_s28 + $0x3f8] sm:$0xff]  }
  0x44   : > { %2297 = vmatprep.subr.bf16.mxu0 %v2540_v2  ;;  %2318 = vmatpush3.bf16.msra.mxu1 %v2539_v3  ;;  %v2589_v2 = vld [vmem:[%s2736_s28 + $0x338] sm:$0xff]   ;;  %v627_v3 = vcombine.high %v605_v61, %v605_v61 }
  0x45   : > { %2319 = vmatprep.subr.bf16.mxu1 %v2542_v4  ;;  %v2592_v4 = vld [vmem:[%s2736_s28 + $0x370] sm:$0xff]  }
  0x47   : > { %2298 = vmatpush3.bf16.msra.mxu0 %v2541_v5  ;;  %v2591_v5 = vld [vmem:[%s2736_s28 + $0x3b8] sm:$0xff]  }
  0x48   : > { %2299 = vmatprep.subr.bf16.mxu0 %v2544_v6  ;;  %2320 = vmatpush3.bf16.msra.mxu1 %v2543_v7  ;;  %v630_v6 = vcombine.high %v626_v0, %v626_v0  ;;  %v2594_v7 = vld [vmem:[%s2736_s28 + $0x3f0] sm:$0xff]  }
  0x49   : > { %2321 = vmatprep.subr.bf16.mxu1 %v2546_v8  ;;  %v2593_v8 = vld [vmem:[%s2736_s28 + $0x330] sm:$0xff]  }
  0x4b   : > { %2300 = vmatpush3.bf16.msra.mxu0 %v2545_v9  ;;  %v2596_v9 = vld [vmem:[%s2736_s28 + $0x368] sm:$0xff]  }
  0x4c   : > { %2301 = vmatprep.subr.bf16.mxu0 %v2548_v10  ;;  %2322 = vmatpush3.bf16.msra.mxu1 %v2547_v11  ;;  %v2595_v10 = vld [vmem:[%s2736_s28 + $0x3b0] sm:$0xff]   ;;  %v2598_v11 = vld [vmem:[%s2736_s28 + $0x3e8] sm:$0xff]  }
  0x4d   : > { %2323 = vmatprep.subr.bf16.mxu1 %v2550_v12  ;;  %v2597_v12 = vld [vmem:[%s2736_s28 + $0x328] sm:$0xff]  }
  0x4f   : > { %2302 = vmatpush3.bf16.msra.mxu0 %v2549_v13  ;;  %v2600_v13 = vld [vmem:[%s2736_s28 + $0x360] sm:$0xff]  }
  0x50   : > { %2303 = vmatprep.subr.bf16.mxu0 %v2552_v14  ;;  %2324 = vmatpush3.bf16.msra.mxu1 %v2551_v15  ;;  %v2599_v14 = vld [vmem:[%s2736_s28 + $0x3a8] sm:$0xff]   ;;  %v2602_v15 = vld [vmem:[%s2736_s28 + $0x3e0] sm:$0xff]  }
  0x51   : > { %2325 = vmatprep.subr.bf16.mxu1 %v2554_v16  ;;  %v2601_v16 = vld [vmem:[%s2736_s28 + $0x320] sm:$0xff]  }
  0x53   : > { %2304 = vmatpush3.bf16.msra.mxu0 %v2553_v17  ;;  %v2604_v17 = vld [vmem:[%s2736_s28 + $0x358] sm:$0xff]  }
  0x54   : > { %2333 = vmatprep.subr.bf16.mxu0 %v2556_v19  ;;  %2326 = vmatpush3.bf16.msra.mxu1 %v2555_v20  ;;  %v2606_v19 = vld [vmem:[%s2736_s28 + $0x3d8] sm:$0xff]  }
  0x55   : > { %2355 = vmatprep.subr.bf16.mxu1 %v2558_v21  ;;  %v2605_v20 = vld [vmem:[%s2736_s28 + $0x318] sm:$0xff]   ;;  %v2608_v21 = vld [vmem:[%s2736_s28 + $0x350] sm:$0xff]  }
  0x56   : > { %1648 = vmatmul.mubr.bf16.vlgmr.msra.gmra.mxu0 %v563_v18  ;;  %v2603_v18 = vld [vmem:[%s2736_s28 + $0x3a0] sm:$0xff]  }
  0x57   : > { %2334 = vmatpush3.bf16.msra.mxu0 %v2557_v22  ;;  %1688 = vmatmul.mubr.bf16.vlgmr.msra.gmra.mxu1 %v579_v23  ;;  %v2607_v22 = vld [vmem:[%s2736_s28 + $0x398] sm:$0xff]   ;;  %v2610_v23 = vld [vmem:[%s2736_s28 + $0x3d0] sm:$0xff]  }
  0x58   : > { %2335 = vmatprep.subr.bf16.mxu0 %v2560_v24  ;;  %2356 = vmatpush3.bf16.msra.mxu1 %v2559_v25  ;;  %v2609_v24 = vld [vmem:[%s2736_s28 + $0x310] sm:$0xff]   ;;  %v2612_v25 = vld [vmem:[%s2736_s28 + $0x348] sm:$0xff]  }
  0x59   : > { %2357 = vmatprep.subr.bf16.mxu1 %v2562_v26  ;;  %1727 = vmatprep.mubr.bf16.mxu0 %v619_v55  ;;  %v2611_v26 = vld [vmem:[%s2736_s28 + $0x390] sm:$0xff]   ;;  %v2636_v55 = vld [vmem:[%s2736_s28 + $0x400] sm:$0xff]  }
  0x5a   : > { %1767 = vmatprep.mubr.bf16.mxu1 %v629_v59 }
  0x5b   : > { %2336 = vmatpush3.bf16.msra.mxu0 %v2561_v27  ;;  %v2614_v27 = vld [vmem:[%s2736_s28 + $0x3c8] sm:$0xff]  }
  0x5c   : > { %2337 = vmatprep.subr.bf16.mxu0 %v2564_v28  ;;  %2358 = vmatpush3.bf16.msra.mxu1 %v2563_v29  ;;  %v2613_v28 = vld [vmem:[%s2736_s28 + $0x308] sm:$0xff]   ;;  %v2616_v29 = vld [vmem:[%s2736_s28 + $0x340] sm:$0xff]  }
  0x5d   : > { %2359 = vmatprep.subr.bf16.mxu1 %v2566_v30  ;;  %v2615_v30 = vld [vmem:[%s2736_s28 + $0x388] sm:$0xff]  }
  0x5f   : > { %2338 = vmatpush3.bf16.msra.mxu0 %v2565_v31  ;;  %v2618_v31 = vld [vmem:[%s2736_s28 + $0x3c0] sm:$0xff]  }
  0x60   : > { %2339 = vmatprep.subr.bf16.mxu0 %v2568_v32  ;;  %2360 = vmatpush3.bf16.msra.mxu1 %v2567_v33  ;;  %v2617_v32 = vld [vmem:[%s2736_s28 + $0x300] sm:$0xff]   ;;  %v612_v33 = vrot.slane %v2846_v52, %v2774_v42  ;;  %v2633_v52 = vld [vmem:[%s2736_s28 + $0x448] sm:$0xff]  }
  0x61   : > { %2361 = vmatprep.subr.bf16.mxu1 %v2570_v34  ;;  %v2621_v34 = vld [vmem:[%s2736_s28 + $0x478] sm:$0xff]  }
  0x63   : > { %2340 = vmatpush3.bf16.msra.mxu0 %v2569_v35  ;;  %v2620_v35 = vld [vmem:[%s2736_s28 + $0x380] sm:$0xff]  }
  0x64   : > { %2341 = vmatprep.subr.bf16.mxu0 %v2572_v36  ;;  %2362 = vmatpush3.bf16.msra.mxu1 %v2571_v37  ;;  %v2622_v36 = vld [vmem:[%s2736_s28 + $0x438] sm:$0xff]   ;;  %v628_v37 = vcombine.high %v612_v33, %v612_v33 }
  0x65   : > { %2363 = vmatprep.subr.bf16.mxu1 %v2574_v38  ;;  %v2623_v38 = vld [vmem:[%s2736_s28 + $0x470] sm:$0xff]  }
  0x67   : > { %2342 = vmatpush3.bf16.msra.mxu0 %v2573_v39  ;;  %v2624_v39 = vld [vmem:[%s2736_s28 + $0x430] sm:$0xff]  }
  0x68   : > { %2343 = vmatprep.subr.bf16.mxu0 %v2576_v40  ;;  %2364 = vmatpush3.bf16.msra.mxu1 %v2575_v41  ;;  %v2625_v40 = vld [vmem:[%s2736_s28 + $0x468] sm:$0xff]   ;;  %v2085_v41 = vld.sshfl [vmem:[%s2731_s24 + $0x10] sm:$0x11 pattern:$0x75316420] }
  0x69   : > { %2365 = vmatprep.subr.bf16.mxu1 %v2578_v43  ;;  %v638_v43 = vcombine.high %v2085_v41, %v2085_v41 }
  0x6b   : > { %2344 = vmatpush3.bf16.msra.mxu0 %v2577_v44  ;;  %v2626_v44 = vld [vmem:[%s2736_s28 + $0x428] sm:$0xff]  }
  0x6c   : > { %2345 = vmatprep.subr.bf16.mxu0 %v2580_v46  ;;  %2366 = vmatpush3.bf16.msra.mxu1 %v2579_v49  ;;  %v652_v46 = vrot.slane %v638_v43, %v2774_v42  ;;  %v2630_v49 = vld [vmem:[%s2736_s28 + $0x418] sm:$0xff]   ;;  %v238_v43 = vld [vmem:[#allocation2] sm:$0x3] }
  0x6d   : > { %2367 = vmatprep.subr.bf16.mxu1 %v2582_v50  ;;  %v2631_v50 = vld [vmem:[%s2736_s28 + $0x450] sm:$0xff]  }
  0x6f   : > { %2346 = vmatpush3.bf16.msra.mxu0 %v2581_v53  ;;  %v2634_v53 = vld [vmem:[%s2736_s28 + $0x408] sm:$0xff]  }
  0x70   : > { %2347 = vmatprep.subr.bf16.mxu0 %v2584_v54  ;;  %2368 = vmatpush3.bf16.msra.mxu1 %v2583_v56  ;;  %v2635_v54 = vld [vmem:[%s2736_s28 + $0x440] sm:$0xff]   ;;  %v645_v56 = vrot.slane %v2085_v41, %v2774_v42 }
  0x71   : > { %2369 = vmatprep.subr.bf16.mxu1 %v2586_v58 }
  0x73   : > { %2348 = vmatpush3.bf16.msra.mxu0 %v2585_v60 }
  0x74   : > { %2377 = vmatprep.subr.bf16.mxu0 %v2588_v62  ;;  %2370 = vmatpush3.bf16.msra.mxu1 %v2587_v63 }
  0x75   : > { %2399 = vmatprep.subr.bf16.mxu1 %v2590_v1 }
  0x76   : > { %1728 = vmatmul.mubr.bf16.vlgmr.msra.gmra.mxu0 %v605_v61 }
  0x77   : > { %2378 = vmatpush3.bf16.msra.mxu0 %v2589_v2  ;;  %1807 = vmatprep.mubr.bf16.mxu0 %v626_v0 }
  0x78   : > { %1768 = vmatmul.mubr.bf16.vlgmr.msra.gmra.mxu1 %v627_v3  ;;  %2379 = vmatprep.subr.bf16.mxu0 %v2592_v4 }
  0x79   : > { %2400 = vmatpush3.bf16.msra.mxu1 %v2591_v5  ;;  %1847 = vmatprep.mubr.bf16.mxu1 %v630_v6 }
  0x7a   : > { %2401 = vmatprep.subr.bf16.mxu1 %v2594_v7 }
  0x7b   : > { %2380 = vmatpush3.bf16.msra.mxu0 %v2593_v8 }
  0x7c   : > { %2381 = vmatprep.subr.bf16.mxu0 %v2596_v9 }
  0x7d   : > { %2402 = vmatpush3.bf16.msra.mxu1 %v2595_v10 }
  0x7e   : > { %2403 = vmatprep.subr.bf16.mxu1 %v2598_v11 }
  0x7f   : > { %2382 = vmatpush3.bf16.msra.mxu0 %v2597_v12 }
  0x80   : > { %2383 = vmatprep.subr.bf16.mxu0 %v2600_v13 }
  0x81   : > { %2404 = vmatpush3.bf16.msra.mxu1 %v2599_v14 }
  0x82   : > { %2405 = vmatprep.subr.bf16.mxu1 %v2602_v15 }
  0x83   : > { %2384 = vmatpush3.bf16.msra.mxu0 %v2601_v16 }
  0x84   : > { %2385 = vmatprep.subr.bf16.mxu0 %v2604_v17 }
  0x85   : > { %2406 = vmatpush3.bf16.msra.mxu1 %v2603_v18 }
  0x86   : > { %2407 = vmatprep.subr.bf16.mxu1 %v2606_v19 }
  0x87   : > { %2386 = vmatpush3.bf16.msra.mxu0 %v2605_v20 }
  0x88   : > { %2387 = vmatprep.subr.bf16.mxu0 %v2608_v21 }
  0x89   : > { %2408 = vmatpush3.bf16.msra.mxu1 %v2607_v22 }
  0x8a   : > { %2409 = vmatprep.subr.bf16.mxu1 %v2610_v23 }
  0x8b   : > { %2388 = vmatpush3.bf16.msra.mxu0 %v2609_v24 }
  0x8c   : > { %2389 = vmatprep.subr.bf16.mxu0 %v2612_v25 }
  0x8d   : > { %2410 = vmatpush3.bf16.msra.mxu1 %v2611_v26 }
  0x8e   : > { %2411 = vmatprep.subr.bf16.mxu1 %v2614_v27 }
  0x8f   : > { %2390 = vmatpush3.bf16.msra.mxu0 %v2613_v28 }
  0x90   : > { %2391 = vmatprep.subr.bf16.mxu0 %v2616_v29 }
  0x91   : > { %2412 = vmatpush3.bf16.msra.mxu1 %v2615_v30 }
  0x92   : > { %2413 = vmatprep.subr.bf16.mxu1 %v2618_v31 }
  0x93   : > { %2392 = vmatpush3.bf16.msra.mxu0 %v2617_v32 }
  0x94   : > { %2421 = vmatprep.subr.bf16.mxu0 %v2621_v34 }
  0x95   : > { %2414 = vmatpush3.bf16.msra.mxu1 %v2620_v35 }
  0x96   : > { %1808 = vmatmul.mubr.bf16.vlgmr.msra.gmra.mxu0 %v612_v33 }
  0x97   : > { %2422 = vmatpush3.bf16.msra.mxu0 %v2622_v36  ;;  %1887 = vmatprep.mubr.bf16.mxu0 %v652_v46 }
  0x98   : > { %1848 = vmatmul.mubr.bf16.vlgmr.msra.gmra.mxu1 %v628_v37  ;;  %2423 = vmatprep.subr.bf16.mxu0 %v2623_v38 }
  0x9b   : > { %2424 = vmatpush3.bf16.msra.mxu0 %v2624_v39 }
  0x9c   : > { %2425 = vmatprep.subr.bf16.mxu0 %v2625_v40 }
  0x9f   : > { %2426 = vmatpush3.bf16.msra.mxu0 %v2626_v44 }
  0xa0   : > { %2427 = vmatprep.subr.bf16.mxu0 %v2627_v45 }
  0xa3   : > { %2428 = vmatpush3.bf16.msra.mxu0 %v2628_v47 }
  0xa4   : > { %2429 = vmatprep.subr.bf16.mxu0 %v2629_v48 }
  0xa7   : > { %2430 = vmatpush3.bf16.msra.mxu0 %v2630_v49 }
  0xa8   : > { %2431 = vmatprep.subr.bf16.mxu0 %v2631_v50 }
  0xab   : > { %2432 = vmatpush3.bf16.msra.mxu0 %v2632_v51 }
  0xac   : > { %2433 = vmatprep.subr.bf16.mxu0 %v2633_v52 }
  0xaf   : > { %2434 = vmatpush3.bf16.msra.mxu0 %v2634_v53 }
  0xb0   : > { %2435 = vmatprep.subr.bf16.mxu0 %v2635_v54 }
  0xb3   : > { %2436 = vmatpush3.bf16.msra.mxu0 %v2636_v55 }
  0xb6   : > { %1888 = vmatmul.mubr.bf16.vlgmr.msra.gmra.mxu0 %v645_v56 }
  0xf6   : > { %v2261_v57 = vpop.f32.mrf.mxu0 }
  0xf7   : > { %v2283_v58 = vpop.f32.mrf.mxu1 }
  0xf8   : > { %v2262_v59 = vpop.f32.mrf.mxu0 }
  0xf9   : > { %v2263_v60 = vadd.f32 %v2262_v59, %v2261_v57  ;;  %v2284_v61 = vpop.f32.mrf.mxu1 }
  0xfa   : > { %v2264_v62 = vpop.f32.mrf.mxu0  ;;  %v2285_v63 = vadd.f32 %v2284_v61, %v2283_v58 }
  0xfb   : > { %v2286_v1 = vpop.f32.mrf.mxu1 }
  0xfc   : > { %v2265_v0 = vpop.f32.mrf.mxu0  ;;  %v1610_v2 = vadd.f32 %v2285_v63, %v2263_v60 }
  0xfd   : > { %v2287_v3 = vpop.f32.mrf.mxu1 }
 0x116   : > { %v2305_v4 = vpop.f32.mrf.mxu0 }
 0x117   : > { %v2327_v6 = vpop.f32.mrf.mxu1 }
 0x118   : > { %v2306_v5 = vpop.f32.mrf.mxu0 }
 0x119   : > { %v2307_v7 = vadd.f32 %v2306_v5, %v2305_v4  ;;  %v2328_v9 = vpop.f32.mrf.mxu1 }
 0x11a   : > { %v2308_v8 = vpop.f32.mrf.mxu0  ;;  %v2329_v10 = vadd.f32 %v2328_v9, %v2327_v6 }
 0x11b   : > { %v1650_v42 = vadd.f32 %v2307_v7, %v1610_v2  ;;  %v2330_v12 = vpop.f32.mrf.mxu1 }
 0x11c   : > { %v2309_v11 = vpop.f32.mrf.mxu0 }
 0x11d   : > { %v1690_v13 = vadd.f32 %v2329_v10, %v1650_v42  ;;  %v2331_v14 = vpop.f32.mrf.mxu1 }
 0x136   : > { %v2349_v15 = vpop.f32.mrf.mxu0 }
 0x138   : > { %v2350_v16 = vpop.f32.mrf.mxu0  ;;  %v2371_v17 = vpop.f32.mrf.mxu1 }
 0x139   : > { %v2351_v31 = vadd.f32 %v2350_v16, %v2349_v15 }
 0x13a   : > { %v2352_v18 = vpop.f32.mrf.mxu0  ;;  %v2372_v19 = vpop.f32.mrf.mxu1 }
 0x13b   : > { %v1730_v32 = vadd.f32 %v2351_v31, %v1690_v13  ;;  %v2373_v33 = vadd.f32 %v2372_v19, %v2371_v17 }
 0x13c   : > { %v2353_v20 = vpop.f32.mrf.mxu0  ;;  %v2374_v21 = vpop.f32.mrf.mxu1 }
 0x13d   : > { %v1770_v35 = vadd.f32 %v2373_v33, %v1730_v32 }
 0x13e   : > { %v2375_v22 = vpop.f32.mrf.mxu1 }
 0x156   : > { %v2393_v23 = vpop.f32.mrf.mxu0 }
 0x158   : > { %v2394_v24 = vpop.f32.mrf.mxu0  ;;  %v2415_v25 = vpop.f32.mrf.mxu1 }
 0x159   : > { %v2395_v34 = vadd.f32 %v2394_v24, %v2393_v23 }
 0x15a   : > { %v2396_v26 = vpop.f32.mrf.mxu0  ;;  %v2416_v27 = vpop.f32.mrf.mxu1 }
 0x15b   : > { %v1810_v36 = vadd.f32 %v2395_v34, %v1770_v35  ;;  %v2417_v37 = vadd.f32 %v2416_v27, %v2415_v25 }
 0x15c   : > { %v2397_v28 = vpop.f32.mrf.mxu0  ;;  %v2418_v29 = vpop.f32.mrf.mxu1 }
 0x15d   : > { %v1850_v40 = vadd.f32 %v2417_v37, %v1810_v36 }
 0x15e   : > { %v2419_v30 = vpop.f32.mrf.mxu1 }
 0x176   : > { %v2437_v38 = vpop.f32.mrf.mxu0 }
 0x178   : > { %v2438_v39 = vpop.f32.mrf.mxu0 }
 0x179   : > { %v2439_v41 = vadd.f32 %v2438_v39, %v2437_v38 }
 0x17a   : > { %v2440_v44 = vpop.f32.mrf.mxu0 }
 0x17b   : > { %v1890_v45 = vadd.f32 %v2439_v41, %v1850_v40  ;;  %1900 = sbr.rel (%p2230_p6) target bundleno = 616 (0x268), region = 48 }
 0x17c   : > { %v2441_v46 = vpop.f32.mrf.mxu0 }
 0x17d   : > { %v1895_v47 = vadd.f32 %v1890_v45, %v238_v43 }
 0x17f   : > { %1896 = vst [vmem:[#allocation2] sm:$0x3] %v1895_v47 }
 0x180   : > { %v2637_v48 = vld [vmem:[%s2961_s3 + $0x38] sm:$0xff]   ;;  %v2683_v49 = vmov 0.0   ;;  %v2638_v50 = vld [vmem:[%s2961_s3 + $0x30] sm:$0xff]   ;;  %vm2684_vm0 = vmmov 0   ;;  %v2639_v51 = vld [vmem:[%s2961_s3 + $0x28] sm:$0xff]  }
 0x181   : > { %2452 = vmatprep.subr.bf16.mxu0 %v2683_v49  ;;  %2468 = vmatprep.mubr.msk.bf16.mxu0 %vm2684_vm0, %v2683_v49  ;;  %v2640_v52 = vld [vmem:[%s2961_s3 + $0x20] sm:$0xff]   ;;  %v2641_v53 = vld [vmem:[%s2961_s3 + $0x18] sm:$0xff]   ;;  %v2642_v54 = vld [vmem:[%s2961_s3 + $0x10] sm:$0xff]  }
 0x182   : > { %2453 = vmatpush3.bf16.msra.mxu0 %v2637_v48  ;;  %v2231_v56 = vld [vmem:[%s2960_s2] ss:$0 sm:$0xff]  ;;  %v2643_v58 = vld [vmem:[%s2961_s3 + $0x8] sm:$0xff]  }
 0x183   : > { %2454 = vmatprep.subr.bf16.mxu0 %v2683_v49  ;;  %v2644_v60 = vld [vmem:[%s2961_s3] sm:$0xff]  }
 0x184   : > { %v2232_v62 = vld [vmem:[%s2962_s4] ss:$0 sm:$0xff] }
 0x186   : > { %2455 = vmatpush3.bf16.msra.mxu0 %v2638_v50  ;;  %v1901_v55 = vld [vmem:[#allocation2] sm:$0x3] }
 0x187   : > { %2456 = vmatprep.subr.bf16.mxu0 %v2683_v49  ;;  %v1909_v57 = vadd.f32 %v2231_v56, %v1901_v55 }
 0x189   : > { %v1910_v59 = vmax.f32 %v1909_v57, 0.0 }
 0x18a   : > { %2457 = vmatpush3.bf16.msra.mxu0 %v2639_v51 }
 0x18b   : > { %2458 = vmatprep.subr.bf16.mxu0 %v2683_v49  ;;  %v1911_v61 = vpack.c.bf16 %v1910_v59, %v1910_v59 }
 0x18e   : > { %2459 = vmatpush3.bf16.msra.mxu0 %v2640_v52 }
 0x18f   : > { %2460 = vmatprep.subr.bf16.mxu0 %v2683_v49 }
 0x192   : > { %2461 = vmatpush3.bf16.msra.mxu0 %v2641_v53 }
 0x193   : > { %2462 = vmatprep.subr.bf16.mxu0 %v2683_v49 }
 0x196   : > { %2463 = vmatpush3.bf16.msra.mxu0 %v2642_v54 }
 0x197   : > { %2464 = vmatprep.subr.bf16.mxu0 %v2683_v49 }
 0x19a   : > { %2465 = vmatpush3.bf16.msra.mxu0 %v2643_v58 }
 0x19b   : > { %2466 = vmatprep.subr.bf16.mxu0 %v2683_v49 }
 0x19e   : > { %2467 = vmatpush3.bf16.msra.mxu0 %v2644_v60 }
 0x1a1   : > { %2469 = vmatmul.mubr.bf16.vlgmr.msra.gmra.mxu0 %v1911_v61 }
 0x261   : > { %v2017_v63 = vpop.f32.mrf.mxu0 }
 0x262   : > { %v2018_v0 = vadd.f32 %v2232_v62, %v2017_v63 }
 0x263   : > { %v2470_v1 = vpop.f32.mrf.mxu0 }
 0x264   : > { %2023 = vst [vmem:[#allocation3] sm:$0x3] %v2018_v0 }
 0x265   : > { %v2020_v2 = vpop.f32.mrf.mxu0 }
 0x267   : > { %v2471_v3 = vpop.f32.mrf.mxu0 }
 0x268 PF: > { %p2476_p7 = scmp.eq.s32.totalorder %s2722_s19, 3  ;;  %s2685_s26 = smov [#allocation3]  }
 0x269   : > { %s2031_s27 = sshll.u32 %s2685_s26, 4  ;;  %s2032_s27 = int_to_ptr.vmem [resolvable:$true] %s2031_s27 }
 0x26a   : > { %s2645_s28 = scalar_lea.vmem %s2032_s27, 32  ;;  %p2652_p11 = scmp.lt.s32.totalorder %s2032_s27, %s2032_s27 }
 0x26b   : > { %p2646_p8 = scmp.ne.s32.totalorder %s2032_s27, %s2645_s28  ;;  %p2653_p12 = scmp.lt.s32.totalorder %s2645_s28, %s2645_s28 }
 0x26d   : > { %p2647_p9 = pnand %p2646_p8, %p2476_p7  ;;  %p2654_p13 = por %p2653_p12, %p2652_p11 }
 0x26f   : > { %p2648_p10 = pneg %p2647_p9 }
 0x271   : > { %p2655_p0 = pnand %p2654_p13, %p2648_p10 }
 0x273   : > { %2658 = shalt.err (!%p2655_p0)
}
 0x274   : > { %2473 = dma.vmem_to_hbm [thread:$0]  (%p2476_p7), %s2032_s27, 32, %s2963_s5, [#allocation4]  }
 0x275   : > { %2674 = dma.done.wait (%p2476_p7), [#allocation4], 32  }
 0x276   : > { %2676 = vsyncadd (%p2476_p7), [#allocation4], 4294967264 }
 0x277 PF: > { %s16_s18 = sadd.s32 1, %s2679_s18  }
 0x278   : > { %p13_p1 = scmp.ge.s32.totalorder %s16_s18, 6  }
 0x27a   :  { %15 = sbr.rel (!%p13_p1) target bundleno = 1 (0x1), region = 78 }
 0x27f   :  { %2044 = vsyncpa [#allocation4], 1 }
 0x280   :  { %2046 = vsyncpa [#allocation4 + $0x1], 1 }

// kernel: classifier_forward.2
= control target key start
LH: loop header
LB: loop body
LE: loop exit
PB: predicated region body
PF: predicated region fallthrough
CT: control target
= control target key end

     0   :  { %10 = vsyncpa [#allocation4], 0  ;;  %s13598_s0 = inlined_call_operand.vmem [shape: bf16[1664,9], index: 0, kind: input, shape index: {}]   ;;  %s13599_s1 = inlined_call_operand.vmem [shape: bf16[9,32], index: 1, kind: input, shape index: {}]   ;;  %s13600_s2 = inlined_call_operand.hbm [shape: f32[1,32], index: 2, kind: input, shape index: {}]   ;;  %s13601_s3 = inlined_call_operand.vmem [shape: bf16[9,32,64], index: 3, kind: input, shape index: {}]   ;;  %s13602_s4 = inlined_call_operand.hbm [shape: f32[1,64], index: 4, kind: input, shape index: {}]   ;;  %s13603_s5 = inlined_call_operand.vmem [shape: bf16[288,64], index: 5, kind: output, shape index: {}]  }
   0x1   :  { %11 = vsyncpa [#allocation6], 0  ;;  %s9095_s18 = smov 0  }
   0x2 LB: > { %s9101_s19 = sadd.s32 4294967295, %s9060_s18   ;;  %p7163_p0 = scmp.ge.s32.totalorder %s9060_s18, 1  ;;  %s9060_s18 = sphi %s9095_s18, %s17_s18  }
   0x3   : > { %p158_p1 = scmp.lt.s32.totalorder %s9060_s18, 3  ;;  %p13604_p2 = scmp.eq.s32.totalorder %s9101_s19, 0 }
   0x4   : > { %s9062_s21 = smov [#allocation3]   ;;  %s9063_s23 = smov [#allocation5]  }
   0x5   : > { %p9106_p3 = pnand %p7163_p0, %p158_p1  ;;  %s174_s22 = sshll.u32 %s9062_s21, 4  ;;  %s175_s22 = int_to_ptr.vmem [resolvable:$true] %s174_s22 }
   0x6   : > { %s188_s24 = sshll.u32 %s9063_s23, 4  ;;  %s9005_s26 = scalar_lea.vmem %s175_s22, 16  ;;  %s189_s24 = int_to_ptr.vmem [resolvable:$true] %s188_s24 }
   0x7   : > { %p8898_p4 = pneg %p9106_p3  ;;  %p9006_p7 = scmp.ne.s32.totalorder %s175_s22, %s9005_s26 }
   0x8   : > { %s9012_s27 = scalar_lea.vmem %s175_s22, 32  ;;  %p9013_p10 = scmp.lt.s32.totalorder %s175_s22, %s175_s22 }
   0x9   : > { %p9114_p5 = pnand %p13604_p2, %p8898_p4  ;;  %p9014_p11 = scmp.lt.s32.totalorder %s9012_s27, %s9005_s26 }
   0xb   : > { %p8996_p6 = pneg %p9114_p5  ;;  %p9015_p12 = por %p9014_p11, %p9013_p10 }
   0xd   : > { %p9008_p8 = pnand %p9006_p7, %p8996_p6 }
   0xf   : > { %p9009_p9 = pneg %p9008_p8 }
  0x11   : > { %p9016_p13 = pnand %p9015_p12, %p9009_p9 }
  0x13   : > { %9019 = shalt.err (!%p9016_p13)
}
  0x14   : > { %8901 = dma.hbm_to_vmem [thread:$0]  (!%p9114_p5), %s13600_s2, 16, %s175_s22, [#allocation4]  }
  0x15   : > { %s9031_s30 = scalar_lea.vmem %s189_s24, 16  ;;  %s9038_s6 = scalar_lea.vmem %s189_s24, 32 }
  0x16   : > { %p9032_p0 = scmp.ne.s32.totalorder %s189_s24, %s9031_s30  ;;  %p9039_p7 = scmp.lt.s32.totalorder %s189_s24, %s189_s24 }
  0x17   : > { %p9040_p8 = scmp.lt.s32.totalorder %s9038_s6, %s9031_s30 }
  0x18   : > { %p9034_p1 = pnand %p9032_p0, %p8996_p6 }
  0x19   : > { %p9041_p2 = por %p9040_p8, %p9039_p7 }
  0x1a   : > { %p9035_p4 = pneg %p9034_p1 }
  0x1c   : > { %p9042_p10 = pnand %p9041_p2, %p9035_p4 }
  0x1e   : > { %9045 = shalt.err (!%p9042_p10)
}
  0x1f   : > { %8904 = dma.hbm_to_vmem [thread:$0]  (!%p9114_p5), %s13602_s4, 16, %s189_s24, [#allocation6]  }
  0x20   : > { %210 = sbr.rel (%p9106_p3) target bundleno = 1251 (0x4e3), region = 40 }
  0x25   : > { %p13958_p9 = scmp.eq.s32.totalorder %s9101_s19, 0 }
  0x27   : > { %9051 = dma.done.wait (%p13958_p9), [#allocation4], 16   ;;  %p13959_p6 = pmov %p13958_p9 }
  0x29   : > { %9053 = vsyncadd (%p13959_p6), [#allocation4], 4294967280  ;;  %p13960_p11 = pmov %p13959_p6 }
  0x2a   : > { %p13961_p2 = pmov %p13959_p6 }
  0x2b   : > { %9055 = dma.done.wait (%p13960_p11), [#allocation6], 16  }
  0x2c   : > { %9057 = vsyncadd (%p13961_p2), [#allocation6], 4294967280  ;;  %vm790_vm0 = vcmask 1043456   ;;  %s242_s9 = smul.u32 104, %s9101_s19  ;;  %vm791_vm1 = vcmask 1044480   ;;  %v9064_v0 = vmov 65535  }
  0x2d   : > { %v792_v1 = vsel %vm790_vm0, 4294967295, %v9064_v0  ;;  %vm633_vm2 = vcmask 72704   ;;  %v8920_v3 = vld [vmem:[%s13599_s1] sm:$0x1f]   ;;  %v8973_v36 = vld [vmem:[%s13601_s3 + $0x18] sm:$0xff]   ;;  %v8974_v37 = vld [vmem:[%s13601_s3 + $0x28] sm:$0xff]  }
  0x2e   : > { %p243_p12 = scmp.lt.s32.totalorder %s242_s9, 207  ;;  %v793_v2 = vsel %vm791_vm1, %v792_v1, 0  ;;  %v8975_v39 = vld [vmem:[%s13601_s3 + $0x10] sm:$0xff]   ;;  %v8976_v40 = vld [vmem:[%s13601_s3 + $0x20] sm:$0xff]   ;;  %v9258_v53 = vld [vmem:[%s13601_s3 + $0x8] sm:$0xff]   ;;  %vm1486_vm3 = vcmask 1046528  }
  0x2f   : > { %v795_v5 = vand.u32 %v8920_v3, %v793_v2  ;;  %v9278_v63 = vld [vmem:[#allocation3] ss:$0 sm:$0xff]  ;;  %vm2651_vm4 = vcmask 1045504   ;;  %vm1780_vm5 = vcmask 261120   ;;  %vm6573_vm6 = vcmask 523264   ;;  %s248_s8 = smul.u32 18, %s9101_s19 }
  0x30   : > { %s15458_s9 = smov (!%p243_p12, %s242_s9), 207  ;;  %vm6842_vm7 = vcmask 519168   ;;  %vm6844_vm8 = vcmask 517120   ;;  %vm6861_vm9 = vcmask 1041408   ;;  %vm6862_vm10 = vcmask 1045508  }
  0x31   : > { %s7170_s10 = sshll.u32 %s15458_s9, 2  ;;  %8098 = vmatprep.subr.bf16.mxu0 %v795_v5  ;;  %8888 = vmatprep.subr.bf16.mxu1 %v795_v5  ;;  %p13149_p3 = scmp.lt.s32.totalorder %s248_s8, 35  ;;  %vm6870_vm11 = vcmask 519170   ;;  %vm13249_vm12 = vmor %vm6861_vm9, %vm6862_vm10 }
  0x32   : > { %s9154_s15 = scalar_lea.vmem %s13598_s0, %s7170_s10  ;;  %8099 = vmatpush3.bf16.msra.mxu0 %v795_v5  ;;  %8889 = vmatpush3.bf16.msra.mxu1 %v795_v5 }
  0x33   : > { %v8921_v4 = vld [vmem:[%s9154_s15] sm:$0xff]   ;;  %v8922_v6 = vld [vmem:[%s9154_s15 + $0x8] sm:$0xff]   ;;  %v8923_v7 = vld [vmem:[%s9154_s15 + $0x10] sm:$0xff]   ;;  %8204 = vmatprep.subr.bf16.mxu1 %v8973_v36  ;;  %8356 = vmatprep.subr.bf16.mxu0 %v8974_v37  ;;  %s15460_s8 = smov (!%p13149_p3, %s248_s8), 35 }
  0x34   : > { %8100 = vmatprep.mubr.msk.bf16.mxu0 %vm633_vm2, %v8921_v4  ;;  %v8924_v8 = vld [vmem:[%s9154_s15 + $0x18] sm:$0xff]   ;;  %v8925_v9 = vld [vmem:[%s9154_s15 + $0x20] sm:$0xff]   ;;  %v8926_v10 = vld [vmem:[%s9154_s15 + $0x28] sm:$0xff]   ;;  %s7171_s19 = sshll.u32 %s15460_s8, 2 }
  0x35   : > { %8101 = vmatmul.mubr.msk.bf16.vlgmr.msra.gmra.mxu0 %vm633_vm2, %v8922_v6  ;;  %v8927_v11 = vld [vmem:[%s9154_s15 + $0x30] sm:$0xff]   ;;  %v8928_v12 = vld [vmem:[%s9154_s15 + $0x38] sm:$0xff]   ;;  %v8929_v13 = vld [vmem:[%s9154_s15 + $0x40] sm:$0xff]   ;;  %s13197_s12 = scalar_lea.vmem %s13603_s5, %s7171_s19 }
  0x36   : > { %8104 = vmatprep.mubr.msk.bf16.mxu0 %vm633_vm2, %v8923_v7  ;;  %v8930_v14 = vld [vmem:[%s9154_s15 + $0x48] sm:$0xff]   ;;  %v8931_v15 = vld [vmem:[%s9154_s15 + $0x50] sm:$0xff]   ;;  %v8932_v16 = vld [vmem:[%s9154_s15 + $0x58] sm:$0xff]   ;;  %8357 = vmatpush3.bf16.msra.mxu0 %v8974_v37 }
  0x37   : > { %v8963_v17 = vld [vmem:[%s9154_s15 + $0x160] sm:$0xff]   ;;  %v8964_v18 = vld [vmem:[%s9154_s15 + $0x168] sm:$0xff]   ;;  %v8967_v20 = vld [vmem:[%s9154_s15 + $0x170] sm:$0xff]   ;;  %8358 = vmatprep.subr.bf16.mxu0 %v8976_v40 }
  0x38   : > { %v8933_v19 = vld [vmem:[%s9154_s15 + $0x60] sm:$0xff]   ;;  %8188 = vmatprep.mubr.msk.bf16.mxu1 %vm633_vm2, %v8963_v17  ;;  %v8968_v21 = vld [vmem:[%s9154_s15 + $0x178] sm:$0xff]   ;;  %v8934_v22 = vld [vmem:[%s9154_s15 + $0x68] sm:$0xff]  }
  0x39   : > { %8189 = vmatmul.mubr.msk.bf16.vlgmr.msra.gmra.mxu1 %vm633_vm2, %v8964_v18  ;;  %v8969_v23 = vld [vmem:[%s9154_s15 + $0x180] sm:$0xff]   ;;  %v8935_v24 = vld [vmem:[%s9154_s15 + $0x70] sm:$0xff]   ;;  %v8970_v25 = vld [vmem:[%s9154_s15 + $0x188] sm:$0xff]  }
  0x3a   : > { %8192 = vmatprep.mubr.msk.bf16.mxu1 %vm633_vm2, %v8967_v20  ;;  %v8936_v26 = vld [vmem:[%s9154_s15 + $0x78] sm:$0xff]   ;;  %v8937_v27 = vld [vmem:[%s9154_s15 + $0x80] sm:$0xff]   ;;  %v8938_v28 = vld [vmem:[%s9154_s15 + $0x88] sm:$0xff]   ;;  %8205 = vmatpush3.bf16.msra.mxu1 %v8973_v36 }
  0x3b   : > { %v8939_v29 = vld [vmem:[%s9154_s15 + $0x90] sm:$0xff]   ;;  %v8940_v30 = vld [vmem:[%s9154_s15 + $0x98] sm:$0xff]   ;;  %v8941_v31 = vld [vmem:[%s9154_s15 + $0xa0] sm:$0xff]   ;;  %8206 = vmatprep.subr.bf16.mxu1 %v8975_v39  ;;  %8359 = vmatpush3.bf16.msra.mxu0 %v8976_v40 }
  0x3c   : > { %v8942_v32 = vld [vmem:[%s9154_s15 + $0xa8] sm:$0xff]   ;;  %v8943_v33 = vld [vmem:[%s9154_s15 + $0xb0] sm:$0xff]   ;;  %v8972_v35 = vld [vmem:[%s9154_s15 + $0x198] sm:$0xff]  }
  0x3d   : > { %8105 = vmatmul.mubr.msk.bf16.gmra.mxu0 %vm633_vm2, %v8924_v8  ;;  %v8971_v34 = vld [vmem:[%s9154_s15 + $0x190] sm:$0xff]   ;;  %v8944_v38 = vld [vmem:[%s9154_s15 + $0xb8] sm:$0xff]   ;;  %v8945_v41 = vld [vmem:[%s9154_s15 + $0xc0] sm:$0xff]  }
  0x3e   : > { %8108 = vmatprep.mubr.msk.bf16.mxu0 %vm633_vm2, %v8925_v9  ;;  %8207 = vmatpush3.bf16.msra.mxu1 %v8975_v39  ;;  %v8946_v42 = vld [vmem:[%s9154_s15 + $0xc8] sm:$0xff]   ;;  %v8947_v43 = vld [vmem:[%s9154_s15 + $0xd0] sm:$0xff]   ;;  %v8948_v44 = vld [vmem:[%s9154_s15 + $0xd8] sm:$0xff]  }
  0x3f   : > { %v8949_v45 = vld [vmem:[%s9154_s15 + $0xe0] sm:$0xff]   ;;  %v8950_v46 = vld [vmem:[%s9154_s15 + $0xe8] sm:$0xff]   ;;  %v8951_v47 = vld [vmem:[%s9154_s15 + $0xf0] sm:$0xff]   ;;  %8280 = vmatprep.subr.bf16.mxu1 %v9258_v53 }
  0x40   : > { %v8952_v48 = vld [vmem:[%s9154_s15 + $0xf8] sm:$0xff]   ;;  %v8953_v49 = vld [vmem:[%s9154_s15 + $0x100] sm:$0xff]   ;;  %v8954_v50 = vld [vmem:[%s9154_s15 + $0x108] sm:$0xff]  }
  0x41   : > { %8193 = vmatmul.mubr.msk.bf16.gmra.mxu1 %vm633_vm2, %v8968_v21  ;;  %v8955_v51 = vld [vmem:[%s9154_s15 + $0x110] sm:$0xff]   ;;  %v8956_v52 = vld [vmem:[%s9154_s15 + $0x118] sm:$0xff]   ;;  %v8957_v54 = vld [vmem:[%s9154_s15 + $0x120] sm:$0xff]  }
  0x42   : > { %8196 = vmatprep.mubr.msk.bf16.mxu1 %vm633_vm2, %v8969_v23  ;;  %v8958_v55 = vld [vmem:[%s9154_s15 + $0x128] sm:$0xff]   ;;  %v8959_v56 = vld [vmem:[%s9154_s15 + $0x130] sm:$0xff]   ;;  %v8960_v57 = vld [vmem:[%s9154_s15 + $0x138] sm:$0xff]  }
  0x43   : > { %v8961_v58 = vld [vmem:[%s9154_s15 + $0x140] sm:$0xff]   ;;  %v8962_v59 = vld [vmem:[%s9154_s15 + $0x148] sm:$0xff]   ;;  %v8965_v60 = vld [vmem:[%s9154_s15 + $0x150] sm:$0xff]  }
  0x44   : > { %v8966_v61 = vld [vmem:[%s9154_s15 + $0x158] sm:$0xff]  }
  0x45   : > { %8109 = vmatmul.mubr.msk.bf16.gmra.mxu0 %vm633_vm2, %v8926_v10 }
  0x46   : > { %8112 = vmatprep.mubr.msk.bf16.mxu0 %vm633_vm2, %v8927_v11 }
  0x49   : > { %8197 = vmatmul.mubr.msk.bf16.gmra.mxu1 %vm633_vm2, %v8970_v25 }
  0x4a   : > { %8200 = vmatprep.mubr.msk.bf16.mxu1 %vm633_vm2, %v8971_v34 }
  0x4d   : > { %8113 = vmatmul.mubr.msk.bf16.gmra.mxu0 %vm633_vm2, %v8928_v12 }
  0x4e   : > { %8116 = vmatprep.mubr.msk.bf16.mxu0 %vm633_vm2, %v8929_v13 }
  0x51   : > { %8201 = vmatmul.mubr.msk.bf16.gmra.mxu1 %vm633_vm2, %v8972_v35 }
  0x55   : > { %8117 = vmatmul.mubr.msk.bf16.gmra.mxu0 %vm633_vm2, %v8930_v14 }
  0x56   : > { %8120 = vmatprep.mubr.msk.bf16.mxu0 %vm633_vm2, %v8931_v15 }
  0x5d   : > { %8121 = vmatmul.mubr.msk.bf16.gmra.mxu0 %vm633_vm2, %v8932_v16 }
  0x5e   : > { %8124 = vmatprep.mubr.msk.bf16.mxu0 %vm633_vm2, %v8933_v19 }
  0x65   : > { %8125 = vmatmul.mubr.msk.bf16.gmra.mxu0 %vm633_vm2, %v8934_v22 }
  0x66   : > { %8128 = vmatprep.mubr.msk.bf16.mxu0 %vm633_vm2, %v8935_v24 }
  0x6d   : > { %8129 = vmatmul.mubr.msk.bf16.gmra.mxu0 %vm633_vm2, %v8936_v26 }
  0x6e   : > { %8132 = vmatprep.mubr.msk.bf16.mxu0 %vm633_vm2, %v8937_v27 }
  0x75   : > { %8133 = vmatmul.mubr.msk.bf16.gmra.mxu0 %vm633_vm2, %v8938_v28 }
  0x76   : > { %8136 = vmatprep.mubr.msk.bf16.mxu0 %vm633_vm2, %v8939_v29 }
  0x7d   : > { %8137 = vmatmul.mubr.msk.bf16.gmra.mxu0 %vm633_vm2, %v8940_v30 }
  0x7e   : > { %8140 = vmatprep.mubr.msk.bf16.mxu0 %vm633_vm2, %v8941_v31 }
  0x85   : > { %8141 = vmatmul.mubr.msk.bf16.gmra.mxu0 %vm633_vm2, %v8942_v32 }
  0x86   : > { %8144 = vmatprep.mubr.msk.bf16.mxu0 %vm633_vm2, %v8943_v33 }
  0x8d   : > { %8145 = vmatmul.mubr.msk.bf16.gmra.mxu0 %vm633_vm2, %v8944_v38 }
  0x8e   : > { %8148 = vmatprep.mubr.msk.bf16.mxu0 %vm633_vm2, %v8945_v41 }
  0x95   : > { %8149 = vmatmul.mubr.msk.bf16.gmra.mxu0 %vm633_vm2, %v8946_v42 }
  0x96   : > { %8152 = vmatprep.mubr.msk.bf16.mxu0 %vm633_vm2, %v8947_v43 }
  0x9d   : > { %8153 = vmatmul.mubr.msk.bf16.gmra.mxu0 %vm633_vm2, %v8948_v44 }
  0x9e   : > { %8156 = vmatprep.mubr.msk.bf16.mxu0 %vm633_vm2, %v8949_v45 }
  0xa5   : > { %8157 = vmatmul.mubr.msk.bf16.gmra.mxu0 %vm633_vm2, %v8950_v46 }
  0xa6   : > { %8160 = vmatprep.mubr.msk.bf16.mxu0 %vm633_vm2, %v8951_v47 }
  0xad   : > { %8161 = vmatmul.mubr.msk.bf16.gmra.mxu0 %vm633_vm2, %v8952_v48 }
  0xae   : > { %8164 = vmatprep.mubr.msk.bf16.mxu0 %vm633_vm2, %v8953_v49 }
  0xb5   : > { %8165 = vmatmul.mubr.msk.bf16.gmra.mxu0 %vm633_vm2, %v8954_v50 }
  0xb6   : > { %8168 = vmatprep.mubr.msk.bf16.mxu0 %vm633_vm2, %v8955_v51 }
  0xbd   : > { %8169 = vmatmul.mubr.msk.bf16.gmra.mxu0 %vm633_vm2, %v8956_v52 }
  0xbe   : > { %8172 = vmatprep.mubr.msk.bf16.mxu0 %vm633_vm2, %v8957_v54 }
  0xc5   : > { %8173 = vmatmul.mubr.msk.bf16.gmra.mxu0 %vm633_vm2, %v8958_v55 }
  0xc6   : > { %8176 = vmatprep.mubr.msk.bf16.mxu0 %vm633_vm2, %v8959_v56 }
  0xcd   : > { %8177 = vmatmul.mubr.msk.bf16.gmra.mxu0 %vm633_vm2, %v8960_v57 }
  0xce   : > { %8180 = vmatprep.mubr.msk.bf16.mxu0 %vm633_vm2, %v8961_v58 }
  0xd5   : > { %8181 = vmatmul.mubr.msk.bf16.gmra.mxu0 %vm633_vm2, %v8962_v59 }
  0xd6   : > { %8184 = vmatprep.mubr.msk.bf16.mxu0 %vm633_vm2, %v8965_v60 }
  0xdd   : > { %8185 = vmatmul.mubr.msk.bf16.gmra.mxu0 %vm633_vm2, %v8966_v61 }
  0xf5   : > { %v8102_v62 = vpop.f32.mrf.mxu0 }
  0xf6   : > { %v840_v1 = vadd.f32 %v8102_v62, %v9278_v63  ;;  %v8978_v62 = vld [vmem:[%s13601_s3] sm:$0xff]  }
  0xf7   : > { %v831_v0 = vpop.f32.mrf.mxu0 }
  0xf8   : > { %v832_v2 = vadd.f32 %v9278_v63, %v831_v0  ;;  %v9283_v6 = vmax.f32 %v840_v1, 0.0 }
  0xf9   : > { %v8103_v3 = vpop.f32.mrf.mxu0 }
  0xfa   : > { %v843_v4 = vadd.f32 %v8103_v3, %v9278_v63  ;;  %v9285_v7 = vmax.f32 %v832_v2, 0.0  ;;  %v1490_v14 = vrot.slane %v9283_v6, 1  ;;  %v2655_v18 = vrot.slane %v9283_v6, 2 }
  0xfb   : > { %v834_v5 = vpop.f32.mrf.mxu0 }
  0xfc   : > { %v835_v8 = vadd.f32 %v9278_v63, %v834_v5  ;;  %v1249_v11 = vmax.f32 %v843_v4, 0.0  ;;  %v1487_v15 = vrot.slane %v9285_v7, 1  ;;  %v2652_v22 = vrot.slane %v9285_v7, 2 }
  0xfd   : > { %v8106_v9 = vpop.f32.mrf.mxu0 }
  0xfe   : > { %v9288_v10 = vmax.f32 %v835_v8, 0.0  ;;  %v856_v12 = vadd.f32 %v8106_v9, %v9278_v63  ;;  %v1492_v26 = vrot.slane %v1249_v11, 1  ;;  %v2657_v35 = vrot.slane %v1249_v11, 2 }
  0xff   : > { %v847_v13 = vpop.f32.mrf.mxu0 }
 0x100   : > { %v1488_v17 = vrot.slane %v9288_v10, 1  ;;  %v2653_v19 = vrot.slane %v9288_v10, 2  ;;  %v848_v20 = vadd.f32 %v9278_v63, %v847_v13  ;;  %v9303_v27 = vmax.f32 %v856_v12, 0.0 }
 0x101   : > { %v8107_v21 = vpop.f32.mrf.mxu0  ;;  %v1493_v39 = vsel %vm1486_vm3, %v1490_v14, %v1492_v26  ;;  %v2658_v47 = vsel %vm2651_vm4, %v2655_v18, %v2657_v35 }
 0x102   : > { %v859_v23 = vadd.f32 %v8107_v21, %v9278_v63  ;;  %v1489_v24 = vsel %vm1486_vm3, %v1487_v15, %v1488_v17  ;;  %v1491_v25 = vsel %vm1486_vm3, %v1488_v17, %v1490_v14  ;;  %v9305_v28 = vmax.f32 %v848_v20, 0.0 }
 0x103   : > { %v850_v29 = vpop.f32.mrf.mxu0  ;;  %v1727_v30 = vpack.c.bf16 %v1491_v25, %v1489_v24  ;;  %v2654_v33 = vsel %vm2651_vm4, %v2652_v22, %v2653_v19  ;;  %v2656_v34 = vsel %vm2651_vm4, %v2653_v19, %v2655_v18  ;;  %v1497_v40 = vrot.slane %v9303_v27, 1 }
 0x104   : > { %v1253_v31 = vmax.f32 %v859_v23, 0.0  ;;  %v851_v32 = vadd.f32 %v9278_v63, %v850_v29  ;;  %v2892_v37 = vpack.c.bf16 %v2656_v34, %v2654_v33  ;;  %v1494_v43 = vrot.slane %v9305_v28, 1 }
 0x105   : > { %v8110_v36 = vpop.f32.mrf.mxu0  ;;  %8208 = vmatprep.mubr.msk.bf16.mxu1 %vm1780_vm5, %v1727_v30  ;;  %v2659_v44 = vrot.slane %v9305_v28, 2  ;;  %v2662_v57 = vrot.slane %v9303_v27, 2 }
 0x106   : > { %v9311_v38 = vmax.f32 %v851_v32, 0.0  ;;  %v1499_v41 = vrot.slane %v1253_v31, 1  ;;  %8360 = vmatprep.mubr.msk.bf16.mxu0 %vm1780_vm5, %v2892_v37  ;;  %v2664_v48 = vrot.slane %v1253_v31, 2  ;;  %v872_v49 = vadd.f32 %v8110_v36, %v9278_v63 }
 0x107   : > { %v863_v42 = vpop.f32.mrf.mxu0 }
 0x108   : > { %v1495_v45 = vrot.slane %v9311_v38, 1  ;;  %v2660_v46 = vrot.slane %v9311_v38, 2  ;;  %v864_v50 = vadd.f32 %v9278_v63, %v863_v42  ;;  %v9335_v58 = vsel %vm1486_vm3, %v1497_v40, %v1499_v41 }
 0x109   : > { %v8111_v51 = vpop.f32.mrf.mxu0  ;;  %13963 = vst [vmem:[#allocation10_spill] sm:$0xff] %v9335_v58  ;;  %v9347_v3 = vmax.f32 %v872_v49, 0.0  ;;  %v9357_v9 = vsel %vm2651_vm4, %v2662_v57, %v2664_v48 }
 0x10a   : > { %v9324_v52 = vsel %vm1486_vm3, %v1494_v43, %v1495_v45  ;;  %v9327_v54 = vsel %vm2651_vm4, %v2659_v44, %v2660_v46  ;;  %v875_v55 = vadd.f32 %v8111_v51, %v9278_v63  ;;  %v9331_v56 = vsel %vm1486_vm3, %v1495_v45, %v1497_v40  ;;  %13967 = vst [vmem:[#allocation14_spill] sm:$0xff] %v9357_v9 }
 0x10b   : > { %13962 = vst [vmem:[#allocation9_spill] sm:$0xff] %v9327_v54  ;;  %v1728_v59 = vpack.c.bf16 %v9324_v52, %v1493_v39  ;;  %v2893_v60 = vpack.c.bf16 %v9327_v54, %v2658_v47  ;;  %v866_v61 = vpop.f32.mrf.mxu0  ;;  %v9342_v0 = vmax.f32 %v864_v50, 0.0  ;;  %v1729_v2 = vpack.c.bf16 %v9335_v58, %v9331_v56  ;;  %13965 = vst [vmem:[#allocation12_spill] sm:$0xff] %v9347_v3 }
 0x10c   : > { %v867_v1 = vadd.f32 %v9278_v63, %v866_v61  ;;  %v9352_v5 = vsel %vm2651_vm4, %v2660_v46, %v2662_v57  ;;  %v1257_v12 = vmax.f32 %v875_v55, 0.0  ;;  %v1504_v19 = vrot.slane %v9347_v3, 1 }
 0x10d   : > { %13964 = vst [vmem:[#allocation11_spill] sm:$0xff] %v9342_v0  ;;  %v8114_v4 = vpop.f32.mrf.mxu0  ;;  %8209 = vmatmul.mubr.msk.bf16.vlgmr.msra.gmra.mxu1 %vm1780_vm5, %v1728_v59  ;;  %8361 = vmatmul.mubr.msk.bf16.vlgmr.msra.gmra.mxu0 %vm1780_vm5, %v2893_v60  ;;  %13966 = vst [vmem:[#allocation13_spill] sm:$0xff] %v9352_v5  ;;  %v2894_v15 = vpack.c.bf16 %v9357_v9, %v9352_v5  ;;  %v1501_v20 = vrot.slane %v9342_v0, 1  ;;  %v2669_v26 = vrot.slane %v9347_v3, 2  ;;  %v2666_v29 = vrot.slane %v9342_v0, 2 }
 0x10e   : > { %8212 = vmatprep.mubr.msk.bf16.mxu1 %vm1780_vm5, %v1729_v2  ;;  %8281 = vmatpush3.bf16.msra.mxu1 %v9258_v53  ;;  %v9363_v13 = vmax.f32 %v867_v1, 0.0  ;;  %v888_v14 = vadd.f32 %v8114_v4, %v9278_v63  ;;  %v1506_v23 = vrot.slane %v1257_v12, 1  ;;  %v2671_v33 = vrot.slane %v1257_v12, 2 }
 0x10f   : > { %v879_v17 = vpop.f32.mrf.mxu0  ;;  %8282 = vmatprep.subr.bf16.mxu1 %v8978_v62  ;;  %8364 = vmatprep.mubr.msk.bf16.mxu0 %vm1780_vm5, %v2894_v15 }
 0x110   : > { %13968 = vst [vmem:[#allocation15_spill] sm:$0xff] %v9363_v13  ;;  %v880_v18 = vadd.f32 %v9278_v63, %v879_v17  ;;  %v1502_v21 = vrot.slane %v9363_v13, 1  ;;  %v2667_v22 = vrot.slane %v9363_v13, 2  ;;  %v9374_v24 = vmax.f32 %v888_v14, 0.0 }
 0x111   : > { %v8115_v53 = vpop.f32.mrf.mxu0  ;;  %v9401_v43 = vsel %vm1486_vm3, %v1504_v19, %v1506_v23  ;;  %v9422_v61 = vsel %vm2651_vm4, %v2669_v26, %v2671_v33 }
 0x112   : > { %13969 = vst [vmem:[#allocation16_spill] sm:$0xff] %v9374_v24  ;;  %v891_v25 = vadd.f32 %v8115_v53, %v9278_v63  ;;  %8283 = vmatpush3.bf16.msra.mxu1 %v8978_v62  ;;  %v9380_v31 = vsel %vm1486_vm3, %v1501_v20, %v1502_v21  ;;  %v9383_v32 = vsel %vm1486_vm3, %v1502_v21, %v1504_v19  ;;  %v9385_v34 = vmax.f32 %v880_v18, 0.0 }
 0x113   : > { %v882_v30 = vpop.f32.mrf.mxu0  ;;  %13970 = vst [vmem:[#allocation17_spill] sm:$0xff] %v9380_v31  ;;  %13971 = vst [vmem:[#allocation18_spill] sm:$0xff] %v9383_v32  ;;  %v9390_v39 = vpack.c.bf16 %v9383_v32, %v9380_v31  ;;  %v9395_v41 = vsel %vm2651_vm4, %v2666_v29, %v2667_v22  ;;  %v9398_v42 = vsel %vm2651_vm4, %v2667_v22, %v2669_v26  ;;  %v1511_v44 = vrot.slane %v9374_v24, 1 }
 0x114   : > { %13972 = vst [vmem:[#allocation19_spill] sm:$0xff] %v9385_v34  ;;  %v1261_v35 = vmax.f32 %v891_v25, 0.0  ;;  %v883_v36 = vadd.f32 %v9278_v63, %v882_v30  ;;  %13974 = vst [vmem:[#allocation21_spill] sm:$0xff] %v9395_v41  ;;  %v9411_v48 = vpack.c.bf16 %v9398_v42, %v9395_v41  ;;  %v1508_v55 = vrot.slane %v9385_v34, 1 }
 0x115   : > { %v8118_v37 = vpop.f32.mrf.mxu0  ;;  %13973 = vst [vmem:[#allocation20_spill] sm:$0xff] %v9390_v39  ;;  %13975 = vst [vmem:[#allocation22_spill] sm:$0xff] %v9398_v42  ;;  %8213 = vmatmul.mubr.msk.bf16.gmra.mxu1 %vm1780_vm5, %v9390_v39  ;;  %v2673_v57 = vrot.slane %v9385_v34, 2  ;;  %v2676_v18 = vrot.slane %v9374_v24, 2 }
 0x116   : > { %13976 = vst [vmem:[#allocation23_spill] sm:$0xff] %v9401_v43  ;;  %v9404_v45 = vmax.f32 %v883_v36, 0.0  ;;  %v904_v46 = vadd.f32 %v8118_v37, %v9278_v63  ;;  %v1513_v47 = vrot.slane %v1261_v35, 1  ;;  %13978 = vst [vmem:[#allocation25_spill] sm:$0xff] %v9411_v48  ;;  %v2678_v62 = vrot.slane %v1261_v35, 2  ;;  %8365 = vmatmul.mubr.msk.bf16.gmra.mxu0 %vm1780_vm5, %v9411_v48 }
 0x117   : > { %v895_v50 = vpop.f32.mrf.mxu0  ;;  %13979 = vst [vmem:[#allocation26_spill] sm:$0xff] %v9422_v61 }
 0x118   : > { %13977 = vst [vmem:[#allocation24_spill] sm:$0xff] %v9404_v45  ;;  %v1509_v59 = vrot.slane %v9404_v45, 1  ;;  %v2674_v60 = vrot.slane %v9404_v45, 2  ;;  %v9424_v1 = vmax.f32 %v904_v46, 0.0  ;;  %v896_v2 = vadd.f32 %v9278_v63, %v895_v50 }
 0x119   : > { %v8119_v4 = vpop.f32.mrf.mxu0  ;;  %v9441_v19 = vsel %vm1486_vm3, %v1511_v44, %v1513_v47  ;;  %v9466_v35 = vsel %vm2651_vm4, %v2676_v18, %v2678_v62 }
 0x11a   : > { %13980 = vst [vmem:[#allocation27_spill] sm:$0xff] %v9424_v1  ;;  %v907_v12 = vadd.f32 %v8119_v4, %v9278_v63  ;;  %v9431_v14 = vsel %vm1486_vm3, %v1508_v55, %v1509_v59  ;;  %v9434_v15 = vsel %vm2651_vm4, %v2673_v57, %v2674_v60  ;;  %v9437_v17 = vsel %vm1486_vm3, %v1509_v59, %v1511_v44 }
 0x11b   : > { %13981 = vst [vmem:[#allocation28_spill] sm:$0xff] %v9431_v14  ;;  %13982 = vst [vmem:[#allocation29_spill] sm:$0xff] %v9434_v15  ;;  %v9443_v20 = vmax.f32 %v896_v2, 0.0  ;;  %v898_v21 = vpop.f32.mrf.mxu0  ;;  %v9447_v22 = vpack.c.bf16 %v9431_v14, %v9401_v43  ;;  %v9452_v25 = vpack.c.bf16 %v9434_v15, %v9422_v61  ;;  %v9456_v26 = vpack.c.bf16 %v9441_v19, %v9437_v17 }
 0x11c   : > { %13983 = vst [vmem:[#allocation30_spill] sm:$0xff] %v9437_v17  ;;  %13984 = vst [vmem:[#allocation31_spill] sm:$0xff] %v9441_v19  ;;  %v1265_v53 = vmax.f32 %v907_v12, 0.0  ;;  %v899_v23 = vadd.f32 %v9278_v63, %v898_v21  ;;  %v9463_v33 = vsel %vm2651_vm4, %v2674_v60, %v2676_v18  ;;  %v1518_v36 = vrot.slane %v9424_v1, 1 }
 0x11d   : > { %13985 = vst [vmem:[#allocation32_spill] sm:$0xff] %v9443_v20  ;;  %13986 = vst [vmem:[#allocation33_spill] sm:$0xff] %v9447_v22  ;;  %v8122_v29 = vpop.f32.mrf.mxu0  ;;  %8216 = vmatprep.mubr.msk.bf16.mxu1 %vm1780_vm5, %v9447_v22  ;;  %8368 = vmatprep.mubr.msk.bf16.mxu0 %vm1780_vm5, %v9452_v25  ;;  %v9478_v50 = vpack.c.bf16 %v9466_v35, %v9463_v33  ;;  %v1515_v59 = vrot.slane %v9443_v20, 1  ;;  %v2680_v60 = vrot.slane %v9443_v20, 2  ;;  %v2683_v4 = vrot.slane %v9424_v1, 2 }
 0x11e   : > { %13987 = vst [vmem:[#allocation34_spill] sm:$0xff] %v9452_v25  ;;  %13988 = vst [vmem:[#allocation35_spill] sm:$0xff] %v9456_v26  ;;  %v1520_v37 = vrot.slane %v1265_v53, 1  ;;  %v9469_v44 = vmax.f32 %v899_v23, 0.0  ;;  %v2685_v46 = vrot.slane %v1265_v53, 2  ;;  %v920_v47 = vadd.f32 %v8122_v29, %v9278_v63  ;;  %8217 = vmatmul.mubr.msk.bf16.gmra.mxu1 %vm1780_vm5, %v9456_v26 }
 0x11f   : > { %13989 = vst [vmem:[#allocation36_spill] sm:$0xff] %v9463_v33  ;;  %13990 = vst [vmem:[#allocation37_spill] sm:$0xff] %v9466_v35  ;;  %v911_v57 = vpop.f32.mrf.mxu0  ;;  %8369 = vmatmul.mubr.msk.bf16.gmra.mxu0 %vm1780_vm5, %v9478_v50 }
 0x120   : > { %13991 = vst [vmem:[#allocation38_spill] sm:$0xff] %v9469_v44  ;;  %13992 = vst [vmem:[#allocation39_spill] sm:$0xff] %v9478_v50  ;;  %v1516_v62 = vrot.slane %v9469_v44, 1  ;;  %v2681_v2 = vrot.slane %v9469_v44, 2  ;;  %v9488_v12 = vsel %vm1486_vm3, %v1518_v36, %v1520_v37  ;;  %v912_v18 = vadd.f32 %v9278_v63, %v911_v57 }
 0x121   : > { %13993 = vst [vmem:[#allocation40_spill] sm:$0xff] %v9488_v12  ;;  %v8123_v21 = vpop.f32.mrf.mxu0  ;;  %v9504_v37 = vsel %vm2651_vm4, %v2683_v4, %v2685_v46  ;;  %v9506_v49 = vmax.f32 %v920_v47, 0.0 }
 0x122   : > { %v923_v53 = vadd.f32 %v8123_v21, %v9278_v63  ;;  %v9495_v23 = vsel %vm1486_vm3, %v1515_v59, %v1516_v62  ;;  %v9498_v29 = vsel %vm1486_vm3, %v1516_v62, %v1518_v36  ;;  %v9501_v55 = vsel %vm2651_vm4, %v2680_v60, %v2681_v2  ;;  %13997 = vst [vmem:[#allocation44_spill] sm:$0xff] %v9504_v37 }
 0x123   : > { %13994 = vst [vmem:[#allocation41_spill] sm:$0xff] %v9495_v23  ;;  %13995 = vst [vmem:[#allocation42_spill] sm:$0xff] %v9498_v29  ;;  %v9508_v11 = vmax.f32 %v912_v18, 0.0  ;;  %v914_v57 = vpop.f32.mrf.mxu0  ;;  %v9512_v21 = vpack.c.bf16 %v9498_v29, %v9495_v23  ;;  %v9518_v60 = vsel %vm2651_vm4, %v2681_v2, %v2683_v4 }
 0x124   : > { %13996 = vst [vmem:[#allocation43_spill] sm:$0xff] %v9501_v55  ;;  %13998 = vst [vmem:[#allocation45_spill] sm:$0xff] %v9506_v49  ;;  %v1269_v59 = vmax.f32 %v923_v53, 0.0  ;;  %v915_v30 = vadd.f32 %v9278_v63, %v914_v57  ;;  %v9524_v47 = vpack.c.bf16 %v9518_v60, %v9501_v55  ;;  %v1525_v53 = vrot.slane %v9506_v49, 1 }
 0x125   : > { %13999 = vst [vmem:[#allocation46_spill] sm:$0xff] %v9508_v11  ;;  %14000 = vst [vmem:[#allocation47_spill] sm:$0xff] %v9512_v21  ;;  %v8126_v46 = vpop.f32.mrf.mxu0  ;;  %8220 = vmatprep.mubr.msk.bf16.mxu1 %vm1780_vm5, %v9512_v21  ;;  %v1522_v4 = vrot.slane %v9508_v11, 1  ;;  %v2687_v51 = vrot.slane %v9508_v11, 2 }
 0x126   : > { %14001 = vst [vmem:[#allocation48_spill] sm:$0xff] %v9518_v60  ;;  %14002 = vst [vmem:[#allocation49_spill] sm:$0xff] %v9524_v47  ;;  %v9528_v18 = vmax.f32 %v915_v30, 0.0  ;;  %v1527_v57 = vrot.slane %v1269_v59, 1  ;;  %v936_v36 = vadd.f32 %v8126_v46, %v9278_v63  ;;  %8372 = vmatprep.mubr.msk.bf16.mxu0 %vm1780_vm5, %v9524_v47  ;;  %v2690_v30 = vrot.slane %v9506_v49, 2 }
 0x127   : > { %v927_v2 = vpop.f32.mrf.mxu0  ;;  %v2692_v21 = vrot.slane %v1269_v59, 2 }
 0x128   : > { %14003 = vst [vmem:[#allocation50_spill] sm:$0xff] %v9528_v18  ;;  %v1523_v40 = vrot.slane %v9528_v18, 1  ;;  %v2688_v8 = vrot.slane %v9528_v18, 2  ;;  %v928_v62 = vadd.f32 %v9278_v63, %v927_v2  ;;  %v9550_v39 = vsel %vm1486_vm3, %v1525_v53, %v1527_v57 }
 0x129   : > { %v8127_v16 = vpop.f32.mrf.mxu0  ;;  %14007 = vst [vmem:[#allocation54_spill] sm:$0xff] %v9550_v39  ;;  %v9552_v60 = vmax.f32 %v936_v36, 0.0 }
 0x12a   : > { %v9541_v46 = vsel %vm1486_vm3, %v1522_v4, %v1523_v40  ;;  %v9544_v26 = vsel %vm2651_vm4, %v2687_v51, %v2688_v8  ;;  %v9547_v22 = vsel %vm1486_vm3, %v1523_v40, %v1525_v53  ;;  %v939_v47 = vadd.f32 %v8127_v16, %v9278_v63 }
 0x12b   : > { %14004 = vst [vmem:[#allocation51_spill] sm:$0xff] %v9541_v46  ;;  %14005 = vst [vmem:[#allocation52_spill] sm:$0xff] %v9544_v26  ;;  %v930_v15 = vpop.f32.mrf.mxu0  ;;  %v9557_v59 = vpack.c.bf16 %v9541_v46, %v9488_v12  ;;  %v9559_v2 = vmax.f32 %v928_v62, 0.0  ;;  %v9564_v40 = vpack.c.bf16 %v9544_v26, %v9504_v37  ;;  %v9568_v53 = vpack.c.bf16 %v9550_v39, %v9547_v22 }
 0x12c   : > { %14006 = vst [vmem:[#allocation53_spill] sm:$0xff] %v9547_v22  ;;  %14008 = vst [vmem:[#allocation55_spill] sm:$0xff] %v9552_v60  ;;  %v931_v51 = vadd.f32 %v9278_v63, %v930_v15  ;;  %v9573_v16 = vsel %vm2651_vm4, %v2688_v8, %v2690_v30  ;;  %v9576_v62 = vsel %vm2651_vm4, %v2690_v30, %v2692_v21  ;;  %v1532_v15 = vrot.slane %v9552_v60, 1 }
 0x12d   : > { %14009 = vst [vmem:[#allocation56_spill] sm:$0xff] %v9557_v59  ;;  %14010 = vst [vmem:[#allocation57_spill] sm:$0xff] %v9559_v2  ;;  %v8130_v36 = vpop.f32.mrf.mxu0  ;;  %8221 = vmatmul.mubr.msk.bf16.gmra.mxu1 %vm1780_vm5, %v9557_v59  ;;  %8373 = vmatmul.mubr.msk.bf16.gmra.mxu0 %vm1780_vm5, %v9564_v40  ;;  %v1273_v4 = vmax.f32 %v939_v47, 0.0  ;;  %v9588_v8 = vpack.c.bf16 %v9576_v62, %v9573_v16  ;;  %v1529_v21 = vrot.slane %v9559_v2, 1  ;;  %v2694_v30 = vrot.slane %v9559_v2, 2 }
 0x12e   : > { %14011 = vst [vmem:[#allocation58_spill] sm:$0xff] %v9564_v40  ;;  %14012 = vst [vmem:[#allocation59_spill] sm:$0xff] %v9568_v53  ;;  %v9578_v57 = vmax.f32 %v931_v51, 0.0  ;;  %8224 = vmatprep.mubr.msk.bf16.mxu1 %vm1780_vm5, %v9568_v53  ;;  %v952_v37 = vadd.f32 %v8130_v36, %v9278_v63  ;;  %v2697_v53 = vrot.slane %v9552_v60, 2 }
 0x12f   : > { %14013 = vst [vmem:[#allocation60_spill] sm:$0xff] %v9573_v16  ;;  %14014 = vst [vmem:[#allocation61_spill] sm:$0xff] %v9576_v62  ;;  %v943_v59 = vpop.f32.mrf.mxu0  ;;  %8376 = vmatprep.mubr.msk.bf16.mxu0 %vm1780_vm5, %v9588_v8  ;;  %v1534_v35 = vrot.slane %v1273_v4, 1 }
 0x130   : > { %14015 = vst [vmem:[#allocation62_spill] sm:$0xff] %v9578_v57  ;;  %14016 = vst [vmem:[#allocation63_spill] sm:$0xff] %v9588_v8  ;;  %v1530_v51 = vrot.slane %v9578_v57, 1  ;;  %v2695_v26 = vrot.slane %v9578_v57, 2  ;;  %v944_v47 = vadd.f32 %v9278_v63, %v943_v59  ;;  %v9608_v50 = vmax.f32 %v952_v37, 0.0 }
 0x131   : > { %v8131_v36 = vpop.f32.mrf.mxu0 }
 0x132   : > { %v955_v16 = vadd.f32 %v8131_v36, %v9278_v63  ;;  %v9600_v40 = vsel %vm1486_vm3, %v1529_v21, %v1530_v51  ;;  %v9603_v33 = vsel %vm1486_vm3, %v1530_v51, %v1532_v15  ;;  %v9606_v55 = vsel %vm2651_vm4, %v2694_v30, %v2695_v26  ;;  %14020 = vst [vmem:[#allocation67_spill] sm:$0xff] %v9608_v50 }
 0x133   : > { %14017 = vst [vmem:[#allocation64_spill] sm:$0xff] %v9600_v40  ;;  %14018 = vst [vmem:[#allocation65_spill] sm:$0xff] %v9603_v33  ;;  %v9610_v25 = vmax.f32 %v944_v47, 0.0  ;;  %v946_v8 = vpop.f32.mrf.mxu0  ;;  %v9614_v59 = vpack.c.bf16 %v9603_v33, %v9600_v40  ;;  %v9620_v9 = vsel %vm2651_vm4, %v2695_v26, %v2697_v53  ;;  %v2699_v30 = vrot.slane %v1273_v4, 2 }
 0x134   : > { %14019 = vst [vmem:[#allocation66_spill] sm:$0xff] %v9606_v55  ;;  %v1277_v36 = vmax.f32 %v955_v16, 0.0  ;;  %v947_v21 = vadd.f32 %v9278_v63, %v946_v8  ;;  %14023 = vst [vmem:[#allocation70_spill] sm:$0xff] %v9620_v9  ;;  %v9626_v37 = vpack.c.bf16 %v9620_v9, %v9606_v55  ;;  %v9634_v51 = vsel %vm1486_vm3, %v1532_v15, %v1534_v35 }
 0x135   : > { %14021 = vst [vmem:[#allocation68_spill] sm:$0xff] %v9610_v25  ;;  %14022 = vst [vmem:[#allocation69_spill] sm:$0xff] %v9614_v59  ;;  %v8134_v41 = vpop.f32.mrf.mxu0  ;;  %8225 = vmatmul.mubr.msk.bf16.gmra.mxu1 %vm1780_vm5, %v9614_v59  ;;  %v1539_v26 = vrot.slane %v9608_v50, 1  ;;  %v1536_v9 = vrot.slane %v9610_v25, 1  ;;  %v2701_v61 = vrot.slane %v9610_v25, 2 }
 0x136   : > { %14024 = vst [vmem:[#allocation71_spill] sm:$0xff] %v9626_v37  ;;  %v9630_v47 = vmax.f32 %v947_v21, 0.0  ;;  %v968_v8 = vadd.f32 %v8134_v41, %v9278_v63  ;;  %14026 = vst [vmem:[#allocation73_spill] sm:$0xff] %v9634_v51  ;;  %v1541_v4 = vrot.slane %v1277_v36, 1  ;;  %8377 = vmatmul.mubr.msk.bf16.gmra.mxu0 %vm1780_vm5, %v9626_v37  ;;  %v9644_v41 = vsel %vm2651_vm4, %v2697_v53, %v2699_v30 }
 0x137   : > { %v959_v59 = vpop.f32.mrf.mxu0  ;;  %14027 = vst [vmem:[#allocation74_spill] sm:$0xff] %v9644_v41  ;;  %v2706_v35 = vrot.slane %v1277_v36, 2  ;;  %v2704_v53 = vrot.slane %v9608_v50, 2 }
 0x138   : > { %14025 = vst [vmem:[#allocation72_spill] sm:$0xff] %v9630_v47  ;;  %v1537_v16 = vrot.slane %v9630_v47, 1  ;;  %v2702_v21 = vrot.slane %v9630_v47, 2  ;;  %v9646_v15 = vmax.f32 %v968_v8, 0.0  ;;  %v960_v62 = vadd.f32 %v9278_v63, %v959_v59 }
 0x139   : > { %v8135_v55 = vpop.f32.mrf.mxu0  ;;  %v9661_v36 = vsel %vm1486_vm3, %v1539_v26, %v1541_v4 }
 0x13a   : > { %14028 = vst [vmem:[#allocation75_spill] sm:$0xff] %v9646_v15  ;;  %v971_v37 = vadd.f32 %v8135_v55, %v9278_v63  ;;  %v9651_v42 = vsel %vm1486_vm3, %v1536_v9, %v1537_v16  ;;  %v9654_v48 = vsel %vm2651_vm4, %v2701_v61, %v2702_v21  ;;  %v9657_v5 = vsel %vm1486_vm3, %v1537_v16, %v1539_v26 }
 0x13b   : > { %14029 = vst [vmem:[#allocation76_spill] sm:$0xff] %v9651_v42  ;;  %14030 = vst [vmem:[#allocation77_spill] sm:$0xff] %v9654_v48  ;;  %v9663_v30 = vmax.f32 %v960_v62, 0.0  ;;  %v962_v59 = vpop.f32.mrf.mxu0  ;;  %v9667_v55 = vpack.c.bf16 %v9651_v42, %v9634_v51  ;;  %v9672_v61 = vpack.c.bf16 %v9654_v48, %v9644_v41  ;;  %v9676_v16 = vpack.c.bf16 %v9661_v36, %v9657_v5  ;;  %v8981_v62 = vld [vmem:[%s13601_s3 + $0x38] sm:$0xff]  }
 0x13c   : > { %14031 = vst [vmem:[#allocation78_spill] sm:$0xff] %v9657_v5  ;;  %14032 = vst [vmem:[#allocation79_spill] sm:$0xff] %v9661_v36  ;;  %v1281_v9 = vmax.f32 %v971_v37, 0.0  ;;  %v963_v8 = vadd.f32 %v9278_v63, %v962_v59  ;;  %v9683_v4 = vsel %vm2651_vm4, %v2702_v21, %v2704_v53  ;;  %v8979_v37 = vld [vmem:[%s13601_s3 + $0x48] sm:$0xff]   ;;  %v9689_v59 = vsel %vm2651_vm4, %v2704_v53, %v2706_v35  ;;  %v8980_v21 = vld [vmem:[%s13601_s3 + $0x40] sm:$0xff]  }
 0x13d   : > { %14033 = vst [vmem:[#allocation80_spill] sm:$0xff] %v9663_v30  ;;  %14034 = vst [vmem:[#allocation81_spill] sm:$0xff] %v9667_v55  ;;  %v8138_v26 = vpop.f32.mrf.mxu0  ;;  %8228 = vmatprep.mubr.msk.bf16.mxu1 %vm1780_vm5, %v9667_v55  ;;  %v1546_v41 = vrot.slane %v9646_v15, 1  ;;  %8380 = vmatprep.mubr.msk.bf16.mxu0 %vm1780_vm5, %v9672_v61  ;;  %v2708_v50 = vrot.slane %v9663_v30, 2 }
 0x13e   : > { %14035 = vst [vmem:[#allocation82_spill] sm:$0xff] %v9672_v61  ;;  %14036 = vst [vmem:[#allocation83_spill] sm:$0xff] %v9676_v16  ;;  %v9692_v54 = vmax.f32 %v963_v8, 0.0  ;;  %8229 = vmatmul.mubr.msk.bf16.gmra.mxu1 %vm1780_vm5, %v9676_v16  ;;  %v1548_v35 = vrot.slane %v1281_v9, 1  ;;  %v984_v53 = vadd.f32 %v8138_v26, %v9278_v63  ;;  %v9707_v8 = vpack.c.bf16 %v9689_v59, %v9683_v4 }
 0x13f   : > { %14037 = vst [vmem:[#allocation84_spill] sm:$0xff] %v9683_v4  ;;  %14038 = vst [vmem:[#allocation85_spill] sm:$0xff] %v9689_v59  ;;  %v975_v61 = vpop.f32.mrf.mxu0  ;;  %8508 = vmatprep.subr.bf16.mxu0 %v8979_v37  ;;  %v1543_v16 = vrot.slane %v9663_v30, 1  ;;  %8432 = vmatprep.subr.bf16.mxu1 %v8981_v62  ;;  %v2711_v26 = vrot.slane %v9646_v15, 2  ;;  %v2713_v5 = vrot.slane %v1281_v9, 2 }
 0x140   : > { %14039 = vst [vmem:[#allocation86_spill] sm:$0xff] %v9692_v54  ;;  %14040 = vst [vmem:[#allocation87_spill] sm:$0xff] %v9707_v8  ;;  %v1544_v47 = vrot.slane %v9692_v54, 1  ;;  %v2709_v42 = vrot.slane %v9692_v54, 2  ;;  %8509 = vmatpush3.bf16.msra.mxu0 %v8979_v37  ;;  %v976_v55 = vadd.f32 %v9278_v63, %v975_v61  ;;  %v9730_v9 = vsel %vm1486_vm3, %v1546_v41, %v1548_v35 }
 0x141   : > { %8381 = vmatmul.mubr.msk.bf16.gmra.mxu0 %vm1780_vm5, %v9707_v8  ;;  %v8139_v48 = vpop.f32.mrf.mxu0  ;;  %8510 = vmatprep.subr.bf16.mxu0 %v8980_v21  ;;  %14044 = vst [vmem:[#allocation91_spill] sm:$0xff] %v9730_v9  ;;  %v9732_v37 = vmax.f32 %v984_v53, 0.0  ;;  %v9753_v35 = vsel %vm2651_vm4, %v2711_v26, %v2713_v5 }
 0x142   : > { %v987_v4 = vadd.f32 %v8139_v48, %v9278_v63  ;;  %v9721_v59 = vsel %vm1486_vm3, %v1543_v16, %v1544_v47  ;;  %v9724_v30 = vsel %vm1486_vm3, %v1544_v47, %v1546_v41  ;;  %v9727_v62 = vsel %vm2651_vm4, %v2708_v50, %v2709_v42  ;;  %14050 = vst [vmem:[#allocation97_spill] sm:$0xff] %v9753_v35 }
 0x143   : > { %14041 = vst [vmem:[#allocation88_spill] sm:$0xff] %v9721_v59  ;;  %14042 = vst [vmem:[#allocation89_spill] sm:$0xff] %v9724_v30  ;;  %v9734_v8 = vmax.f32 %v976_v55, 0.0  ;;  %v978_v61 = vpop.f32.mrf.mxu0  ;;  %v9738_v48 = vpack.c.bf16 %v9724_v30, %v9721_v59  ;;  %v9744_v50 = vsel %vm2651_vm4, %v2709_v42, %v2711_v26  ;;  %v1553_v53 = vrot.slane %v9732_v37, 1 }
 0x144   : > { %14043 = vst [vmem:[#allocation90_spill] sm:$0xff] %v9727_v62  ;;  %14045 = vst [vmem:[#allocation92_spill] sm:$0xff] %v9732_v37  ;;  %v1285_v16 = vmax.f32 %v987_v4, 0.0  ;;  %v979_v15 = vadd.f32 %v9278_v63, %v978_v61  ;;  %8511 = vmatpush3.bf16.msra.mxu0 %v8980_v21  ;;  %v9750_v55 = vpack.c.bf16 %v9744_v50, %v9727_v62  ;;  %v2718_v59 = vrot.slane %v9732_v37, 2 }
 0x145   : > { %14046 = vst [vmem:[#allocation93_spill] sm:$0xff] %v9734_v8  ;;  %14047 = vst [vmem:[#allocation94_spill] sm:$0xff] %v9738_v48  ;;  %v8142_v41 = vpop.f32.mrf.mxu0  ;;  %8232 = vmatprep.mubr.msk.bf16.mxu1 %vm1780_vm5, %v9738_v48  ;;  %v1550_v48 = vrot.slane %v9734_v8, 1  ;;  %v2715_v62 = vrot.slane %v9734_v8, 2  ;;  %v9778_v8 = vpop.f32.mrf.mxu1 }
 0x146   : > { %14048 = vst [vmem:[#allocation95_spill] sm:$0xff] %v9744_v50  ;;  %14049 = vst [vmem:[#allocation96_spill] sm:$0xff] %v9750_v55  ;;  %v9755_v4 = vmax.f32 %v979_v15, 0.0  ;;  %v1555_v61 = vrot.slane %v1285_v16, 1  ;;  %v1000_v42 = vadd.f32 %v8142_v41, %v9278_v63  ;;  %8384 = vmatprep.mubr.msk.bf16.mxu0 %vm1780_vm5, %v9750_v55  ;;  %v2720_v26 = vrot.slane %v1285_v16, 2 }
 0x147   : > { %v991_v47 = vpop.f32.mrf.mxu0 }
 0x148   : > { %14051 = vst [vmem:[#allocation98_spill] sm:$0xff] %v9755_v4  ;;  %v1551_v5 = vrot.slane %v9755_v4, 1  ;;  %v2716_v15 = vrot.slane %v9755_v4, 2  ;;  %v992_v30 = vadd.f32 %v9278_v63, %v991_v47  ;;  %v9782_v16 = vsel %vm1486_vm3, %v1553_v53, %v1555_v61 }
 0x149   : > { %v8143_v54 = vpop.f32.mrf.mxu0  ;;  %14055 = vst [vmem:[#allocation102_spill] sm:$0xff] %v9782_v16  ;;  %v9784_v47 = vmax.f32 %v1000_v42, 0.0 }
 0x14a   : > { %v1003_v41 = vadd.f32 %v8143_v54, %v9278_v63  ;;  %v9770_v55 = vsel %vm1486_vm3, %v1550_v48, %v1551_v5  ;;  %v9773_v21 = vsel %vm2651_vm4, %v2715_v62, %v2716_v15  ;;  %v9776_v50 = vsel %vm1486_vm3, %v1551_v5, %v1553_v53 }
 0x14b   : > { %14052 = vst [vmem:[#allocation99_spill] sm:$0xff] %v9770_v55  ;;  %14053 = vst [vmem:[#allocation100_spill] sm:$0xff] %v9773_v21  ;;  %v994_v4 = vpop.f32.mrf.mxu0  ;;  %v9788_v54 = vpack.c.bf16 %v9770_v55, %v9730_v9  ;;  %v9790_v48 = vmax.f32 %v992_v30, 0.0  ;;  %v9795_v5 = vpack.c.bf16 %v9773_v21, %v9753_v35  ;;  %v9799_v37 = vpack.c.bf16 %v9782_v16, %v9776_v50  ;;  %v9815_v35 = vpop.f32.mrf.mxu1 }
 0x14c   : > { %14054 = vst [vmem:[#allocation101_spill] sm:$0xff] %v9776_v50  ;;  %14056 = vst [vmem:[#allocation103_spill] sm:$0xff] %v9784_v47  ;;  %v995_v62 = vadd.f32 %v9278_v63, %v994_v4  ;;  %v9804_v61 = vsel %vm2651_vm4, %v2716_v15, %v2718_v59  ;;  %v9807_v30 = vsel %vm2651_vm4, %v2718_v59, %v2720_v26  ;;  %v1289_v42 = vmax.f32 %v1003_v41, 0.0 }
 0x14d   : > { %14057 = vst [vmem:[#allocation104_spill] sm:$0xff] %v9788_v54  ;;  %14058 = vst [vmem:[#allocation105_spill] sm:$0xff] %v9790_v48  ;;  %v8146_v53 = vpop.f32.mrf.mxu0  ;;  %8233 = vmatmul.mubr.msk.bf16.gmra.mxu1 %vm1780_vm5, %v9788_v54  ;;  %8385 = vmatmul.mubr.msk.bf16.gmra.mxu0 %vm1780_vm5, %v9795_v5  ;;  %v9820_v15 = vpack.c.bf16 %v9807_v30, %v9804_v61  ;;  %v1560_v59 = vrot.slane %v9784_v47, 1  ;;  %v1557_v26 = vrot.slane %v9790_v48, 1 }
 0x14e   : > { %14059 = vst [vmem:[#allocation106_spill] sm:$0xff] %v9795_v5  ;;  %14060 = vst [vmem:[#allocation107_spill] sm:$0xff] %v9799_v37  ;;  %v9809_v4 = vmax.f32 %v995_v62, 0.0  ;;  %8236 = vmatprep.mubr.msk.bf16.mxu1 %vm1780_vm5, %v9799_v37  ;;  %v1016_v21 = vadd.f32 %v8146_v53, %v9278_v63  ;;  %v2725_v62 = vrot.slane %v9784_v47, 2  ;;  %v2722_v5 = vrot.slane %v9790_v48, 2  ;;  %v9838_v47 = vpop.f32.mrf.mxu1 }
 0x14f   : > { %14061 = vst [vmem:[#allocation108_spill] sm:$0xff] %v9804_v61  ;;  %14062 = vst [vmem:[#allocation109_spill] sm:$0xff] %v9807_v30  ;;  %v1007_v54 = vpop.f32.mrf.mxu0  ;;  %8388 = vmatprep.mubr.msk.bf16.mxu0 %vm1780_vm5, %v9820_v15  ;;  %v1562_v61 = vrot.slane %v1289_v42, 1  ;;  %v2727_v48 = vrot.slane %v1289_v42, 2 }
 0x150   : > { %14063 = vst [vmem:[#allocation110_spill] sm:$0xff] %v9809_v4  ;;  %14064 = vst [vmem:[#allocation111_spill] sm:$0xff] %v9820_v15  ;;  %v1558_v41 = vrot.slane %v9809_v4, 1  ;;  %v2723_v37 = vrot.slane %v9809_v4, 2  ;;  %v1008_v53 = vadd.f32 %v9278_v63, %v1007_v54  ;;  %v9840_v36 = vmax.f32 %v1016_v21, 0.0 }
 0x151   : > { %v8147_v30 = vpop.f32.mrf.mxu0 }
 0x152   : > { %v1019_v9 = vadd.f32 %v8147_v30, %v9278_v63  ;;  %v9833_v50 = vsel %vm1486_vm3, %v1557_v26, %v1558_v41  ;;  %v9836_v55 = vsel %vm1486_vm3, %v1558_v41, %v1560_v59  ;;  %14067 = vst [vmem:[#allocation114_spill] sm:$0xff] %v9840_v36  ;;  %v9842_v4 = vmax.f32 %v1008_v53, 0.0 }
 0x153   : > { %14065 = vst [vmem:[#allocation112_spill] sm:$0xff] %v9833_v50  ;;  %14066 = vst [vmem:[#allocation113_spill] sm:$0xff] %v9836_v55  ;;  %v1010_v15 = vpop.f32.mrf.mxu0  ;;  %v9846_v54 = vpack.c.bf16 %v9836_v55, %v9833_v50  ;;  %v9852_v41 = vsel %vm2651_vm4, %v2722_v5, %v2723_v37  ;;  %v9857_v21 = vsel %vm2651_vm4, %v2723_v37, %v2725_v62  ;;  %v1567_v37 = vrot.slane %v9840_v36, 1 }
 0x154   : > { %14068 = vst [vmem:[#allocation115_spill] sm:$0xff] %v9842_v4  ;;  %v1293_v25 = vmax.f32 %v1019_v9, 0.0  ;;  %v1011_v30 = vadd.f32 %v9278_v63, %v1010_v15  ;;  %14070 = vst [vmem:[#allocation117_spill] sm:$0xff] %v9852_v41  ;;  %v9862_v9 = vpop.f32.mrf.mxu1  ;;  %v9865_v15 = vsel %vm1486_vm3, %v1560_v59, %v1562_v61  ;;  %v9869_v5 = vpack.c.bf16 %v9857_v21, %v9852_v41 }
 0x155   : > { %14069 = vst [vmem:[#allocation116_spill] sm:$0xff] %v9846_v54  ;;  %v8150_v60 = vpop.f32.mrf.mxu0  ;;  %8237 = vmatmul.mubr.msk.bf16.gmra.mxu1 %vm1780_vm5, %v9846_v54  ;;  %14071 = vst [vmem:[#allocation118_spill] sm:$0xff] %v9857_v21  ;;  %v9872_v54 = vsel %vm2651_vm4, %v2725_v62, %v2727_v48  ;;  %v2732_v50 = vrot.slane %v9840_v36, 2  ;;  %v2729_v61 = vrot.slane %v9842_v4, 2 }
 0x156   : > { %v9859_v42 = vmax.f32 %v1011_v30, 0.0  ;;  %v1032_v53 = vadd.f32 %v8150_v60, %v9278_v63  ;;  %14073 = vst [vmem:[#allocation120_spill] sm:$0xff] %v9865_v15  ;;  %v2734_v26 = vrot.slane %v1293_v25, 2  ;;  %14074 = vst [vmem:[#allocation121_spill] sm:$0xff] %v9869_v5  ;;  %v1564_v30 = vrot.slane %v9842_v4, 1  ;;  %8389 = vmatmul.mubr.msk.bf16.gmra.mxu0 %vm1780_vm5, %v9869_v5  ;;  %v8194_v2 = vpop.f32.mrf.mxu1 }
 0x157   : > { %v1023_v16 = vpop.f32.mrf.mxu0  ;;  %14075 = vst [vmem:[#allocation122_spill] sm:$0xff] %v9872_v54  ;;  %v1569_v48 = vrot.slane %v1293_v25, 1 }
 0x158   : > { %14072 = vst [vmem:[#allocation119_spill] sm:$0xff] %v9859_v42  ;;  %v1565_v60 = vrot.slane %v9859_v42, 1  ;;  %v2730_v59 = vrot.slane %v9859_v42, 2  ;;  %v1024_v21 = vadd.f32 %v9278_v63, %v1023_v16  ;;  %v9883_v62 = vmax.f32 %v1032_v53, 0.0 }
 0x159   : > { %v8151_v41 = vpop.f32.mrf.mxu0  ;;  %v9890_v36 = vsel %vm2651_vm4, %v2732_v50, %v2734_v26 }
 0x15a   : > { %14076 = vst [vmem:[#allocation123_spill] sm:$0xff] %v9883_v62  ;;  %v1035_v55 = vadd.f32 %v8151_v41, %v9278_v63  ;;  %v9887_v57 = vsel %vm1486_vm3, %v1564_v30, %v1565_v60  ;;  %14078 = vst [vmem:[#allocation125_spill] sm:$0xff] %v9890_v36  ;;  %v9892_v4 = vmax.f32 %v1024_v21, 0.0  ;;  %v9899_v25 = vsel %vm1486_vm3, %v1565_v60, %v1567_v37 }
 0x15b   : > { %14077 = vst [vmem:[#allocation124_spill] sm:$0xff] %v9887_v57  ;;  %v1026_v42 = vpop.f32.mrf.mxu0  ;;  %v9896_v5 = vpack.c.bf16 %v9887_v57, %v9865_v15  ;;  %14081 = vst [vmem:[#allocation128_spill] sm:$0xff] %v9899_v25  ;;  %v9903_v53 = vsel %vm2651_vm4, %v2729_v61, %v2730_v59  ;;  %v9906_v30 = vsel %vm2651_vm4, %v2730_v59, %v2732_v50  ;;  %v1574_v50 = vrot.slane %v9883_v62, 1 }
 0x15c   : > { %14079 = vst [vmem:[#allocation126_spill] sm:$0xff] %v9892_v4  ;;  %v1297_v16 = vmax.f32 %v1035_v55, 0.0  ;;  %v1027_v41 = vadd.f32 %v9278_v63, %v1026_v42  ;;  %14082 = vst [vmem:[#allocation129_spill] sm:$0xff] %v9903_v53  ;;  %v9912_v21 = vpack.c.bf16 %v9903_v53, %v9872_v54  ;;  %v9916_v60 = vpack.c.bf16 %v9890_v36, %v9906_v30 }
 0x15d   : > { %14080 = vst [vmem:[#allocation127_spill] sm:$0xff] %v9896_v5  ;;  %14083 = vst [vmem:[#allocation130_spill] sm:$0xff] %v9906_v30  ;;  %v8154_v26 = vpop.f32.mrf.mxu0  ;;  %8240 = vmatprep.mubr.msk.bf16.mxu1 %vm1780_vm5, %v9896_v5  ;;  %v1192_v55 = vadd.f32 %v9778_v8, %v9278_v63  ;;  %v9921_v42 = vsel %vm1486_vm3, %v1567_v37, %v1569_v48  ;;  %v9926_v5 = vpop.f32.mrf.mxu1  ;;  %v2736_v15 = vrot.slane %v9892_v4, 2 }
 0x15e   : > { %14084 = vst [vmem:[#allocation131_spill] sm:$0xff] %v9912_v21  ;;  %14085 = vst [vmem:[#allocation132_spill] sm:$0xff] %v9916_v60  ;;  %v1576_v61 = vrot.slane %v1297_v16, 1  ;;  %v9924_v59 = vmax.f32 %v1027_v41, 0.0  ;;  %v1048_v54 = vadd.f32 %v8154_v26, %v9278_v63  ;;  %8392 = vmatprep.mubr.msk.bf16.mxu0 %vm1780_vm5, %v9912_v21  ;;  %v9935_v8 = vpack.c.bf16 %v9921_v42, %v9899_v25 }
 0x15f   : > { %14086 = vst [vmem:[#allocation133_spill] sm:$0xff] %v9921_v42  ;;  %v1039_v48 = vpop.f32.mrf.mxu0  ;;  %v1571_v41 = vrot.slane %v9892_v4, 1  ;;  %v2739_v21 = vrot.slane %v9883_v62, 2  ;;  %v2741_v40 = vrot.slane %v1297_v16, 2  ;;  %8393 = vmatmul.mubr.msk.bf16.gmra.mxu0 %vm1780_vm5, %v9916_v60  ;;  %v1184_v53 = vadd.f32 %v9278_v63, %v9815_v35 }
 0x160   : > { %14087 = vst [vmem:[#allocation134_spill] sm:$0xff] %v9924_v59  ;;  %14088 = vst [vmem:[#allocation135_spill] sm:$0xff] %v9935_v8  ;;  %v1572_v26 = vrot.slane %v9924_v59, 1  ;;  %v2737_v39 = vrot.slane %v9924_v59, 2  ;;  %8241 = vmatmul.mubr.msk.bf16.gmra.mxu1 %vm1780_vm5, %v9935_v8  ;;  %v1040_v36 = vadd.f32 %v9278_v63, %v1039_v48  ;;  %v9961_v8 = vpop.f32.mrf.mxu1  ;;  %v9964_v60 = vsel %vm1486_vm3, %v1574_v50, %v1576_v61 }
 0x161   : > { %v8155_v37 = vpop.f32.mrf.mxu0  ;;  %14092 = vst [vmem:[#allocation139_spill] sm:$0xff] %v9964_v60  ;;  %v9966_v48 = vmax.f32 %v1048_v54, 0.0  ;;  %v9986_v54 = vmax.f32 %v1192_v55, 0.0  ;;  %v1208_v61 = vadd.f32 %v8194_v2, %v9278_v63 }
 0x162   : > { %v1051_v30 = vadd.f32 %v8155_v37, %v9278_v63  ;;  %v9953_v4 = vsel %vm1486_vm3, %v1571_v41, %v1572_v26  ;;  %v9956_v62 = vsel %vm1486_vm3, %v1572_v26, %v1574_v50  ;;  %v9959_v16 = vsel %vm2651_vm4, %v2736_v15, %v2737_v39 }
 0x163   : > { %14089 = vst [vmem:[#allocation136_spill] sm:$0xff] %v9953_v4  ;;  %14090 = vst [vmem:[#allocation137_spill] sm:$0xff] %v9956_v62  ;;  %v9968_v59 = vmax.f32 %v1040_v36, 0.0  ;;  %v1042_v35 = vpop.f32.mrf.mxu0  ;;  %v9972_v37 = vpack.c.bf16 %v9956_v62, %v9953_v4  ;;  %v9978_v57 = vsel %vm2651_vm4, %v2737_v39, %v2739_v21  ;;  %v9996_v15 = vmax.f32 %v1184_v53, 0.0 }
 0x164   : > { %14091 = vst [vmem:[#allocation138_spill] sm:$0xff] %v9959_v16  ;;  %14093 = vst [vmem:[#allocation140_spill] sm:$0xff] %v9966_v48  ;;  %v1301_v41 = vmax.f32 %v1051_v30, 0.0  ;;  %v1043_v26 = vadd.f32 %v9278_v63, %v1042_v35  ;;  %v9984_v36 = vpack.c.bf16 %v9978_v57, %v9959_v16  ;;  %v1187_v30 = vadd.f32 %v9278_v63, %v9862_v9  ;;  %v10002_v16 = vpop.f32.mrf.mxu1 }
 0x165   : > { %14094 = vst [vmem:[#allocation141_spill] sm:$0xff] %v9968_v59  ;;  %14095 = vst [vmem:[#allocation142_spill] sm:$0xff] %v9972_v37  ;;  %v8158_v50 = vpop.f32.mrf.mxu0  ;;  %8244 = vmatprep.mubr.msk.bf16.mxu1 %vm1780_vm5, %v9972_v37  ;;  %v9992_v35 = vsel %vm2651_vm4, %v2739_v21, %v2741_v40  ;;  %v10000_v37 = vadd.f32 %v9838_v47, %v9278_v63  ;;  %v1581_v55 = vrot.slane %v9966_v48, 1  ;;  %v1578_v53 = vrot.slane %v9968_v59, 1 }
 0x166   : > { %14096 = vst [vmem:[#allocation143_spill] sm:$0xff] %v9978_v57  ;;  %14097 = vst [vmem:[#allocation144_spill] sm:$0xff] %v9984_v36  ;;  %v9994_v39 = vmax.f32 %v1043_v26, 0.0  ;;  %v1583_v62 = vrot.slane %v1301_v41, 1  ;;  %v1064_v9 = vadd.f32 %v8158_v50, %v9278_v63  ;;  %8396 = vmatprep.mubr.msk.bf16.mxu0 %vm1780_vm5, %v9984_v36  ;;  %v2743_v21 = vrot.slane %v9968_v59, 2 }
 0x167   : > { %14098 = vst [vmem:[#allocation145_spill] sm:$0xff] %v9986_v54  ;;  %14099 = vst [vmem:[#allocation146_spill] sm:$0xff] %v9992_v35  ;;  %v1055_v40 = vpop.f32.mrf.mxu0  ;;  %v2748_v25 = vrot.slane %v1301_v41, 2  ;;  %v10015_v50 = vmax.f32 %v1187_v30, 0.0  ;;  %v10017_v51 = vmax.f32 %v1208_v61, 0.0  ;;  %v2746_v41 = vrot.slane %v9966_v48, 2 }
 0x168   : > { %14100 = vst [vmem:[#allocation147_spill] sm:$0xff] %v9994_v39  ;;  %14101 = vst [vmem:[#allocation148_spill] sm:$0xff] %v9996_v15  ;;  %v1579_v47 = vrot.slane %v9994_v39, 1  ;;  %v2744_v26 = vrot.slane %v9994_v39, 2  ;;  %v1056_v4 = vadd.f32 %v9278_v63, %v1055_v40  ;;  %v8198_v39 = vpop.f32.mrf.mxu1  ;;  %v10031_v40 = vsel %vm1486_vm3, %v1581_v55, %v1583_v62 }
 0x169   : > { %v8159_v42 = vpop.f32.mrf.mxu0  ;;  %14102 = vst [vmem:[#allocation149_spill] sm:$0xff] %v10015_v50  ;;  %14106 = vst [vmem:[#allocation153_spill] sm:$0xff] %v10031_v40  ;;  %v10033_v30 = vmax.f32 %v1064_v9, 0.0  ;;  %v14186_v43 = vrot.slane %v10017_v51, 2 }
 0x16a   : > { %v1067_v36 = vadd.f32 %v8159_v42, %v9278_v63  ;;  %v10021_v2 = vsel %vm1486_vm3, %v1578_v53, %v1579_v47  ;;  %v10024_v57 = vsel %vm2651_vm4, %v2743_v21, %v2744_v26  ;;  %v10027_v59 = vsel %vm1486_vm3, %v1579_v47, %v1581_v55 }
 0x16b   : > { %14103 = vst [vmem:[#allocation150_spill] sm:$0xff] %v10021_v2  ;;  %14104 = vst [vmem:[#allocation151_spill] sm:$0xff] %v10024_v57  ;;  %v1058_v61 = vpop.f32.mrf.mxu0  ;;  %v10037_v42 = vpack.c.bf16 %v10021_v2, %v9964_v60  ;;  %v10039_v53 = vmax.f32 %v1056_v4, 0.0  ;;  %v10044_v47 = vpack.c.bf16 %v10024_v57, %v9992_v35  ;;  %v10048_v48 = vpack.c.bf16 %v10031_v40, %v10027_v59  ;;  %v10070_v4 = vpop.f32.mrf.mxu1 }
 0x16c   : > { %14105 = vst [vmem:[#allocation152_spill] sm:$0xff] %v10027_v59  ;;  %14107 = vst [vmem:[#allocation154_spill] sm:$0xff] %v10033_v30  ;;  %v1059_v21 = vadd.f32 %v9278_v63, %v1058_v61  ;;  %v1305_v62 = vmax.f32 %v1067_v36, 0.0  ;;  %v10053_v9 = vsel %vm2651_vm4, %v2744_v26, %v2746_v41  ;;  %v10058_v61 = vsel %vm2651_vm4, %v2746_v41, %v2748_v25 }
 0x16d   : > { %14108 = vst [vmem:[#allocation155_spill] sm:$0xff] %v10037_v42  ;;  %14109 = vst [vmem:[#allocation156_spill] sm:$0xff] %v10039_v53  ;;  %v8162_v55 = vpop.f32.mrf.mxu0  ;;  %8245 = vmatmul.mubr.msk.bf16.gmra.mxu1 %vm1780_vm5, %v10037_v42  ;;  %8397 = vmatmul.mubr.msk.bf16.gmra.mxu0 %vm1780_vm5, %v10044_v47  ;;  %v10067_v42 = vld [vmem:[#allocation3] ss:$0 sm:$0xff]  ;;  %v1588_v63 = vrot.slane %v10033_v30, 1  ;;  %v10076_v41 = vpack.c.bf16 %v10058_v61, %v10053_v9  ;;  %v1585_v36 = vrot.slane %v10039_v53, 1  ;;  %v8199_v33 = vpop.f32.mrf.mxu1 }
 0x16e   : > { %14110 = vst [vmem:[#allocation157_spill] sm:$0xff] %v10044_v47  ;;  %14111 = vst [vmem:[#allocation158_spill] sm:$0xff] %v10048_v48  ;;  %v10060_v35 = vmax.f32 %v1059_v21, 0.0  ;;  %8248 = vmatprep.mubr.msk.bf16.mxu1 %vm1780_vm5, %v10048_v48  ;;  %v1224_v26 = vadd.f32 %v10067_v42, %v8198_v39  ;;  %v1080_v25 = vadd.f32 %v10067_v42, %v8162_v55  ;;  %v2753_v48 = vrot.slane %v10033_v30, 2 }
 0x16f   : > { %14112 = vst [vmem:[#allocation159_spill] sm:$0xff] %v10053_v9  ;;  %14113 = vst [vmem:[#allocation160_spill] sm:$0xff] %v10058_v61  ;;  %v1071_v21 = vpop.f32.mrf.mxu0  ;;  %v2750_v47 = vrot.slane %v10039_v53, 2  ;;  %v1590_v60 = vrot.slane %v1305_v62, 1  ;;  %v2755_v59 = vrot.slane %v1305_v62, 2  ;;  %8400 = vmatprep.mubr.msk.bf16.mxu0 %vm1780_vm5, %v10076_v41 }
 0x170   : > { %14114 = vst [vmem:[#allocation161_spill] sm:$0xff] %v10060_v35  ;;  %14115 = vst [vmem:[#allocation162_spill] sm:$0xff] %v10076_v41  ;;  %v1586_v39 = vrot.slane %v10060_v35, 1  ;;  %v2751_v2 = vrot.slane %v10060_v35, 2  ;;  %v1072_v55 = vadd.f32 %v10067_v42, %v1071_v21  ;;  %v10094_v53 = vmax.f32 %v1224_v26, 0.0 }
 0x171   : > { %v8163_v61 = vpop.f32.mrf.mxu0  ;;  %v10096_v62 = vmax.f32 %v1080_v25, 0.0  ;;  %v10114_v25 = vsel %vm1486_vm3, %v1588_v63, %v1590_v60 }
 0x172   : > { %v1083_v57 = vadd.f32 %v10067_v42, %v8163_v61  ;;  %v10089_v9 = vsel %vm1486_vm3, %v1585_v36, %v1586_v39  ;;  %v10092_v30 = vsel %vm1486_vm3, %v1586_v39, %v1588_v63  ;;  %14118 = vst [vmem:[#allocation165_spill] sm:$0xff] %v10094_v53  ;;  %v10098_v35 = vmax.f32 %v1072_v55, 0.0  ;;  %14123 = vst [vmem:[#allocation170_spill] sm:$0xff] %v10114_v25 }
 0x173   : > { %14116 = vst [vmem:[#allocation163_spill] sm:$0xff] %v10089_v9  ;;  %14117 = vst [vmem:[#allocation164_spill] sm:$0xff] %v10092_v30  ;;  %v1074_v49 = vpop.f32.mrf.mxu0  ;;  %v10102_v21 = vpack.c.bf16 %v10092_v30, %v10089_v9  ;;  %v10105_v61 = vadd.f32 %v10067_v42, %v8199_v33  ;;  %v10111_v39 = vsel %vm2651_vm4, %v2750_v47, %v2751_v2  ;;  %v1595_v40 = vrot.slane %v10096_v62, 1 }
 0x174   : > { %14119 = vst [vmem:[#allocation166_spill] sm:$0xff] %v10096_v62  ;;  %14120 = vst [vmem:[#allocation167_spill] sm:$0xff] %v10098_v35  ;;  %v1309_v36 = vmax.f32 %v1083_v57, 0.0  ;;  %v1075_v41 = vadd.f32 %v10067_v42, %v1074_v49  ;;  %v10119_v30 = vsel %vm2651_vm4, %v2751_v2, %v2753_v48  ;;  %v10123_v33 = vadd.f32 %v10067_v42, %v9926_v5 }
 0x175   : > { %14121 = vst [vmem:[#allocation168_spill] sm:$0xff] %v10102_v21  ;;  %14122 = vst [vmem:[#allocation169_spill] sm:$0xff] %v10111_v39  ;;  %v8166_v55 = vpop.f32.mrf.mxu0  ;;  %8249 = vmatmul.mubr.msk.bf16.gmra.mxu1 %vm1780_vm5, %v10102_v21  ;;  %v10127_v49 = vadd.f32 %v10067_v42, %v10002_v16  ;;  %v10130_v57 = vsel %vm2651_vm4, %v2753_v48, %v2755_v59  ;;  %v10137_v2 = vpack.c.bf16 %v10119_v30, %v10111_v39 }
 0x176   : > { %14124 = vst [vmem:[#allocation171_spill] sm:$0xff] %v10119_v30  ;;  %14125 = vst [vmem:[#allocation172_spill] sm:$0xff] %v10130_v57  ;;  %v2762_v60 = vrot.slane %v1309_v36, 2  ;;  %v10132_v47 = vmax.f32 %v1075_v41, 0.0  ;;  %v1096_v63 = vadd.f32 %v10067_v42, %v8166_v55  ;;  %v1345_v16 = vmax.f32 %v10105_v61, 0.0 }
 0x177   : > { %14127 = vst [vmem:[#allocation174_spill] sm:$0xff] %v10137_v2  ;;  %v1087_v26 = vpop.f32.mrf.mxu0  ;;  %v2760_v59 = vrot.slane %v10096_v62, 2  ;;  %v1592_v48 = vrot.slane %v10098_v35, 1  ;;  %v1597_v55 = vrot.slane %v1309_v36, 1  ;;  %8401 = vmatmul.mubr.msk.bf16.gmra.mxu0 %vm1780_vm5, %v10137_v2  ;;  %v2757_v61 = vrot.slane %v10098_v35, 2 }
 0x178   : > { %14126 = vst [vmem:[#allocation173_spill] sm:$0xff] %v10132_v47  ;;  %v1593_v41 = vrot.slane %v10132_v47, 1  ;;  %v2758_v9 = vrot.slane %v10132_v47, 2  ;;  %v10147_v30 = vmax.f32 %v1096_v63, 0.0  ;;  %v1088_v21 = vadd.f32 %v10067_v42, %v1087_v26 }
 0x179   : > { %v8167_v5 = vpop.f32.mrf.mxu0  ;;  %v10154_v39 = vsel %vm2651_vm4, %v2760_v59, %v2762_v60  ;;  %v4009_v2 = vrot.slane %v1345_v16, 1 }
 0x17a   : > { %14128 = vst [vmem:[#allocation175_spill] sm:$0xff] %v10147_v30  ;;  %14129 = vst [vmem:[#allocation176_spill] sm:$0xff] %v10154_v39  ;;  %v1099_v62 = vadd.f32 %v10067_v42, %v8167_v5  ;;  %v10158_v18 = vsel %vm1486_vm3, %v1592_v48, %v1593_v41  ;;  %v10160_v36 = vmax.f32 %v1088_v21, 0.0  ;;  %v10167_v26 = vsel %vm1486_vm3, %v1593_v41, %v1595_v40 }
 0x17b   : > { %14130 = vst [vmem:[#allocation177_spill] sm:$0xff] %v10158_v18  ;;  %v1090_v63 = vpop.f32.mrf.mxu0  ;;  %v10164_v47 = vpack.c.bf16 %v10158_v18, %v10114_v25  ;;  %14133 = vst [vmem:[#allocation180_spill] sm:$0xff] %v10167_v26  ;;  %v10171_v11 = vsel %vm2651_vm4, %v2757_v61, %v2758_v9  ;;  %v10174_v5 = vsel %vm2651_vm4, %v2758_v9, %v2760_v59  ;;  %v1602_v48 = vrot.slane %v10147_v30, 1 }
 0x17c   : > { %14131 = vst [vmem:[#allocation178_spill] sm:$0xff] %v10160_v36  ;;  %v1313_v35 = vmax.f32 %v1099_v62, 0.0  ;;  %v1091_v60 = vadd.f32 %v10067_v42, %v1090_v63  ;;  %14134 = vst [vmem:[#allocation181_spill] sm:$0xff] %v10171_v11  ;;  %v10177_v21 = vsel %vm1486_vm3, %v1595_v40, %v1597_v55  ;;  %v10184_v62 = vpack.c.bf16 %v10171_v11, %v10130_v57 }
 0x17d   : > { %14132 = vst [vmem:[#allocation179_spill] sm:$0xff] %v10164_v47  ;;  %14135 = vst [vmem:[#allocation182_spill] sm:$0xff] %v10174_v5  ;;  %v8170_v25 = vpop.f32.mrf.mxu0  ;;  %8252 = vmatprep.mubr.msk.bf16.mxu1 %vm1780_vm5, %v10164_v47  ;;  %v10188_v41 = vpack.c.bf16 %v10154_v39, %v10174_v5  ;;  %v2767_v9 = vrot.slane %v10147_v30, 2  ;;  %v10200_v63 = vpack.c.bf16 %v10177_v21, %v10167_v26  ;;  %v14140_v57 = vrot.slane %v10094_v53, 1 }
 0x17e   : > { %14136 = vst [vmem:[#allocation183_spill] sm:$0xff] %v10184_v62  ;;  %v1604_v59 = vrot.slane %v1313_v35, 1  ;;  %v10191_v61 = vmax.f32 %v1091_v60, 0.0  ;;  %v1112_v40 = vadd.f32 %v10067_v42, %v8170_v25  ;;  %8404 = vmatprep.mubr.msk.bf16.mxu0 %vm1780_vm5, %v10184_v62  ;;  %v1599_v25 = vrot.slane %v10160_v36, 1 }
 0x17f   : > { %14137 = vst [vmem:[#allocation184_spill] sm:$0xff] %v10188_v41  ;;  %14139 = vst [vmem:[#allocation186_spill] sm:$0xff] %v10200_v63  ;;  %v1103_v39 = vpop.f32.mrf.mxu0  ;;  %v10207_v60 = vsel %vm1486_vm3, %v14140_v57, %v4009_v2  ;;  %v2764_v62 = vrot.slane %v10160_v36, 2  ;;  %v2769_v11 = vrot.slane %v1313_v35, 2  ;;  %8253 = vmatmul.mubr.msk.bf16.gmra.mxu1 %vm1780_vm5, %v10200_v63  ;;  %8405 = vmatmul.mubr.msk.bf16.gmra.mxu0 %vm1780_vm5, %v10188_v41 }
 0x180   : > { %14138 = vst [vmem:[#allocation185_spill] sm:$0xff] %v10191_v61  ;;  %14141 = vst [vmem:[#allocation187_spill] sm:$0xff] %v10207_v60  ;;  %v1600_v1 = vrot.slane %v10191_v61, 1  ;;  %v2765_v55 = vrot.slane %v10191_v61, 2  ;;  %v10215_v29 = vmax.f32 %v1112_v40, 0.0  ;;  %v1104_v57 = vadd.f32 %v10067_v42, %v1103_v39 }
 0x181   : > { %v8171_v2 = vpop.f32.mrf.mxu0  ;;  %v10233_v5 = vsel %vm1486_vm3, %v1602_v48, %v1604_v59 }
 0x182   : > { %14142 = vst [vmem:[#allocation188_spill] sm:$0xff] %v10215_v29  ;;  %v1115_v47 = vadd.f32 %v10067_v42, %v8171_v2  ;;  %v10224_v60 = vsel %vm1486_vm3, %v1599_v25, %v1600_v1  ;;  %v10227_v35 = vsel %vm1486_vm3, %v1600_v1, %v1602_v48  ;;  %v10230_v40 = vsel %vm2651_vm4, %v2764_v62, %v2765_v55 }
 0x183   : > { %14143 = vst [vmem:[#allocation189_spill] sm:$0xff] %v10227_v35  ;;  %14144 = vst [vmem:[#allocation190_spill] sm:$0xff] %v10230_v40  ;;  %v10235_v63 = vmax.f32 %v1104_v57, 0.0  ;;  %v1106_v41 = vpop.f32.mrf.mxu0  ;;  %v10239_v39 = vpack.c.bf16 %v10227_v35, %v10224_v60  ;;  %v4573_v2 = vrot.slane %v1345_v16, 2  ;;  %v10245_v62 = vsel %vm2651_vm4, %v2765_v55, %v2767_v9 }
 0x184   : > { %14145 = vst [vmem:[#allocation191_spill] sm:$0xff] %v10233_v5  ;;  %v1317_v18 = vmax.f32 %v1115_v47, 0.0  ;;  %v1107_v25 = vadd.f32 %v10067_v42, %v1106_v41  ;;  %14148 = vst [vmem:[#allocation194_spill] sm:$0xff] %v10245_v62  ;;  %v10255_v16 = vpack.c.bf16 %v10245_v62, %v10230_v40  ;;  %v10259_v41 = vmax.f32 %v10123_v33, 0.0 }
 0x185   : > { %14146 = vst [vmem:[#allocation192_spill] sm:$0xff] %v10235_v63  ;;  %14147 = vst [vmem:[#allocation193_spill] sm:$0xff] %v10239_v39  ;;  %v10249_v48 = vpack.c.bf16 %v10235_v63, %v10147_v30  ;;  %v8174_v59 = vpop.f32.mrf.mxu0  ;;  %8256 = vmatprep.mubr.msk.bf16.mxu1 %vm1780_vm5, %v10239_v39  ;;  %v10262_v55 = vsel %vm2651_vm4, %v2767_v9, %v2769_v11  ;;  %v1609_v57 = vrot.slane %v10215_v29, 1  ;;  %v10268_v30 = vmax.f32 %v10127_v49, 0.0  ;;  %v1218_v39 = vpop.f32.mrf.mxu1 }
 0x186   : > { %14150 = vst [vmem:[#allocation196_spill] sm:$0xff] %v10255_v16  ;;  %14151 = vst [vmem:[#allocation197_spill] sm:$0xff] %v10259_v41  ;;  %v10265_v1 = vmax.f32 %v1107_v25, 0.0  ;;  %v1128_v40 = vadd.f32 %v10067_v42, %v8174_v59  ;;  %8408 = vmatprep.mubr.msk.bf16.mxu0 %vm1780_vm5, %v10255_v16  ;;  %v14155_v11 = vrot.slane %v10094_v53, 2  ;;  %v1606_v25 = vrot.slane %v10235_v63, 1 }
 0x187   : > { %14149 = vst [vmem:[#allocation195_spill] sm:$0xff] %v10249_v48  ;;  %14152 = vst [vmem:[#allocation198_spill] sm:$0xff] %v10262_v55  ;;  %v1611_v48 = vrot.slane %v1317_v18, 1  ;;  %v1119_v47 = vpop.f32.mrf.mxu0  ;;  %v2771_v49 = vrot.slane %v10235_v63, 2  ;;  %v2774_v26 = vrot.slane %v10215_v29, 2  ;;  %v2776_v16 = vrot.slane %v1317_v18, 2 }
 0x188   : > { %14153 = vst [vmem:[#allocation199_spill] sm:$0xff] %v10265_v1  ;;  %14154 = vst [vmem:[#allocation200_spill] sm:$0xff] %v10268_v30  ;;  %v10278_v9 = vsel %vm2651_vm4, %v14155_v11, %v4573_v2  ;;  %v1607_v35 = vrot.slane %v10265_v1, 1  ;;  %v2772_v59 = vrot.slane %v10265_v1, 2  ;;  %v1120_v12 = vadd.f32 %v10067_v42, %v1119_v47  ;;  %v14284_v63 = vld [vmem:[#allocation42_spill] sm:$0xff] }
 0x189   : > { %14156 = vst [vmem:[#allocation201_spill] sm:$0xff] %v10278_v9  ;;  %v8175_v33 = vpop.f32.mrf.mxu0  ;;  %v1219_v62 = vadd.f32 %v10067_v42, %v1218_v39  ;;  %v10298_v46 = vsel %vm1486_vm3, %v1609_v57, %v1611_v48  ;;  %v10300_v18 = vmax.f32 %v1128_v40, 0.0  ;;  %v14164_v40 = vrot.slane %v10015_v50, 1 }
 0x18a   : > { %v1131_v22 = vadd.f32 %v10067_v42, %v8175_v33  ;;  %v10289_v2 = vsel %vm1486_vm3, %v1606_v25, %v1607_v35  ;;  %v10292_v11 = vsel %vm2651_vm4, %v2771_v49, %v2772_v59  ;;  %v10295_v9 = vsel %vm1486_vm3, %v1607_v35, %v1609_v57  ;;  %14158 = vst [vmem:[#allocation203_spill] sm:$0xff] %v10298_v46 }
 0x18b   : > { %14157 = vst [vmem:[#allocation202_spill] sm:$0xff] %v10292_v11  ;;  %14159 = vst [vmem:[#allocation204_spill] sm:$0xff] %v10300_v18  ;;  %v10302_v47 = vmax.f32 %v1120_v12, 0.0  ;;  %v1122_v44 = vpop.f32.mrf.mxu0  ;;  %v10306_v39 = vpack.c.bf16 %v10289_v2, %v10233_v5  ;;  %v10311_v25 = vpack.c.bf16 %v10292_v11, %v10262_v55  ;;  %v10315_v35 = vpack.c.bf16 %v10298_v46, %v10295_v9  ;;  %v14250_v11 = vld [vmem:[#allocation18_spill] sm:$0xff] }
 0x18c   : > { %v1123_v33 = vadd.f32 %v10067_v42, %v1122_v44  ;;  %v14165_v12 = vrot.slane %v9996_v15, 1  ;;  %v1321_v49 = vmax.f32 %v1131_v22, 0.0  ;;  %v10329_v55 = vsel %vm2651_vm4, %v2772_v59, %v2774_v26 }
 0x18d   : > { %14160 = vst [vmem:[#allocation205_spill] sm:$0xff] %v10302_v47  ;;  %14161 = vst [vmem:[#allocation206_spill] sm:$0xff] %v10306_v39  ;;  %v8178_v44 = vpop.f32.mrf.mxu0  ;;  %8257 = vmatmul.mubr.msk.bf16.gmra.mxu1 %vm1780_vm5, %v10306_v39  ;;  %v10331_v5 = vmax.f32 %v1219_v62, 0.0  ;;  %v10334_v20 = vsel %vm2651_vm4, %v2774_v26, %v2776_v16  ;;  %8409 = vmatmul.mubr.msk.bf16.gmra.mxu0 %vm1780_vm5, %v10311_v25  ;;  %v1648_v22 = vrot.slane %v10259_v41, 1  ;;  %v1616_v59 = vrot.slane %v10300_v18, 1 }
 0x18e   : > { %14162 = vst [vmem:[#allocation207_spill] sm:$0xff] %v10311_v25  ;;  %14163 = vst [vmem:[#allocation208_spill] sm:$0xff] %v10315_v35  ;;  %v10322_v48 = vsel %vm1486_vm3, %v14165_v12, %v14164_v40  ;;  %v10336_v24 = vmax.f32 %v1123_v33, 0.0  ;;  %v1144_v40 = vadd.f32 %v10067_v42, %v8178_v44  ;;  %8260 = vmatprep.mubr.msk.bf16.mxu1 %vm1780_vm5, %v10315_v35  ;;  %v1613_v12 = vrot.slane %v10302_v47, 1 }
 0x18f   : > { %14166 = vst [vmem:[#allocation209_spill] sm:$0xff] %v10329_v55  ;;  %14167 = vst [vmem:[#allocation210_spill] sm:$0xff] %v10331_v5  ;;  %v10347_v62 = vpack.c.bf16 %v10334_v20, %v10329_v55  ;;  %v1135_v26 = vpop.f32.mrf.mxu0  ;;  %v2778_v44 = vrot.slane %v10302_v47, 2  ;;  %v1618_v39 = vrot.slane %v1321_v49, 1  ;;  %v2783_v25 = vrot.slane %v1321_v49, 2  ;;  %v14275_v55 = vld [vmem:[#allocation32_spill] sm:$0xff] }
 0x190   : > { %14168 = vst [vmem:[#allocation211_spill] sm:$0xff] %v10334_v20  ;;  %14169 = vst [vmem:[#allocation212_spill] sm:$0xff] %v10336_v24  ;;  %v10356_v57 = vpack.c.bf16 %v10336_v24, %v10302_v47  ;;  %v1614_v35 = vrot.slane %v10336_v24, 1  ;;  %v2779_v45 = vrot.slane %v10336_v24, 2  ;;  %v1136_v16 = vadd.f32 %v10067_v42, %v1135_v26 }
 0x191   : > { %14170 = vst [vmem:[#allocation213_spill] sm:$0xff] %v10347_v62  ;;  %8412 = vmatprep.mubr.msk.bf16.mxu0 %vm1780_vm5, %v10347_v62  ;;  %v8179_v33 = vpop.f32.mrf.mxu0  ;;  %v10363_v14 = vmax.f32 %v1144_v40, 0.0  ;;  %v2781_v49 = vrot.slane %v10300_v18, 2  ;;  %v2813_v40 = vrot.slane %v10259_v41, 2  ;;  %v10387_v34 = vsel %vm1486_vm3, %v1616_v59, %v1618_v39 }
 0x192   : > { %14171 = vst [vmem:[#allocation214_spill] sm:$0xff] %v10356_v57  ;;  %v1147_v17 = vadd.f32 %v10067_v42, %v8179_v33  ;;  %v10367_v23 = vsel %vm1486_vm3, %v1613_v12, %v1614_v35  ;;  %v10370_v47 = vsel %vm1486_vm3, %v1614_v35, %v1616_v59  ;;  %v10373_v57 = vmax.f32 %v1136_v16, 0.0 }
 0x193   : > { %14172 = vst [vmem:[#allocation215_spill] sm:$0xff] %v10363_v14  ;;  %14173 = vst [vmem:[#allocation216_spill] sm:$0xff] %v10367_v23  ;;  %v1138_v19 = vpop.f32.mrf.mxu0  ;;  %v10377_v62 = vpack.c.bf16 %v10370_v47, %v10367_v23  ;;  %v10384_v35 = vsel %vm2651_vm4, %v2778_v44, %v2779_v45  ;;  %v10390_v16 = vsel %vm2651_vm4, %v2781_v49, %v2783_v25  ;;  %v1623_v12 = vrot.slane %v10363_v14, 1 }
 0x194   : > { %14174 = vst [vmem:[#allocation217_spill] sm:$0xff] %v10373_v57  ;;  %v1325_v26 = vmax.f32 %v1147_v17, 0.0  ;;  %v1139_v33 = vadd.f32 %v10067_v42, %v1138_v19  ;;  %14176 = vst [vmem:[#allocation219_spill] sm:$0xff] %v10384_v35  ;;  %v10395_v17 = vsel %vm2651_vm4, %v2779_v45, %v2781_v49  ;;  %v2814_v19 = vrot.slane %v10268_v30, 2 }
 0x195   : > { %14175 = vst [vmem:[#allocation218_spill] sm:$0xff] %v10377_v62  ;;  %14177 = vst [vmem:[#allocation220_spill] sm:$0xff] %v10390_v16  ;;  %v8182_v3 = vpop.f32.mrf.mxu0  ;;  %8261 = vmatmul.mubr.msk.bf16.gmra.mxu1 %vm1780_vm5, %v10377_v62  ;;  %v14180_v39 = vrot.slane %v10268_v30, 1  ;;  %v2788_v59 = vrot.slane %v10363_v14, 2  ;;  %v1620_v62 = vrot.slane %v10373_v57, 1  ;;  %v10411_v45 = vpack.c.bf16 %v10395_v17, %v10384_v35 }
 0x196   : > { %14178 = vst [vmem:[#allocation221_spill] sm:$0xff] %v10395_v17  ;;  %v10399_v41 = vmax.f32 %v1139_v33, 0.0  ;;  %v1160_v44 = vadd.f32 %v10067_v42, %v8182_v3  ;;  %v2790_v46 = vrot.slane %v1325_v26, 2  ;;  %v2785_v33 = vrot.slane %v10373_v57, 2 }
 0x197   : > { %v10405_v25 = vsel %vm1486_vm3, %v1648_v22, %v14180_v39  ;;  %14181 = vst [vmem:[#allocation223_spill] sm:$0xff] %v10411_v45  ;;  %v1151_v49 = vpop.f32.mrf.mxu0  ;;  %v1625_v23 = vrot.slane %v1325_v26, 1  ;;  %8413 = vmatmul.mubr.msk.bf16.gmra.mxu0 %vm1780_vm5, %v10411_v45  ;;  %v10437_v13 = vsel %vm2651_vm4, %v2814_v19, %v14186_v43 }
 0x198   : > { %14179 = vst [vmem:[#allocation222_spill] sm:$0xff] %v10399_v41  ;;  %v10416_v3 = vpack.c.bf16 %v10363_v14, %v10399_v41  ;;  %v1621_v22 = vrot.slane %v10399_v41, 1  ;;  %v2786_v39 = vrot.slane %v10399_v41, 2  ;;  %v10422_v0 = vmax.f32 %v1160_v44, 0.0  ;;  %14187 = vst [vmem:[#allocation228_spill] sm:$0xff] %v10437_v13 }
 0x199   : > { %v1152_v53 = vadd.f32 %v10067_v42, %v1151_v49  ;;  %v8183_v32 = vpop.f32.mrf.mxu0  ;;  %v10440_v44 = vsel %vm2651_vm4, %v2788_v59, %v2790_v46  ;;  %v10459_v46 = vsel %vm1486_vm3, %v1623_v12, %v1625_v23 }
 0x19a   : > { %14182 = vst [vmem:[#allocation224_spill] sm:$0xff] %v10416_v3  ;;  %14183 = vst [vmem:[#allocation225_spill] sm:$0xff] %v10422_v0  ;;  %v1163_v26 = vadd.f32 %v10067_v42, %v8183_v32  ;;  %v10429_v14 = vsel %vm1486_vm3, %v1620_v62, %v1621_v22  ;;  %v10432_v3 = vsel %vm2651_vm4, %v2813_v40, %v2814_v19 }
 0x19b   : > { %14184 = vst [vmem:[#allocation226_spill] sm:$0xff] %v10429_v14  ;;  %14185 = vst [vmem:[#allocation227_spill] sm:$0xff] %v10432_v3  ;;  %v10442_v45 = vmax.f32 %v1152_v53, 0.0  ;;  %v1154_v49 = vpop.f32.mrf.mxu0  ;;  %v10446_v32 = vpack.c.bf16 %v10429_v14, %v10387_v34  ;;  %v10449_v62 = vsel %vm1486_vm3, %v1621_v22, %v1623_v12  ;;  %v10453_v58 = vsel %vm2651_vm4, %v2785_v33, %v2786_v39 }
 0x19c   : > { %14188 = vst [vmem:[#allocation229_spill] sm:$0xff] %v10440_v44  ;;  %14191 = vst [vmem:[#allocation232_spill] sm:$0xff] %v10449_v62  ;;  %v1329_v40 = vmax.f32 %v1163_v26, 0.0  ;;  %v1155_v41 = vadd.f32 %v10067_v42, %v1154_v49  ;;  %v10456_v43 = vsel %vm2651_vm4, %v2786_v39, %v2788_v59  ;;  %v1630_v53 = vrot.slane %v10422_v0, 1 }
 0x19d   : > { %14189 = vst [vmem:[#allocation230_spill] sm:$0xff] %v10442_v45  ;;  %14190 = vst [vmem:[#allocation231_spill] sm:$0xff] %v10446_v32  ;;  %v8186_v19 = vpop.f32.mrf.mxu0  ;;  %8264 = vmatprep.mubr.msk.bf16.mxu1 %vm1780_vm5, %v10446_v32  ;;  %v10466_v22 = vpack.c.bf16 %v10453_v58, %v10390_v16  ;;  %v10470_v33 = vpack.c.bf16 %v10440_v44, %v10456_v43  ;;  %v2795_v59 = vrot.slane %v10422_v0, 2  ;;  %v2792_v16 = vrot.slane %v10442_v45, 2 }
 0x19e   : > { %14192 = vst [vmem:[#allocation233_spill] sm:$0xff] %v10453_v58  ;;  %14193 = vst [vmem:[#allocation234_spill] sm:$0xff] %v10456_v43  ;;  %v1632_v39 = vrot.slane %v1329_v40, 1  ;;  %v10473_v26 = vmax.f32 %v1155_v41, 0.0  ;;  %v1176_v23 = vadd.f32 %v10067_v42, %v8186_v19  ;;  %v2797_v12 = vrot.slane %v1329_v40, 2 }
 0x19f   : > { %14194 = vst [vmem:[#allocation235_spill] sm:$0xff] %v10466_v22  ;;  %14195 = vst [vmem:[#allocation236_spill] sm:$0xff] %v10470_v33  ;;  %8416 = vmatprep.mubr.msk.bf16.mxu0 %vm1780_vm5, %v10466_v22  ;;  %v10482_v32 = vpack.c.bf16 %v10459_v46, %v10449_v62  ;;  %v1167_v31 = vpop.f32.mrf.mxu0  ;;  %v1627_v41 = vrot.slane %v10442_v45, 1  ;;  %v8202_v22 = vpop.f32.mrf.mxu1  ;;  %v14200_v49 = vrot.slane %v10017_v51, 1 }
 0x1a0   : > { %14196 = vst [vmem:[#allocation237_spill] sm:$0xff] %v10473_v26  ;;  %v1628_v40 = vrot.slane %v10473_v26, 1  ;;  %v2793_v19 = vrot.slane %v10473_v26, 2  ;;  %v10492_v58 = vmax.f32 %v1176_v23, 0.0  ;;  %8417 = vmatmul.mubr.msk.bf16.gmra.mxu0 %vm1780_vm5, %v10470_v33  ;;  %v1168_v44 = vadd.f32 %v10067_v42, %v1167_v31 }
 0x1a1   : > { %14197 = vst [vmem:[#allocation238_spill] sm:$0xff] %v10482_v32  ;;  %8265 = vmatmul.mubr.msk.bf16.gmra.mxu1 %vm1780_vm5, %v10482_v32  ;;  %v8187_v43 = vpop.f32.mrf.mxu0  ;;  %v14201_v32 = vrot.slane %v10268_v30, 1  ;;  %v10516_v31 = vsel %vm1486_vm3, %v1630_v53, %v1632_v39  ;;  %v10519_v14 = vsel %vm2651_vm4, %v2795_v59, %v2797_v12 }
 0x1a2   : > { %14198 = vst [vmem:[#allocation239_spill] sm:$0xff] %v10492_v58  ;;  %v1179_v62 = vadd.f32 %v10067_v42, %v8187_v43  ;;  %v10503_v17 = vsel %vm1486_vm3, %v1627_v41, %v1628_v40  ;;  %v10506_v23 = vsel %vm1486_vm3, %v1628_v40, %v1630_v53  ;;  %14202 = vst [vmem:[#allocation241_spill] sm:$0xff] %v10516_v31  ;;  %v10521_v43 = vmax.f32 %v1168_v44, 0.0  ;;  %v10533_v53 = vpop.f32.mrf.mxu1 }
 0x1a3   : > { %14199 = vst [vmem:[#allocation240_spill] sm:$0xff] %v10506_v23  ;;  %v10513_v33 = vsel %vm1486_vm3, %v14201_v32, %v14200_v49  ;;  %14203 = vst [vmem:[#allocation242_spill] sm:$0xff] %v10519_v14  ;;  %v1170_v41 = vpop.f32.mrf.mxu0  ;;  %v10524_v35 = vsel %vm2651_vm4, %v2792_v16, %v2793_v19  ;;  %v10529_v30 = vpack.c.bf16 %v10506_v23, %v10503_v17  ;;  %v1637_v39 = vrot.slane %v10492_v58, 1 }
 0x1a4   : > { %14204 = vst [vmem:[#allocation243_spill] sm:$0xff] %v10521_v43  ;;  %14205 = vst [vmem:[#allocation244_spill] sm:$0xff] %v10524_v35  ;;  %v1333_v40 = vmax.f32 %v1179_v62, 0.0  ;;  %v1171_v20 = vadd.f32 %v10067_v42, %v1170_v41  ;;  %v2802_v44 = vrot.slane %v10492_v58, 2  ;;  %v10539_v16 = vpack.c.bf16 %v10521_v43, %v10422_v0 }
 0x1a5   : > { %14206 = vst [vmem:[#allocation245_spill] sm:$0xff] %v10529_v30  ;;  %14207 = vst [vmem:[#allocation246_spill] sm:$0xff] %v10533_v53  ;;  %v10542_v62 = vsel %vm2651_vm4, %v2793_v19, %v2795_v59  ;;  %8268 = vmatprep.mubr.msk.bf16.mxu1 %vm1780_vm5, %v10529_v30  ;;  %v1634_v23 = vrot.slane %v10521_v43, 1  ;;  %v1240_v19 = vadd.f32 %v10067_v42, %v8202_v22  ;;  %v8203_v53 = vpop.f32.mrf.mxu1 }
 0x1a6   : > { %14208 = vst [vmem:[#allocation247_spill] sm:$0xff] %v10539_v16  ;;  %14209 = vst [vmem:[#allocation248_spill] sm:$0xff] %v10542_v62  ;;  %v1639_v12 = vrot.slane %v1333_v40, 1  ;;  %v2804_v49 = vrot.slane %v1333_v40, 2  ;;  %v10544_v41 = vmax.f32 %v1171_v20, 0.0  ;;  %v10550_v32 = vpack.c.bf16 %v10542_v62, %v10524_v35 }
 0x1a7   : > { %v2799_v20 = vrot.slane %v10521_v43, 2  ;;  %v1211_v22 = vadd.f32 %v10067_v42, %v9961_v8  ;;  %v10573_v62 = vmax.f32 %v1240_v19, 0.0 }
 0x1a8   : > { %14210 = vst [vmem:[#allocation249_spill] sm:$0xff] %v10544_v41  ;;  %14211 = vst [vmem:[#allocation250_spill] sm:$0xff] %v10550_v32  ;;  %v10560_v40 = vsel %vm1486_vm3, %v1637_v39, %v1639_v12  ;;  %v1635_v30 = vrot.slane %v10544_v41, 1  ;;  %v2800_v16 = vrot.slane %v10544_v41, 2  ;;  %8420 = vmatprep.mubr.msk.bf16.mxu0 %vm1780_vm5, %v10550_v32  ;;  %v10567_v0 = vsel %vm2651_vm4, %v2802_v44, %v2804_v49 }
 0x1a9   : > { %14212 = vst [vmem:[#allocation251_spill] sm:$0xff] %v10560_v40  ;;  %14213 = vst [vmem:[#allocation252_spill] sm:$0xff] %v10567_v0 }
 0x1aa   : > { %v10576_v12 = vsel %vm1486_vm3, %v1634_v23, %v1635_v30  ;;  %v10579_v43 = vsel %vm2651_vm4, %v2799_v20, %v2800_v16  ;;  %v10582_v32 = vsel %vm1486_vm3, %v1635_v30, %v1637_v39  ;;  %v10585_v49 = vsel %vm2651_vm4, %v2800_v16, %v2802_v44  ;;  %v1234_v16 = vpop.f32.mrf.mxu1 }
 0x1ab   : > { %14214 = vst [vmem:[#allocation253_spill] sm:$0xff] %v10579_v43  ;;  %14215 = vst [vmem:[#allocation254_spill] sm:$0xff] %v10585_v49  ;;  %v10589_v59 = vpack.c.bf16 %v10576_v12, %v10516_v31  ;;  %v10593_v8 = vpack.c.bf16 %v10579_v43, %v10519_v14  ;;  %v10597_v23 = vpack.c.bf16 %v10560_v40, %v10582_v32  ;;  %v1644_v30 = vrot.slane %v9986_v54, 1 }
 0x1ac   : > { %v10601_v19 = vpack.c.bf16 %v10567_v0, %v10585_v49  ;;  %v2809_v39 = vrot.slane %v9986_v54, 2  ;;  %v10606_v44 = vadd.f32 %v10067_v42, %v8203_v53  ;;  %v2806_v20 = vrot.slane %v9996_v15, 2 }
 0x1ad   : > { %14216 = vst [vmem:[#allocation255_spill] sm:$0xff] %v10589_v59  ;;  %14217 = vst [vmem:[#allocation256_spill] sm:$0xff] %v10593_v8  ;;  %v14220_v14 = vmax.f32 %v10000_v37, 0.0  ;;  %8269 = vmatmul.mubr.msk.bf16.gmra.mxu1 %vm1780_vm5, %v10589_v59  ;;  %8421 = vmatmul.mubr.msk.bf16.gmra.mxu0 %vm1780_vm5, %v10593_v8  ;;  %v1235_v0 = vadd.f32 %v10067_v42, %v1234_v16  ;;  %v2807_v53 = vrot.slane %v10015_v50, 2  ;;  %v1341_v54 = vmax.f32 %v1211_v22, 0.0 }
 0x1ae   : > { %14218 = vst [vmem:[#allocation257_spill] sm:$0xff] %v10597_v23  ;;  %14219 = vst [vmem:[#allocation258_spill] sm:$0xff] %v10601_v19  ;;  %8272 = vmatprep.mubr.msk.bf16.mxu1 %vm1780_vm5, %v10597_v23  ;;  %8424 = vmatprep.mubr.msk.bf16.mxu0 %vm1780_vm5, %v10601_v19  ;;  %v13895_v37 = vmax.f32 %v10606_v44, 0.0  ;;  %v14223_v16 = vrot.slane %v10015_v50, 1 }
 0x1af   : > { %v1646_v31 = vrot.slane %v14220_v14, 1  ;;  %v14221_v40 = vmov %v14220_v14  ;;  %v5561_v14 = vrot.slane %v10573_v62, 1  ;;  %v10626_v59 = vmax.f32 %v1235_v0, 0.0 }
 0x1b0   : > { %v2811_v43 = vrot.slane %v14221_v40, 2  ;;  %v10629_v8 = vsel %vm2651_vm4, %v2807_v53, %v2809_v39  ;;  %v10634_v22 = vsel %vm1486_vm3, %v14223_v16, %v1644_v30  ;;  %v5563_v23 = vrot.slane %v13895_v37, 1 }
 0x1b1   : > { %14222 = vst [vmem:[#allocation259_spill] sm:$0xff] %v10629_v8  ;;  %v10639_v19 = vsel %vm1486_vm3, %v1644_v30, %v1646_v31  ;;  %v13896_v0 = vrot.slane %v10626_v59, 1  ;;  %v13897_v40 = vrot.slane %v10626_v59, 2  ;;  %v10647_v49 = vsel %vm2651_vm4, %v2806_v20, %v2807_v53 }
 0x1b2   : > { %v10642_v15 = vsel %vm2651_vm4, %v2809_v39, %v2811_v43  ;;  %14225 = vst [vmem:[#allocation261_spill] sm:$0xff] %v10647_v49  ;;  %v1653_v50 = vrot.slane %v1341_v54, 1  ;;  %v2818_v35 = vrot.slane %v1341_v54, 2  ;;  %v10650_v16 = vsel %vm1486_vm3, %v5561_v14, %v5563_v23 }
 0x1b3   : > { %14224 = vst [vmem:[#allocation260_spill] sm:$0xff] %v10642_v15  ;;  %14226 = vst [vmem:[#allocation262_spill] sm:$0xff] %v10650_v16  ;;  %v10654_v37 = vpack.c.bf16 %v10629_v8, %v10647_v49  ;;  %v10658_v31 = vpack.c.bf16 %v10634_v22, %v10322_v48  ;;  %v10663_v43 = vsel %vm1486_vm3, %v13896_v0, %v5561_v14  ;;  %v14230_v30 = vrot.slane %v10573_v62, 2  ;;  %v8992_v49 = vld [vmem:[%s13601_s3 + $0x38] sm:$0xff]  }
 0x1b4   : > { %14229 = vst [vmem:[#allocation265_spill] sm:$0xff] %v10663_v43  ;;  %v10674_v23 = vpack.c.bf16 %v10405_v25, %v10639_v19  ;;  %v10678_v39 = vpack.c.bf16 %v10432_v3, %v10642_v15  ;;  %v14234_v20 = vrot.slane %v10017_v51, 1  ;;  %v14235_v14 = vrot.slane %v10017_v51, 2  ;;  %v14247_v15 = vld [vmem:[#allocation10_spill] sm:$0xff] }
 0x1b5   : > { %14227 = vst [vmem:[#allocation263_spill] sm:$0xff] %v10654_v37  ;;  %14228 = vst [vmem:[#allocation264_spill] sm:$0xff] %v10658_v31  ;;  %v10670_v54 = vsel %vm2651_vm4, %v13897_v40, %v14230_v30  ;;  %8273 = vmatmul.mubr.msk.bf16.gmra.mxu1 %vm1780_vm5, %v10658_v31  ;;  %8425 = vmatmul.mubr.msk.bf16.gmra.mxu0 %vm1780_vm5, %v10654_v37  ;;  %v10702_v40 = vpack.c.bf16 %v10191_v61, %v10160_v36  ;;  %v14249_v37 = vld [vmem:[#allocation23_spill] sm:$0xff]  ;;  %v14297_v36 = vld [vmem:[#allocation65_spill] sm:$0xff] }
 0x1b6   : > { %14231 = vst [vmem:[#allocation266_spill] sm:$0xff] %v10670_v54  ;;  %14232 = vst [vmem:[#allocation267_spill] sm:$0xff] %v10674_v23  ;;  %v10687_v53 = vsel %vm1486_vm3, %v14234_v20, %v1653_v50  ;;  %v10692_v30 = vsel %vm2651_vm4, %v14235_v14, %v2818_v35  ;;  %8276 = vmatprep.mubr.msk.bf16.mxu1 %vm1780_vm5, %v10674_v23  ;;  %8428 = vmatprep.mubr.msk.bf16.mxu0 %vm1780_vm5, %v10678_v39 }
 0x1b7   : > { %14233 = vst [vmem:[#allocation268_spill] sm:$0xff] %v10678_v39  ;;  %14236 = vst [vmem:[#allocation269_spill] sm:$0xff] %v10692_v30  ;;  %v10708_v35 = vpack.c.bf16 %v10215_v29, %v10265_v1  ;;  %v10714_v14 = vpack.c.bf16 %v10373_v57, %v10300_v18  ;;  %v10720_v23 = vpack.c.bf16 %v10473_v26, %v10442_v45  ;;  %v14260_v39 = vld [vmem:[#allocation31_spill] sm:$0xff]  ;;  %v14279_v57 = vld [vmem:[#allocation53_spill] sm:$0xff] }
 0x1b8   : > { %v1216_v31 = vadd.f32 %v10067_v42, %v10070_v4  ;;  %v10728_v20 = vpack.c.bf16 %v10692_v30, %v10437_v13  ;;  %v10732_v3 = vpack.c.bf16 %v10687_v53, %v10513_v33  ;;  %v10742_v4 = vpack.c.bf16 %v10492_v58, %v10544_v41  ;;  %v14283_v29 = vld [vmem:[#allocation40_spill] sm:$0xff] }
 0x1b9   : > { %v14239_v50 = vpack.c.bf16 %v9288_v10, %v9285_v7  ;;  %v14240_v13 = vpack.c.bf16 %v9331_v56, %v9324_v52  ;;  %v1351_v7 = vpack.c.bf16 %v9305_v28, %v9283_v6  ;;  %v4005_v52 = vrot.slane %v10331_v5, 1  ;;  %v8982_v56 = vld [vmem:[%s13601_s3 + $0x30] sm:$0xff]   ;;  %v14246_v6 = vld [vmem:[#allocation17_spill] sm:$0xff] }
 0x1ba   : > { %14237 = vst [vmem:[#allocation270_spill] sm:$0xff] %v10728_v20  ;;  %14238 = vst [vmem:[#allocation271_spill] sm:$0xff] %v10732_v3  ;;  %v10752_v0 = vmax.f32 %v1216_v31, 0.0  ;;  %v14248_v8 = vpack.c.bf16 %v14246_v6, %v14247_v15  ;;  %v14251_v30 = vpack.c.bf16 %v14249_v37, %v14250_v11  ;;  %v14258_v11 = vld [vmem:[#allocation12_spill] sm:$0xff]  ;;  %v14259_v37 = vld [vmem:[#allocation19_spill] sm:$0xff]  ;;  %v14285_v1 = vpack.c.bf16 %v14283_v29, %v14284_v63 }
 0x1bc   : > { %14241 = vst [vmem:[#allocation272_spill] sm:$0xff] %v10752_v0  ;;  %v4004_v10 = vrot.slane %v10752_v0, 1 }
 0x1bd   : > { %8277 = vmatmul.mubr.msk.bf16.gmra.mxu1 %vm1780_vm5, %v10732_v3  ;;  %8429 = vmatmul.mubr.msk.bf16.gmra.mxu0 %vm1780_vm5, %v10728_v20  ;;  %v14253_v20 = vld [vmem:[#allocation165_spill] sm:$0xff] }
 0x1be   : > { %8284 = vmatprep.mubr.msk.bf16.mxu1 %vm1780_vm5, %v14239_v50  ;;  %8512 = vmatprep.mubr.msk.bf16.mxu0 %vm1780_vm5, %v14240_v13  ;;  %v1352_v13 = vpack.c.bf16 %v9303_v27, %v9311_v38  ;;  %v14254_v15 = vrot.slane %v14253_v20, 1 }
 0x1c5   : > { %8285 = vmatmul.mubr.msk.bf16.vlgmr.msra.gmra.mxu1 %vm1780_vm5, %v1351_v7  ;;  %8513 = vmatmul.mubr.msk.bf16.vlgmr.msra.gmra.mxu0 %vm1780_vm5, %v14248_v8  ;;  %v10787_v7 = vsel %vm1486_vm3, %v4004_v10, %v4005_v52  ;;  %v10792_v8 = vsel %vm1486_vm3, %v4005_v52, %v14254_v15  ;;  %v14261_v10 = vld [vmem:[#allocation41_spill] sm:$0xff]  ;;  %v14264_v15 = vld [vmem:[#allocation30_spill] sm:$0xff] }
 0x1c6   : > { %8433 = vmatpush3.bf16.msra.mxu1 %v8992_v49  ;;  %8288 = vmatprep.mubr.msk.bf16.mxu1 %vm1780_vm5, %v1352_v13  ;;  %14252 = vst [vmem:[#allocation17_spill] sm:$0xff] %v10787_v7  ;;  %14255 = vst [vmem:[#allocation10_spill] sm:$0xff] %v10792_v8  ;;  %v14256_v49 = vld [vmem:[#allocation11_spill] sm:$0xff]  ;;  %v4018_v31 = vpack.c.bf16 %v14261_v10, %v14260_v39  ;;  %v8983_v39 = vld [vmem:[%s13601_s3 + $0x68] sm:$0xff]  }
 0x1c7   : > { %8516 = vmatprep.mubr.msk.bf16.mxu0 %vm1780_vm5, %v14251_v30  ;;  %8434 = vmatprep.subr.bf16.mxu1 %v8982_v56  ;;  %v14257_v13 = vld [vmem:[#allocation15_spill] sm:$0xff]  ;;  %v10802_v30 = vpack.c.bf16 %v14259_v37, %v14258_v11 }
 0x1c8   : > { %v10798_v3 = vpack.c.bf16 %v14257_v13, %v14256_v49  ;;  %8660 = vmatprep.subr.bf16.mxu0 %v8983_v39 }
 0x1c9   : > { %8661 = vmatpush3.bf16.msra.mxu0 %v8983_v39  ;;  %v10850_v39 = vld [vmem:[%s13601_s3 + $0x58] sm:$0xff]  }
 0x1ca   : > { %8435 = vmatpush3.bf16.msra.mxu1 %v8982_v56  ;;  %v14265_v56 = vld [vmem:[#allocation28_spill] sm:$0xff] }
 0x1cb   : > { %v14266_v6 = vpack.c.bf16 %v14264_v15, %v14265_v56  ;;  %v8984_v56 = vld [vmem:[%s13601_s3 + $0x60] sm:$0xff]   ;;  %8584 = vmatprep.subr.bf16.mxu1 %v10850_v39 }
 0x1cc   : > { %8662 = vmatprep.subr.bf16.mxu0 %v8984_v56 }
 0x1cd   : > { %v10806_v50 = vpop.f32.mrf.mxu1  ;;  %8289 = vmatmul.mubr.msk.bf16.gmra.mxu1 %vm1780_vm5, %v10798_v3  ;;  %v10810_v52 = vpop.f32.mrf.mxu0  ;;  %8517 = vmatmul.mubr.msk.bf16.gmra.mxu0 %vm1780_vm5, %v14266_v6 }
 0x1ce   : > { %14262 = vst [vmem:[#allocation23_spill] sm:$0xff] %v10806_v50  ;;  %14263 = vst [vmem:[#allocation18_spill] sm:$0xff] %v10810_v52  ;;  %8292 = vmatprep.mubr.msk.bf16.mxu1 %vm1780_vm5, %v10802_v30  ;;  %8520 = vmatprep.mubr.msk.bf16.mxu0 %vm1780_vm5, %v4018_v31  ;;  %v14273_v31 = vld [vmem:[#allocation24_spill] sm:$0xff] }
 0x1cf   : > { %v10824_v10 = vpop.f32.mrf.mxu1  ;;  %v10826_v52 = vpop.f32.mrf.mxu0  ;;  %v14274_v50 = vld [vmem:[#allocation16_spill] sm:$0xff]  ;;  %8663 = vmatpush3.bf16.msra.mxu0 %v8984_v56 }
 0x1d0   : > { %14268 = vst [vmem:[#allocation165_spill] sm:$0xff] %v10824_v10  ;;  %14269 = vst [vmem:[#allocation11_spill] sm:$0xff] %v10826_v52  ;;  %v10839_v26 = vpack.c.bf16 %v14274_v50, %v14273_v31  ;;  %v14276_v10 = vld [vmem:[#allocation38_spill] sm:$0xff]  ;;  %v14278_v52 = vld [vmem:[#allocation51_spill] sm:$0xff] }
 0x1d1   : > { %v10828_v15 = vpop.f32.mrf.mxu1  ;;  %v10830_v6 = vpop.f32.mrf.mxu0  ;;  %v10843_v45 = vpack.c.bf16 %v14276_v10, %v14275_v55  ;;  %v14298_v10 = vld [vmem:[#allocation73_spill] sm:$0xff] }
 0x1d2   : > { %14270 = vst [vmem:[#allocation15_spill] sm:$0xff] %v10828_v15  ;;  %14271 = vst [vmem:[#allocation12_spill] sm:$0xff] %v10830_v6  ;;  %v4020_v15 = vpack.c.bf16 %v14279_v57, %v14278_v52 }
 0x1d3   : > { %v10835_v58 = vpop.f32.mrf.mxu1  ;;  %14277 = vst [vmem:[#allocation31_spill] sm:$0xff] %v10843_v45  ;;  %v10854_v18 = vpop.f32.mrf.mxu0 }
 0x1d4   : > { %14272 = vst [vmem:[#allocation19_spill] sm:$0xff] %v10835_v58  ;;  %14282 = vst [vmem:[#allocation41_spill] sm:$0xff] %v10854_v18  ;;  %v14293_v18 = vld [vmem:[#allocation46_spill] sm:$0xff] }
 0x1d5   : > { %8293 = vmatmul.mubr.msk.bf16.gmra.mxu1 %vm1780_vm5, %v10839_v26  ;;  %8521 = vmatmul.mubr.msk.bf16.gmra.mxu0 %vm1780_vm5, %v14285_v1  ;;  %v10865_v57 = vpop.f32.mrf.mxu1  ;;  %v14292_v1 = vld [vmem:[#allocation27_spill] sm:$0xff] }
 0x1d6   : > { %8296 = vmatprep.mubr.msk.bf16.mxu1 %vm1780_vm5, %v10843_v45  ;;  %8524 = vmatprep.mubr.msk.bf16.mxu0 %vm1780_vm5, %v4020_v15  ;;  %14286 = vst [vmem:[#allocation30_spill] sm:$0xff] %v10865_v57  ;;  %v10868_v52 = vpop.f32.mrf.mxu0  ;;  %v10880_v61 = vpack.c.bf16 %v14293_v18, %v14292_v1  ;;  %v14294_v15 = vld [vmem:[#allocation50_spill] sm:$0xff]  ;;  %v14295_v57 = vld [vmem:[#allocation45_spill] sm:$0xff] }
 0x1d7   : > { %14287 = vst [vmem:[#allocation28_spill] sm:$0xff] %v10868_v52  ;;  %v10870_v58 = vpop.f32.mrf.mxu1  ;;  %v10884_v56 = vpack.c.bf16 %v14295_v57, %v14294_v15  ;;  %v4022_v52 = vpack.c.bf16 %v14298_v10, %v14297_v36  ;;  %v14317_v57 = vld [vmem:[#allocation79_spill] sm:$0xff] }
 0x1d8   : > { %14288 = vst [vmem:[#allocation24_spill] sm:$0xff] %v10870_v58  ;;  %v10874_v29 = vpop.f32.mrf.mxu0  ;;  %v14310_v58 = vld [vmem:[#allocation57_spill] sm:$0xff] }
 0x1d9   : > { %14290 = vst [vmem:[#allocation51_spill] sm:$0xff] %v10874_v29  ;;  %v10876_v63 = vpop.f32.mrf.mxu1  ;;  %14296 = vst [vmem:[#allocation40_spill] sm:$0xff] %v10884_v56  ;;  %v14303_v29 = vld [vmem:[#allocation64_spill] sm:$0xff] }
 0x1da   : > { %14291 = vst [vmem:[#allocation53_spill] sm:$0xff] %v10876_v63  ;;  %v10890_v50 = vpop.f32.mrf.mxu0  ;;  %v14304_v63 = vld [vmem:[#allocation54_spill] sm:$0xff] }
 0x1db   : > { %14301 = vst [vmem:[#allocation42_spill] sm:$0xff] %v10890_v50  ;;  %v10892_v24 = vpop.f32.mrf.mxu1  ;;  %v14305_v6 = vpack.c.bf16 %v14303_v29, %v14304_v63  ;;  %v14311_v50 = vld [vmem:[#allocation62_spill] sm:$0xff]  ;;  %v14315_v63 = vld [vmem:[#allocation68_spill] sm:$0xff] }
 0x1dc   : > { %14302 = vst [vmem:[#allocation27_spill] sm:$0xff] %v10892_v24  ;;  %v10903_v36 = vpop.f32.mrf.mxu0  ;;  %v10913_v24 = vpack.c.bf16 %v14311_v50, %v14310_v58  ;;  %v14332_v58 = vld [vmem:[#allocation99_spill] sm:$0xff] }
 0x1dd   : > { %8297 = vmatmul.mubr.msk.bf16.gmra.mxu1 %vm1780_vm5, %v10880_v61  ;;  %8525 = vmatmul.mubr.msk.bf16.gmra.mxu0 %vm1780_vm5, %v14305_v6  ;;  %14306 = vst [vmem:[#allocation46_spill] sm:$0xff] %v10903_v36  ;;  %v14314_v6 = vld [vmem:[#allocation55_spill] sm:$0xff]  ;;  %v14319_v36 = vld [vmem:[#allocation78_spill] sm:$0xff] }
 0x1de   : > { %8300 = vmatprep.mubr.msk.bf16.mxu1 %vm1780_vm5, %v10884_v56  ;;  %8528 = vmatprep.mubr.msk.bf16.mxu0 %vm1780_vm5, %v4022_v52  ;;  %v10905_v10 = vpop.f32.mrf.mxu1  ;;  %14312 = vst [vmem:[#allocation64_spill] sm:$0xff] %v10913_v24  ;;  %v10919_v41 = vpack.c.bf16 %v14315_v63, %v14314_v6  ;;  %v14318_v52 = vld [vmem:[#allocation88_spill] sm:$0xff] }
 0x1df   : > { %14307 = vst [vmem:[#allocation50_spill] sm:$0xff] %v10905_v10  ;;  %v10907_v55 = vpop.f32.mrf.mxu0  ;;  %v4024_v56 = vpack.c.bf16 %v14318_v52, %v14317_v57  ;;  %v14325_v57 = vld [vmem:[#allocation72_spill] sm:$0xff]  ;;  %v14326_v52 = vld [vmem:[#allocation67_spill] sm:$0xff] }
 0x1e0   : > { %14308 = vst [vmem:[#allocation65_spill] sm:$0xff] %v10907_v55  ;;  %v10909_v45 = vpop.f32.mrf.mxu1  ;;  %14316 = vst [vmem:[#allocation273_spill] sm:$0xff] %v10919_v41  ;;  %v14320_v55 = vld [vmem:[#allocation76_spill] sm:$0xff]  ;;  %v10940_v6 = vpack.c.bf16 %v14326_v52, %v14325_v57 }
 0x1e1   : > { %14309 = vst [vmem:[#allocation73_spill] sm:$0xff] %v10909_v45  ;;  %v10915_v29 = vpop.f32.mrf.mxu0  ;;  %v14321_v10 = vpack.c.bf16 %v14319_v36, %v14320_v55  ;;  %v14329_v55 = vld [vmem:[#allocation80_spill] sm:$0xff]  ;;  %v14330_v36 = vld [vmem:[#allocation86_spill] sm:$0xff] }
 0x1e2   : > { %14313 = vst [vmem:[#allocation54_spill] sm:$0xff] %v10915_v29  ;;  %v10932_v29 = vpop.f32.mrf.mxu1  ;;  %14327 = vst [vmem:[#allocation76_spill] sm:$0xff] %v10940_v6 }
 0x1e3   : > { %14322 = vst [vmem:[#allocation79_spill] sm:$0xff] %v10932_v29  ;;  %v10934_v45 = vpop.f32.mrf.mxu0 }
 0x1e4   : > { %14323 = vst [vmem:[#allocation88_spill] sm:$0xff] %v10934_v45  ;;  %v10936_v63 = vpop.f32.mrf.mxu1  ;;  %v14335_v45 = vld [vmem:[#allocation91_spill] sm:$0xff] }
 0x1e5   : > { %8301 = vmatmul.mubr.msk.bf16.gmra.mxu1 %vm1780_vm5, %v10913_v24  ;;  %8529 = vmatmul.mubr.msk.bf16.gmra.mxu0 %vm1780_vm5, %v14321_v10  ;;  %14324 = vst [vmem:[#allocation78_spill] sm:$0xff] %v10936_v63  ;;  %v10942_v50 = vpop.f32.mrf.mxu0  ;;  %v10946_v10 = vpack.c.bf16 %v14330_v36, %v14329_v55  ;;  %v14336_v63 = vld [vmem:[#allocation89_spill] sm:$0xff]  ;;  %v14343_v36 = vld [vmem:[#allocation75_spill] sm:$0xff] }
 0x1e6   : > { %8304 = vmatprep.mubr.msk.bf16.mxu1 %vm1780_vm5, %v10919_v41  ;;  %8532 = vmatprep.mubr.msk.bf16.mxu0 %vm1780_vm5, %v4024_v56  ;;  %14328 = vst [vmem:[#allocation274_spill] sm:$0xff] %v10942_v50  ;;  %v14333_v41 = vld [vmem:[#allocation101_spill] sm:$0xff]  ;;  %v14337_v29 = vpack.c.bf16 %v14335_v45, %v14336_v63 }
 0x1e7   : > { %14331 = vst [vmem:[#allocation275_spill] sm:$0xff] %v10946_v10  ;;  %v4026_v24 = vpack.c.bf16 %v14333_v41, %v14332_v58  ;;  %v14344_v55 = vld [vmem:[#allocation93_spill] sm:$0xff] }
 0x1e8   : > { %v10973_v45 = vpack.c.bf16 %v14344_v55, %v14343_v36 }
 0x1ea   : > { %14345 = vst [vmem:[#allocation278_spill] sm:$0xff] %v10973_v45 }
 0x1ed   : > { %v10950_v56 = vpop.f32.mrf.mxu1  ;;  %8305 = vmatmul.mubr.msk.bf16.gmra.mxu1 %vm1780_vm5, %v10940_v6  ;;  %8533 = vmatmul.mubr.msk.bf16.gmra.mxu0 %vm1780_vm5, %v14337_v29  ;;  %v10958_v52 = vpop.f32.mrf.mxu0 }
 0x1ee   : > { %14334 = vst [vmem:[#allocation99_spill] sm:$0xff] %v10950_v56  ;;  %14338 = vst [vmem:[#allocation101_spill] sm:$0xff] %v10958_v52  ;;  %8308 = vmatprep.mubr.msk.bf16.mxu1 %vm1780_vm5, %v10946_v10  ;;  %8536 = vmatprep.mubr.msk.bf16.mxu0 %vm1780_vm5, %v4026_v24  ;;  %v14348_v52 = vld [vmem:[#allocation98_spill] sm:$0xff]  ;;  %v14349_v10 = vld [vmem:[#allocation92_spill] sm:$0xff] }
 0x1ef   : > { %v10963_v50 = vpop.f32.mrf.mxu1  ;;  %v10965_v58 = vpop.f32.mrf.mxu0  ;;  %v10981_v57 = vpack.c.bf16 %v14349_v10, %v14348_v52  ;;  %v14351_v24 = vld [vmem:[#allocation113_spill] sm:$0xff]  ;;  %v14362_v10 = vld [vmem:[#allocation110_spill] sm:$0xff] }
 0x1f0   : > { %14339 = vst [vmem:[#allocation91_spill] sm:$0xff] %v10963_v50  ;;  %14340 = vst [vmem:[#allocation89_spill] sm:$0xff] %v10965_v58  ;;  %v14352_v50 = vld [vmem:[#allocation120_spill] sm:$0xff] }
 0x1f1   : > { %v10967_v41 = vpop.f32.mrf.mxu1  ;;  %v10969_v56 = vpop.f32.mrf.mxu0  ;;  %14350 = vst [vmem:[#allocation281_spill] sm:$0xff] %v10981_v57  ;;  %v4028_v6 = vpack.c.bf16 %v14352_v50, %v14351_v24 }
 0x1f2   : > { %14341 = vst [vmem:[#allocation276_spill] sm:$0xff] %v10967_v41  ;;  %14342 = vst [vmem:[#allocation277_spill] sm:$0xff] %v10969_v56  ;;  %v14354_v56 = vld [vmem:[#allocation112_spill] sm:$0xff]  ;;  %v14355_v41 = vld [vmem:[#allocation102_spill] sm:$0xff] }
 0x1f3   : > { %v10975_v29 = vpop.f32.mrf.mxu1  ;;  %v10977_v63 = vpop.f32.mrf.mxu0  ;;  %v14356_v55 = vpack.c.bf16 %v14354_v56, %v14355_v41  ;;  %v14366_v41 = vld [vmem:[#allocation103_spill] sm:$0xff] }
 0x1f4   : > { %14346 = vst [vmem:[#allocation279_spill] sm:$0xff] %v10975_v29  ;;  %14347 = vst [vmem:[#allocation280_spill] sm:$0xff] %v10977_v63 }
 0x1f5   : > { %v10985_v58 = vpop.f32.mrf.mxu1  ;;  %8309 = vmatmul.mubr.msk.bf16.gmra.mxu1 %vm1780_vm5, %v10973_v45  ;;  %8537 = vmatmul.mubr.msk.bf16.gmra.mxu0 %vm1780_vm5, %v14356_v55 }
 0x1f6   : > { %14353 = vst [vmem:[#allocation113_spill] sm:$0xff] %v10985_v58  ;;  %8312 = vmatprep.mubr.msk.bf16.mxu1 %vm1780_vm5, %v10981_v57  ;;  %8540 = vmatprep.mubr.msk.bf16.mxu0 %vm1780_vm5, %v4028_v6  ;;  %v10996_v63 = vpop.f32.mrf.mxu0  ;;  %v14361_v58 = vld [vmem:[#allocation105_spill] sm:$0xff]  ;;  %v14367_v57 = vld [vmem:[#allocation115_spill] sm:$0xff] }
 0x1f7   : > { %14357 = vst [vmem:[#allocation120_spill] sm:$0xff] %v10996_v63  ;;  %v10998_v29 = vpop.f32.mrf.mxu1  ;;  %v11006_v52 = vpack.c.bf16 %v14362_v10, %v14361_v58  ;;  %v11014_v36 = vpack.c.bf16 %v14367_v57, %v14366_v41  ;;  %v14369_v6 = vld [vmem:[#allocation133_spill] sm:$0xff]  ;;  %v14370_v63 = vld [vmem:[#allocation136_spill] sm:$0xff]  ;;  %v14385_v58 = vld [vmem:[#allocation150_spill] sm:$0xff] }
 0x1f8   : > { %14358 = vst [vmem:[#allocation112_spill] sm:$0xff] %v10998_v29  ;;  %v11000_v50 = vpop.f32.mrf.mxu0  ;;  %v4030_v45 = vpack.c.bf16 %v14370_v63, %v14369_v6  ;;  %v14377_v63 = vld [vmem:[#allocation119_spill] sm:$0xff]  ;;  %v14378_v6 = vld [vmem:[#allocation114_spill] sm:$0xff] }
 0x1f9   : > { %14359 = vst [vmem:[#allocation102_spill] sm:$0xff] %v11000_v50  ;;  %v11002_v24 = vpop.f32.mrf.mxu1  ;;  %14363 = vst [vmem:[#allocation283_spill] sm:$0xff] %v11006_v52  ;;  %v14372_v50 = vld [vmem:[#allocation128_spill] sm:$0xff] }
 0x1fa   : > { %14360 = vst [vmem:[#allocation282_spill] sm:$0xff] %v11002_v24  ;;  %v11008_v56 = vpop.f32.mrf.mxu0  ;;  %14368 = vst [vmem:[#allocation286_spill] sm:$0xff] %v11014_v36  ;;  %v14373_v24 = vld [vmem:[#allocation124_spill] sm:$0xff] }
 0x1fb   : > { %14364 = vst [vmem:[#allocation284_spill] sm:$0xff] %v11008_v56  ;;  %v11010_v55 = vpop.f32.mrf.mxu1  ;;  %v14374_v10 = vpack.c.bf16 %v14372_v50, %v14373_v24  ;;  %v14382_v50 = vld [vmem:[#allocation126_spill] sm:$0xff] }
 0x1fc   : > { %14365 = vst [vmem:[#allocation285_spill] sm:$0xff] %v11010_v55  ;;  %v11018_v29 = vpop.f32.mrf.mxu0  ;;  %v14383_v24 = vld [vmem:[#allocation134_spill] sm:$0xff] }
 0x1fd   : > { %14371 = vst [vmem:[#allocation133_spill] sm:$0xff] %v11018_v29  ;;  %8313 = vmatmul.mubr.msk.bf16.gmra.mxu1 %vm1780_vm5, %v11006_v52  ;;  %8541 = vmatmul.mubr.msk.bf16.gmra.mxu0 %vm1780_vm5, %v14374_v10  ;;  %v11035_v29 = vpack.c.bf16 %v14378_v6, %v14377_v63  ;;  %v11043_v10 = vpack.c.bf16 %v14383_v24, %v14382_v50  ;;  %v14392_v24 = vld [vmem:[#allocation123_spill] sm:$0xff]  ;;  %v14393_v50 = vld [vmem:[#allocation141_spill] sm:$0xff]  ;;  %v14400_v63 = vld [vmem:[#allocation164_spill] sm:$0xff] }
 0x1fe   : > { %8316 = vmatprep.mubr.msk.bf16.mxu1 %vm1780_vm5, %v11014_v36  ;;  %8544 = vmatprep.mubr.msk.bf16.mxu0 %vm1780_vm5, %v4030_v45  ;;  %v11029_v56 = vpop.f32.mrf.mxu1  ;;  %v14386_v36 = vld [vmem:[#allocation152_spill] sm:$0xff]  ;;  %v14387_v45 = vld [vmem:[#allocation139_spill] sm:$0xff] }
 0x1ff   : > { %14375 = vst [vmem:[#allocation136_spill] sm:$0xff] %v11029_v56  ;;  %14379 = vst [vmem:[#allocation124_spill] sm:$0xff] %v11035_v29  ;;  %v4032_v52 = vpack.c.bf16 %v14386_v36, %v14385_v58  ;;  %v11062_v36 = vpack.c.bf16 %v14393_v50, %v14392_v24  ;;  %v14416_v24 = vld [vmem:[#allocation167_spill] sm:$0xff] }
 0x200   : > { %v11037_v57 = vpop.f32.mrf.mxu1  ;;  %14384 = vst [vmem:[#allocation289_spill] sm:$0xff] %v11043_v10 }
 0x201   : > { %v11031_v55 = vpop.f32.mrf.mxu0  ;;  %14380 = vst [vmem:[#allocation287_spill] sm:$0xff] %v11037_v57  ;;  %14394 = vst [vmem:[#allocation139_spill] sm:$0xff] %v11062_v36 }
 0x202   : > { %14376 = vst [vmem:[#allocation128_spill] sm:$0xff] %v11031_v55  ;;  %v14388_v55 = vld [vmem:[#allocation137_spill] sm:$0xff] }
 0x203   : > { %v11039_v41 = vpop.f32.mrf.mxu0  ;;  %v14389_v56 = vpack.c.bf16 %v14387_v45, %v14388_v55  ;;  %v14397_v55 = vld [vmem:[#allocation147_spill] sm:$0xff]  ;;  %v14398_v45 = vld [vmem:[#allocation140_spill] sm:$0xff] }
 0x204   : > { %14381 = vst [vmem:[#allocation288_spill] sm:$0xff] %v11039_v41  ;;  %v11056_v41 = vpop.f32.mrf.mxu1 }
 0x205   : > { %8317 = vmatmul.mubr.msk.bf16.gmra.mxu1 %vm1780_vm5, %v11035_v29  ;;  %8545 = vmatmul.mubr.msk.bf16.gmra.mxu0 %vm1780_vm5, %v14389_v56  ;;  %14390 = vst [vmem:[#allocation150_spill] sm:$0xff] %v11056_v41  ;;  %v11058_v57 = vpop.f32.mrf.mxu0  ;;  %v11070_v56 = vpack.c.bf16 %v14398_v45, %v14397_v55  ;;  %v14404_v41 = vld [vmem:[#allocation153_spill] sm:$0xff] }
 0x206   : > { %8320 = vmatprep.mubr.msk.bf16.mxu1 %vm1780_vm5, %v11043_v10  ;;  %8548 = vmatprep.mubr.msk.bf16.mxu0 %vm1780_vm5, %v4032_v52  ;;  %14391 = vst [vmem:[#allocation152_spill] sm:$0xff] %v11058_v57  ;;  %v11064_v58 = vpop.f32.mrf.mxu1  ;;  %v14401_v10 = vld [vmem:[#allocation170_spill] sm:$0xff]  ;;  %v14403_v57 = vld [vmem:[#allocation163_spill] sm:$0xff] }
 0x207   : > { %14395 = vst [vmem:[#allocation137_spill] sm:$0xff] %v11064_v58  ;;  %v11066_v6 = vpop.f32.mrf.mxu0  ;;  %14399 = vst [vmem:[#allocation291_spill] sm:$0xff] %v11070_v56  ;;  %v4034_v29 = vpack.c.bf16 %v14401_v10, %v14400_v63  ;;  %v14405_v50 = vpack.c.bf16 %v14403_v57, %v14404_v41  ;;  %v14409_v10 = vld [vmem:[#allocation246_spill] sm:$0xff]  ;;  %v14412_v57 = vld [vmem:[#allocation156_spill] sm:$0xff] }
 0x208   : > { %14396 = vst [vmem:[#allocation290_spill] sm:$0xff] %v11066_v6  ;;  %v14413_v41 = vld [vmem:[#allocation161_spill] sm:$0xff] }
 0x20d   : > { %v11074_v52 = vpop.f32.mrf.mxu1  ;;  %8321 = vmatmul.mubr.msk.bf16.gmra.mxu1 %vm1780_vm5, %v11062_v36  ;;  %8549 = vmatmul.mubr.msk.bf16.gmra.mxu0 %vm1780_vm5, %v14405_v50  ;;  %v11082_v58 = vpop.f32.mrf.mxu0  ;;  %v11099_v50 = vpack.c.bf16 %v14413_v41, %v14412_v57 }
 0x20e   : > { %14402 = vst [vmem:[#allocation164_spill] sm:$0xff] %v11074_v52  ;;  %14406 = vst [vmem:[#allocation170_spill] sm:$0xff] %v11082_v58  ;;  %8324 = vmatprep.mubr.msk.bf16.mxu1 %vm1780_vm5, %v11070_v56  ;;  %8552 = vmatprep.mubr.msk.bf16.mxu0 %vm1780_vm5, %v4034_v29  ;;  %v1232_v52 = vadd.f32 %v10067_v42, %v14409_v10  ;;  %v14415_v56 = vld [vmem:[#allocation154_spill] sm:$0xff]  ;;  %v14421_v42 = vld [vmem:[#allocation180_spill] sm:$0xff] }
 0x20f   : > { %v11087_v6 = vpop.f32.mrf.mxu1  ;;  %v11089_v63 = vpop.f32.mrf.mxu0  ;;  %v11105_v29 = vpack.c.bf16 %v14416_v24, %v14415_v56  ;;  %v14422_v10 = vld [vmem:[#allocation177_spill] sm:$0xff] }
 0x210   : > { %14407 = vst [vmem:[#allocation163_spill] sm:$0xff] %v11087_v6  ;;  %14408 = vst [vmem:[#allocation153_spill] sm:$0xff] %v11089_v63  ;;  %v11107_v6 = vmax.f32 %v1232_v52, 0.0  ;;  %v14428_v24 = vld [vmem:[#allocation173_spill] sm:$0xff] }
 0x211   : > { %v11093_v45 = vpop.f32.mrf.mxu1  ;;  %v11095_v55 = vpop.f32.mrf.mxu0  ;;  %14417 = vst [vmem:[#allocation161_spill] sm:$0xff] %v11105_v29 }
 0x212   : > { %14410 = vst [vmem:[#allocation246_spill] sm:$0xff] %v11093_v45  ;;  %14411 = vst [vmem:[#allocation292_spill] sm:$0xff] %v11095_v55  ;;  %v14423_v55 = vpack.c.bf16 %v14421_v42, %v14422_v10  ;;  %v5558_v45 = vrot.slane %v11107_v6, 1  ;;  %v5990_v42 = vrot.slane %v11107_v6, 2 }
 0x213   : > { %v11101_v58 = vpop.f32.mrf.mxu1  ;;  %14418 = vst [vmem:[#allocation293_spill] sm:$0xff] %v11107_v6  ;;  %v11109_v63 = vpop.f32.mrf.mxu0  ;;  %v14434_v6 = vld [vmem:[#allocation191_spill] sm:$0xff] }
 0x214   : > { %14414 = vst [vmem:[#allocation156_spill] sm:$0xff] %v11101_v58  ;;  %14419 = vst [vmem:[#allocation294_spill] sm:$0xff] %v11109_v63  ;;  %v14424_v58 = vpack.c.bf16 %v10224_v60, %v10177_v21  ;;  %v4568_v63 = vrot.slane %v10752_v0, 2 }
 0x215   : > { %v11111_v36 = vpop.f32.mrf.mxu1  ;;  %8325 = vmatmul.mubr.msk.bf16.gmra.mxu1 %vm1780_vm5, %v11099_v50  ;;  %8553 = vmatmul.mubr.msk.bf16.gmra.mxu0 %vm1780_vm5, %v14423_v55 }
 0x216   : > { %14420 = vst [vmem:[#allocation295_spill] sm:$0xff] %v11111_v36  ;;  %8328 = vmatprep.mubr.msk.bf16.mxu1 %vm1780_vm5, %v11105_v29  ;;  %8556 = vmatprep.mubr.msk.bf16.mxu0 %vm1780_vm5, %v14424_v58  ;;  %v4569_v36 = vrot.slane %v10331_v5, 2  ;;  %v11131_v10 = vpop.f32.mrf.mxu0  ;;  %v14429_v29 = vld [vmem:[#allocation166_spill] sm:$0xff] }
 0x217   : > { %v11125_v52 = vpop.f32.mrf.mxu1  ;;  %14426 = vst [vmem:[#allocation177_spill] sm:$0xff] %v11131_v10  ;;  %v11137_v56 = vpack.c.bf16 %v14429_v29, %v14428_v24  ;;  %v14435_v10 = vld [vmem:[#allocation189_spill] sm:$0xff] }
 0x218   : > { %14425 = vst [vmem:[#allocation180_spill] sm:$0xff] %v11125_v52  ;;  %v11139_v21 = vpop.f32.mrf.mxu0  ;;  %v11142_v60 = vsel %vm2651_vm4, %v4568_v63, %v4569_v36  ;;  %v14436_v5 = vpack.c.bf16 %v14434_v6, %v14435_v10  ;;  %v14439_v63 = vrot.slane %v10626_v59, 2  ;;  %v14448_v6 = vld [vmem:[#allocation195_spill] sm:$0xff] }
 0x219   : > { %v11133_v55 = vpop.f32.mrf.mxu1  ;;  %14430 = vst [vmem:[#allocation173_spill] sm:$0xff] %v11139_v21  ;;  %14431 = vst [vmem:[#allocation166_spill] sm:$0xff] %v11142_v60  ;;  %v14456_v60 = vld [vmem:[#allocation214_spill] sm:$0xff] }
 0x21a   : > { %14427 = vst [vmem:[#allocation296_spill] sm:$0xff] %v11133_v55  ;;  %v11144_v58 = vpop.f32.mrf.mxu0  ;;  %v14437_v55 = vrot.slane %v14253_v20, 2  ;;  %v11162_v21 = vsel %vm2651_vm4, %v5990_v42, %v14439_v63 }
 0x21b   : > { %14432 = vst [vmem:[#allocation297_spill] sm:$0xff] %v11144_v58  ;;  %v11146_v52 = vpop.f32.mrf.mxu1  ;;  %14440 = vst [vmem:[#allocation189_spill] sm:$0xff] %v11162_v21  ;;  %v14441_v58 = vrot.slane %v10626_v59, 1 }
 0x21c   : > { %14433 = vst [vmem:[#allocation298_spill] sm:$0xff] %v11146_v52  ;;  %v11157_v0 = vsel %vm2651_vm4, %v4569_v36, %v14437_v55  ;;  %v14452_v36 = vpack.c.bf16 %v10387_v34, %v10370_v47  ;;  %v14457_v34 = vld [vmem:[#allocation232_spill] sm:$0xff]  ;;  %v14458_v47 = vld [vmem:[#allocation226_spill] sm:$0xff] }
 0x21d   : > { %8329 = vmatmul.mubr.msk.bf16.gmra.mxu1 %vm1780_vm5, %v11137_v56  ;;  %8557 = vmatmul.mubr.msk.bf16.gmra.mxu0 %vm1780_vm5, %v14436_v5  ;;  %14438 = vst [vmem:[#allocation191_spill] sm:$0xff] %v11157_v0  ;;  %v11167_v52 = vsel %vm1486_vm3, %v5558_v45, %v14441_v58  ;;  %v14443_v5 = vpack.c.bf16 %v10295_v9, %v10289_v2  ;;  %v14445_v45 = vmax.f32 %v10606_v44, 0.0  ;;  %v11183_v58 = vpop.f32.mrf.mxu0  ;;  %v14446_v9 = vrot.slane %v10573_v62, 2  ;;  %v14449_v44 = vld [vmem:[#allocation216_spill] sm:$0xff] }
 0x21e   : > { %14442 = vst [vmem:[#allocation299_spill] sm:$0xff] %v11167_v52  ;;  %8332 = vmatprep.mubr.msk.bf16.mxu1 %vm1780_vm5, %v10702_v40 }
 0x21f   : > { %8560 = vmatprep.mubr.msk.bf16.mxu0 %vm1780_vm5, %v14443_v5  ;;  %v5995_v55 = vrot.slane %v14445_v45, 2  ;;  %v11187_v52 = vpop.f32.mrf.mxu0  ;;  %v14450_v45 = vld [vmem:[#allocation203_spill] sm:$0xff] }
 0x220   : > { %v11185_v63 = vpop.f32.mrf.mxu1  ;;  %v14451_v10 = vpack.c.bf16 %v14449_v44, %v14450_v45 }
 0x221   : > { %v11192_v2 = vsel %vm2651_vm4, %v14446_v9, %v5995_v55  ;;  %v11196_v42 = vpop.f32.mrf.mxu0  ;;  %v14461_v9 = vpack.c.bf16 %v10503_v17, %v10459_v46  ;;  %v14470_v17 = vld [vmem:[#allocation241_spill] sm:$0xff]  ;;  %v14471_v46 = vld [vmem:[#allocation240_spill] sm:$0xff] }
 0x222   : > { %14447 = vst [vmem:[#allocation300_spill] sm:$0xff] %v11192_v2  ;;  %v11194_v5 = vpop.f32.mrf.mxu1 }
 0x223   : > { %v11216_v0 = vpop.f32.mrf.mxu0 }
 0x224   : > { %v11214_v21 = vpop.f32.mrf.mxu1  ;;  %14453 = vst [vmem:[#allocation195_spill] sm:$0xff] %v11216_v0 }
 0x225   : > { %8333 = vmatmul.mubr.msk.bf16.gmra.mxu1 %vm1780_vm5, %v14448_v6  ;;  %8561 = vmatmul.mubr.msk.bf16.gmra.mxu0 %vm1780_vm5, %v14451_v10  ;;  %v11220_v10 = vpop.f32.mrf.mxu0 }
 0x226   : > { %8336 = vmatprep.mubr.msk.bf16.mxu1 %vm1780_vm5, %v10708_v35  ;;  %8564 = vmatprep.mubr.msk.bf16.mxu0 %vm1780_vm5, %v14452_v36  ;;  %v11218_v44 = vpop.f32.mrf.mxu1  ;;  %14454 = vst [vmem:[#allocation216_spill] sm:$0xff] %v11220_v10  ;;  %v14459_v36 = vpack.c.bf16 %v14457_v34, %v14458_v47 }
 0x22d   : > { %v11222_v45 = vpop.f32.mrf.mxu1  ;;  %8337 = vmatmul.mubr.msk.bf16.gmra.mxu1 %vm1780_vm5, %v14456_v60  ;;  %8565 = vmatmul.mubr.msk.bf16.gmra.mxu0 %vm1780_vm5, %v14459_v36  ;;  %v11230_v55 = vpop.f32.mrf.mxu0 }
 0x22e   : > { %14455 = vst [vmem:[#allocation203_spill] sm:$0xff] %v11222_v45  ;;  %14460 = vst [vmem:[#allocation214_spill] sm:$0xff] %v11230_v55  ;;  %8340 = vmatprep.mubr.msk.bf16.mxu1 %vm1780_vm5, %v10714_v14  ;;  %8568 = vmatprep.mubr.msk.bf16.mxu0 %vm1780_vm5, %v14461_v9  ;;  %v14469_v55 = vld [vmem:[#allocation224_spill] sm:$0xff]  ;;  %v14472_v9 = vpack.c.bf16 %v14470_v17, %v14471_v46  ;;  %v14480_v46 = vld [vmem:[#allocation247_spill] sm:$0xff] }
 0x22f   : > { %v11238_v43 = vpop.f32.mrf.mxu1  ;;  %v11240_v16 = vpop.f32.mrf.mxu0 }
 0x230   : > { %14462 = vst [vmem:[#allocation232_spill] sm:$0xff] %v11238_v43  ;;  %14463 = vst [vmem:[#allocation226_spill] sm:$0xff] %v11240_v16  ;;  %v14650_v43 = vld [vmem:[#allocation243_spill] sm:$0xff] }
 0x231   : > { %v11242_v54 = vpop.f32.mrf.mxu1  ;;  %v11244_v2 = vpop.f32.mrf.mxu0 }
 0x232   : > { %14464 = vst [vmem:[#allocation301_spill] sm:$0xff] %v11242_v54  ;;  %14465 = vst [vmem:[#allocation302_spill] sm:$0xff] %v11244_v2  ;;  %v14473_v2 = vpack.c.bf16 %v10582_v32, %v10576_v12  ;;  %v14483_v12 = vpack.c.bf16 %v10639_v19, %v10634_v22  ;;  %v4048_v19 = vpack.c.bf16 %v10787_v7, %v10687_v53 }
 0x233   : > { %v11246_v34 = vpop.f32.mrf.mxu1  ;;  %v11248_v47 = vpop.f32.mrf.mxu0  ;;  %v14493_v22 = vpack.c.bf16 %v10513_v33, %v10405_v25 }
 0x234   : > { %14466 = vst [vmem:[#allocation303_spill] sm:$0xff] %v11246_v34  ;;  %14467 = vst [vmem:[#allocation304_spill] sm:$0xff] %v11248_v47 }
 0x235   : > { %v11250_v36 = vpop.f32.mrf.mxu1  ;;  %8341 = vmatmul.mubr.msk.bf16.gmra.mxu1 %vm1780_vm5, %v14469_v55  ;;  %8569 = vmatmul.mubr.msk.bf16.gmra.mxu0 %vm1780_vm5, %v14472_v9  ;;  %v14481_v9 = vld [vmem:[#allocation251_spill] sm:$0xff] }
 0x236   : > { %14468 = vst [vmem:[#allocation305_spill] sm:$0xff] %v11250_v36  ;;  %8344 = vmatprep.mubr.msk.bf16.mxu1 %vm1780_vm5, %v10720_v23  ;;  %8572 = vmatprep.mubr.msk.bf16.mxu0 %vm1780_vm5, %v14473_v2  ;;  %v14482_v32 = vpack.c.bf16 %v10322_v48, %v14481_v9 }
 0x237   : > { %v11264_v16 = vpop.f32.mrf.mxu1  ;;  %v11266_v47 = vpop.f32.mrf.mxu0 }
 0x238   : > { %14474 = vst [vmem:[#allocation224_spill] sm:$0xff] %v11264_v16  ;;  %14475 = vst [vmem:[#allocation241_spill] sm:$0xff] %v11266_v47  ;;  %v14488_v47 = vld [vmem:[#allocation149_spill] sm:$0xff] }
 0x239   : > { %v11268_v36 = vpop.f32.mrf.mxu1  ;;  %v11270_v34 = vpop.f32.mrf.mxu0  ;;  %v14492_v16 = vld [vmem:[#allocation197_spill] sm:$0xff] }
 0x23a   : > { %14476 = vst [vmem:[#allocation240_spill] sm:$0xff] %v11268_v36  ;;  %14477 = vst [vmem:[#allocation306_spill] sm:$0xff] %v11270_v34 }
 0x23b   : > { %v11272_v54 = vpop.f32.mrf.mxu0  ;;  %v11274_v17 = vpop.f32.mrf.mxu1 }
 0x23c   : > { %14478 = vst [vmem:[#allocation307_spill] sm:$0xff] %v11272_v54  ;;  %14479 = vst [vmem:[#allocation308_spill] sm:$0xff] %v11274_v17  ;;  %v14487_v17 = vld [vmem:[#allocation148_spill] sm:$0xff] }
 0x23d   : > { %8345 = vmatmul.mubr.msk.bf16.gmra.mxu1 %vm1780_vm5, %v14480_v46  ;;  %8573 = vmatmul.mubr.msk.bf16.gmra.mxu0 %vm1780_vm5, %v14482_v32  ;;  %v11288_v2 = vpop.f32.mrf.mxu0  ;;  %v11296_v36 = vpack.c.bf16 %v14488_v47, %v14487_v17  ;;  %v14491_v32 = vld [vmem:[#allocation145_spill] sm:$0xff] }
 0x23e   : > { %8348 = vmatprep.mubr.msk.bf16.mxu1 %vm1780_vm5, %v10742_v4  ;;  %8576 = vmatprep.mubr.msk.bf16.mxu0 %vm1780_vm5, %v14483_v12  ;;  %14484 = vst [vmem:[#allocation247_spill] sm:$0xff] %v11288_v2  ;;  %v11304_v10 = vpack.c.bf16 %v14492_v16, %v14491_v32  ;;  %v14498_v2 = vld [vmem:[#allocation187_spill] sm:$0xff] }
 0x23f   : > { %v11290_v54 = vpop.f32.mrf.mxu1  ;;  %v11292_v34 = vpop.f32.mrf.mxu0  ;;  %v4049_v25 = vpack.c.bf16 %v14498_v2, %v10792_v8 }
 0x240   : > { %14485 = vst [vmem:[#allocation251_spill] sm:$0xff] %v11290_v54  ;;  %14486 = vst [vmem:[#allocation309_spill] sm:$0xff] %v11292_v34  ;;  %v14496_v34 = vld [vmem:[#allocation200_spill] sm:$0xff] }
 0x241   : > { %v11298_v48 = vpop.f32.mrf.mxu1  ;;  %v11300_v9 = vpop.f32.mrf.mxu0  ;;  %v11323_v53 = vpack.c.bf16 %v10017_v51, %v14496_v34 }
 0x242   : > { %14489 = vst [vmem:[#allocation148_spill] sm:$0xff] %v11298_v48  ;;  %14490 = vst [vmem:[#allocation149_spill] sm:$0xff] %v11300_v9 }
 0x243   : > { %v11317_v12 = vpop.f32.mrf.mxu1  ;;  %v11319_v9 = vpop.f32.mrf.mxu0 }
 0x244   : > { %14494 = vst [vmem:[#allocation145_spill] sm:$0xff] %v11317_v12  ;;  %14495 = vst [vmem:[#allocation197_spill] sm:$0xff] %v11319_v9  ;;  %v14640_v12 = vld [vmem:[#allocation215_spill] sm:$0xff] }
 0x245   : > { %8349 = vmatmul.mubr.msk.bf16.gmra.mxu1 %vm1780_vm5, %v11296_v36  ;;  %8577 = vmatmul.mubr.msk.bf16.gmra.mxu0 %vm1780_vm5, %v14493_v22  ;;  %v11325_v7 = vpop.f32.mrf.mxu1  ;;  %v11329_v33 = vpop.f32.mrf.mxu0  ;;  %v3446_v22 = vpack.c.bf16 %v9311_v38, %v9305_v28 }
 0x246   : > { %8352 = vmatprep.mubr.msk.bf16.mxu1 %vm1780_vm5, %v11304_v10  ;;  %8580 = vmatprep.mubr.msk.bf16.mxu0 %vm1780_vm5, %v4048_v19  ;;  %14497 = vst [vmem:[#allocation200_spill] sm:$0xff] %v11325_v7  ;;  %14499 = vst [vmem:[#allocation310_spill] sm:$0xff] %v11329_v33 }
 0x24d   : > { %v11333_v48 = vpop.f32.mrf.mxu1  ;;  %8353 = vmatmul.mubr.msk.bf16.gmra.mxu1 %vm1780_vm5, %v11323_v53  ;;  %8581 = vmatmul.mubr.msk.bf16.gmra.mxu0 %vm1780_vm5, %v4049_v25  ;;  %v11338_v19 = vpop.f32.mrf.mxu0  ;;  %v8986_v25 = vld [vmem:[%s13601_s3 + $0x50] sm:$0xff]  }
 0x24e   : > { %14500 = vst [vmem:[#allocation311_spill] sm:$0xff] %v11333_v48  ;;  %14501 = vst [vmem:[#allocation312_spill] sm:$0xff] %v11338_v19  ;;  %8436 = vmatprep.mubr.msk.bf16.mxu1 %vm1780_vm5, %v3446_v22  ;;  %8664 = vmatprep.mubr.msk.bf16.mxu0 %vm1780_vm5, %v10798_v3  ;;  %v3448_v22 = vpack.c.bf16 %v14258_v11, %v14257_v13  ;;  %v14630_v48 = vld [vmem:[#allocation212_spill] sm:$0xff] }
 0x24f   : > { %v11343_v8 = vpop.f32.mrf.mxu1  ;;  %v11345_v2 = vpop.f32.mrf.mxu0 }
 0x250   : > { %14502 = vst [vmem:[#allocation313_spill] sm:$0xff] %v11343_v8  ;;  %14503 = vst [vmem:[#allocation314_spill] sm:$0xff] %v11345_v2  ;;  %v14509_v2 = vpack.c.bf16 %v14256_v49, %v9303_v27  ;;  %v3449_v27 = vpack.c.bf16 %v14273_v31, %v14259_v37  ;;  %v8987_v37 = vld [vmem:[%s13601_s3 + $0x88] sm:$0xff]  }
 0x251   : > { %v11347_v33 = vpop.f32.mrf.mxu1  ;;  %v11349_v28 = vpop.f32.mrf.mxu0  ;;  %8812 = vmatprep.subr.bf16.mxu0 %v8987_v37 }
 0x252   : > { %14504 = vst [vmem:[#allocation315_spill] sm:$0xff] %v11347_v33  ;;  %14505 = vst [vmem:[#allocation316_spill] sm:$0xff] %v11349_v28 }
 0x253   : > { %v11351_v38 = vpop.f32.mrf.mxu1  ;;  %v11358_v19 = vpop.f32.mrf.mxu0 }
 0x254   : > { %14506 = vst [vmem:[#allocation317_spill] sm:$0xff] %v11351_v38  ;;  %14507 = vst [vmem:[#allocation318_spill] sm:$0xff] %v11358_v19 }
 0x255   : > { %v11360_v3 = vpop.f32.mrf.mxu1  ;;  %8437 = vmatmul.mubr.msk.bf16.vlgmr.msra.gmra.mxu1 %vm1780_vm5, %v14509_v2  ;;  %8665 = vmatmul.mubr.msk.bf16.vlgmr.msra.gmra.mxu0 %vm1780_vm5, %v10802_v30  ;;  %v14514_v30 = vld [vmem:[#allocation16_spill] sm:$0xff] }
 0x256   : > { %14508 = vst [vmem:[#allocation319_spill] sm:$0xff] %v11360_v3  ;;  %8585 = vmatpush3.bf16.msra.mxu1 %v10850_v39  ;;  %8440 = vmatprep.mubr.msk.bf16.mxu1 %vm1780_vm5, %v3448_v22  ;;  %v14515_v39 = vld [vmem:[#allocation32_spill] sm:$0xff] }
 0x257   : > { %8668 = vmatprep.mubr.msk.bf16.mxu0 %vm1780_vm5, %v10839_v26  ;;  %v11372_v13 = vpop.f32.mrf.mxu1  ;;  %8586 = vmatprep.subr.bf16.mxu1 %v8986_v25  ;;  %v11374_v11 = vpop.f32.mrf.mxu0  ;;  %v3450_v2 = vpack.c.bf16 %v14515_v39, %v14514_v30  ;;  %v14518_v26 = vld [vmem:[#allocation31_spill] sm:$0xff]  ;;  %v14522_v39 = vld [vmem:[#allocation38_spill] sm:$0xff] }
 0x258   : > { %14510 = vst [vmem:[#allocation320_spill] sm:$0xff] %v11372_v13  ;;  %14511 = vst [vmem:[#allocation321_spill] sm:$0xff] %v11374_v11  ;;  %8813 = vmatpush3.bf16.msra.mxu0 %v8987_v37  ;;  %v14525_v37 = vld [vmem:[#allocation40_spill] sm:$0xff] }
 0x259   : > { %v11376_v19 = vpop.f32.mrf.mxu1  ;;  %v11380_v49 = vpop.f32.mrf.mxu0 }
 0x25a   : > { %14512 = vst [vmem:[#allocation322_spill] sm:$0xff] %v11376_v19  ;;  %8587 = vmatpush3.bf16.msra.mxu1 %v8986_v25  ;;  %14513 = vst [vmem:[#allocation323_spill] sm:$0xff] %v11380_v49 }
 0x25b   : > { %v11384_v22 = vpop.f32.mrf.mxu0  ;;  %v11386_v28 = vpop.f32.mrf.mxu1 }
 0x25c   : > { %14516 = vst [vmem:[#allocation16_spill] sm:$0xff] %v11384_v22  ;;  %14517 = vst [vmem:[#allocation32_spill] sm:$0xff] %v11386_v28 }
 0x25d   : > { %8441 = vmatmul.mubr.msk.bf16.gmra.mxu1 %vm1780_vm5, %v3449_v27  ;;  %8669 = vmatmul.mubr.msk.bf16.gmra.mxu0 %vm1780_vm5, %v14518_v26  ;;  %v11397_v31 = vpop.f32.mrf.mxu0  ;;  %v8988_v27 = vld [vmem:[%s13601_s3 + $0x80] sm:$0xff]  }
 0x25e   : > { %8444 = vmatprep.mubr.msk.bf16.mxu1 %vm1780_vm5, %v3450_v2  ;;  %8672 = vmatprep.mubr.msk.bf16.mxu0 %vm1780_vm5, %v10880_v61  ;;  %14519 = vst [vmem:[#allocation31_spill] sm:$0xff] %v11397_v31  ;;  %v3451_v2 = vpack.c.bf16 %v14292_v1, %v14522_v39  ;;  %v3452_v31 = vpack.c.bf16 %v14294_v15, %v14293_v18  ;;  %v14526_v1 = vld [vmem:[#allocation64_spill] sm:$0xff]  ;;  %v14529_v18 = vld [vmem:[#allocation45_spill] sm:$0xff] }
 0x25f   : > { %8814 = vmatprep.subr.bf16.mxu0 %v8988_v27  ;;  %v14530_v15 = vld [vmem:[#allocation57_spill] sm:$0xff] }
 0x260   : > { %v11401_v30 = vpop.f32.mrf.mxu0  ;;  %8815 = vmatpush3.bf16.msra.mxu0 %v8988_v27  ;;  %v14538_v27 = vld [vmem:[#allocation76_spill] sm:$0xff] }
 0x261   : > { %v11399_v25 = vpop.f32.mrf.mxu1  ;;  %14521 = vst [vmem:[#allocation325_spill] sm:$0xff] %v11401_v30  ;;  %v11417_v30 = vld [vmem:[%s13601_s3 + $0x78] sm:$0xff]  }
 0x262   : > { %14520 = vst [vmem:[#allocation324_spill] sm:$0xff] %v11399_v25  ;;  %v11410_v26 = vpop.f32.mrf.mxu0  ;;  %8736 = vmatprep.subr.bf16.mxu1 %v11417_v30  ;;  %v14534_v25 = vld [vmem:[#allocation55_spill] sm:$0xff] }
 0x263   : > { %v11408_v61 = vpop.f32.mrf.mxu1  ;;  %14524 = vst [vmem:[#allocation326_spill] sm:$0xff] %v11410_v26 }
 0x264   : > { %14523 = vst [vmem:[#allocation38_spill] sm:$0xff] %v11408_v61  ;;  %v11427_v26 = vpop.f32.mrf.mxu0  ;;  %v3453_v61 = vpack.c.bf16 %v14530_v15, %v14529_v18 }
 0x265   : > { %8445 = vmatmul.mubr.msk.bf16.gmra.mxu1 %vm1780_vm5, %v3451_v2  ;;  %8673 = vmatmul.mubr.msk.bf16.gmra.mxu0 %vm1780_vm5, %v14525_v37  ;;  %v11425_v39 = vpop.f32.mrf.mxu1  ;;  %14528 = vst [vmem:[#allocation64_spill] sm:$0xff] %v11427_v26  ;;  %v14533_v37 = vld [vmem:[#allocation62_spill] sm:$0xff]  ;;  %v14537_v26 = vld [vmem:[#allocation273_spill] sm:$0xff] }
 0x266   : > { %8448 = vmatprep.mubr.msk.bf16.mxu1 %vm1780_vm5, %v3452_v31  ;;  %8676 = vmatprep.mubr.msk.bf16.mxu0 %vm1780_vm5, %v14526_v1  ;;  %14527 = vst [vmem:[#allocation40_spill] sm:$0xff] %v11425_v39  ;;  %v11434_v2 = vpop.f32.mrf.mxu0  ;;  %v3454_v31 = vpack.c.bf16 %v14534_v25, %v14533_v37  ;;  %v14543_v37 = vld [vmem:[#allocation68_spill] sm:$0xff] }
 0x267   : > { %v11432_v22 = vpop.f32.mrf.mxu1  ;;  %14532 = vst [vmem:[#allocation57_spill] sm:$0xff] %v11434_v2 }
 0x268   : > { %14531 = vst [vmem:[#allocation45_spill] sm:$0xff] %v11432_v22 }
 0x26d   : > { %v11438_v49 = vpop.f32.mrf.mxu1  ;;  %v11440_v1 = vpop.f32.mrf.mxu0  ;;  %8449 = vmatmul.mubr.msk.bf16.gmra.mxu1 %vm1780_vm5, %v3453_v61  ;;  %8677 = vmatmul.mubr.msk.bf16.gmra.mxu0 %vm1780_vm5, %v14537_v26  ;;  %v14547_v26 = vld [vmem:[#allocation67_spill] sm:$0xff] }
 0x26e   : > { %14535 = vst [vmem:[#allocation62_spill] sm:$0xff] %v11438_v49  ;;  %14536 = vst [vmem:[#allocation55_spill] sm:$0xff] %v11440_v1  ;;  %8452 = vmatprep.mubr.msk.bf16.mxu1 %vm1780_vm5, %v3454_v31  ;;  %8680 = vmatprep.mubr.msk.bf16.mxu0 %vm1780_vm5, %v14538_v27  ;;  %v14544_v1 = vld [vmem:[#allocation72_spill] sm:$0xff] }
 0x26f   : > { %v11448_v18 = vpop.f32.mrf.mxu1  ;;  %v11450_v15 = vpop.f32.mrf.mxu0  ;;  %v3455_v49 = vpack.c.bf16 %v14544_v1, %v14543_v37  ;;  %v14548_v31 = vld [vmem:[#allocation80_spill] sm:$0xff] }
 0x270   : > { %14539 = vst [vmem:[#allocation273_spill] sm:$0xff] %v11448_v18  ;;  %14540 = vst [vmem:[#allocation76_spill] sm:$0xff] %v11450_v15  ;;  %v3456_v39 = vpack.c.bf16 %v14548_v31, %v14547_v26  ;;  %v14551_v15 = vld [vmem:[#allocation275_spill] sm:$0xff]  ;;  %v14557_v31 = vld [vmem:[#allocation86_spill] sm:$0xff] }
 0x271   : > { %v11452_v2 = vpop.f32.mrf.mxu1  ;;  %v11454_v25 = vpop.f32.mrf.mxu0 }
 0x272   : > { %14541 = vst [vmem:[#allocation327_spill] sm:$0xff] %v11452_v2  ;;  %14542 = vst [vmem:[#allocation328_spill] sm:$0xff] %v11454_v25  ;;  %v14552_v25 = vld [vmem:[#allocation278_spill] sm:$0xff] }
 0x273   : > { %v11458_v61 = vpop.f32.mrf.mxu1  ;;  %v11460_v22 = vpop.f32.mrf.mxu0 }
 0x274   : > { %14545 = vst [vmem:[#allocation68_spill] sm:$0xff] %v11458_v61  ;;  %14546 = vst [vmem:[#allocation72_spill] sm:$0xff] %v11460_v22 }
 0x275   : > { %v11464_v28 = vpop.f32.mrf.mxu1  ;;  %v11466_v27 = vpop.f32.mrf.mxu0  ;;  %8453 = vmatmul.mubr.msk.bf16.gmra.mxu1 %vm1780_vm5, %v3455_v49  ;;  %8681 = vmatmul.mubr.msk.bf16.gmra.mxu0 %vm1780_vm5, %v14551_v15  ;;  %v14561_v15 = vld [vmem:[#allocation93_spill] sm:$0xff] }
 0x276   : > { %14549 = vst [vmem:[#allocation67_spill] sm:$0xff] %v11464_v28  ;;  %14550 = vst [vmem:[#allocation80_spill] sm:$0xff] %v11466_v27  ;;  %8456 = vmatprep.mubr.msk.bf16.mxu1 %vm1780_vm5, %v3456_v39  ;;  %8684 = vmatprep.mubr.msk.bf16.mxu0 %vm1780_vm5, %v14552_v25  ;;  %v14558_v27 = vld [vmem:[#allocation75_spill] sm:$0xff]  ;;  %v14562_v39 = vld [vmem:[#allocation98_spill] sm:$0xff] }
 0x277   : > { %v11474_v1 = vpop.f32.mrf.mxu1  ;;  %v11476_v37 = vpop.f32.mrf.mxu0  ;;  %v3457_v28 = vpack.c.bf16 %v14558_v27, %v14557_v31  ;;  %v3458_v2 = vpack.c.bf16 %v14562_v39, %v14561_v15  ;;  %v14571_v39 = vld [vmem:[#allocation92_spill] sm:$0xff] }
 0x278   : > { %14553 = vst [vmem:[#allocation275_spill] sm:$0xff] %v11474_v1  ;;  %14554 = vst [vmem:[#allocation278_spill] sm:$0xff] %v11476_v37  ;;  %v14565_v37 = vld [vmem:[#allocation281_spill] sm:$0xff] }
 0x279   : > { %v11478_v22 = vpop.f32.mrf.mxu1  ;;  %v11480_v26 = vpop.f32.mrf.mxu0 }
 0x27a   : > { %14555 = vst [vmem:[#allocation329_spill] sm:$0xff] %v11478_v22  ;;  %14556 = vst [vmem:[#allocation330_spill] sm:$0xff] %v11480_v26  ;;  %v14566_v26 = vld [vmem:[#allocation283_spill] sm:$0xff] }
 0x27b   : > { %v11484_v49 = vpop.f32.mrf.mxu1  ;;  %v11486_v61 = vpop.f32.mrf.mxu0 }
 0x27c   : > { %14559 = vst [vmem:[#allocation86_spill] sm:$0xff] %v11484_v49  ;;  %14560 = vst [vmem:[#allocation75_spill] sm:$0xff] %v11486_v61 }
 0x27d   : > { %v11490_v18 = vpop.f32.mrf.mxu1  ;;  %v11492_v25 = vpop.f32.mrf.mxu0  ;;  %8457 = vmatmul.mubr.msk.bf16.gmra.mxu1 %vm1780_vm5, %v3457_v28  ;;  %8685 = vmatmul.mubr.msk.bf16.gmra.mxu0 %vm1780_vm5, %v14565_v37  ;;  %v14575_v37 = vld [vmem:[#allocation110_spill] sm:$0xff] }
 0x27e   : > { %14563 = vst [vmem:[#allocation93_spill] sm:$0xff] %v11490_v18  ;;  %14564 = vst [vmem:[#allocation98_spill] sm:$0xff] %v11492_v25  ;;  %8460 = vmatprep.mubr.msk.bf16.mxu1 %vm1780_vm5, %v3458_v2  ;;  %8688 = vmatprep.mubr.msk.bf16.mxu0 %vm1780_vm5, %v14566_v26  ;;  %v14572_v25 = vld [vmem:[#allocation105_spill] sm:$0xff]  ;;  %v14576_v2 = vld [vmem:[#allocation103_spill] sm:$0xff] }
 0x27f   : > { %v11500_v27 = vpop.f32.mrf.mxu1  ;;  %v11502_v31 = vpop.f32.mrf.mxu0  ;;  %v3459_v18 = vpack.c.bf16 %v14572_v25, %v14571_v39  ;;  %v3460_v22 = vpack.c.bf16 %v14576_v2, %v14575_v37  ;;  %v14582_v2 = vld [vmem:[#allocation115_spill] sm:$0xff] }
 0x280   : > { %14567 = vst [vmem:[#allocation281_spill] sm:$0xff] %v11500_v27  ;;  %14568 = vst [vmem:[#allocation283_spill] sm:$0xff] %v11502_v31  ;;  %v14578_v31 = vld [vmem:[#allocation286_spill] sm:$0xff] }
 0x281   : > { %v11504_v61 = vpop.f32.mrf.mxu1  ;;  %v11506_v15 = vpop.f32.mrf.mxu0 }
 0x282   : > { %14569 = vst [vmem:[#allocation331_spill] sm:$0xff] %v11504_v61  ;;  %14570 = vst [vmem:[#allocation332_spill] sm:$0xff] %v11506_v15  ;;  %v14579_v15 = vld [vmem:[#allocation124_spill] sm:$0xff] }
 0x283   : > { %v11510_v28 = vpop.f32.mrf.mxu1  ;;  %v11512_v49 = vpop.f32.mrf.mxu0 }
 0x284   : > { %14573 = vst [vmem:[#allocation92_spill] sm:$0xff] %v11510_v28  ;;  %14574 = vst [vmem:[#allocation105_spill] sm:$0xff] %v11512_v49 }
 0x285   : > { %v11516_v1 = vpop.f32.mrf.mxu1  ;;  %8461 = vmatmul.mubr.msk.bf16.gmra.mxu1 %vm1780_vm5, %v3459_v18  ;;  %v11519_v26 = vpop.f32.mrf.mxu0  ;;  %8689 = vmatmul.mubr.msk.bf16.gmra.mxu0 %vm1780_vm5, %v14578_v31  ;;  %v14583_v18 = vld [vmem:[#allocation119_spill] sm:$0xff]  ;;  %v14585_v31 = vld [vmem:[#allocation114_spill] sm:$0xff] }
 0x286   : > { %14577 = vst [vmem:[#allocation110_spill] sm:$0xff] %v11519_v26  ;;  %8464 = vmatprep.mubr.msk.bf16.mxu1 %vm1780_vm5, %v3460_v22  ;;  %8692 = vmatprep.mubr.msk.bf16.mxu0 %vm1780_vm5, %v14579_v15  ;;  %v3461_v28 = vpack.c.bf16 %v14583_v18, %v14582_v2  ;;  %v14586_v22 = vld [vmem:[#allocation126_spill] sm:$0xff] }
 0x287   : > { %v11526_v25 = vpop.f32.mrf.mxu1  ;;  %v11528_v39 = vpop.f32.mrf.mxu0  ;;  %v3462_v27 = vpack.c.bf16 %v14586_v22, %v14585_v31  ;;  %v14592_v22 = vld [vmem:[#allocation134_spill] sm:$0xff] }
 0x288   : > { %14580 = vst [vmem:[#allocation103_spill] sm:$0xff] %v11528_v39  ;;  %v14588_v39 = vld [vmem:[#allocation289_spill] sm:$0xff] }
 0x289   : > { %v11530_v49 = vpop.f32.mrf.mxu1  ;;  %v11532_v37 = vpop.f32.mrf.mxu0 }
 0x28a   : > { %14581 = vst [vmem:[#allocation286_spill] sm:$0xff] %v11532_v37  ;;  %v14589_v37 = vld [vmem:[#allocation139_spill] sm:$0xff] }
 0x28b   : > { %v11536_v26 = vpop.f32.mrf.mxu1  ;;  %v11538_v61 = vpop.f32.mrf.mxu0 }
 0x28c   : > { %14584 = vst [vmem:[#allocation124_spill] sm:$0xff] %v11538_v61 }
 0x28d   : > { %v11542_v11 = vpop.f32.mrf.mxu1  ;;  %8465 = vmatmul.mubr.msk.bf16.gmra.mxu1 %vm1780_vm5, %v3461_v28  ;;  %v11545_v15 = vpop.f32.mrf.mxu0  ;;  %8693 = vmatmul.mubr.msk.bf16.gmra.mxu0 %vm1780_vm5, %v14588_v39  ;;  %v14593_v28 = vld [vmem:[#allocation123_spill] sm:$0xff]  ;;  %v14595_v39 = vld [vmem:[#allocation141_spill] sm:$0xff] }
 0x28e   : > { %14587 = vst [vmem:[#allocation115_spill] sm:$0xff] %v11545_v15  ;;  %8468 = vmatprep.mubr.msk.bf16.mxu1 %vm1780_vm5, %v3462_v27  ;;  %8696 = vmatprep.mubr.msk.bf16.mxu0 %vm1780_vm5, %v14589_v37  ;;  %v3463_v19 = vpack.c.bf16 %v14593_v28, %v14592_v22  ;;  %v14596_v27 = vld [vmem:[#allocation147_spill] sm:$0xff] }
 0x28f   : > { %v11552_v2 = vpop.f32.mrf.mxu1  ;;  %v11554_v18 = vpop.f32.mrf.mxu0  ;;  %v3464_v3 = vpack.c.bf16 %v14596_v27, %v14595_v39  ;;  %v14601_v27 = vld [vmem:[#allocation140_spill] sm:$0xff] }
 0x290   : > { %14590 = vst [vmem:[#allocation119_spill] sm:$0xff] %v11554_v18  ;;  %v14598_v18 = vld [vmem:[#allocation291_spill] sm:$0xff] }
 0x291   : > { %v11556_v61 = vpop.f32.mrf.mxu1  ;;  %v11558_v31 = vpop.f32.mrf.mxu0 }
 0x292   : > { %14591 = vst [vmem:[#allocation114_spill] sm:$0xff] %v11558_v31 }
 0x293   : > { %v11562_v15 = vpop.f32.mrf.mxu1  ;;  %v11564_v13 = vpop.f32.mrf.mxu0 }
 0x294   : > { %14594 = vst [vmem:[#allocation126_spill] sm:$0xff] %v11564_v13 }
 0x295   : > { %v11568_v38 = vpop.f32.mrf.mxu1  ;;  %8469 = vmatmul.mubr.msk.bf16.gmra.mxu1 %vm1780_vm5, %v3463_v19  ;;  %v11571_v37 = vpop.f32.mrf.mxu0  ;;  %8697 = vmatmul.mubr.msk.bf16.gmra.mxu0 %vm1780_vm5, %v14598_v18  ;;  %v3465_v19 = vpack.c.bf16 %v14412_v57, %v14601_v27 }
 0x296   : > { %14597 = vst [vmem:[#allocation289_spill] sm:$0xff] %v11571_v37  ;;  %8472 = vmatprep.mubr.msk.bf16.mxu1 %vm1780_vm5, %v3464_v3  ;;  %8700 = vmatprep.mubr.msk.bf16.mxu0 %vm1780_vm5, %v11099_v50  ;;  %v14603_v3 = vld [vmem:[#allocation154_spill] sm:$0xff] }
 0x297   : > { %v11578_v22 = vpop.f32.mrf.mxu1  ;;  %v11580_v28 = vpop.f32.mrf.mxu0  ;;  %v3466_v18 = vpack.c.bf16 %v14603_v3, %v14413_v41  ;;  %v14608_v3 = vld [vmem:[#allocation167_spill] sm:$0xff] }
 0x298   : > { %14599 = vst [vmem:[#allocation139_spill] sm:$0xff] %v11580_v28  ;;  %v14605_v28 = vld [vmem:[#allocation161_spill] sm:$0xff] }
 0x299   : > { %v11582_v13 = vpop.f32.mrf.mxu1  ;;  %v11584_v39 = vpop.f32.mrf.mxu0 }
 0x29a   : > { %14600 = vst [vmem:[#allocation134_spill] sm:$0xff] %v11584_v39 }
 0x29b   : > { %v11588_v37 = vpop.f32.mrf.mxu1  ;;  %v11590_v31 = vpop.f32.mrf.mxu0 }
 0x29c   : > { %14602 = vst [vmem:[#allocation123_spill] sm:$0xff] %v11590_v31 }
 0x29d   : > { %v11594_v33 = vpop.f32.mrf.mxu1  ;;  %8473 = vmatmul.mubr.msk.bf16.gmra.mxu1 %vm1780_vm5, %v3465_v19  ;;  %v11597_v50 = vpop.f32.mrf.mxu0  ;;  %8701 = vmatmul.mubr.msk.bf16.gmra.mxu0 %vm1780_vm5, %v14605_v28  ;;  %v3467_v19 = vpack.c.bf16 %v14428_v24, %v14608_v3  ;;  %v14610_v28 = vld [vmem:[#allocation178_spill] sm:$0xff] }
 0x29e   : > { %14604 = vst [vmem:[#allocation141_spill] sm:$0xff] %v11597_v50  ;;  %8476 = vmatprep.mubr.msk.bf16.mxu1 %vm1780_vm5, %v3466_v18  ;;  %8704 = vmatprep.mubr.msk.bf16.mxu0 %vm1780_vm5, %v11137_v56  ;;  %v3468_v18 = vpack.c.bf16 %v14610_v28, %v14429_v29 }
 0x29f   : > { %v11604_v57 = vpop.f32.mrf.mxu1  ;;  %v11606_v27 = vpop.f32.mrf.mxu0 }
 0x2a0   : > { %14606 = vst [vmem:[#allocation147_spill] sm:$0xff] %v11606_v27  ;;  %v14620_v27 = vld [vmem:[#allocation192_spill] sm:$0xff] }
 0x2a1   : > { %v11608_v31 = vpop.f32.mrf.mxu1  ;;  %v11610_v41 = vpop.f32.mrf.mxu0 }
 0x2a2   : > { %14607 = vst [vmem:[#allocation291_spill] sm:$0xff] %v11610_v41  ;;  %v14616_v41 = vld [vmem:[#allocation185_spill] sm:$0xff] }
 0x2a3   : > { %v11614_v50 = vpop.f32.mrf.mxu1  ;;  %v11616_v39 = vpop.f32.mrf.mxu0 }
 0x2a4   : > { %14609 = vst [vmem:[#allocation140_spill] sm:$0xff] %v11616_v39 }
 0x2a5   : > { %v11620_v8 = vpop.f32.mrf.mxu1  ;;  %8477 = vmatmul.mubr.msk.bf16.gmra.mxu1 %vm1780_vm5, %v3467_v19  ;;  %v11623_v56 = vpop.f32.mrf.mxu0  ;;  %8705 = vmatmul.mubr.msk.bf16.gmra.mxu0 %vm1780_vm5, %v10702_v40  ;;  %v14615_v40 = vld [vmem:[#allocation175_spill] sm:$0xff] }
 0x2a6   : > { %14611 = vst [vmem:[#allocation154_spill] sm:$0xff] %v11623_v56  ;;  %8480 = vmatprep.mubr.msk.bf16.mxu1 %vm1780_vm5, %v3468_v18  ;;  %8708 = vmatprep.mubr.msk.bf16.mxu0 %vm1780_vm5, %v14448_v6  ;;  %v14617_v18 = vpack.c.bf16 %v14615_v40, %v14616_v41 }
 0x2a7   : > { %v11630_v24 = vpop.f32.mrf.mxu1  ;;  %v11632_v3 = vpop.f32.mrf.mxu0 }
 0x2a8   : > { %14612 = vst [vmem:[#allocation161_spill] sm:$0xff] %v11632_v3  ;;  %v14619_v3 = vld [vmem:[#allocation199_spill] sm:$0xff] }
 0x2a9   : > { %v11634_v39 = vpop.f32.mrf.mxu1  ;;  %v11636_v29 = vpop.f32.mrf.mxu0  ;;  %v14621_v9 = vpack.c.bf16 %v14619_v3, %v14620_v27  ;;  %v14625_v27 = vld [vmem:[#allocation205_spill] sm:$0xff]  ;;  %v14626_v3 = vld [vmem:[#allocation188_spill] sm:$0xff] }
 0x2aa   : > { %14613 = vst [vmem:[#allocation167_spill] sm:$0xff] %v11636_v29 }
 0x2ab   : > { %v11638_v28 = vpop.f32.mrf.mxu1  ;;  %v11640_v19 = vpop.f32.mrf.mxu0 }
 0x2ac   : > { %14614 = vst [vmem:[#allocation178_spill] sm:$0xff] %v11640_v19 }
 0x2ad   : > { %v11642_v56 = vpop.f32.mrf.mxu1  ;;  %8481 = vmatmul.mubr.msk.bf16.gmra.mxu1 %vm1780_vm5, %v14617_v18  ;;  %v11648_v6 = vpop.f32.mrf.mxu0  ;;  %8709 = vmatmul.mubr.msk.bf16.gmra.mxu0 %vm1780_vm5, %v10708_v35 }
 0x2ae   : > { %14618 = vst [vmem:[#allocation175_spill] sm:$0xff] %v11648_v6  ;;  %8484 = vmatprep.mubr.msk.bf16.mxu1 %vm1780_vm5, %v14621_v9  ;;  %8712 = vmatprep.mubr.msk.bf16.mxu0 %vm1780_vm5, %v14456_v60  ;;  %v14627_v9 = vpack.c.bf16 %v14625_v27, %v14626_v3 }
 0x2af   : > { %v11658_v19 = vpop.f32.mrf.mxu1  ;;  %v11660_v29 = vpop.f32.mrf.mxu0 }
 0x2b0   : > { %14622 = vst [vmem:[#allocation185_spill] sm:$0xff] %v11660_v29  ;;  %v14629_v29 = vld [vmem:[#allocation204_spill] sm:$0xff] }
 0x2b1   : > { %v11662_v41 = vpop.f32.mrf.mxu1  ;;  %v11664_v40 = vpop.f32.mrf.mxu0  ;;  %v14631_v7 = vpack.c.bf16 %v14629_v29, %v14630_v48  ;;  %v14635_v48 = vld [vmem:[#allocation222_spill] sm:$0xff]  ;;  %v14636_v29 = vld [vmem:[#allocation217_spill] sm:$0xff] }
 0x2b2   : > { %14623 = vst [vmem:[#allocation199_spill] sm:$0xff] %v11664_v40 }
 0x2b3   : > { %v11666_v18 = vpop.f32.mrf.mxu1  ;;  %v11668_v6 = vpop.f32.mrf.mxu0 }
 0x2b4   : > { %14624 = vst [vmem:[#allocation192_spill] sm:$0xff] %v11668_v6 }
 0x2b5   : > { %v11670_v35 = vpop.f32.mrf.mxu1  ;;  %8485 = vmatmul.mubr.msk.bf16.gmra.mxu1 %vm1780_vm5, %v14627_v9  ;;  %v11676_v60 = vpop.f32.mrf.mxu0  ;;  %8713 = vmatmul.mubr.msk.bf16.gmra.mxu0 %vm1780_vm5, %v10714_v14 }
 0x2b6   : > { %14628 = vst [vmem:[#allocation205_spill] sm:$0xff] %v11676_v60  ;;  %8488 = vmatprep.mubr.msk.bf16.mxu1 %vm1780_vm5, %v14631_v7  ;;  %8716 = vmatprep.mubr.msk.bf16.mxu0 %vm1780_vm5, %v14469_v55  ;;  %v14637_v7 = vpack.c.bf16 %v14635_v48, %v14636_v29 }
 0x2b7   : > { %v11686_v6 = vpop.f32.mrf.mxu1  ;;  %v11688_v40 = vpop.f32.mrf.mxu0 }
 0x2b8   : > { %14632 = vst [vmem:[#allocation188_spill] sm:$0xff] %v11688_v40  ;;  %v14639_v40 = vld [vmem:[#allocation230_spill] sm:$0xff] }
 0x2b9   : > { %v11690_v27 = vpop.f32.mrf.mxu1  ;;  %v11692_v3 = vpop.f32.mrf.mxu0  ;;  %v14641_v54 = vpack.c.bf16 %v14639_v40, %v14640_v12  ;;  %v14645_v12 = vld [vmem:[#allocation225_spill] sm:$0xff] }
 0x2ba   : > { %14633 = vst [vmem:[#allocation204_spill] sm:$0xff] %v11692_v3  ;;  %v14646_v40 = vld [vmem:[#allocation237_spill] sm:$0xff] }
 0x2bb   : > { %v11694_v9 = vpop.f32.mrf.mxu1  ;;  %v11696_v60 = vpop.f32.mrf.mxu0 }
 0x2bc   : > { %14634 = vst [vmem:[#allocation212_spill] sm:$0xff] %v11696_v60 }
 0x2bd   : > { %v11698_v14 = vpop.f32.mrf.mxu1  ;;  %8489 = vmatmul.mubr.msk.bf16.gmra.mxu1 %vm1780_vm5, %v14637_v7  ;;  %v11704_v55 = vpop.f32.mrf.mxu0  ;;  %8717 = vmatmul.mubr.msk.bf16.gmra.mxu0 %vm1780_vm5, %v10720_v23 }
 0x2be   : > { %14638 = vst [vmem:[#allocation222_spill] sm:$0xff] %v11704_v55  ;;  %8492 = vmatprep.mubr.msk.bf16.mxu1 %vm1780_vm5, %v14641_v54  ;;  %8720 = vmatprep.mubr.msk.bf16.mxu0 %vm1780_vm5, %v14480_v46  ;;  %v14647_v54 = vpack.c.bf16 %v14645_v12, %v14646_v40 }
 0x2bf   : > { %v11714_v60 = vpop.f32.mrf.mxu1  ;;  %v11716_v3 = vpop.f32.mrf.mxu0 }
 0x2c0   : > { %14642 = vst [vmem:[#allocation217_spill] sm:$0xff] %v11716_v3  ;;  %v14649_v3 = vld [vmem:[#allocation249_spill] sm:$0xff] }
 0x2c1   : > { %v11718_v48 = vpop.f32.mrf.mxu1  ;;  %v11720_v29 = vpop.f32.mrf.mxu0  ;;  %v14651_v0 = vpack.c.bf16 %v14649_v3, %v14650_v43 }
 0x2c2   : > { %14643 = vst [vmem:[#allocation230_spill] sm:$0xff] %v11720_v29 }
 0x2c3   : > { %v11722_v7 = vpop.f32.mrf.mxu1  ;;  %v11724_v55 = vpop.f32.mrf.mxu0 }
 0x2c4   : > { %14644 = vst [vmem:[#allocation215_spill] sm:$0xff] %v11724_v55 }
 0x2c5   : > { %v11726_v23 = vpop.f32.mrf.mxu1  ;;  %8493 = vmatmul.mubr.msk.bf16.gmra.mxu1 %vm1780_vm5, %v14647_v54  ;;  %v11732_v46 = vpop.f32.mrf.mxu0  ;;  %8721 = vmatmul.mubr.msk.bf16.gmra.mxu0 %vm1780_vm5, %v10742_v4  ;;  %v14654_v54 = vld [vmem:[#allocation239_spill] sm:$0xff] }
 0x2c6   : > { %14648 = vst [vmem:[#allocation225_spill] sm:$0xff] %v11732_v46  ;;  %8496 = vmatprep.mubr.msk.bf16.mxu1 %vm1780_vm5, %v14651_v0  ;;  %8724 = vmatprep.mubr.msk.bf16.mxu0 %vm1780_vm5, %v11296_v36  ;;  %v3477_v46 = vpack.c.bf16 %v14487_v17, %v14654_v54  ;;  %v3478_v0 = vpack.c.bf16 %v14491_v32, %v14488_v47 }
 0x2c7   : > { %v11742_v55 = vpop.f32.mrf.mxu1  ;;  %v11744_v29 = vpop.f32.mrf.mxu0  ;;  %v3479_v32 = vpack.c.bf16 %v14496_v34, %v14492_v16 }
 0x2c8   : > { %14652 = vst [vmem:[#allocation237_spill] sm:$0xff] %v11744_v29 }
 0x2c9   : > { %v11746_v12 = vpop.f32.mrf.mxu1  ;;  %v11748_v40 = vpop.f32.mrf.mxu0 }
 0x2ca   : > { %14653 = vst [vmem:[#allocation249_spill] sm:$0xff] %v11748_v40 }
 0x2cb   : > { %v11752_v4 = vpop.f32.mrf.mxu1  ;;  %v11754_v45 = vpop.f32.mrf.mxu0 }
 0x2cc   : > { %14655 = vst [vmem:[#allocation243_spill] sm:$0xff] %v11754_v45 }
 0x2cd   : > { %v11758_v43 = vpop.f32.mrf.mxu1  ;;  %8497 = vmatmul.mubr.msk.bf16.gmra.mxu1 %vm1780_vm5, %v3477_v46  ;;  %v11761_v36 = vpop.f32.mrf.mxu0  ;;  %8725 = vmatmul.mubr.msk.bf16.gmra.mxu0 %vm1780_vm5, %v11304_v10  ;;  %v14659_v46 = vld [vmem:[#allocation272_spill] sm:$0xff] }
 0x2ce   : > { %14656 = vst [vmem:[#allocation239_spill] sm:$0xff] %v11761_v36  ;;  %8500 = vmatprep.mubr.msk.bf16.mxu1 %vm1780_vm5, %v3478_v0  ;;  %8728 = vmatprep.mubr.msk.bf16.mxu0 %vm1780_vm5, %v11323_v53  ;;  %v14660_v36 = vld [vmem:[#allocation210_spill] sm:$0xff]  ;;  %v14662_v53 = vld [vmem:[#allocation293_spill] sm:$0xff] }
 0x2cf   : > { %v11768_v17 = vpop.f32.mrf.mxu1  ;;  %v11770_v3 = vpop.f32.mrf.mxu0  ;;  %v5132_v45 = vpack.c.bf16 %v14660_v36, %v14659_v46  ;;  %v5133_v40 = vpack.c.bf16 %v14662_v53, %v14253_v20 }
 0x2d0   : > { %14657 = vst [vmem:[#allocation333_spill] sm:$0xff] %v11770_v3  ;;  %v3480_v3 = vpack.c.bf16 %v14659_v46, %v10017_v51  ;;  %v5134_v51 = vpack.c.bf16 %v10573_v62, %v10626_v59  ;;  %v14675_v62 = vld [vmem:[#allocation25_spill] sm:$0xff] }
 0x2d1   : > { %v11772_v54 = vpop.f32.mrf.mxu1  ;;  %v11774_v47 = vpop.f32.mrf.mxu0 }
 0x2d2   : > { %14658 = vst [vmem:[#allocation334_spill] sm:$0xff] %v11774_v47 }
 0x2d3   : > { %v11780_v10 = vpop.f32.mrf.mxu1  ;;  %v11782_v0 = vpop.f32.mrf.mxu0 }
 0x2d4   : > { %14661 = vst [vmem:[#allocation272_spill] sm:$0xff] %v11782_v0 }
 0x2d5   : > { %v11788_v29 = vpop.f32.mrf.mxu1  ;;  %8501 = vmatmul.mubr.msk.bf16.gmra.mxu1 %vm1780_vm5, %v3479_v32  ;;  %v11791_v47 = vpop.f32.mrf.mxu0  ;;  %8729 = vmatmul.mubr.msk.bf16.gmra.mxu0 %vm1780_vm5, %v5132_v45  ;;  %v14670_v45 = vld [vmem:[#allocation9_spill] sm:$0xff] }
 0x2d6   : > { %14663 = vst [vmem:[#allocation210_spill] sm:$0xff] %v11788_v29  ;;  %14664 = vst [vmem:[#allocation293_spill] sm:$0xff] %v11791_v47  ;;  %8504 = vmatprep.mubr.msk.bf16.mxu1 %vm1780_vm5, %v3480_v3  ;;  %8732 = vmatprep.mubr.msk.bf16.mxu0 %vm1780_vm5, %v5133_v40  ;;  %v14671_v47 = vld [vmem:[#allocation13_spill] sm:$0xff]  ;;  %v14673_v40 = vpack.c.bf16 %v14253_v20, %v14660_v36 }
 0x2d7   : > { %v11796_v16 = vpop.f32.mrf.mxu1  ;;  %v11798_v34 = vpop.f32.mrf.mxu0  ;;  %v4578_v3 = vpack.c.bf16 %v14671_v47, %v14670_v45 }
 0x2d8   : > { %14665 = vst [vmem:[#allocation335_spill] sm:$0xff] %v11798_v34 }
 0x2d9   : > { %v11800_v53 = vpop.f32.mrf.mxu1  ;;  %v11802_v0 = vpop.f32.mrf.mxu0 }
 0x2da   : > { %14666 = vst [vmem:[#allocation336_spill] sm:$0xff] %v11800_v53  ;;  %14667 = vst [vmem:[#allocation337_spill] sm:$0xff] %v11802_v0 }
 0x2db   : > { %v11806_v32 = vpop.f32.mrf.mxu1  ;;  %v11808_v46 = vpop.f32.mrf.mxu0 }
 0x2dc   : > { %14668 = vst [vmem:[#allocation338_spill] sm:$0xff] %v11806_v32  ;;  %14669 = vst [vmem:[#allocation339_spill] sm:$0xff] %v11808_v46 }
 0x2dd   : > { %v11812_v29 = vpop.f32.mrf.mxu1  ;;  %8505 = vmatmul.mubr.msk.bf16.gmra.mxu1 %vm1780_vm5, %v14673_v40  ;;  %v11818_v34 = vpop.f32.mrf.mxu0  ;;  %8733 = vmatmul.mubr.msk.bf16.gmra.mxu0 %vm1780_vm5, %v5134_v51  ;;  %v8990_v51 = vld [vmem:[%s13601_s3 + $0x70] sm:$0xff]  }
 0x2de   : > { %14672 = vst [vmem:[#allocation9_spill] sm:$0xff] %v11812_v29  ;;  %14674 = vst [vmem:[#allocation13_spill] sm:$0xff] %v11818_v34  ;;  %8588 = vmatprep.mubr.msk.bf16.mxu1 %vm1780_vm5, %v4578_v3  ;;  %8816 = vmatprep.mubr.msk.bf16.mxu0 %vm1780_vm5, %v14675_v62  ;;  %v14682_v3 = vld [vmem:[#allocation22_spill] sm:$0xff] }
 0x2df   : > { %v11824_v59 = vpop.f32.mrf.mxu1  ;;  %v11826_v46 = vpop.f32.mrf.mxu0  ;;  %v14683_v40 = vld [vmem:[#allocation26_spill] sm:$0xff] }
 0x2e0   : > { %14676 = vst [vmem:[#allocation25_spill] sm:$0xff] %v11824_v59  ;;  %14677 = vst [vmem:[#allocation340_spill] sm:$0xff] %v11826_v46  ;;  %v4580_v34 = vpack.c.bf16 %v14683_v40, %v14682_v3  ;;  %v14686_v46 = vld [vmem:[#allocation21_spill] sm:$0xff]  ;;  %v14687_v59 = vld [vmem:[#allocation14_spill] sm:$0xff] }
 0x2e1   : > { %v11828_v47 = vpop.f32.mrf.mxu1  ;;  %v11830_v45 = vpop.f32.mrf.mxu0  ;;  %v14777_v29 = vld [vmem:[#allocation18_spill] sm:$0xff] }
 0x2e2   : > { %14678 = vst [vmem:[#allocation341_spill] sm:$0xff] %v11828_v47  ;;  %14679 = vst [vmem:[#allocation342_spill] sm:$0xff] %v11830_v45  ;;  %v14688_v47 = vpack.c.bf16 %v14686_v46, %v14687_v59  ;;  %v14689_v45 = vld [vmem:[#allocation34_spill] sm:$0xff] }
 0x2e3   : > { %v11832_v20 = vpop.f32.mrf.mxu1  ;;  %v11834_v36 = vpop.f32.mrf.mxu0 }
 0x2e4   : > { %14680 = vst [vmem:[#allocation343_spill] sm:$0xff] %v11832_v20  ;;  %14681 = vst [vmem:[#allocation344_spill] sm:$0xff] %v11834_v36  ;;  %v14690_v36 = vld [vmem:[#allocation39_spill] sm:$0xff]  ;;  %v14702_v20 = vld [vmem:[#allocation29_spill] sm:$0xff] }
 0x2e5   : > { %v11841_v62 = vpop.f32.mrf.mxu1  ;;  %v11843_v0 = vpop.f32.mrf.mxu0  ;;  %8589 = vmatmul.mubr.msk.bf16.vlgmr.msra.gmra.mxu1 %vm1780_vm5, %v14688_v47  ;;  %8817 = vmatmul.mubr.msk.bf16.vlgmr.msra.gmra.mxu0 %vm1780_vm5, %v14689_v45  ;;  %v14698_v45 = vld [vmem:[#allocation43_spill] sm:$0xff] }
 0x2e6   : > { %14684 = vst [vmem:[#allocation22_spill] sm:$0xff] %v11841_v62  ;;  %14685 = vst [vmem:[#allocation26_spill] sm:$0xff] %v11843_v0  ;;  %8737 = vmatpush3.bf16.msra.mxu1 %v11417_v30  ;;  %8592 = vmatprep.mubr.msk.bf16.mxu1 %vm1780_vm5, %v4580_v34  ;;  %v14697_v30 = vld [vmem:[#allocation37_spill] sm:$0xff] }
 0x2e7   : > { %8820 = vmatprep.mubr.msk.bf16.mxu0 %vm1780_vm5, %v14690_v36  ;;  %v11855_v3 = vpop.f32.mrf.mxu1  ;;  %v11857_v40 = vpop.f32.mrf.mxu0  ;;  %8738 = vmatprep.subr.bf16.mxu1 %v8990_v51  ;;  %v4582_v34 = vpack.c.bf16 %v14698_v45, %v14697_v30 }
 0x2e8   : > { %14691 = vst [vmem:[#allocation21_spill] sm:$0xff] %v11855_v3  ;;  %14692 = vst [vmem:[#allocation14_spill] sm:$0xff] %v11857_v40  ;;  %v14701_v3 = vld [vmem:[#allocation36_spill] sm:$0xff] }
 0x2e9   : > { %v11859_v0 = vpop.f32.mrf.mxu1  ;;  %v11861_v46 = vpop.f32.mrf.mxu0  ;;  %v14703_v40 = vpack.c.bf16 %v14701_v3, %v14702_v20  ;;  %v14712_v3 = vld [vmem:[#allocation52_spill] sm:$0xff] }
 0x2ea   : > { %14693 = vst [vmem:[#allocation34_spill] sm:$0xff] %v11859_v0  ;;  %14694 = vst [vmem:[#allocation39_spill] sm:$0xff] %v11861_v46  ;;  %8739 = vmatpush3.bf16.msra.mxu1 %v8990_v51  ;;  %v14704_v0 = vld [vmem:[#allocation49_spill] sm:$0xff]  ;;  %v14705_v51 = vld [vmem:[#allocation58_spill] sm:$0xff] }
 0x2eb   : > { %v11863_v59 = vpop.f32.mrf.mxu1  ;;  %v11865_v47 = vpop.f32.mrf.mxu0 }
 0x2ec   : > { %14695 = vst [vmem:[#allocation345_spill] sm:$0xff] %v11863_v59  ;;  %14696 = vst [vmem:[#allocation346_spill] sm:$0xff] %v11865_v47  ;;  %v14717_v59 = vld [vmem:[#allocation48_spill] sm:$0xff] }
 0x2ed   : > { %v11869_v62 = vpop.f32.mrf.mxu1  ;;  %v11871_v36 = vpop.f32.mrf.mxu0  ;;  %8593 = vmatmul.mubr.msk.bf16.gmra.mxu1 %vm1780_vm5, %v14703_v40  ;;  %8821 = vmatmul.mubr.msk.bf16.gmra.mxu0 %vm1780_vm5, %v14704_v0  ;;  %v14713_v40 = vld [vmem:[#allocation60_spill] sm:$0xff] }
 0x2ee   : > { %14699 = vst [vmem:[#allocation37_spill] sm:$0xff] %v11869_v62  ;;  %14700 = vst [vmem:[#allocation43_spill] sm:$0xff] %v11871_v36  ;;  %8596 = vmatprep.mubr.msk.bf16.mxu1 %vm1780_vm5, %v4582_v34  ;;  %8824 = vmatprep.mubr.msk.bf16.mxu0 %vm1780_vm5, %v14705_v51  ;;  %v4584_v0 = vpack.c.bf16 %v14713_v40, %v14712_v3  ;;  %v14716_v51 = vld [vmem:[#allocation44_spill] sm:$0xff] }
 0x2ef   : > { %v11882_v47 = vpop.f32.mrf.mxu1  ;;  %v11884_v30 = vpop.f32.mrf.mxu0 }
 0x2f0   : > { %14706 = vst [vmem:[#allocation36_spill] sm:$0xff] %v11882_v47  ;;  %14707 = vst [vmem:[#allocation29_spill] sm:$0xff] %v11884_v30  ;;  %v14718_v47 = vpack.c.bf16 %v14716_v51, %v14717_v59  ;;  %v14719_v30 = vld [vmem:[#allocation63_spill] sm:$0xff]  ;;  %v14728_v51 = vld [vmem:[#allocation74_spill] sm:$0xff] }
 0x2f1   : > { %v11886_v45 = vpop.f32.mrf.mxu1  ;;  %v11888_v36 = vpop.f32.mrf.mxu0 }
 0x2f2   : > { %14708 = vst [vmem:[#allocation49_spill] sm:$0xff] %v11886_v45  ;;  %14709 = vst [vmem:[#allocation58_spill] sm:$0xff] %v11888_v36  ;;  %v14720_v36 = vld [vmem:[#allocation71_spill] sm:$0xff]  ;;  %v14732_v45 = vld [vmem:[#allocation61_spill] sm:$0xff] }
 0x2f3   : > { %v11890_v46 = vpop.f32.mrf.mxu1  ;;  %v11892_v20 = vpop.f32.mrf.mxu0 }
 0x2f4   : > { %14710 = vst [vmem:[#allocation347_spill] sm:$0xff] %v11890_v46  ;;  %14711 = vst [vmem:[#allocation348_spill] sm:$0xff] %v11892_v20 }
 0x2f5   : > { %v11896_v62 = vpop.f32.mrf.mxu1  ;;  %v11898_v34 = vpop.f32.mrf.mxu0  ;;  %8597 = vmatmul.mubr.msk.bf16.gmra.mxu1 %vm1780_vm5, %v14718_v47  ;;  %8825 = vmatmul.mubr.msk.bf16.gmra.mxu0 %vm1780_vm5, %v14719_v30  ;;  %v14727_v47 = vld [vmem:[#allocation70_spill] sm:$0xff] }
 0x2f6   : > { %14714 = vst [vmem:[#allocation52_spill] sm:$0xff] %v11896_v62  ;;  %14715 = vst [vmem:[#allocation60_spill] sm:$0xff] %v11898_v34  ;;  %8600 = vmatprep.mubr.msk.bf16.mxu1 %vm1780_vm5, %v4584_v0  ;;  %8828 = vmatprep.mubr.msk.bf16.mxu0 %vm1780_vm5, %v14720_v36  ;;  %v4586_v30 = vpack.c.bf16 %v14728_v51, %v14727_v47  ;;  %v14731_v36 = vld [vmem:[#allocation66_spill] sm:$0xff] }
 0x2f7   : > { %v11909_v20 = vpop.f32.mrf.mxu1  ;;  %v11911_v3 = vpop.f32.mrf.mxu0 }
 0x2f8   : > { %14721 = vst [vmem:[#allocation44_spill] sm:$0xff] %v11909_v20  ;;  %14722 = vst [vmem:[#allocation48_spill] sm:$0xff] %v11911_v3  ;;  %v14733_v20 = vpack.c.bf16 %v14731_v36, %v14732_v45  ;;  %v14734_v3 = vld [vmem:[#allocation82_spill] sm:$0xff] }
 0x2f9   : > { %v11913_v40 = vpop.f32.mrf.mxu1  ;;  %v11915_v34 = vpop.f32.mrf.mxu0  ;;  %v14743_v36 = vld [vmem:[#allocation90_spill] sm:$0xff] }
 0x2fa   : > { %14723 = vst [vmem:[#allocation63_spill] sm:$0xff] %v11913_v40  ;;  %14724 = vst [vmem:[#allocation71_spill] sm:$0xff] %v11915_v34  ;;  %v14735_v34 = vld [vmem:[#allocation87_spill] sm:$0xff]  ;;  %v14747_v40 = vld [vmem:[#allocation77_spill] sm:$0xff] }
 0x2fb   : > { %v11917_v62 = vpop.f32.mrf.mxu1  ;;  %v11919_v59 = vpop.f32.mrf.mxu0 }
 0x2fc   : > { %14725 = vst [vmem:[#allocation349_spill] sm:$0xff] %v11917_v62  ;;  %14726 = vst [vmem:[#allocation350_spill] sm:$0xff] %v11919_v59 }
 0x2fd   : > { %v11923_v46 = vpop.f32.mrf.mxu1  ;;  %v11925_v0 = vpop.f32.mrf.mxu0  ;;  %8601 = vmatmul.mubr.msk.bf16.gmra.mxu1 %vm1780_vm5, %v14733_v20  ;;  %8829 = vmatmul.mubr.msk.bf16.gmra.mxu0 %vm1780_vm5, %v14734_v3  ;;  %v14742_v20 = vld [vmem:[#allocation85_spill] sm:$0xff] }
 0x2fe   : > { %14729 = vst [vmem:[#allocation70_spill] sm:$0xff] %v11923_v46  ;;  %14730 = vst [vmem:[#allocation74_spill] sm:$0xff] %v11925_v0  ;;  %8604 = vmatprep.mubr.msk.bf16.mxu1 %vm1780_vm5, %v4586_v30  ;;  %8832 = vmatprep.mubr.msk.bf16.mxu0 %vm1780_vm5, %v14735_v34  ;;  %v4588_v3 = vpack.c.bf16 %v14743_v36, %v14742_v20  ;;  %v14746_v34 = vld [vmem:[#allocation84_spill] sm:$0xff] }
 0x2ff   : > { %v11936_v59 = vpop.f32.mrf.mxu1  ;;  %v11938_v47 = vpop.f32.mrf.mxu0 }
 0x300   : > { %14736 = vst [vmem:[#allocation66_spill] sm:$0xff] %v11936_v59  ;;  %14737 = vst [vmem:[#allocation61_spill] sm:$0xff] %v11938_v47  ;;  %v14748_v59 = vpack.c.bf16 %v14746_v34, %v14747_v40  ;;  %v14749_v47 = vld [vmem:[#allocation96_spill] sm:$0xff] }
 0x301   : > { %v11940_v51 = vpop.f32.mrf.mxu1  ;;  %v11942_v0 = vpop.f32.mrf.mxu0  ;;  %v14758_v34 = vld [vmem:[#allocation108_spill] sm:$0xff] }
 0x302   : > { %14738 = vst [vmem:[#allocation82_spill] sm:$0xff] %v11940_v51  ;;  %14739 = vst [vmem:[#allocation87_spill] sm:$0xff] %v11942_v0  ;;  %v14750_v0 = vld [vmem:[#allocation106_spill] sm:$0xff]  ;;  %v14762_v51 = vld [vmem:[#allocation95_spill] sm:$0xff] }
 0x303   : > { %v11944_v46 = vpop.f32.mrf.mxu1  ;;  %v11946_v45 = vpop.f32.mrf.mxu0 }
 0x304   : > { %14740 = vst [vmem:[#allocation351_spill] sm:$0xff] %v11944_v46  ;;  %14741 = vst [vmem:[#allocation352_spill] sm:$0xff] %v11946_v45 }
 0x305   : > { %v11950_v62 = vpop.f32.mrf.mxu1  ;;  %v11952_v30 = vpop.f32.mrf.mxu0  ;;  %8605 = vmatmul.mubr.msk.bf16.gmra.mxu1 %vm1780_vm5, %v14748_v59  ;;  %8833 = vmatmul.mubr.msk.bf16.gmra.mxu0 %vm1780_vm5, %v14749_v47  ;;  %v14757_v59 = vld [vmem:[#allocation100_spill] sm:$0xff] }
 0x306   : > { %14744 = vst [vmem:[#allocation85_spill] sm:$0xff] %v11950_v62  ;;  %14745 = vst [vmem:[#allocation90_spill] sm:$0xff] %v11952_v30  ;;  %8608 = vmatprep.mubr.msk.bf16.mxu1 %vm1780_vm5, %v4588_v3  ;;  %8836 = vmatprep.mubr.msk.bf16.mxu0 %vm1780_vm5, %v14750_v0  ;;  %v4590_v47 = vpack.c.bf16 %v14758_v34, %v14757_v59  ;;  %v14761_v0 = vld [vmem:[#allocation97_spill] sm:$0xff]  ;;  %v14768_v34 = vld [vmem:[#allocation23_spill] sm:$0xff] }
 0x307   : > { %v11963_v45 = vpop.f32.mrf.mxu1  ;;  %v11965_v20 = vpop.f32.mrf.mxu0 }
 0x308   : > { %14751 = vst [vmem:[#allocation84_spill] sm:$0xff] %v11963_v45  ;;  %14752 = vst [vmem:[#allocation77_spill] sm:$0xff] %v11965_v20  ;;  %v14763_v45 = vpack.c.bf16 %v14761_v0, %v14762_v51  ;;  %v14764_v20 = vld [vmem:[#allocation111_spill] sm:$0xff] }
 0x309   : > { %v11967_v36 = vpop.f32.mrf.mxu1  ;;  %v11969_v30 = vpop.f32.mrf.mxu0 }
 0x30a   : > { %14753 = vst [vmem:[#allocation96_spill] sm:$0xff] %v11967_v36  ;;  %14754 = vst [vmem:[#allocation106_spill] sm:$0xff] %v11969_v30  ;;  %v14765_v30 = vld [vmem:[#allocation121_spill] sm:$0xff] }
 0x30b   : > { %v11971_v62 = vpop.f32.mrf.mxu1  ;;  %v11973_v40 = vpop.f32.mrf.mxu0 }
 0x30c   : > { %14755 = vst [vmem:[#allocation353_spill] sm:$0xff] %v11971_v62  ;;  %14756 = vst [vmem:[#allocation354_spill] sm:$0xff] %v11973_v40  ;;  %v14774_v62 = vld [vmem:[#allocation109_spill] sm:$0xff] }
 0x30d   : > { %v11977_v46 = vpop.f32.mrf.mxu1  ;;  %v11979_v3 = vpop.f32.mrf.mxu0  ;;  %8609 = vmatmul.mubr.msk.bf16.gmra.mxu1 %vm1780_vm5, %v14763_v45  ;;  %8837 = vmatmul.mubr.msk.bf16.gmra.mxu0 %vm1780_vm5, %v14764_v20  ;;  %v14771_v45 = vld [vmem:[#allocation165_spill] sm:$0xff] }
 0x30e   : > { %14759 = vst [vmem:[#allocation100_spill] sm:$0xff] %v11977_v46  ;;  %14760 = vst [vmem:[#allocation108_spill] sm:$0xff] %v11979_v3  ;;  %8612 = vmatprep.mubr.msk.bf16.mxu1 %vm1780_vm5, %v4590_v47  ;;  %8840 = vmatprep.mubr.msk.bf16.mxu0 %vm1780_vm5, %v14765_v30  ;;  %v2373_v3 = vadd.f32 %v11516_v1, %v14768_v34  ;;  %v2365_v0 = vadd.f32 %v11526_v25, %v14771_v45  ;;  %v14775_v30 = vld [vmem:[#allocation117_spill] sm:$0xff]  ;;  %v14778_v1 = vld [vmem:[#allocation118_spill] sm:$0xff] }
 0x30f   : > { %v11990_v40 = vpop.f32.mrf.mxu1  ;;  %v11992_v59 = vpop.f32.mrf.mxu0  ;;  %v4591_v36 = vpack.c.bf16 %v14775_v30, %v14774_v62  ;;  %v14779_v34 = vld [vmem:[#allocation122_spill] sm:$0xff]  ;;  %v14781_v25 = vld [vmem:[#allocation131_spill] sm:$0xff] }
 0x310   : > { %14766 = vst [vmem:[#allocation97_spill] sm:$0xff] %v11990_v40  ;;  %14767 = vst [vmem:[#allocation95_spill] sm:$0xff] %v11992_v59  ;;  %v14776_v40 = vld [vmem:[#allocation15_spill] sm:$0xff]  ;;  %v3376_v32 = vadd.f32 %v14777_v29, %v2373_v3 }
 0x311   : > { %v11996_v46 = vpop.f32.mrf.mxu1  ;;  %v11998_v51 = vpop.f32.mrf.mxu0  ;;  %v2376_v59 = vadd.f32 %v11530_v49, %v14776_v40  ;;  %v14782_v45 = vld [vmem:[#allocation19_spill] sm:$0xff]  ;;  %v14784_v49 = vld [vmem:[#allocation132_spill] sm:$0xff] }
 0x312   : > { %14769 = vst [vmem:[#allocation111_spill] sm:$0xff] %v11996_v46  ;;  %14770 = vst [vmem:[#allocation121_spill] sm:$0xff] %v11998_v51  ;;  %v4592_v46 = vpack.c.bf16 %v14779_v34, %v14778_v1  ;;  %v14785_v29 = vld [vmem:[#allocation11_spill] sm:$0xff] }
 0x313   : > { %v12002_v20 = vpop.f32.mrf.mxu1  ;;  %v12004_v47 = vpop.f32.mrf.mxu0  ;;  %v3374_v40 = vadd.f32 %v14785_v29, %v2365_v0 }
 0x314   : > { %14772 = vst [vmem:[#allocation23_spill] sm:$0xff] %v12002_v20  ;;  %14773 = vst [vmem:[#allocation165_spill] sm:$0xff] %v12004_v47  ;;  %v2368_v47 = vadd.f32 %v11536_v26, %v14782_v45  ;;  %v14798_v20 = vld [vmem:[#allocation130_spill] sm:$0xff] }
 0x315   : > { %v8438_v53 = vpop.f32.mrf.mxu1  ;;  %8613 = vmatmul.mubr.msk.bf16.gmra.mxu1 %vm1780_vm5, %v4591_v36  ;;  %v12014_v51 = vpop.f32.mrf.mxu0  ;;  %8841 = vmatmul.mubr.msk.bf16.gmra.mxu0 %vm1780_vm5, %v14781_v25  ;;  %v14787_v36 = vld [vmem:[#allocation30_spill] sm:$0xff]  ;;  %v14789_v25 = vld [vmem:[#allocation12_spill] sm:$0xff] }
 0x316   : > { %14780 = vst [vmem:[#allocation109_spill] sm:$0xff] %v12014_v51  ;;  %v12020_v62 = vadd.f32 %v8438_v53, %v3376_v32  ;;  %8616 = vmatprep.mubr.msk.bf16.mxu1 %vm1780_vm5, %v4592_v46  ;;  %8844 = vmatprep.mubr.msk.bf16.mxu0 %vm1780_vm5, %v14784_v49  ;;  %v2389_v1 = vadd.f32 %v11542_v11, %v14787_v36  ;;  %v14791_v32 = vld [vmem:[#allocation24_spill] sm:$0xff]  ;;  %v14792_v49 = vld [vmem:[#allocation41_spill] sm:$0xff] }
 0x317   : > { %v3641_v3 = vpop.f32.mrf.mxu1  ;;  %v12026_v30 = vpop.f32.mrf.mxu0  ;;  %v3377_v51 = vadd.f32 %v14789_v25, %v2376_v59  ;;  %v2381_v46 = vadd.f32 %v11552_v2, %v14791_v32  ;;  %v3375_v0 = vadd.f32 %v14792_v49, %v2368_v47  ;;  %v14796_v36 = vld [vmem:[#allocation125_spill] sm:$0xff]  ;;  %v14797_v25 = vld [vmem:[#allocation138_spill] sm:$0xff]  ;;  %v14803_v32 = vld [vmem:[#allocation27_spill] sm:$0xff] }
 0x318   : > { %14783 = vst [vmem:[#allocation117_spill] sm:$0xff] %v12020_v62  ;;  %14786 = vst [vmem:[#allocation15_spill] sm:$0xff] %v12026_v30  ;;  %v12030_v34 = vadd.f32 %v3641_v3, %v3374_v40  ;;  %v14794_v30 = vld [vmem:[#allocation53_spill] sm:$0xff]  ;;  %v14795_v3 = vld [vmem:[#allocation28_spill] sm:$0xff] }
 0x319   : > { %v8439_v26 = vpop.f32.mrf.mxu1  ;;  %v12033_v53 = vpop.f32.mrf.mxu0  ;;  %v2392_v11 = vadd.f32 %v11556_v61, %v14794_v30  ;;  %v3380_v59 = vadd.f32 %v14795_v3, %v2389_v1  ;;  %v14799_v2 = vld [vmem:[#allocation129_spill] sm:$0xff]  ;;  %v2384_v61 = vadd.f32 %v11562_v15, %v14803_v32  ;;  %v14805_v49 = vld [vmem:[#allocation51_spill] sm:$0xff]  ;;  %v14807_v3 = vld [vmem:[#allocation50_spill] sm:$0xff] }
 0x31a   : > { %14788 = vst [vmem:[#allocation18_spill] sm:$0xff] %v12030_v34  ;;  %14790 = vst [vmem:[#allocation118_spill] sm:$0xff] %v12033_v53  ;;  %v12037_v45 = vadd.f32 %v8439_v26, %v3377_v51  ;;  %v4594_v53 = vpack.c.bf16 %v14797_v25, %v14796_v36  ;;  %v14800_v51 = vpack.c.bf16 %v14798_v20, %v14799_v2  ;;  %v14802_v26 = vld [vmem:[#allocation144_spill] sm:$0xff]  ;;  %v14804_v1 = vld [vmem:[#allocation157_spill] sm:$0xff] }
 0x31b   : > { %v3644_v29 = vpop.f32.mrf.mxu1  ;;  %v12040_v62 = vpop.f32.mrf.mxu0  ;;  %v2405_v36 = vadd.f32 %v11568_v38, %v14807_v3  ;;  %v14808_v2 = vld [vmem:[#allocation42_spill] sm:$0xff]  ;;  %v14815_v3 = vld [vmem:[#allocation151_spill] sm:$0xff] }
 0x31c   : > { %14793 = vst [vmem:[#allocation122_spill] sm:$0xff] %v12040_v62  ;;  %v12044_v40 = vadd.f32 %v3644_v29, %v3375_v0  ;;  %v3378_v0 = vadd.f32 %v14805_v49, %v2381_v46  ;;  %v14811_v32 = vld [vmem:[#allocation46_spill] sm:$0xff] }
 0x31d   : > { %v8442_v34 = vpop.f32.mrf.mxu1  ;;  %8617 = vmatmul.mubr.msk.bf16.gmra.mxu1 %vm1780_vm5, %v14800_v51  ;;  %v12053_v47 = vpop.f32.mrf.mxu0  ;;  %8845 = vmatmul.mubr.msk.bf16.gmra.mxu0 %vm1780_vm5, %v14802_v26  ;;  %v3381_v51 = vadd.f32 %v14808_v2, %v2392_v11  ;;  %v3379_v46 = vadd.f32 %v14811_v32, %v2384_v61  ;;  %v14816_v2 = vld [vmem:[#allocation159_spill] sm:$0xff]  ;;  %v14817_v62 = vld [vmem:[#allocation146_spill] sm:$0xff] }
 0x31e   : > { %14801 = vst [vmem:[#allocation131_spill] sm:$0xff] %v12053_v47  ;;  %v12059_v30 = vadd.f32 %v8442_v34, %v3380_v59  ;;  %8620 = vmatprep.mubr.msk.bf16.mxu1 %vm1780_vm5, %v4594_v53  ;;  %8848 = vmatprep.mubr.msk.bf16.mxu0 %vm1780_vm5, %v14804_v1  ;;  %v14810_v59 = vld [vmem:[#allocation73_spill] sm:$0xff]  ;;  %v14824_v32 = vld [vmem:[#allocation54_spill] sm:$0xff] }
 0x31f   : > { %v3657_v20 = vpop.f32.mrf.mxu1  ;;  %v12065_v29 = vpop.f32.mrf.mxu0  ;;  %v2397_v53 = vadd.f32 %v11578_v22, %v14810_v59  ;;  %v14818_v22 = vld [vmem:[#allocation143_spill] sm:$0xff]  ;;  %v14822_v59 = vld [vmem:[#allocation78_spill] sm:$0xff] }
 0x320   : > { %14806 = vst [vmem:[#allocation19_spill] sm:$0xff] %v12065_v29  ;;  %v12069_v25 = vadd.f32 %v3657_v20, %v3378_v0  ;;  %v14813_v29 = vld [vmem:[#allocation79_spill] sm:$0xff]  ;;  %v14814_v20 = vld [vmem:[#allocation65_spill] sm:$0xff] }
 0x321   : > { %v8443_v15 = vpop.f32.mrf.mxu1  ;;  %v12072_v34 = vpop.f32.mrf.mxu0  ;;  %v2408_v38 = vadd.f32 %v11582_v13, %v14813_v29  ;;  %v3384_v11 = vadd.f32 %v14814_v20, %v2405_v36  ;;  %v2400_v13 = vadd.f32 %v11588_v37, %v14822_v59  ;;  %v14823_v36 = vld [vmem:[#allocation174_spill] sm:$0xff]  ;;  %v14826_v20 = vld [vmem:[#allocation99_spill] sm:$0xff] }
 0x322   : > { %14809 = vst [vmem:[#allocation132_spill] sm:$0xff] %v12072_v34  ;;  %v12076_v26 = vadd.f32 %v8443_v15, %v3381_v51  ;;  %v4596_v34 = vpack.c.bf16 %v14816_v2, %v14815_v3  ;;  %v14819_v51 = vpack.c.bf16 %v14817_v62, %v14818_v22  ;;  %v14821_v15 = vld [vmem:[#allocation162_spill] sm:$0xff]  ;;  %v2421_v3 = vadd.f32 %v11594_v33, %v14826_v20  ;;  %v14827_v22 = vld [vmem:[#allocation88_spill] sm:$0xff]  ;;  %v14835_v20 = vld [vmem:[#allocation101_spill] sm:$0xff] }
 0x323   : > { %v3660_v1 = vpop.f32.mrf.mxu1  ;;  %v12079_v49 = vpop.f32.mrf.mxu0  ;;  %v14830_v59 = vld [vmem:[#allocation274_spill] sm:$0xff] }
 0x324   : > { %14812 = vst [vmem:[#allocation11_spill] sm:$0xff] %v12079_v49  ;;  %v12083_v0 = vadd.f32 %v3660_v1, %v3379_v46  ;;  %v3382_v46 = vadd.f32 %v14824_v32, %v2397_v53  ;;  %v3383_v53 = vadd.f32 %v14830_v59, %v2400_v13  ;;  %v14837_v49 = vld [vmem:[#allocation172_spill] sm:$0xff] }
 0x325   : > { %v8446_v47 = vpop.f32.mrf.mxu1  ;;  %8621 = vmatmul.mubr.msk.bf16.gmra.mxu1 %vm1780_vm5, %v14819_v51  ;;  %v12092_v61 = vpop.f32.mrf.mxu0  ;;  %8849 = vmatmul.mubr.msk.bf16.gmra.mxu0 %vm1780_vm5, %v14821_v15  ;;  %v3385_v51 = vadd.f32 %v14827_v22, %v2408_v38  ;;  %v3388_v22 = vadd.f32 %v14835_v20, %v2421_v3  ;;  %v14842_v3 = vld [vmem:[#allocation89_spill] sm:$0xff] }
 0x326   : > { %14820 = vst [vmem:[#allocation30_spill] sm:$0xff] %v12092_v61  ;;  %v12098_v29 = vadd.f32 %v8446_v47, %v3384_v11  ;;  %8624 = vmatprep.mubr.msk.bf16.mxu1 %vm1780_vm5, %v4596_v34  ;;  %8852 = vmatprep.mubr.msk.bf16.mxu0 %vm1780_vm5, %v14823_v36  ;;  %v14829_v11 = vld [vmem:[#allocation91_spill] sm:$0xff]  ;;  %v14833_v61 = vld [vmem:[#allocation169_spill] sm:$0xff] }
 0x327   : > { %v3673_v62 = vpop.f32.mrf.mxu1  ;;  %v12104_v1 = vpop.f32.mrf.mxu0  ;;  %v2413_v34 = vadd.f32 %v11604_v57, %v14829_v11  ;;  %v14840_v11 = vld [vmem:[#allocation279_spill] sm:$0xff] }
 0x328   : > { %14825 = vst [vmem:[#allocation12_spill] sm:$0xff] %v12104_v1  ;;  %v12108_v2 = vadd.f32 %v3673_v62, %v3382_v46  ;;  %v14832_v1 = vld [vmem:[#allocation160_spill] sm:$0xff] }
 0x329   : > { %v8447_v37 = vpop.f32.mrf.mxu1  ;;  %v12111_v47 = vpop.f32.mrf.mxu0  ;;  %v4597_v33 = vpack.c.bf16 %v14833_v61, %v14832_v1  ;;  %v14834_v46 = vld [vmem:[#allocation276_spill] sm:$0xff]  ;;  %v2416_v61 = vadd.f32 %v11614_v50, %v14840_v11 }
 0x32a   : > { %14828 = vst [vmem:[#allocation24_spill] sm:$0xff] %v12111_v47  ;;  %v12115_v15 = vadd.f32 %v8447_v37, %v3385_v51  ;;  %v2424_v62 = vadd.f32 %v11608_v31, %v14834_v46  ;;  %v14836_v47 = vld [vmem:[#allocation171_spill] sm:$0xff]  ;;  %v14841_v31 = vld [vmem:[#allocation184_spill] sm:$0xff]  ;;  %v14845_v46 = vld [vmem:[#allocation277_spill] sm:$0xff] }
 0x32b   : > { %v3676_v36 = vpop.f32.mrf.mxu1  ;;  %v12118_v32 = vpop.f32.mrf.mxu0  ;;  %v4598_v57 = vpack.c.bf16 %v14837_v49, %v14836_v47  ;;  %v14839_v37 = vld [vmem:[#allocation183_spill] sm:$0xff]  ;;  %v3386_v49 = vadd.f32 %v14842_v3, %v2413_v34  ;;  %v14848_v11 = vld [vmem:[#allocation280_spill] sm:$0xff] }
 0x32c   : > { %14831 = vst [vmem:[#allocation41_spill] sm:$0xff] %v12118_v32  ;;  %v12124_v38 = vadd.f32 %v3676_v36, %v3383_v53  ;;  %v14844_v53 = vld [vmem:[#allocation113_spill] sm:$0xff]  ;;  %v3389_v20 = vadd.f32 %v14845_v46, %v2424_v62  ;;  %v3387_v34 = vadd.f32 %v14848_v11, %v2416_v61  ;;  %v14853_v46 = vld [vmem:[#allocation190_spill] sm:$0xff] }
 0x32d   : > { %v8450_v51 = vpop.f32.mrf.mxu1  ;;  %8625 = vmatmul.mubr.msk.bf16.gmra.mxu1 %vm1780_vm5, %v4597_v33  ;;  %v12130_v13 = vpop.f32.mrf.mxu0  ;;  %8853 = vmatmul.mubr.msk.bf16.gmra.mxu0 %vm1780_vm5, %v14839_v37  ;;  %v2437_v36 = vadd.f32 %v11620_v8, %v14844_v53  ;;  %v14852_v53 = vld [vmem:[#allocation176_spill] sm:$0xff]  ;;  %v14854_v32 = vld [vmem:[#allocation182_spill] sm:$0xff] }
 0x32e   : > { %14838 = vst [vmem:[#allocation53_spill] sm:$0xff] %v12130_v13  ;;  %v12136_v1 = vadd.f32 %v8450_v51, %v3388_v22  ;;  %8628 = vmatprep.mubr.msk.bf16.mxu1 %vm1780_vm5, %v4598_v57  ;;  %8856 = vmatprep.mubr.msk.bf16.mxu0 %vm1780_vm5, %v14841_v31  ;;  %v14847_v51 = vld [vmem:[#allocation112_spill] sm:$0xff]  ;;  %v14861_v11 = vld [vmem:[#allocation102_spill] sm:$0xff] }
 0x32f   : > { %v3689_v47 = vpop.f32.mrf.mxu1  ;;  %v12142_v59 = vpop.f32.mrf.mxu0  ;;  %v2429_v57 = vadd.f32 %v11630_v24, %v14847_v51  ;;  %v14855_v24 = vld [vmem:[#allocation181_spill] sm:$0xff] }
 0x330   : > { %14843 = vst [vmem:[#allocation28_spill] sm:$0xff] %v12142_v59  ;;  %v12146_v33 = vadd.f32 %v3689_v47, %v3386_v49  ;;  %v14850_v59 = vld [vmem:[#allocation282_spill] sm:$0xff]  ;;  %v14851_v47 = vld [vmem:[#allocation120_spill] sm:$0xff]  ;;  %v14859_v51 = vld [vmem:[#allocation285_spill] sm:$0xff] }
 0x331   : > { %v8451_v50 = vpop.f32.mrf.mxu1  ;;  %v12149_v22 = vpop.f32.mrf.mxu0  ;;  %v2440_v8 = vadd.f32 %v11634_v39, %v14850_v59  ;;  %v3392_v62 = vadd.f32 %v14851_v47, %v2437_v36  ;;  %v2432_v39 = vadd.f32 %v11638_v28, %v14859_v51  ;;  %v14860_v36 = vld [vmem:[#allocation207_spill] sm:$0xff]  ;;  %v14863_v47 = vld [vmem:[#allocation136_spill] sm:$0xff]  ;;  %v14867_v51 = vld [vmem:[#allocation133_spill] sm:$0xff] }
 0x332   : > { %14846 = vst [vmem:[#allocation125_spill] sm:$0xff] %v12149_v22  ;;  %v12153_v37 = vadd.f32 %v8451_v50, %v3389_v20  ;;  %v4600_v22 = vpack.c.bf16 %v14853_v46, %v14852_v53  ;;  %v14856_v20 = vpack.c.bf16 %v14854_v32, %v14855_v24  ;;  %v14858_v50 = vld [vmem:[#allocation196_spill] sm:$0xff]  ;;  %v2453_v53 = vadd.f32 %v11642_v56, %v14863_v47 }
 0x333   : > { %v3692_v31 = vpop.f32.mrf.mxu1  ;;  %v12156_v3 = vpop.f32.mrf.mxu0  ;;  %v14864_v24 = vld [vmem:[#allocation284_spill] sm:$0xff] }
 0x334   : > { %14849 = vst [vmem:[#allocation138_spill] sm:$0xff] %v12156_v3  ;;  %v12160_v49 = vadd.f32 %v3692_v31, %v3387_v34  ;;  %v3390_v34 = vadd.f32 %v14861_v11, %v2429_v57  ;;  %v3391_v57 = vadd.f32 %v14867_v51, %v2432_v39  ;;  %v14876_v39 = vld [vmem:[#allocation137_spill] sm:$0xff] }
 0x335   : > { %v8454_v13 = vpop.f32.mrf.mxu1  ;;  %8629 = vmatmul.mubr.msk.bf16.gmra.mxu1 %vm1780_vm5, %v14856_v20  ;;  %v12169_v61 = vpop.f32.mrf.mxu0  ;;  %8857 = vmatmul.mubr.msk.bf16.gmra.mxu0 %vm1780_vm5, %v14858_v50  ;;  %v3393_v20 = vadd.f32 %v14864_v24, %v2440_v8  ;;  %v14871_v24 = vld [vmem:[#allocation198_spill] sm:$0xff] }
 0x336   : > { %14857 = vst [vmem:[#allocation130_spill] sm:$0xff] %v12169_v61  ;;  %v12175_v59 = vadd.f32 %v8454_v13, %v3392_v62  ;;  %8632 = vmatprep.mubr.msk.bf16.mxu1 %vm1780_vm5, %v4600_v22  ;;  %8860 = vmatprep.mubr.msk.bf16.mxu0 %vm1780_vm5, %v14860_v36  ;;  %v14866_v62 = vld [vmem:[#allocation287_spill] sm:$0xff] }
 0x337   : > { %v3705_v32 = vpop.f32.mrf.mxu1  ;;  %v12181_v31 = vpop.f32.mrf.mxu0  ;;  %v2445_v22 = vadd.f32 %v11658_v19, %v14866_v62 }
 0x338   : > { %14862 = vst [vmem:[#allocation129_spill] sm:$0xff] %v12181_v31  ;;  %v12185_v46 = vadd.f32 %v3705_v32, %v3390_v34  ;;  %v14869_v31 = vld [vmem:[#allocation150_spill] sm:$0xff]  ;;  %v14870_v32 = vld [vmem:[#allocation128_spill] sm:$0xff] }
 0x339   : > { %v8455_v28 = vpop.f32.mrf.mxu1  ;;  %v12188_v13 = vpop.f32.mrf.mxu0  ;;  %v2456_v56 = vadd.f32 %v11662_v41, %v14869_v31  ;;  %v3396_v8 = vadd.f32 %v14870_v32, %v2453_v53  ;;  %v14877_v41 = vld [vmem:[#allocation209_spill] sm:$0xff]  ;;  %v14878_v31 = vld [vmem:[#allocation202_spill] sm:$0xff]  ;;  %v14880_v53 = vld [vmem:[#allocation223_spill] sm:$0xff] }
 0x33a   : > { %14865 = vst [vmem:[#allocation144_spill] sm:$0xff] %v12188_v13  ;;  %v12192_v50 = vadd.f32 %v8455_v28, %v3393_v20  ;;  %v14872_v13 = vld [vmem:[#allocation194_spill] sm:$0xff]  ;;  %v14875_v20 = vld [vmem:[#allocation213_spill] sm:$0xff]  ;;  %v2448_v28 = vadd.f32 %v11666_v18, %v14876_v39  ;;  %v14879_v51 = vpack.c.bf16 %v14877_v41, %v14878_v31  ;;  %v14883_v32 = vld [vmem:[#allocation164_spill] sm:$0xff] }
 0x33b   : > { %v3708_v36 = vpop.f32.mrf.mxu1  ;;  %v12195_v11 = vpop.f32.mrf.mxu0  ;;  %v14873_v61 = vpack.c.bf16 %v14871_v24, %v14872_v13  ;;  %v14881_v13 = vld [vmem:[#allocation288_spill] sm:$0xff]  ;;  %v2469_v24 = vadd.f32 %v11670_v35, %v14883_v32  ;;  %v14886_v41 = vld [vmem:[#allocation163_spill] sm:$0xff] }
 0x33c   : > { %14868 = vst [vmem:[#allocation27_spill] sm:$0xff] %v12195_v11  ;;  %v12199_v34 = vadd.f32 %v3708_v36, %v3391_v57  ;;  %v14884_v18 = vld [vmem:[#allocation152_spill] sm:$0xff]  ;;  %v2461_v31 = vadd.f32 %v11686_v6, %v14886_v41 }
 0x33d   : > { %v8458_v47 = vpop.f32.mrf.mxu1  ;;  %8633 = vmatmul.mubr.msk.bf16.gmra.mxu1 %vm1780_vm5, %v14873_v61  ;;  %v12206_v19 = vpop.f32.mrf.mxu0  ;;  %8861 = vmatmul.mubr.msk.bf16.gmra.mxu0 %vm1780_vm5, %v14875_v20  ;;  %v3394_v61 = vadd.f32 %v14881_v13, %v2445_v22 }
 0x33e   : > { %14874 = vst [vmem:[#allocation157_spill] sm:$0xff] %v12206_v19  ;;  %v12212_v62 = vadd.f32 %v8458_v47, %v3396_v8  ;;  %8636 = vmatprep.mubr.msk.bf16.mxu1 %vm1780_vm5, %v14879_v51  ;;  %8864 = vmatprep.mubr.msk.bf16.mxu0 %vm1780_vm5, %v14880_v53  ;;  %v3397_v8 = vadd.f32 %v14884_v18, %v2456_v56  ;;  %v14887_v53 = vld [vmem:[#allocation290_spill] sm:$0xff]  ;;  %v14891_v18 = vld [vmem:[#allocation219_spill] sm:$0xff] }
 0x33f   : > { %v3721_v57 = vpop.f32.mrf.mxu1  ;;  %v12221_v36 = vpop.f32.mrf.mxu0  ;;  %v3395_v22 = vadd.f32 %v14887_v53, %v2448_v28  ;;  %v14896_v28 = vld [vmem:[#allocation156_spill] sm:$0xff] }
 0x340   : > { %14882 = vst [vmem:[#allocation51_spill] sm:$0xff] %v12221_v36  ;;  %v12225_v20 = vadd.f32 %v3721_v57, %v3394_v61  ;;  %v14889_v36 = vld [vmem:[#allocation246_spill] sm:$0xff] }
 0x341   : > { %v8459_v47 = vpop.f32.mrf.mxu1  ;;  %v12228_v39 = vpop.f32.mrf.mxu0  ;;  %v2472_v35 = vadd.f32 %v11690_v27, %v14889_v36  ;;  %v14890_v57 = vld [vmem:[#allocation170_spill] sm:$0xff]  ;;  %v14897_v27 = vld [vmem:[#allocation220_spill] sm:$0xff]  ;;  %v14898_v36 = vld [vmem:[#allocation221_spill] sm:$0xff] }
 0x342   : > { %14885 = vst [vmem:[#allocation50_spill] sm:$0xff] %v12228_v39  ;;  %v12232_v51 = vadd.f32 %v8459_v47, %v3397_v8  ;;  %v3400_v56 = vadd.f32 %v14890_v57, %v2469_v24  ;;  %v14892_v39 = vld [vmem:[#allocation211_spill] sm:$0xff]  ;;  %v2464_v47 = vadd.f32 %v11694_v9, %v14896_v28  ;;  %v14899_v53 = vpack.c.bf16 %v14897_v27, %v14898_v36  ;;  %v14900_v24 = vld [vmem:[#allocation236_spill] sm:$0xff] }
 0x343   : > { %v3724_v13 = vpop.f32.mrf.mxu1  ;;  %v12235_v19 = vpop.f32.mrf.mxu0  ;;  %v14893_v11 = vpack.c.bf16 %v14891_v18, %v14892_v39  ;;  %v14895_v8 = vld [vmem:[#allocation235_spill] sm:$0xff]  ;;  %v14901_v39 = vld [vmem:[#allocation153_spill] sm:$0xff]  ;;  %v14904_v9 = vld [vmem:[#allocation292_spill] sm:$0xff] }
 0x344   : > { %14888 = vst [vmem:[#allocation42_spill] sm:$0xff] %v12235_v19  ;;  %v12239_v61 = vadd.f32 %v3724_v13, %v3395_v22  ;;  %v14903_v57 = vld [vmem:[#allocation295_spill] sm:$0xff]  ;;  %v14906_v27 = vld [vmem:[#allocation180_spill] sm:$0xff] }
 0x345   : > { %v8462_v32 = vpop.f32.mrf.mxu1  ;;  %8637 = vmatmul.mubr.msk.bf16.gmra.mxu1 %vm1780_vm5, %v14893_v11  ;;  %v12246_v6 = vpop.f32.mrf.mxu0  ;;  %8865 = vmatmul.mubr.msk.bf16.gmra.mxu0 %vm1780_vm5, %v14895_v8  ;;  %v3398_v11 = vadd.f32 %v14901_v39, %v2461_v31  ;;  %v2485_v18 = vadd.f32 %v11698_v14, %v14903_v57  ;;  %v2477_v36 = vadd.f32 %v11714_v60, %v14906_v27 }
 0x346   : > { %14894 = vst [vmem:[#allocation73_spill] sm:$0xff] %v12246_v6  ;;  %v12252_v41 = vadd.f32 %v8462_v32, %v3400_v56  ;;  %8640 = vmatprep.mubr.msk.bf16.mxu1 %vm1780_vm5, %v14899_v53  ;;  %8868 = vmatprep.mubr.msk.bf16.mxu0 %vm1780_vm5, %v14900_v24  ;;  %v3401_v56 = vadd.f32 %v14904_v9, %v2472_v35  ;;  %v14907_v24 = vld [vmem:[#allocation294_spill] sm:$0xff] }
 0x347   : > { %v3737_v22 = vpop.f32.mrf.mxu1  ;;  %v12261_v13 = vpop.f32.mrf.mxu0  ;;  %v3399_v31 = vadd.f32 %v14907_v24, %v2464_v47  ;;  %v14911_v9 = vld [vmem:[#allocation234_spill] sm:$0xff] }
 0x348   : > { %14902 = vst [vmem:[#allocation46_spill] sm:$0xff] %v12261_v13  ;;  %v12265_v8 = vadd.f32 %v3737_v22, %v3398_v11  ;;  %v14909_v13 = vld [vmem:[#allocation296_spill] sm:$0xff]  ;;  %v14910_v22 = vld [vmem:[#allocation177_spill] sm:$0xff]  ;;  %v14916_v47 = vld [vmem:[#allocation298_spill] sm:$0xff] }
 0x349   : > { %v8463_v32 = vpop.f32.mrf.mxu1  ;;  %v12268_v28 = vpop.f32.mrf.mxu0  ;;  %v2488_v14 = vadd.f32 %v11718_v48, %v14909_v13  ;;  %v3404_v35 = vadd.f32 %v14910_v22, %v2485_v18  ;;  %v14917_v48 = vld [vmem:[#allocation244_spill] sm:$0xff]  ;;  %v14918_v13 = vld [vmem:[#allocation229_spill] sm:$0xff]  ;;  %v2501_v22 = vadd.f32 %v11726_v23, %v11185_v63  ;;  %v2504_v63 = vadd.f32 %v11746_v12, %v11214_v21  ;;  %v14931_v21 = vld [vmem:[#allocation254_spill] sm:$0xff] }
 0x34a   : > { %14905 = vst [vmem:[#allocation79_spill] sm:$0xff] %v12268_v28  ;;  %v12272_v53 = vadd.f32 %v8463_v32, %v3401_v56  ;;  %v14912_v28 = vld [vmem:[#allocation233_spill] sm:$0xff]  ;;  %v14915_v56 = vld [vmem:[#allocation250_spill] sm:$0xff]  ;;  %v2480_v32 = vadd.f32 %v11722_v7, %v14916_v47  ;;  %v14919_v24 = vpack.c.bf16 %v14917_v48, %v14918_v13  ;;  %v14920_v18 = vld [vmem:[#allocation256_spill] sm:$0xff]  ;;  %v2493_v47 = vadd.f32 %v11742_v55, %v11194_v5 }
 0x34b   : > { %v3740_v39 = vpop.f32.mrf.mxu1  ;;  %v12275_v6 = vpop.f32.mrf.mxu0  ;;  %v14913_v19 = vpack.c.bf16 %v14911_v9, %v14912_v28  ;;  %v14921_v28 = vld [vmem:[#allocation173_spill] sm:$0xff]  ;;  %v14930_v55 = vld [vmem:[#allocation258_spill] sm:$0xff] }
 0x34c   : > { %14908 = vst [vmem:[#allocation65_spill] sm:$0xff] %v12275_v6  ;;  %v12279_v11 = vadd.f32 %v3740_v39, %v3399_v31  ;;  %v14923_v7 = vld [vmem:[#allocation297_spill] sm:$0xff] }
 0x34d   : > { %v8466_v57 = vpop.f32.mrf.mxu1  ;;  %8641 = vmatmul.mubr.msk.bf16.gmra.mxu1 %vm1780_vm5, %v14913_v19  ;;  %v12286_v60 = vpop.f32.mrf.mxu0  ;;  %8869 = vmatmul.mubr.msk.bf16.gmra.mxu0 %vm1780_vm5, %v14915_v56  ;;  %v3402_v19 = vadd.f32 %v14921_v28, %v2477_v36  ;;  %v3403_v36 = vadd.f32 %v11183_v58, %v2480_v32  ;;  %v14926_v28 = vld [vmem:[#allocation242_spill] sm:$0xff]  ;;  %v2496_v58 = vadd.f32 %v11752_v4, %v11218_v44  ;;  %v14932_v12 = vld [vmem:[#allocation253_spill] sm:$0xff]  ;;  %v14937_v44 = vld [vmem:[#allocation195_spill] sm:$0xff] }
 0x34e   : > { %14914 = vst [vmem:[#allocation151_spill] sm:$0xff] %v12286_v60  ;;  %v12292_v27 = vadd.f32 %v8466_v57, %v3404_v35  ;;  %8644 = vmatprep.mubr.msk.bf16.mxu1 %vm1780_vm5, %v14919_v24  ;;  %8872 = vmatprep.mubr.msk.bf16.mxu0 %vm1780_vm5, %v14920_v18  ;;  %v3405_v35 = vadd.f32 %v14923_v7, %v2488_v14  ;;  %v14988_v6 = vld [vmem:[#allocation341_spill] sm:$0xff] }
 0x34f   : > { %v3753_v31 = vpop.f32.mrf.mxu1  ;;  %v12301_v39 = vpop.f32.mrf.mxu0  ;;  %v3408_v14 = vadd.f32 %v11187_v52, %v2501_v22  ;;  %v14933_v7 = vpack.c.bf16 %v14931_v21, %v14932_v12  ;;  %v14934_v52 = vld [vmem:[#allocation263_spill] sm:$0xff]  ;;  %v3406_v22 = vadd.f32 %v11196_v42, %v2493_v47  ;;  %v3409_v4 = vadd.f32 %v14937_v44, %v2504_v63  ;;  %v14940_v21 = vld [vmem:[#allocation216_spill] sm:$0xff]  ;;  %v14942_v12 = vld [vmem:[#allocation261_spill] sm:$0xff] }
 0x350   : > { %14922 = vst [vmem:[#allocation159_spill] sm:$0xff] %v12301_v39  ;;  %v12305_v9 = vadd.f32 %v3753_v31, %v3402_v19  ;;  %v14927_v19 = vld [vmem:[#allocation248_spill] sm:$0xff]  ;;  %v3407_v42 = vadd.f32 %v14940_v21, %v2496_v58  ;;  %v14946_v44 = vld [vmem:[#allocation259_spill] sm:$0xff] }
 0x351   : > { %v8467_v57 = vpop.f32.mrf.mxu1  ;;  %v12308_v56 = vpop.f32.mrf.mxu0  ;;  %v14928_v31 = vpack.c.bf16 %v14926_v28, %v14927_v19  ;;  %v14939_v19 = vld [vmem:[#allocation232_spill] sm:$0xff] }
 0x352   : > { %14924 = vst [vmem:[#allocation146_spill] sm:$0xff] %v12308_v56  ;;  %v12312_v48 = vadd.f32 %v8467_v57, %v3405_v35  ;;  %v14941_v47 = vld [vmem:[#allocation252_spill] sm:$0xff]  ;;  %v14984_v56 = vld [vmem:[#allocation25_spill] sm:$0xff] }
 0x353   : > { %v3756_v13 = vpop.f32.mrf.mxu1  ;;  %v12315_v24 = vpop.f32.mrf.mxu0 }
 0x354   : > { %14925 = vst [vmem:[#allocation143_spill] sm:$0xff] %v12315_v24  ;;  %v12319_v23 = vadd.f32 %v3756_v13, %v3403_v36  ;;  %v14936_v36 = vld [vmem:[#allocation203_spill] sm:$0xff]  ;;  %v14966_v24 = vld [vmem:[#allocation228_spill] sm:$0xff] }
 0x355   : > { %v8470_v18 = vpop.f32.mrf.mxu1  ;;  %8645 = vmatmul.mubr.msk.bf16.gmra.mxu1 %vm1780_vm5, %v14928_v31  ;;  %v12326_v5 = vpop.f32.mrf.mxu0  ;;  %8873 = vmatmul.mubr.msk.bf16.gmra.mxu0 %vm1780_vm5, %v14930_v55  ;;  %v2517_v13 = vadd.f32 %v11758_v43, %v14936_v36  ;;  %v2509_v31 = vadd.f32 %v11768_v17, %v14939_v19  ;;  %v14944_v43 = vld [vmem:[#allocation301_spill] sm:$0xff]  ;;  %v14950_v19 = vld [vmem:[#allocation303_spill] sm:$0xff] }
 0x356   : > { %14929 = vst [vmem:[#allocation162_spill] sm:$0xff] %v12326_v5  ;;  %v12332_v32 = vadd.f32 %v8470_v18, %v3408_v14  ;;  %8648 = vmatprep.mubr.msk.bf16.mxu1 %vm1780_vm5, %v14933_v7  ;;  %8876 = vmatprep.mubr.msk.bf16.mxu0 %vm1780_vm5, %v14934_v52  ;;  %v4609_v7 = vpack.c.bf16 %v14942_v12, %v14941_v47 }
 0x357   : > { %v3769_v35 = vpop.f32.mrf.mxu1  ;;  %v12341_v57 = vpop.f32.mrf.mxu0  ;;  %v2512_v21 = vadd.f32 %v11780_v10, %v14950_v19 }
 0x358   : > { %14935 = vst [vmem:[#allocation78_spill] sm:$0xff] %v12341_v57  ;;  %v12345_v28 = vadd.f32 %v3769_v35, %v3406_v22  ;;  %v2520_v22 = vadd.f32 %v11772_v54, %v14944_v43  ;;  %v14945_v35 = vld [vmem:[#allocation214_spill] sm:$0xff] }
 0x359   : > { %v8471_v14 = vpop.f32.mrf.mxu1  ;;  %v12348_v18 = vpop.f32.mrf.mxu0  ;;  %v3412_v36 = vadd.f32 %v14945_v35, %v2517_v13  ;;  %v14951_v54 = vld [vmem:[#allocation270_spill] sm:$0xff] }
 0x35a   : > { %14938 = vst [vmem:[#allocation174_spill] sm:$0xff] %v12348_v18  ;;  %v12352_v55 = vadd.f32 %v8471_v14, %v3409_v4  ;;  %v14947_v18 = vld [vmem:[#allocation260_spill] sm:$0xff]  ;;  %v14952_v13 = vld [vmem:[#allocation226_spill] sm:$0xff] }
 0x35b   : > { %v3772_v52 = vpop.f32.mrf.mxu1  ;;  %v12357_v57 = vpop.f32.mrf.mxu0  ;;  %v4610_v17 = vpack.c.bf16 %v14947_v18, %v14946_v44  ;;  %v14949_v14 = vld [vmem:[#allocation268_spill] sm:$0xff]  ;;  %v3410_v18 = vadd.f32 %v14952_v13, %v2509_v31  ;;  %v14956_v44 = vld [vmem:[#allocation302_spill] sm:$0xff] }
 0x35c   : > { %14943 = vst [vmem:[#allocation54_spill] sm:$0xff] %v12357_v57  ;;  %v12361_v63 = vadd.f32 %v3772_v52, %v3407_v42  ;;  %v14955_v52 = vld [vmem:[#allocation210_spill] sm:$0xff]  ;;  %v14962_v57 = vld [vmem:[#allocation336_spill] sm:$0xff] }
 0x35d   : > { %v8474_v4 = vpop.f32.mrf.mxu1  ;;  %8649 = vmatmul.mubr.msk.bf16.gmra.mxu1 %vm1780_vm5, %v4609_v7  ;;  %v12367_v58 = vpop.f32.mrf.mxu0  ;;  %8877 = vmatmul.mubr.msk.bf16.gmra.mxu0 %vm1780_vm5, %v14949_v14  ;;  %v14954_v7 = vld [vmem:[#allocation305_spill] sm:$0xff]  ;;  %v3413_v14 = vadd.f32 %v14956_v44, %v2520_v22  ;;  %v14965_v44 = vld [vmem:[#allocation166_spill] sm:$0xff] }
 0x35e   : > { %14948 = vst [vmem:[#allocation99_spill] sm:$0xff] %v12367_v58  ;;  %v12373_v47 = vadd.f32 %v8474_v4, %v3412_v36  ;;  %8652 = vmatprep.mubr.msk.bf16.mxu1 %vm1780_vm5, %v4610_v17  ;;  %8880 = vmatprep.mubr.msk.bf16.mxu0 %vm1780_vm5, %v14951_v54  ;;  %v2533_v43 = vadd.f32 %v14955_v52, %v14954_v7  ;;  %v14958_v4 = vld [vmem:[#allocation224_spill] sm:$0xff]  ;;  %v14964_v52 = vld [vmem:[#allocation269_spill] sm:$0xff] }
 0x35f   : > { %v3785_v42 = vpop.f32.mrf.mxu1  ;;  %v12379_v12 = vpop.f32.mrf.mxu0  ;;  %v2525_v17 = vadd.f32 %v11796_v16, %v14958_v4  ;;  %v14959_v54 = vld [vmem:[#allocation304_spill] sm:$0xff]  ;;  %v14967_v16 = vld [vmem:[#allocation227_spill] sm:$0xff] }
 0x360   : > { %14953 = vst [vmem:[#allocation88_spill] sm:$0xff] %v12379_v12  ;;  %v12383_v35 = vadd.f32 %v3785_v42, %v3410_v18  ;;  %v3411_v31 = vadd.f32 %v14959_v54, %v2512_v21  ;;  %v14961_v12 = vld [vmem:[#allocation240_spill] sm:$0xff]  ;;  %v14963_v42 = vld [vmem:[#allocation241_spill] sm:$0xff] }
 0x361   : > { %v8475_v10 = vpop.f32.mrf.mxu1  ;;  %v12386_v36 = vpop.f32.mrf.mxu0  ;;  %v2536_v7 = vadd.f32 %v14962_v57, %v14961_v12  ;;  %v3416_v22 = vadd.f32 %v14963_v42, %v2533_v43  ;;  %v14972_v57 = vld [vmem:[#allocation308_spill] sm:$0xff]  ;;  %v14973_v12 = vld [vmem:[#allocation338_spill] sm:$0xff] }
 0x362   : > { %14957 = vst [vmem:[#allocation91_spill] sm:$0xff] %v12386_v36  ;;  %v12390_v19 = vadd.f32 %v8475_v10, %v3413_v14  ;;  %v4612_v36 = vpack.c.bf16 %v14965_v44, %v14964_v52  ;;  %v14968_v14 = vpack.c.bf16 %v14966_v24, %v14967_v16  ;;  %v14970_v10 = vld [vmem:[#allocation191_spill] sm:$0xff]  ;;  %v2528_v54 = vadd.f32 %v14973_v12, %v14972_v57  ;;  %v14977_v24 = vld [vmem:[#allocation306_spill] sm:$0xff] }
 0x363   : > { %v3788_v13 = vpop.f32.mrf.mxu1  ;;  %v12393_v58 = vpop.f32.mrf.mxu0  ;;  %v14971_v4 = vpack.c.bf16 %v14970_v10, %v14965_v44  ;;  %v3414_v52 = vadd.f32 %v14977_v24, %v2525_v17  ;;  %v14979_v44 = vld [vmem:[#allocation251_spill] sm:$0xff] }
 0x364   : > { %14960 = vst [vmem:[#allocation274_spill] sm:$0xff] %v12393_v58  ;;  %v12397_v18 = vadd.f32 %v3788_v13, %v3411_v31  ;;  %v14974_v31 = vld [vmem:[#allocation189_spill] sm:$0xff]  ;;  %v14981_v57 = vld [vmem:[#allocation307_spill] sm:$0xff] }
 0x365   : > { %v8478_v5 = vpop.f32.mrf.mxu1  ;;  %8653 = vmatmul.mubr.msk.bf16.gmra.mxu1 %vm1780_vm5, %v14968_v14  ;;  %v12406_v21 = vpop.f32.mrf.mxu0  ;;  %8881 = vmatmul.mubr.msk.bf16.gmra.mxu0 %vm1780_vm5, %v14971_v4  ;;  %v14975_v13 = vld [vmem:[#allocation201_spill] sm:$0xff] }
 0x366   : > { %14969 = vst [vmem:[#allocation160_spill] sm:$0xff] %v12406_v21  ;;  %v12414_v43 = vadd.f32 %v8478_v5, %v3416_v22  ;;  %8656 = vmatprep.mubr.msk.bf16.mxu1 %vm1780_vm5, %v4612_v36  ;;  %v14976_v42 = vpack.c.bf16 %v14974_v31, %v14975_v13  ;;  %v14980_v21 = vld [vmem:[#allocation9_spill] sm:$0xff]  ;;  %v3417_v5 = vadd.f32 %v14981_v57, %v2536_v7  ;;  %v14983_v36 = vld [vmem:[#allocation148_spill] sm:$0xff] }
 0x367   : > { %v3801_v16 = vpop.f32.mrf.mxu1  ;;  %v12422_v14 = vpop.f32.mrf.mxu0  ;;  %v2549_v4 = vadd.f32 %v14980_v21, %v14979_v44  ;;  %v2541_v31 = vadd.f32 %v14984_v56, %v14983_v36  ;;  %v14990_v57 = vpack.c.bf16 %v14975_v13, %v14970_v10  ;;  %v14995_v36 = vld [vmem:[#allocation200_spill] sm:$0xff] }
 0x368   : > { %8884 = vmatprep.mubr.msk.bf16.mxu0 %vm1780_vm5, %v14976_v42  ;;  %14978 = vst [vmem:[#allocation169_spill] sm:$0xff] %v12422_v14  ;;  %v12426_v58 = vadd.f32 %v3801_v16, %v3414_v52  ;;  %v14985_v42 = vld [vmem:[#allocation247_spill] sm:$0xff]  ;;  %v14987_v14 = vld [vmem:[#allocation145_spill] sm:$0xff] }
 0x369   : > { %v8479_v22 = vpop.f32.mrf.mxu1  ;;  %v12429_v12 = vpop.f32.mrf.mxu0  ;;  %v3415_v17 = vadd.f32 %v14985_v42, %v2528_v54  ;;  %v2552_v21 = vadd.f32 %v14988_v6, %v14987_v14  ;;  %v14989_v16 = vld [vmem:[#allocation309_spill] sm:$0xff]  ;;  %v14993_v54 = vld [vmem:[#allocation266_spill] sm:$0xff]  ;;  %v14996_v42 = vld [vmem:[#allocation343_spill] sm:$0xff] }
 0x36a   : > { %14982 = vst [vmem:[#allocation276_spill] sm:$0xff] %v12429_v12  ;;  %v12433_v39 = vadd.f32 %v8479_v22, %v3417_v5  ;;  %v3420_v7 = vadd.f32 %v14989_v16, %v2549_v4  ;;  %v14992_v5 = vld [vmem:[#allocation300_spill] sm:$0xff]  ;;  %v2544_v6 = vadd.f32 %v14996_v42, %v14995_v36  ;;  %v14999_v4 = vld [vmem:[#allocation149_spill] sm:$0xff]  ;;  %v15001_v16 = vld [vmem:[#allocation311_spill] sm:$0xff] }
 0x36b   : > { %v3804_v24 = vpop.f32.mrf.mxu1  ;;  %v12436_v60 = vpop.f32.mrf.mxu0  ;;  %v14994_v22 = vpack.c.bf16 %v14992_v5, %v14993_v54  ;;  %v15004_v5 = vld [vmem:[#allocation197_spill] sm:$0xff] }
 0x36c   : > { %14986 = vst [vmem:[#allocation101_spill] sm:$0xff] %v12436_v60  ;;  %v12440_v52 = vadd.f32 %v3804_v24, %v3415_v17  ;;  %v14998_v17 = vld [vmem:[#allocation20_spill] sm:$0xff]  ;;  %v3418_v24 = vadd.f32 %v14999_v4, %v2541_v31  ;;  %v3421_v54 = vadd.f32 %v15004_v5, %v2552_v21 }
 0x36d   : > { %v8482_v44 = vpop.f32.mrf.mxu1  ;;  %8657 = vmatmul.mubr.msk.bf16.gmra.mxu1 %vm1780_vm5, %v14990_v57  ;;  %v12447_v56 = vpop.f32.mrf.mxu0  ;;  %8885 = vmatmul.mubr.msk.bf16.gmra.mxu0 %vm1780_vm5, %v14994_v22  ;;  %v15002_v57 = vld [vmem:[#allocation22_spill] sm:$0xff] }
 0x36e   : > { %14991 = vst [vmem:[#allocation171_spill] sm:$0xff] %v12447_v56  ;;  %v12455_v14 = vadd.f32 %v8482_v44, %v3420_v7  ;;  %8740 = vmatprep.mubr.msk.bf16.mxu1 %vm1780_vm5, %v14998_v17  ;;  %v2565_v56 = vadd.f32 %v15002_v57, %v15001_v16  ;;  %v15006_v7 = vld [vmem:[#allocation313_spill] sm:$0xff]  ;;  %v15009_v17 = vld [vmem:[#allocation310_spill] sm:$0xff] }
 0x36f   : > { %v3817_v10 = vpop.f32.mrf.mxu1  ;;  %v12460_v13 = vpop.f32.mrf.mxu0  ;;  %v15007_v44 = vld [vmem:[#allocation21_spill] sm:$0xff]  ;;  %v3419_v31 = vadd.f32 %v15009_v17, %v2544_v6  ;;  %v15021_v17 = vld [vmem:[#allocation314_spill] sm:$0xff] }
 0x370   : > { %14997 = vst [vmem:[#allocation172_spill] sm:$0xff] %v12455_v14  ;;  %15000 = vst [vmem:[#allocation183_spill] sm:$0xff] %v12460_v13  ;;  %v12464_v60 = vadd.f32 %v3817_v10, %v3418_v24  ;;  %v2557_v36 = vadd.f32 %v15007_v44, %v15006_v7  ;;  %v15011_v13 = vld [vmem:[#allocation315_spill] sm:$0xff]  ;;  %v15012_v14 = vld [vmem:[#allocation34_spill] sm:$0xff] }
 0x371   : > { %v8483_v22 = vpop.f32.mrf.mxu1  ;;  %v12467_v12 = vpop.f32.mrf.mxu0  ;;  %v2568_v16 = vadd.f32 %v15012_v14, %v15011_v13  ;;  %v15014_v10 = vld [vmem:[#allocation312_spill] sm:$0xff]  ;;  %v15020_v44 = vld [vmem:[#allocation35_spill] sm:$0xff] }
 0x372   : > { %15003 = vst [vmem:[#allocation279_spill] sm:$0xff] %v12464_v60  ;;  %15005 = vst [vmem:[#allocation184_spill] sm:$0xff] %v12467_v12  ;;  %v12471_v42 = vadd.f32 %v8483_v22, %v3421_v54  ;;  %v3424_v21 = vadd.f32 %v15014_v10, %v2565_v56  ;;  %v15016_v12 = vld [vmem:[#allocation33_spill] sm:$0xff]  ;;  %v3422_v14 = vadd.f32 %v15021_v17, %v2557_v36  ;;  %v15023_v56 = vld [vmem:[#allocation319_spill] sm:$0xff] }
 0x373   : > { %v3820_v4 = vpop.f32.mrf.mxu1  ;;  %v12474_v3 = vpop.f32.mrf.mxu0  ;;  %v15017_v54 = vld [vmem:[#allocation317_spill] sm:$0xff] }
 0x374   : > { %15008 = vst [vmem:[#allocation89_spill] sm:$0xff] %v12471_v42  ;;  %15010 = vst [vmem:[#allocation113_spill] sm:$0xff] %v12474_v3  ;;  %v12478_v24 = vadd.f32 %v3820_v4, %v3419_v31  ;;  %v15018_v22 = vld [vmem:[#allocation345_spill] sm:$0xff]  ;;  %v15026_v3 = vld [vmem:[#allocation316_spill] sm:$0xff] }
 0x375   : > { %v8486_v57 = vpop.f32.mrf.mxu1  ;;  %v12481_v5 = vpop.f32.mrf.mxu0  ;;  %8741 = vmatmul.mubr.msk.bf16.vlgmr.msra.gmra.mxu1 %vm1780_vm5, %v15016_v12  ;;  %v2560_v7 = vadd.f32 %v15018_v22, %v15017_v54  ;;  %v15024_v4 = vld [vmem:[#allocation37_spill] sm:$0xff]  ;;  %v3425_v12 = vadd.f32 %v15026_v3, %v2568_v16 }
 0x376   : > { %15013 = vst [vmem:[#allocation277_spill] sm:$0xff] %v12478_v24  ;;  %15015 = vst [vmem:[#allocation112_spill] sm:$0xff] %v12481_v5  ;;  %v12487_v6 = vadd.f32 %v8486_v57, %v3424_v21  ;;  %8744 = vmatprep.mubr.msk.bf16.mxu1 %vm1780_vm5, %v15020_v44  ;;  %v2581_v10 = vadd.f32 %v15024_v4, %v15023_v56  ;;  %v15028_v21 = vld [vmem:[#allocation320_spill] sm:$0xff]  ;;  %v15031_v44 = vld [vmem:[#allocation318_spill] sm:$0xff] }
 0x377   : > { %v3833_v13 = vpop.f32.mrf.mxu1  ;;  %v12492_v31 = vpop.f32.mrf.mxu0  ;;  %v15029_v57 = vld [vmem:[#allocation36_spill] sm:$0xff]  ;;  %v3423_v36 = vadd.f32 %v15031_v44, %v2560_v7  ;;  %v15034_v60 = vld [vmem:[#allocation49_spill] sm:$0xff]  ;;  %v15043_v44 = vld [vmem:[#allocation323_spill] sm:$0xff] }
 0x378   : > { %15019 = vst [vmem:[#allocation280_spill] sm:$0xff] %v12487_v6  ;;  %15022 = vst [vmem:[#allocation282_spill] sm:$0xff] %v12492_v31  ;;  %v12496_v5 = vadd.f32 %v3833_v13, %v3422_v14  ;;  %v2573_v54 = vadd.f32 %v15029_v57, %v15028_v21  ;;  %v15033_v31 = vld [vmem:[#allocation322_spill] sm:$0xff]  ;;  %v15036_v13 = vld [vmem:[#allocation321_spill] sm:$0xff] }
 0x379   : > { %v8487_v24 = vpop.f32.mrf.mxu1  ;;  %v12499_v42 = vpop.f32.mrf.mxu0  ;;  %v2584_v56 = vadd.f32 %v15034_v60, %v15033_v31  ;;  %v3428_v3 = vadd.f32 %v15036_v13, %v2581_v10  ;;  %v15042_v57 = vld [vmem:[#allocation56_spill] sm:$0xff] }
 0x37a   : > { %15025 = vst [vmem:[#allocation120_spill] sm:$0xff] %v12496_v5  ;;  %15027 = vst [vmem:[#allocation176_spill] sm:$0xff] %v12499_v42  ;;  %v12503_v22 = vadd.f32 %v8487_v24, %v3425_v12  ;;  %v15038_v42 = vld [vmem:[#allocation47_spill] sm:$0xff]  ;;  %v15039_v24 = vld [vmem:[#allocation32_spill] sm:$0xff]  ;;  %v3426_v60 = vadd.f32 %v15043_v44, %v2573_v54 }
 0x37b   : > { %v3836_v17 = vpop.f32.mrf.mxu1  ;;  %v12506_v6 = vpop.f32.mrf.mxu0  ;;  %v15040_v12 = vld [vmem:[#allocation347_spill] sm:$0xff]  ;;  %v15045_v10 = vld [vmem:[#allocation324_spill] sm:$0xff] }
 0x37c   : > { %15030 = vst [vmem:[#allocation190_spill] sm:$0xff] %v12503_v22  ;;  %15032 = vst [vmem:[#allocation182_spill] sm:$0xff] %v12506_v6  ;;  %v12510_v14 = vadd.f32 %v3836_v17, %v3423_v36  ;;  %v2576_v21 = vadd.f32 %v15040_v12, %v15039_v24  ;;  %v15046_v17 = vld [vmem:[#allocation52_spill] sm:$0xff]  ;;  %v15056_v5 = vld [vmem:[#allocation63_spill] sm:$0xff] }
 0x37d   : > { %v8490_v16 = vpop.f32.mrf.mxu1  ;;  %v12513_v4 = vpop.f32.mrf.mxu0  ;;  %8745 = vmatmul.mubr.msk.bf16.gmra.mxu1 %vm1780_vm5, %v15038_v42  ;;  %v2597_v13 = vadd.f32 %v15046_v17, %v15045_v10  ;;  %v15048_v6 = vld [vmem:[#allocation16_spill] sm:$0xff] }
 0x37e   : > { %15035 = vst [vmem:[#allocation181_spill] sm:$0xff] %v12510_v14  ;;  %15037 = vst [vmem:[#allocation196_spill] sm:$0xff] %v12513_v4  ;;  %v12519_v7 = vadd.f32 %v8490_v16, %v3428_v3  ;;  %8748 = vmatprep.mubr.msk.bf16.mxu1 %vm1780_vm5, %v15042_v57  ;;  %v3429_v42 = vadd.f32 %v15048_v6, %v2584_v56  ;;  %v15050_v3 = vld [vmem:[#allocation38_spill] sm:$0xff]  ;;  %v15051_v16 = vld [vmem:[#allocation44_spill] sm:$0xff] }
 0x37f   : > { %v3849_v31 = vpop.f32.mrf.mxu1  ;;  %v12524_v36 = vpop.f32.mrf.mxu0  ;;  %v2589_v24 = vadd.f32 %v15051_v16, %v15050_v3  ;;  %v15053_v57 = vld [vmem:[#allocation31_spill] sm:$0xff]  ;;  %v15064_v16 = vld [vmem:[#allocation69_spill] sm:$0xff] }
 0x380   : > { %15041 = vst [vmem:[#allocation285_spill] sm:$0xff] %v12519_v7  ;;  %15044 = vst [vmem:[#allocation207_spill] sm:$0xff] %v12524_v36  ;;  %v12528_v4 = vadd.f32 %v3849_v31, %v3426_v60  ;;  %v3427_v54 = vadd.f32 %v15053_v57, %v2576_v21  ;;  %v15055_v36 = vld [vmem:[#allocation40_spill] sm:$0xff]  ;;  %v15058_v31 = vld [vmem:[#allocation325_spill] sm:$0xff] }
 0x381   : > { %v8491_v14 = vpop.f32.mrf.mxu1  ;;  %v12531_v22 = vpop.f32.mrf.mxu0  ;;  %v2600_v10 = vadd.f32 %v15056_v5, %v15055_v36  ;;  %v3432_v6 = vadd.f32 %v15058_v31, %v2597_v13  ;;  %v15065_v57 = vld [vmem:[#allocation326_spill] sm:$0xff] }
 0x382   : > { %15047 = vst [vmem:[#allocation102_spill] sm:$0xff] %v12528_v4  ;;  %15049 = vst [vmem:[#allocation136_spill] sm:$0xff] %v12531_v22  ;;  %v12535_v12 = vadd.f32 %v8491_v14, %v3429_v42  ;;  %v15060_v22 = vld [vmem:[#allocation59_spill] sm:$0xff]  ;;  %v15061_v14 = vld [vmem:[#allocation45_spill] sm:$0xff]  ;;  %v3430_v5 = vadd.f32 %v15065_v57, %v2589_v24 }
 0x383   : > { %v3852_v44 = vpop.f32.mrf.mxu1  ;;  %v12538_v7 = vpop.f32.mrf.mxu0  ;;  %v15062_v42 = vld [vmem:[#allocation349_spill] sm:$0xff]  ;;  %v15067_v13 = vld [vmem:[#allocation62_spill] sm:$0xff] }
 0x384   : > { %15052 = vst [vmem:[#allocation284_spill] sm:$0xff] %v12535_v12  ;;  %15054 = vst [vmem:[#allocation287_spill] sm:$0xff] %v12538_v7  ;;  %v12542_v60 = vadd.f32 %v3852_v44, %v3427_v54  ;;  %v2592_v3 = vadd.f32 %v15062_v42, %v15061_v14  ;;  %v15068_v44 = vld [vmem:[#allocation70_spill] sm:$0xff]  ;;  %v15070_v7 = vld [vmem:[#allocation64_spill] sm:$0xff] }
 0x385   : > { %v8494_v56 = vpop.f32.mrf.mxu1  ;;  %v12545_v17 = vpop.f32.mrf.mxu0  ;;  %8749 = vmatmul.mubr.msk.bf16.gmra.mxu1 %vm1780_vm5, %v15060_v22  ;;  %v2613_v31 = vadd.f32 %v15068_v44, %v15067_v13  ;;  %v3433_v22 = vadd.f32 %v15070_v7, %v2600_v10  ;;  %v15078_v4 = vld [vmem:[#allocation82_spill] sm:$0xff] }
 0x386   : > { %15057 = vst [vmem:[#allocation133_spill] sm:$0xff] %v12542_v60  ;;  %15059 = vst [vmem:[#allocation150_spill] sm:$0xff] %v12545_v17  ;;  %v12551_v21 = vadd.f32 %v8494_v56, %v3432_v6  ;;  %8752 = vmatprep.mubr.msk.bf16.mxu1 %vm1780_vm5, %v15064_v16  ;;  %v15072_v6 = vld [vmem:[#allocation273_spill] sm:$0xff]  ;;  %v15073_v56 = vld [vmem:[#allocation66_spill] sm:$0xff] }
 0x387   : > { %v3865_v36 = vpop.f32.mrf.mxu1  ;;  %v12556_v54 = vpop.f32.mrf.mxu0  ;;  %v2605_v14 = vadd.f32 %v15073_v56, %v15072_v6  ;;  %v15075_v16 = vld [vmem:[#allocation57_spill] sm:$0xff]  ;;  %v15086_v56 = vld [vmem:[#allocation83_spill] sm:$0xff] }
 0x388   : > { %15063 = vst [vmem:[#allocation128_spill] sm:$0xff] %v12551_v21  ;;  %15066 = vst [vmem:[#allocation198_spill] sm:$0xff] %v12556_v54  ;;  %v12560_v17 = vadd.f32 %v3865_v36, %v3430_v5  ;;  %v3431_v24 = vadd.f32 %v15075_v16, %v2592_v3  ;;  %v15077_v54 = vld [vmem:[#allocation327_spill] sm:$0xff]  ;;  %v15087_v16 = vld [vmem:[#allocation76_spill] sm:$0xff] }
 0x389   : > { %v8495_v60 = vpop.f32.mrf.mxu1  ;;  %v12563_v12 = vpop.f32.mrf.mxu0  ;;  %v2616_v13 = vadd.f32 %v15078_v4, %v15077_v54  ;;  %v15080_v36 = vld [vmem:[#allocation55_spill] sm:$0xff]  ;;  %v3434_v4 = vadd.f32 %v15087_v16, %v2605_v14 }
 0x38a   : > { %15069 = vst [vmem:[#allocation194_spill] sm:$0xff] %v12560_v17  ;;  %15071 = vst [vmem:[#allocation213_spill] sm:$0xff] %v12563_v12  ;;  %v12567_v42 = vadd.f32 %v8495_v60, %v3433_v22  ;;  %v3436_v7 = vadd.f32 %v15080_v36, %v2613_v31  ;;  %v15082_v12 = vld [vmem:[#allocation81_spill] sm:$0xff]  ;;  %v15083_v60 = vld [vmem:[#allocation68_spill] sm:$0xff] }
 0x38b   : > { %v3868_v57 = vpop.f32.mrf.mxu1  ;;  %v12570_v21 = vpop.f32.mrf.mxu0  ;;  %v15084_v22 = vld [vmem:[#allocation351_spill] sm:$0xff]  ;;  %v15100_v17 = vld [vmem:[#allocation96_spill] sm:$0xff] }
 0x38c   : > { %15074 = vst [vmem:[#allocation137_spill] sm:$0xff] %v12567_v42  ;;  %15076 = vst [vmem:[#allocation209_spill] sm:$0xff] %v12570_v21  ;;  %v12574_v5 = vadd.f32 %v3868_v57, %v3431_v24  ;;  %v2608_v6 = vadd.f32 %v15084_v22, %v15083_v60  ;;  %v15089_v31 = vld [vmem:[#allocation67_spill] sm:$0xff]  ;;  %v15090_v57 = vld [vmem:[#allocation85_spill] sm:$0xff] }
 0x38d   : > { %v8498_v10 = vpop.f32.mrf.mxu1  ;;  %v12577_v44 = vpop.f32.mrf.mxu0  ;;  %8753 = vmatmul.mubr.msk.bf16.gmra.mxu1 %vm1780_vm5, %v15082_v12  ;;  %v2629_v36 = vadd.f32 %v15090_v57, %v15089_v31  ;;  %v15092_v21 = vld [vmem:[#allocation328_spill] sm:$0xff] }
 0x38e   : > { %15079 = vst [vmem:[#allocation202_spill] sm:$0xff] %v12574_v5  ;;  %15081 = vst [vmem:[#allocation223_spill] sm:$0xff] %v12577_v44  ;;  %v12583_v3 = vadd.f32 %v8498_v10, %v3436_v7  ;;  %8756 = vmatprep.mubr.msk.bf16.mxu1 %vm1780_vm5, %v15086_v56  ;;  %v3437_v12 = vadd.f32 %v15092_v21, %v2616_v13  ;;  %v15094_v7 = vld [vmem:[#allocation275_spill] sm:$0xff]  ;;  %v15095_v10 = vld [vmem:[#allocation84_spill] sm:$0xff] }
 0x38f   : > { %v3881_v54 = vpop.f32.mrf.mxu1  ;;  %v12588_v24 = vpop.f32.mrf.mxu0  ;;  %v2621_v60 = vadd.f32 %v15095_v10, %v15094_v7  ;;  %v15097_v56 = vld [vmem:[#allocation72_spill] sm:$0xff] }
 0x390   : > { %15085 = vst [vmem:[#allocation288_spill] sm:$0xff] %v12583_v3  ;;  %15088 = vst [vmem:[#allocation164_spill] sm:$0xff] %v12588_v24  ;;  %v12592_v44 = vadd.f32 %v3881_v54, %v3434_v4  ;;  %v3435_v14 = vadd.f32 %v15097_v56, %v2608_v6  ;;  %v15099_v24 = vld [vmem:[#allocation329_spill] sm:$0xff]  ;;  %v15102_v54 = vld [vmem:[#allocation80_spill] sm:$0xff] }
 0x391   : > { %v8499_v5 = vpop.f32.mrf.mxu1  ;;  %v12595_v42 = vpop.f32.mrf.mxu0  ;;  %v2632_v31 = vadd.f32 %v15100_v17, %v15099_v24  ;;  %v3440_v21 = vadd.f32 %v15102_v54, %v2629_v36  ;;  %v15108_v10 = vld [vmem:[#allocation104_spill] sm:$0xff]  ;;  %v15109_v56 = vld [vmem:[#allocation278_spill] sm:$0xff]  ;;  %v15111_v36 = vld [vmem:[#allocation93_spill] sm:$0xff] }
 0x392   : > { %15091 = vst [vmem:[#allocation152_spill] sm:$0xff] %v12592_v44  ;;  %15093 = vst [vmem:[#allocation163_spill] sm:$0xff] %v12595_v42  ;;  %v12599_v22 = vadd.f32 %v8499_v5, %v3437_v12  ;;  %v15104_v42 = vld [vmem:[#allocation94_spill] sm:$0xff]  ;;  %v15106_v12 = vld [vmem:[#allocation353_spill] sm:$0xff]  ;;  %v3438_v17 = vadd.f32 %v15109_v56, %v2621_v60 }
 0x393   : > { %v3884_v16 = vpop.f32.mrf.mxu1  ;;  %v12602_v3 = vpop.f32.mrf.mxu0  ;;  %v15105_v5 = vld [vmem:[#allocation86_spill] sm:$0xff]  ;;  %v15120_v44 = vld [vmem:[#allocation111_spill] sm:$0xff] }
 0x394   : > { %15096 = vst [vmem:[#allocation290_spill] sm:$0xff] %v12599_v22  ;;  %15098 = vst [vmem:[#allocation246_spill] sm:$0xff] %v12602_v3  ;;  %v12606_v4 = vadd.f32 %v3884_v16, %v3435_v14  ;;  %v2624_v7 = vadd.f32 %v15106_v12, %v15105_v5  ;;  %v15112_v16 = vld [vmem:[#allocation100_spill] sm:$0xff]  ;;  %v15113_v3 = vld [vmem:[#allocation330_spill] sm:$0xff] }
 0x395   : > { %v8502_v13 = vpop.f32.mrf.mxu1  ;;  %v12609_v57 = vpop.f32.mrf.mxu0  ;;  %8757 = vmatmul.mubr.msk.bf16.gmra.mxu1 %vm1780_vm5, %v15104_v42  ;;  %v2645_v54 = vadd.f32 %v15112_v16, %v15111_v36  ;;  %v3441_v42 = vadd.f32 %v15113_v3, %v2632_v31 }
 0x396   : > { %15101 = vst [vmem:[#allocation170_spill] sm:$0xff] %v12606_v4  ;;  %15103 = vst [vmem:[#allocation219_spill] sm:$0xff] %v12609_v57  ;;  %v12615_v6 = vadd.f32 %v8502_v13, %v3440_v21  ;;  %8760 = vmatprep.mubr.msk.bf16.mxu1 %vm1780_vm5, %v15108_v10  ;;  %v15115_v21 = vld [vmem:[#allocation281_spill] sm:$0xff]  ;;  %v15117_v10 = vld [vmem:[#allocation75_spill] sm:$0xff] }
 0x397   : > { %v3897_v24 = vpop.f32.mrf.mxu1  ;;  %v12620_v14 = vpop.f32.mrf.mxu0  ;;  %v15116_v13 = vld [vmem:[#allocation97_spill] sm:$0xff]  ;;  %v3439_v60 = vadd.f32 %v15117_v10, %v2624_v7  ;;  %v15129_v10 = vld [vmem:[#allocation283_spill] sm:$0xff] }
 0x398   : > { %15107 = vst [vmem:[#allocation211_spill] sm:$0xff] %v12615_v6  ;;  %15110 = vst [vmem:[#allocation235_spill] sm:$0xff] %v12620_v14  ;;  %v12624_v57 = vadd.f32 %v3897_v24, %v3438_v17  ;;  %v2637_v5 = vadd.f32 %v15116_v13, %v15115_v21  ;;  %v15119_v14 = vld [vmem:[#allocation331_spill] sm:$0xff]  ;;  %v15122_v24 = vld [vmem:[#allocation98_spill] sm:$0xff] }
 0x399   : > { %v8503_v4 = vpop.f32.mrf.mxu1  ;;  %v12627_v22 = vpop.f32.mrf.mxu0  ;;  %v2648_v36 = vadd.f32 %v15120_v44, %v15119_v14  ;;  %v3444_v3 = vadd.f32 %v15122_v24, %v2645_v54  ;;  %v15128_v13 = vld [vmem:[#allocation116_spill] sm:$0xff] }
 0x39a   : > { %15114 = vst [vmem:[#allocation156_spill] sm:$0xff] %v12627_v22  ;;  %v12631_v12 = vadd.f32 %v8503_v4, %v3441_v42  ;;  %v15124_v22 = vld [vmem:[#allocation107_spill] sm:$0xff]  ;;  %v15125_v4 = vld [vmem:[#allocation92_spill] sm:$0xff]  ;;  %v3442_v44 = vadd.f32 %v15129_v10, %v2637_v5 }
 0x39b   : > { %v3900_v56 = vpop.f32.mrf.mxu1  ;;  %v12634_v6 = vpop.f32.mrf.mxu0  ;;  %v15126_v42 = vld [vmem:[#allocation23_spill] sm:$0xff] }
 0x39c   : > { %15118 = vst [vmem:[#allocation220_spill] sm:$0xff] %v12634_v6  ;;  %v12638_v17 = vadd.f32 %v3900_v56, %v3439_v60  ;;  %v2640_v21 = vadd.f32 %v15126_v42, %v15125_v4  ;;  %v15131_v56 = vld [vmem:[#allocation332_spill] sm:$0xff]  ;;  %v15133_v4 = vld [vmem:[#allocation105_spill] sm:$0xff] }
 0x39d   : > { %v8506_v31 = vpop.f32.mrf.mxu1  ;;  %v12641_v16 = vpop.f32.mrf.mxu0  ;;  %8761 = vmatmul.mubr.msk.bf16.gmra.mxu1 %vm1780_vm5, %v15124_v22  ;;  %v3445_v24 = vadd.f32 %v15131_v56, %v2648_v36  ;;  %v15140_v56 = vld [vmem:[#allocation103_spill] sm:$0xff] }
 0x39e   : > { %15121 = vst [vmem:[#allocation221_spill] sm:$0xff] %v12638_v17  ;;  %15123 = vst [vmem:[#allocation236_spill] sm:$0xff] %v12641_v16  ;;  %v12647_v7 = vadd.f32 %v8506_v31, %v3444_v3  ;;  %8764 = vmatprep.mubr.msk.bf16.mxu1 %vm1780_vm5, %v15128_v13  ;;  %v3443_v3 = vadd.f32 %v15133_v4, %v2640_v21  ;;  %v15134_v13 = vld [vmem:[#allocation117_spill] sm:$0xff]  ;;  %v15136_v17 = vld [vmem:[#allocation127_spill] sm:$0xff] }
 0x39f   : > { %v3913_v14 = vpop.f32.mrf.mxu1  ;;  %v12652_v60 = vpop.f32.mrf.mxu0 }
 0x3a0   : > { %15127 = vst [vmem:[#allocation153_spill] sm:$0xff] %v12647_v7  ;;  %15130 = vst [vmem:[#allocation295_spill] sm:$0xff] %v12652_v60  ;;  %v12654_v54 = vadd.f32 %v3913_v14, %v3442_v44  ;;  %v15135_v7 = vld [vmem:[#allocation110_spill] sm:$0xff] }
 0x3a1   : > { %v8507_v16 = vpop.f32.mrf.mxu1  ;;  %v12659_v22 = vpop.f32.mrf.mxu0  ;;  %v4498_v5 = vadd.f32 %v15135_v7, %v15134_v13  ;;  %v15139_v14 = vld [vmem:[#allocation18_spill] sm:$0xff] }
 0x3a2   : > { %v12657_v6 = vadd.f32 %v8507_v16, %v3445_v24  ;;  %15132 = vst [vmem:[#allocation292_spill] sm:$0xff] %v12659_v22  ;;  %v15138_v16 = vld [vmem:[#allocation135_spill] sm:$0xff]  ;;  %v4496_v21 = vadd.f32 %v15140_v56, %v15139_v14 }
 0x3a3   : > { %v3916_v31 = vpop.f32.mrf.mxu1  ;;  %v12668_v44 = vpop.f32.mrf.mxu0 }
 0x3a4   : > { %v12662_v42 = vadd.f32 %v3916_v31, %v3443_v3  ;;  %15137 = vst [vmem:[#allocation180_spill] sm:$0xff] %v12668_v44  ;;  %v15141_v3 = vld [vmem:[#allocation286_spill] sm:$0xff] }
 0x3a5   : > { %v8590_v10 = vpop.f32.mrf.mxu1  ;;  %8765 = vmatmul.mubr.msk.bf16.gmra.mxu1 %vm1780_vm5, %v15136_v17  ;;  %v4499_v7 = vadd.f32 %v15141_v3, %v12037_v45  ;;  %v12680_v13 = vpop.f32.mrf.mxu0  ;;  %v15146_v3 = vld [vmem:[#allocation155_spill] sm:$0xff] }
 0x3a6   : > { %v12670_v36 = vadd.f32 %v8590_v10, %v4498_v5  ;;  %8768 = vmatprep.mubr.msk.bf16.mxu1 %vm1780_vm5, %v15138_v16  ;;  %v15142_v5 = vld [vmem:[#allocation124_spill] sm:$0xff]  ;;  %v15143_v16 = vld [vmem:[#allocation115_spill] sm:$0xff] }
 0x3a7   : > { %v4773_v24 = vpop.f32.mrf.mxu1  ;;  %v4497_v10 = vadd.f32 %v15142_v5, %v12044_v40  ;;  %v4502_v14 = vadd.f32 %v15143_v16, %v12059_v30  ;;  %v15148_v5 = vld [vmem:[#allocation114_spill] sm:$0xff] }
 0x3a8   : > { %v12676_v4 = vadd.f32 %v4773_v24, %v4496_v21  ;;  %v15144_v21 = vld [vmem:[#allocation142_spill] sm:$0xff]  ;;  %v12692_v24 = vpop.f32.mrf.mxu0  ;;  %v4503_v30 = vadd.f32 %v15148_v5, %v12076_v26  ;;  %v15154_v5 = vld [vmem:[#allocation168_spill] sm:$0xff] }
 0x3a9   : > { %v8591_v31 = vpop.f32.mrf.mxu1 }
 0x3aa   : > { %v12682_v17 = vadd.f32 %v8591_v31, %v4499_v7  ;;  %v15147_v7 = vld [vmem:[#allocation119_spill] sm:$0xff]  ;;  %v12704_v16 = vpop.f32.mrf.mxu0 }
 0x3ab   : > { %v4776_v44 = vpop.f32.mrf.mxu1  ;;  %v4500_v40 = vadd.f32 %v15147_v7, %v12069_v25 }
 0x3ac   : > { %v12686_v22 = vadd.f32 %v4776_v44, %v4497_v10 }
 0x3ad   : > { %v8594_v56 = vpop.f32.mrf.mxu1  ;;  %8769 = vmatmul.mubr.msk.bf16.gmra.mxu1 %vm1780_vm5, %v15144_v21 }
 0x3ae   : > { %v12694_v45 = vadd.f32 %v8594_v56, %v4502_v14  ;;  %8772 = vmatprep.mubr.msk.bf16.mxu1 %vm1780_vm5, %v15146_v3  ;;  %v15149_v14 = vld [vmem:[#allocation126_spill] sm:$0xff]  ;;  %v15151_v3 = vld [vmem:[#allocation289_spill] sm:$0xff] }
 0x3af   : > { %v4789_v31 = vpop.f32.mrf.mxu1  ;;  %v4501_v56 = vadd.f32 %v15149_v14, %v12083_v0  ;;  %v4506_v25 = vadd.f32 %v15151_v3, %v12098_v29  ;;  %v15156_v14 = vld [vmem:[#allocation134_spill] sm:$0xff] }
 0x3b0   : > { %15145 = vst [vmem:[#allocation294_spill] sm:$0xff] %v12694_v45  ;;  %v12700_v44 = vadd.f32 %v4789_v31, %v4500_v40  ;;  %v15152_v40 = vld [vmem:[#allocation158_spill] sm:$0xff]  ;;  %v12716_v31 = vpop.f32.mrf.mxu0  ;;  %v4507_v29 = vadd.f32 %v15156_v14, %v12115_v15 }
 0x3b1   : > { %v8595_v10 = vpop.f32.mrf.mxu1  ;;  %v15162_v14 = vld [vmem:[#allocation186_spill] sm:$0xff] }
 0x3b2   : > { %v12706_v21 = vadd.f32 %v8595_v10, %v4503_v30  ;;  %v15155_v30 = vld [vmem:[#allocation139_spill] sm:$0xff]  ;;  %v12728_v3 = vpop.f32.mrf.mxu0 }
 0x3b3   : > { %v4792_v60 = vpop.f32.mrf.mxu1  ;;  %v4504_v0 = vadd.f32 %v15155_v30, %v12108_v2 }
 0x3b4   : > { %v12710_v45 = vadd.f32 %v4792_v60, %v4501_v56 }
 0x3b5   : > { %v8598_v7 = vpop.f32.mrf.mxu1  ;;  %8773 = vmatmul.mubr.msk.bf16.gmra.mxu1 %vm1780_vm5, %v15152_v40 }
 0x3b6   : > { %15150 = vst [vmem:[#allocation296_spill] sm:$0xff] %v12710_v45  ;;  %v12718_v26 = vadd.f32 %v8598_v7, %v4506_v25  ;;  %8776 = vmatprep.mubr.msk.bf16.mxu1 %vm1780_vm5, %v15154_v5  ;;  %v15157_v25 = vld [vmem:[#allocation123_spill] sm:$0xff]  ;;  %v15159_v5 = vld [vmem:[#allocation141_spill] sm:$0xff] }
 0x3b7   : > { %v4805_v10 = vpop.f32.mrf.mxu1  ;;  %v4505_v7 = vadd.f32 %v15157_v25, %v12124_v38  ;;  %v4510_v2 = vadd.f32 %v15159_v5, %v12136_v1  ;;  %v15164_v25 = vld [vmem:[#allocation291_spill] sm:$0xff] }
 0x3b8   : > { %15153 = vst [vmem:[#allocation177_spill] sm:$0xff] %v12718_v26  ;;  %v12724_v60 = vadd.f32 %v4805_v10, %v4504_v0  ;;  %v15160_v0 = vld [vmem:[#allocation179_spill] sm:$0xff]  ;;  %v12740_v10 = vpop.f32.mrf.mxu0  ;;  %v4511_v1 = vadd.f32 %v15164_v25, %v12153_v37  ;;  %v15170_v25 = vld [vmem:[#allocation206_spill] sm:$0xff] }
 0x3b9   : > { %v8599_v56 = vpop.f32.mrf.mxu1 }
 0x3ba   : > { %v12730_v40 = vadd.f32 %v8599_v56, %v4507_v29  ;;  %v15163_v29 = vld [vmem:[#allocation147_spill] sm:$0xff]  ;;  %v12752_v5 = vpop.f32.mrf.mxu0 }
 0x3bb   : > { %v4808_v26 = vpop.f32.mrf.mxu1  ;;  %v4508_v38 = vadd.f32 %v15163_v29, %v12146_v33 }
 0x3bc   : > { %v12734_v45 = vadd.f32 %v4808_v26, %v4505_v7 }
 0x3bd   : > { %v8602_v30 = vpop.f32.mrf.mxu1  ;;  %8777 = vmatmul.mubr.msk.bf16.gmra.mxu1 %vm1780_vm5, %v15160_v0 }
 0x3be   : > { %15158 = vst [vmem:[#allocation234_spill] sm:$0xff] %v12734_v45  ;;  %v12742_v15 = vadd.f32 %v8602_v30, %v4510_v2  ;;  %8780 = vmatprep.mubr.msk.bf16.mxu1 %vm1780_vm5, %v15162_v14  ;;  %v15165_v2 = vld [vmem:[#allocation140_spill] sm:$0xff]  ;;  %v15167_v14 = vld [vmem:[#allocation154_spill] sm:$0xff] }
 0x3bf   : > { %v4821_v56 = vpop.f32.mrf.mxu1  ;;  %v4509_v30 = vadd.f32 %v15165_v2, %v12160_v49  ;;  %v4514_v33 = vadd.f32 %v15167_v14, %v12175_v59  ;;  %v15172_v2 = vld [vmem:[#allocation167_spill] sm:$0xff] }
 0x3c0   : > { %15161 = vst [vmem:[#allocation233_spill] sm:$0xff] %v12742_v15  ;;  %v12748_v26 = vadd.f32 %v4821_v56, %v4508_v38  ;;  %v15168_v38 = vld [vmem:[#allocation193_spill] sm:$0xff]  ;;  %v12764_v56 = vpop.f32.mrf.mxu0  ;;  %v4515_v59 = vadd.f32 %v15172_v2, %v12192_v50  ;;  %v15178_v2 = vld [vmem:[#allocation218_spill] sm:$0xff] }
 0x3c1   : > { %v8603_v7 = vpop.f32.mrf.mxu1 }
 0x3c2   : > { %v12754_v0 = vadd.f32 %v8603_v7, %v4511_v1  ;;  %v15171_v1 = vld [vmem:[#allocation161_spill] sm:$0xff]  ;;  %v12776_v14 = vpop.f32.mrf.mxu0 }
 0x3c3   : > { %v4824_v15 = vpop.f32.mrf.mxu1  ;;  %v4512_v49 = vadd.f32 %v15171_v1, %v12185_v46 }
 0x3c4   : > { %v12758_v45 = vadd.f32 %v4824_v15, %v4509_v30 }
 0x3c5   : > { %v8606_v29 = vpop.f32.mrf.mxu1  ;;  %8781 = vmatmul.mubr.msk.bf16.gmra.mxu1 %vm1780_vm5, %v15168_v38 }
 0x3c6   : > { %15166 = vst [vmem:[#allocation250_spill] sm:$0xff] %v12758_v45  ;;  %v12766_v37 = vadd.f32 %v8606_v29, %v4514_v33  ;;  %8784 = vmatprep.mubr.msk.bf16.mxu1 %vm1780_vm5, %v15170_v25  ;;  %v15173_v33 = vld [vmem:[#allocation178_spill] sm:$0xff]  ;;  %v15175_v25 = vld [vmem:[#allocation175_spill] sm:$0xff] }
 0x3c7   : > { %v4837_v7 = vpop.f32.mrf.mxu1  ;;  %v4513_v29 = vadd.f32 %v15173_v33, %v12199_v34  ;;  %v4518_v46 = vadd.f32 %v15175_v25, %v12212_v62  ;;  %v15180_v33 = vld [vmem:[#allocation199_spill] sm:$0xff] }
 0x3c8   : > { %15169 = vst [vmem:[#allocation298_spill] sm:$0xff] %v12766_v37  ;;  %v12772_v15 = vadd.f32 %v4837_v7, %v4512_v49  ;;  %v15176_v49 = vld [vmem:[#allocation208_spill] sm:$0xff]  ;;  %v12788_v7 = vpop.f32.mrf.mxu0  ;;  %v4519_v62 = vadd.f32 %v15180_v33, %v12232_v51  ;;  %v15186_v33 = vld [vmem:[#allocation238_spill] sm:$0xff] }
 0x3c9   : > { %v8607_v30 = vpop.f32.mrf.mxu1 }
 0x3ca   : > { %v12778_v38 = vadd.f32 %v8607_v30, %v4515_v59  ;;  %v15179_v59 = vld [vmem:[#allocation185_spill] sm:$0xff]  ;;  %v12800_v25 = vpop.f32.mrf.mxu0 }
 0x3cb   : > { %v4840_v37 = vpop.f32.mrf.mxu1  ;;  %v4516_v34 = vadd.f32 %v15179_v59, %v12225_v20 }
 0x3cc   : > { %v12782_v45 = vadd.f32 %v4840_v37, %v4513_v29 }
 0x3cd   : > { %v8610_v1 = vpop.f32.mrf.mxu1  ;;  %8785 = vmatmul.mubr.msk.bf16.gmra.mxu1 %vm1780_vm5, %v15176_v49 }
 0x3ce   : > { %15174 = vst [vmem:[#allocation244_spill] sm:$0xff] %v12782_v45  ;;  %v12790_v50 = vadd.f32 %v8610_v1, %v4518_v46  ;;  %8788 = vmatprep.mubr.msk.bf16.mxu1 %vm1780_vm5, %v15178_v2  ;;  %v15181_v46 = vld [vmem:[#allocation192_spill] sm:$0xff]  ;;  %v15183_v2 = vld [vmem:[#allocation205_spill] sm:$0xff] }
 0x3cf   : > { %v4853_v30 = vpop.f32.mrf.mxu1  ;;  %v4517_v1 = vadd.f32 %v15181_v46, %v12239_v61  ;;  %v4522_v20 = vadd.f32 %v15183_v2, %v12252_v41  ;;  %v15188_v46 = vld [vmem:[#allocation204_spill] sm:$0xff] }
 0x3d0   : > { %15177 = vst [vmem:[#allocation229_spill] sm:$0xff] %v12790_v50  ;;  %v12796_v37 = vadd.f32 %v4853_v30, %v4516_v34  ;;  %v15184_v34 = vld [vmem:[#allocation231_spill] sm:$0xff]  ;;  %v12812_v30 = vpop.f32.mrf.mxu0  ;;  %v4523_v41 = vadd.f32 %v15188_v46, %v12272_v53 }
 0x3d1   : > { %v8611_v29 = vpop.f32.mrf.mxu1  ;;  %v15194_v46 = vld [vmem:[#allocation255_spill] sm:$0xff] }
 0x3d2   : > { %v12802_v49 = vadd.f32 %v8611_v29, %v4519_v62  ;;  %v15187_v62 = vld [vmem:[#allocation188_spill] sm:$0xff]  ;;  %v12824_v2 = vpop.f32.mrf.mxu0 }
 0x3d3   : > { %v4856_v50 = vpop.f32.mrf.mxu1  ;;  %v4520_v61 = vadd.f32 %v15187_v62, %v12265_v8 }
 0x3d4   : > { %v12806_v45 = vadd.f32 %v4856_v50, %v4517_v1 }
 0x3d5   : > { %v8614_v59 = vpop.f32.mrf.mxu1  ;;  %8789 = vmatmul.mubr.msk.bf16.gmra.mxu1 %vm1780_vm5, %v15184_v34 }
 0x3d6   : > { %15182 = vst [vmem:[#allocation256_spill] sm:$0xff] %v12806_v45  ;;  %v12814_v51 = vadd.f32 %v8614_v59, %v4522_v20  ;;  %8792 = vmatprep.mubr.msk.bf16.mxu1 %vm1780_vm5, %v15186_v33  ;;  %v15189_v20 = vld [vmem:[#allocation212_spill] sm:$0xff]  ;;  %v15191_v33 = vld [vmem:[#allocation222_spill] sm:$0xff] }
 0x3d7   : > { %v4869_v29 = vpop.f32.mrf.mxu1  ;;  %v4521_v59 = vadd.f32 %v15189_v20, %v12279_v11  ;;  %v4526_v8 = vadd.f32 %v15191_v33, %v12292_v27  ;;  %v15197_v20 = vld [vmem:[#allocation230_spill] sm:$0xff] }
 0x3d8   : > { %15185 = vst [vmem:[#allocation173_spill] sm:$0xff] %v12814_v51  ;;  %v12820_v50 = vadd.f32 %v4869_v29, %v4520_v61  ;;  %v15192_v61 = vld [vmem:[#allocation245_spill] sm:$0xff]  ;;  %v12836_v29 = vpop.f32.mrf.mxu0  ;;  %v4527_v27 = vadd.f32 %v15197_v20, %v12312_v48  ;;  %v15204_v20 = vld [vmem:[#allocation264_spill] sm:$0xff] }
 0x3d9   : > { %v8615_v1 = vpop.f32.mrf.mxu1 }
 0x3da   : > { %v12826_v34 = vadd.f32 %v8615_v1, %v4523_v41  ;;  %v15195_v41 = vld [vmem:[#allocation217_spill] sm:$0xff]  ;;  %v12848_v33 = vpop.f32.mrf.mxu0 }
 0x3db   : > { %v4872_v51 = vpop.f32.mrf.mxu1  ;;  %v4524_v11 = vadd.f32 %v15195_v41, %v12305_v9 }
 0x3dc   : > { %v12830_v45 = vadd.f32 %v4872_v51, %v4521_v59 }
 0x3dd   : > { %v8618_v62 = vpop.f32.mrf.mxu1  ;;  %8793 = vmatmul.mubr.msk.bf16.gmra.mxu1 %vm1780_vm5, %v15192_v61 }
 0x3de   : > { %15190 = vst [vmem:[#allocation297_spill] sm:$0xff] %v12830_v45  ;;  %v12838_v53 = vadd.f32 %v8618_v62, %v4526_v8  ;;  %8796 = vmatprep.mubr.msk.bf16.mxu1 %vm1780_vm5, %v15194_v46  ;;  %v15199_v8 = vld [vmem:[#allocation215_spill] sm:$0xff]  ;;  %v15201_v46 = vld [vmem:[#allocation225_spill] sm:$0xff] }
 0x3df   : > { %v4885_v1 = vpop.f32.mrf.mxu1  ;;  %v4525_v62 = vadd.f32 %v15199_v8, %v12319_v23  ;;  %v4530_v9 = vadd.f32 %v15201_v46, %v12332_v32  ;;  %v15207_v8 = vld [vmem:[#allocation249_spill] sm:$0xff] }
 0x3e0   : > { %15193 = vst [vmem:[#allocation242_spill] sm:$0xff] %v12838_v53  ;;  %v12844_v51 = vadd.f32 %v4885_v1, %v4524_v11  ;;  %v15202_v11 = vld [vmem:[#allocation257_spill] sm:$0xff]  ;;  %v12860_v1 = vpop.f32.mrf.mxu0  ;;  %v4531_v32 = vadd.f32 %v15207_v8, %v12352_v55  ;;  %v15214_v8 = vld [vmem:[#allocation271_spill] sm:$0xff] }
 0x3e1   : > { %v8619_v59 = vpop.f32.mrf.mxu1 }
 0x3e2   : > { %15196 = vst [vmem:[#allocation248_spill] sm:$0xff] %v12844_v51  ;;  %v12850_v61 = vadd.f32 %v8619_v59, %v4527_v27  ;;  %v15205_v27 = vld [vmem:[#allocation237_spill] sm:$0xff]  ;;  %v12872_v46 = vpop.f32.mrf.mxu0 }
 0x3e3   : > { %v4888_v53 = vpop.f32.mrf.mxu1  ;;  %v4528_v23 = vadd.f32 %v15205_v27, %v12345_v28 }
 0x3e4   : > { %15198 = vst [vmem:[#allocation258_spill] sm:$0xff] %v12850_v61  ;;  %v12854_v45 = vadd.f32 %v4888_v53, %v4525_v62 }
 0x3e5   : > { %v8622_v41 = vpop.f32.mrf.mxu1  ;;  %8797 = vmatmul.mubr.msk.bf16.gmra.mxu1 %vm1780_vm5, %v15202_v11 }
 0x3e6   : > { %15200 = vst [vmem:[#allocation254_spill] sm:$0xff] %v12854_v45  ;;  %v12862_v48 = vadd.f32 %v8622_v41, %v4530_v9  ;;  %8800 = vmatprep.mubr.msk.bf16.mxu1 %vm1780_vm5, %v15204_v20  ;;  %v15209_v9 = vld [vmem:[#allocation243_spill] sm:$0xff] }
 0x3e7   : > { %v4901_v59 = vpop.f32.mrf.mxu1  ;;  %v4529_v41 = vadd.f32 %v15209_v9, %v12361_v63  ;;  %v15211_v20 = vld [vmem:[#allocation239_spill] sm:$0xff]  ;;  %v15217_v9 = vld [vmem:[#allocation334_spill] sm:$0xff] }
 0x3e8   : > { %15203 = vst [vmem:[#allocation253_spill] sm:$0xff] %v12862_v48  ;;  %v12868_v53 = vadd.f32 %v4901_v59, %v4528_v23  ;;  %v4534_v28 = vadd.f32 %v15211_v20, %v12373_v47  ;;  %v15212_v23 = vld [vmem:[#allocation267_spill] sm:$0xff]  ;;  %v12884_v59 = vpop.f32.mrf.mxu0  ;;  %v4535_v47 = vadd.f32 %v15217_v9, %v12390_v19  ;;  %v15225_v19 = vld [vmem:[#allocation17_spill] sm:$0xff] }
 0x3e9   : > { %v8623_v62 = vpop.f32.mrf.mxu1 }
 0x3ea   : > { %15206 = vst [vmem:[#allocation263_spill] sm:$0xff] %v12868_v53  ;;  %v12874_v11 = vadd.f32 %v8623_v62, %v4531_v32  ;;  %v15215_v32 = vld [vmem:[#allocation333_spill] sm:$0xff]  ;;  %v12896_v20 = vpop.f32.mrf.mxu0 }
 0x3eb   : > { %v4904_v48 = vpop.f32.mrf.mxu1  ;;  %v4532_v63 = vadd.f32 %v15215_v32, %v12383_v35  ;;  %v15222_v32 = vld [vmem:[#allocation187_spill] sm:$0xff] }
 0x3ec   : > { %15208 = vst [vmem:[#allocation203_spill] sm:$0xff] %v12874_v11  ;;  %v12878_v45 = vadd.f32 %v4904_v48, %v4529_v41  ;;  %v15224_v11 = vld [vmem:[#allocation10_spill] sm:$0xff] }
 0x3ed   : > { %v8626_v27 = vpop.f32.mrf.mxu1  ;;  %8801 = vmatmul.mubr.msk.bf16.gmra.mxu1 %vm1780_vm5, %v15212_v23  ;;  %v15226_v9 = vpack.c.bf16 %v15224_v11, %v15225_v19  ;;  %v15232_v19 = vld [vmem:[#allocation339_spill] sm:$0xff] }
 0x3ee   : > { %15210 = vst [vmem:[#allocation195_spill] sm:$0xff] %v12878_v45  ;;  %v12886_v55 = vadd.f32 %v8626_v27, %v4534_v28  ;;  %8804 = vmatprep.mubr.msk.bf16.mxu1 %vm1780_vm5, %v15214_v8  ;;  %v15219_v28 = vld [vmem:[#allocation272_spill] sm:$0xff]  ;;  %v15221_v8 = vld [vmem:[#allocation293_spill] sm:$0xff] }
 0x3ef   : > { %v4917_v62 = vpop.f32.mrf.mxu1  ;;  %v4533_v27 = vadd.f32 %v15219_v28, %v12397_v18  ;;  %v4538_v35 = vadd.f32 %v15221_v8, %v12414_v43  ;;  %v15228_v18 = vld [vmem:[#allocation335_spill] sm:$0xff] }
 0x3f0   : > { %15213 = vst [vmem:[#allocation232_spill] sm:$0xff] %v12886_v55  ;;  %v12892_v48 = vadd.f32 %v4917_v62, %v4532_v63  ;;  %v15223_v63 = vld [vmem:[#allocation299_spill] sm:$0xff] }
 0x3f1   : > { %v8627_v41 = vpop.f32.mrf.mxu1  ;;  %v5569_v62 = vpack.c.bf16 %v15223_v63, %v15222_v32 }
 0x3f2   : > { %15216 = vst [vmem:[#allocation216_spill] sm:$0xff] %v12892_v48  ;;  %v12898_v23 = vadd.f32 %v8627_v41, %v4535_v47  ;;  %v12912_v47 = vpop.f32.mrf.mxu0 }
 0x3f3   : > { %v4920_v55 = vpop.f32.mrf.mxu1 }
 0x3f4   : > { %15218 = vst [vmem:[#allocation252_spill] sm:$0xff] %v12898_v23  ;;  %v12902_v45 = vadd.f32 %v4920_v55, %v4533_v27  ;;  %v4536_v55 = vadd.f32 %v15228_v18, %v12426_v58  ;;  %v15230_v27 = vld [vmem:[#allocation337_spill] sm:$0xff]  ;;  %v12923_v63 = vpop.f32.mrf.mxu0 }
 0x3f5   : > { %v8630_v48 = vpop.f32.mrf.mxu1  ;;  %8805 = vmatmul.mubr.msk.bf16.gmra.mxu1 %vm1780_vm5, %v15226_v9  ;;  %v4539_v8 = vadd.f32 %v15230_v27, %v12433_v39 }
 0x3f6   : > { %15220 = vst [vmem:[#allocation261_spill] sm:$0xff] %v12902_v45  ;;  %v12914_v41 = vadd.f32 %v8630_v48, %v4538_v35  ;;  %8808 = vmatprep.mubr.msk.bf16.mxu1 %vm1780_vm5, %v5569_v62  ;;  %v4537_v48 = vadd.f32 %v15232_v19, %v12440_v52  ;;  %v15234_v62 = vld [vmem:[#allocation172_spill] sm:$0xff]  ;;  %v12937_v39 = vpop.f32.mrf.mxu0 }
 0x3f7   : > { %v4933_v28 = vpop.f32.mrf.mxu1 }
 0x3f8   : > { %15227 = vst [vmem:[#allocation301_spill] sm:$0xff] %v12914_v41  ;;  %v12919_v43 = vadd.f32 %v4933_v28, %v4536_v55  ;;  %v15235_v41 = vld [vmem:[#allocation13_spill] sm:$0xff]  ;;  %v15236_v55 = vld [vmem:[#allocation262_spill] sm:$0xff] }
 0x3f9   : > { %v8631_v32 = vpop.f32.mrf.mxu1  ;;  %v4542_v58 = vadd.f32 %v15235_v41, %v15234_v62  ;;  %v15237_v28 = vld [vmem:[#allocation265_spill] sm:$0xff]  ;;  %v12947_v62 = vpop.f32.mrf.mxu0 }
 0x3fa   : > { %15229 = vst [vmem:[#allocation214_spill] sm:$0xff] %v12919_v43  ;;  %v12925_v11 = vadd.f32 %v8631_v32, %v4539_v8  ;;  %v15238_v43 = vpack.c.bf16 %v15236_v55, %v15237_v28  ;;  %v15240_v8 = vld [vmem:[#allocation279_spill] sm:$0xff]  ;;  %v15241_v32 = vld [vmem:[#allocation340_spill] sm:$0xff]  ;;  %v15246_v55 = vld [vmem:[#allocation277_spill] sm:$0xff] }
 0x3fb   : > { %v4936_v35 = vpop.f32.mrf.mxu1 }
 0x3fc   : > { %15231 = vst [vmem:[#allocation259_spill] sm:$0xff] %v12925_v11  ;;  %v12929_v9 = vadd.f32 %v4936_v35, %v4537_v48  ;;  %v4540_v11 = vadd.f32 %v15241_v32, %v15240_v8  ;;  %v15243_v48 = vld [vmem:[#allocation89_spill] sm:$0xff]  ;;  %v15244_v35 = vld [vmem:[#allocation342_spill] sm:$0xff] }
 0x3fd   : > { %v8634_v18 = vpop.f32.mrf.mxu1  ;;  %8809 = vmatmul.mubr.msk.bf16.gmra.mxu1 %vm1780_vm5, %v15238_v43  ;;  %v15247_v43 = vld [vmem:[#allocation344_spill] sm:$0xff] }
 0x3fe   : > { %15233 = vst [vmem:[#allocation260_spill] sm:$0xff] %v12929_v9  ;;  %v12939_v27 = vadd.f32 %v8634_v18, %v4542_v58  ;;  %v4543_v9 = vadd.f32 %v15244_v35, %v15243_v48  ;;  %v4541_v28 = vadd.f32 %v15247_v43, %v15246_v55  ;;  %v15249_v18 = vld [vmem:[#allocation280_spill] sm:$0xff]  ;;  %v15253_v35 = vld [vmem:[#allocation14_spill] sm:$0xff] }
 0x3ff   : > { %v4949_v52 = vpop.f32.mrf.mxu1  ;;  %v15252_v48 = vld [vmem:[#allocation120_spill] sm:$0xff] }
 0x400   : > { %15239 = vst [vmem:[#allocation268_spill] sm:$0xff] %v12939_v27  ;;  %v12943_v19 = vadd.f32 %v4949_v52, %v4540_v11  ;;  %v15250_v27 = vld [vmem:[#allocation26_spill] sm:$0xff]  ;;  %v12957_v11 = vpop.f32.mrf.mxu0 }
 0x401   : > { %v8635_v41 = vpop.f32.mrf.mxu1  ;;  %v4546_v8 = vadd.f32 %v15250_v27, %v15249_v18  ;;  %v15258_v27 = vld [vmem:[#allocation181_spill] sm:$0xff]  ;;  %v15259_v18 = vld [vmem:[#allocation346_spill] sm:$0xff] }
 0x402   : > { %15242 = vst [vmem:[#allocation303_spill] sm:$0xff] %v12943_v19  ;;  %v12949_v45 = vadd.f32 %v8635_v41, %v4543_v9  ;;  %v4544_v19 = vadd.f32 %v15253_v35, %v15252_v48  ;;  %v15255_v41 = vld [vmem:[#allocation190_spill] sm:$0xff] }
 0x403   : > { %v4952_v23 = vpop.f32.mrf.mxu1 }
 0x404   : > { %15245 = vst [vmem:[#allocation270_spill] sm:$0xff] %v12949_v45  ;;  %v12953_v58 = vadd.f32 %v4952_v23, %v4541_v28  ;;  %v15256_v45 = vld [vmem:[#allocation39_spill] sm:$0xff]  ;;  %v12967_v23 = vpop.f32.mrf.mxu0 }
 0x405   : > { %v8638_v32 = vpop.f32.mrf.mxu1  ;;  %v4547_v55 = vadd.f32 %v15256_v45, %v15255_v41  ;;  %v15265_v45 = vld [vmem:[#allocation102_spill] sm:$0xff]  ;;  %v15266_v41 = vld [vmem:[#allocation29_spill] sm:$0xff] }
 0x406   : > { %15248 = vst [vmem:[#allocation226_spill] sm:$0xff] %v12953_v58  ;;  %v12959_v52 = vadd.f32 %v8638_v32, %v4546_v8  ;;  %v4545_v58 = vadd.f32 %v15259_v18, %v15258_v27  ;;  %v15261_v32 = vld [vmem:[#allocation285_spill] sm:$0xff] }
 0x407   : > { %v4965_v53 = vpop.f32.mrf.mxu1 }
 0x408   : > { %15251 = vst [vmem:[#allocation305_spill] sm:$0xff] %v12959_v52  ;;  %v12963_v9 = vadd.f32 %v4965_v53, %v4544_v19  ;;  %v15262_v52 = vld [vmem:[#allocation43_spill] sm:$0xff]  ;;  %v12977_v53 = vpop.f32.mrf.mxu0 }
 0x409   : > { %v8639_v43 = vpop.f32.mrf.mxu1  ;;  %v4550_v48 = vadd.f32 %v15262_v52, %v15261_v32  ;;  %15263 = vst [vmem:[#allocation304_spill] sm:$0xff] %v12977_v53  ;;  %v15272_v52 = vld [vmem:[#allocation133_spill] sm:$0xff]  ;;  %v15273_v32 = vld [vmem:[#allocation348_spill] sm:$0xff] }
 0x40a   : > { %15254 = vst [vmem:[#allocation210_spill] sm:$0xff] %v12963_v9  ;;  %v12969_v28 = vadd.f32 %v8639_v43, %v4547_v55  ;;  %v4548_v9 = vadd.f32 %v15266_v41, %v15265_v45  ;;  %v15268_v43 = vld [vmem:[#allocation284_spill] sm:$0xff] }
 0x40b   : > { %v4968_v61 = vpop.f32.mrf.mxu1 }
 0x40c   : > { %15257 = vst [vmem:[#allocation302_spill] sm:$0xff] %v12969_v28  ;;  %v12973_v8 = vadd.f32 %v4968_v61, %v4545_v58  ;;  %v15269_v28 = vld [vmem:[#allocation58_spill] sm:$0xff]  ;;  %v12987_v61 = vpop.f32.mrf.mxu0 }
 0x40d   : > { %v8642_v35 = vpop.f32.mrf.mxu1  ;;  %v4551_v27 = vadd.f32 %v15269_v28, %v15268_v43  ;;  %15270 = vst [vmem:[#allocation241_spill] sm:$0xff] %v12987_v61  ;;  %v15279_v28 = vld [vmem:[#allocation194_spill] sm:$0xff]  ;;  %v15280_v43 = vld [vmem:[#allocation48_spill] sm:$0xff] }
 0x40e   : > { %15260 = vst [vmem:[#allocation224_spill] sm:$0xff] %v12973_v8  ;;  %v12979_v19 = vadd.f32 %v8642_v35, %v4550_v48  ;;  %v4549_v8 = vadd.f32 %v15273_v32, %v15272_v52  ;;  %v15275_v35 = vld [vmem:[#allocation128_spill] sm:$0xff] }
 0x40f   : > { %v4981_v51 = vpop.f32.mrf.mxu1 }
 0x410   : > { %15264 = vst [vmem:[#allocation240_spill] sm:$0xff] %v12979_v19  ;;  %v12983_v55 = vadd.f32 %v4981_v51, %v4548_v9  ;;  %v15276_v19 = vld [vmem:[#allocation60_spill] sm:$0xff]  ;;  %v12997_v51 = vpop.f32.mrf.mxu0 }
 0x411   : > { %v8643_v18 = vpop.f32.mrf.mxu1  ;;  %v4554_v45 = vadd.f32 %v15276_v19, %v15275_v35  ;;  %15277 = vst [vmem:[#allocation228_spill] sm:$0xff] %v12997_v51  ;;  %v15286_v19 = vld [vmem:[#allocation202_spill] sm:$0xff] }
 0x412   : > { %15267 = vst [vmem:[#allocation336_spill] sm:$0xff] %v12983_v55  ;;  %v12989_v58 = vadd.f32 %v8643_v18, %v4551_v27  ;;  %v4552_v55 = vadd.f32 %v15280_v43, %v15279_v28  ;;  %v15282_v18 = vld [vmem:[#allocation137_spill] sm:$0xff]  ;;  %v15287_v35 = vld [vmem:[#allocation350_spill] sm:$0xff] }
 0x413   : > { %v4984_v53 = vpop.f32.mrf.mxu1 }
 0x414   : > { %15271 = vst [vmem:[#allocation269_spill] sm:$0xff] %v12989_v58  ;;  %v12993_v48 = vadd.f32 %v4984_v53, %v4549_v8  ;;  %v15283_v58 = vld [vmem:[#allocation71_spill] sm:$0xff]  ;;  %v13007_v8 = vpop.f32.mrf.mxu0 }
 0x415   : > { %v8646_v41 = vpop.f32.mrf.mxu1  ;;  %v4555_v52 = vadd.f32 %v15283_v58, %v15282_v18  ;;  %15284 = vst [vmem:[#allocation308_spill] sm:$0xff] %v13007_v8  ;;  %v15293_v58 = vld [vmem:[#allocation152_spill] sm:$0xff]  ;;  %v15294_v18 = vld [vmem:[#allocation61_spill] sm:$0xff] }
 0x416   : > { %15274 = vst [vmem:[#allocation166_spill] sm:$0xff] %v12993_v48  ;;  %v12999_v9 = vadd.f32 %v8646_v41, %v4554_v45  ;;  %v4553_v48 = vadd.f32 %v15287_v35, %v15286_v19  ;;  %v15289_v41 = vld [vmem:[#allocation288_spill] sm:$0xff] }
 0x417   : > { %v4997_v61 = vpop.f32.mrf.mxu1 }
 0x418   : > { %15278 = vst [vmem:[#allocation227_spill] sm:$0xff] %v12999_v9  ;;  %v13003_v27 = vadd.f32 %v4997_v61, %v4552_v55  ;;  %v15290_v9 = vld [vmem:[#allocation74_spill] sm:$0xff]  ;;  %v13017_v55 = vpop.f32.mrf.mxu0 }
 0x419   : > { %v8647_v32 = vpop.f32.mrf.mxu1  ;;  %v4558_v28 = vadd.f32 %v15290_v9, %v15289_v41  ;;  %15291 = vst [vmem:[#allocation201_spill] sm:$0xff] %v13017_v55  ;;  %v15299_v9 = vld [vmem:[#allocation170_spill] sm:$0xff]  ;;  %v15300_v41 = vld [vmem:[#allocation352_spill] sm:$0xff] }
 0x41a   : > { %15281 = vst [vmem:[#allocation191_spill] sm:$0xff] %v13003_v27  ;;  %v13009_v53 = vadd.f32 %v8647_v32, %v4555_v52  ;;  %v4556_v27 = vadd.f32 %v15294_v18, %v15293_v58  ;;  %v15296_v32 = vld [vmem:[#allocation290_spill] sm:$0xff] }
 0x41b   : > { %v5000_v51 = vpop.f32.mrf.mxu1 }
 0x41c   : > { %15285 = vst [vmem:[#allocation338_spill] sm:$0xff] %v13009_v53  ;;  %v13013_v45 = vadd.f32 %v5000_v51, %v4553_v48  ;;  %v15297_v53 = vld [vmem:[#allocation87_spill] sm:$0xff]  ;;  %v13027_v48 = vpop.f32.mrf.mxu0 }
 0x41d   : > { %v8650_v43 = vpop.f32.mrf.mxu1  ;;  %v4559_v19 = vadd.f32 %v15297_v53, %v15296_v32  ;;  %v15305_v53 = vld [vmem:[#allocation77_spill] sm:$0xff] }
 0x41e   : > { %15288 = vst [vmem:[#allocation189_spill] sm:$0xff] %v13013_v45  ;;  %v13019_v61 = vadd.f32 %v8650_v43, %v4558_v28  ;;  %v4557_v45 = vadd.f32 %v15300_v41, %v15299_v9  ;;  %v15302_v43 = vld [vmem:[#allocation211_spill] sm:$0xff]  ;;  %v4560_v32 = vadd.f32 %v15305_v53, %v12624_v57 }
 0x41f   : > { %v5013_v8 = vpop.f32.mrf.mxu1 }
 0x420   : > { %15292 = vst [vmem:[#allocation306_spill] sm:$0xff] %v13019_v61  ;;  %v13023_v52 = vadd.f32 %v5013_v8, %v4556_v27  ;;  %v15303_v61 = vld [vmem:[#allocation90_spill] sm:$0xff]  ;;  %v13037_v27 = vpop.f32.mrf.mxu0 }
 0x421   : > { %v8651_v35 = vpop.f32.mrf.mxu1  ;;  %v4562_v58 = vadd.f32 %v15303_v61, %v15302_v43  ;;  %v15309_v61 = vld [vmem:[#allocation221_spill] sm:$0xff]  ;;  %v15310_v43 = vld [vmem:[#allocation354_spill] sm:$0xff] }
 0x422   : > { %15295 = vst [vmem:[#allocation251_spill] sm:$0xff] %v13023_v52  ;;  %v13029_v51 = vadd.f32 %v8651_v35, %v4559_v19  ;;  %v15307_v35 = vld [vmem:[#allocation106_spill] sm:$0xff] }
 0x423   : > { %v5016_v55 = vpop.f32.mrf.mxu1  ;;  %v4563_v9 = vadd.f32 %v15307_v35, %v12631_v12  ;;  %v15315_v12 = vld [vmem:[#allocation95_spill] sm:$0xff] }
 0x424   : > { %15298 = vst [vmem:[#allocation9_spill] sm:$0xff] %v13029_v51  ;;  %v13033_v28 = vadd.f32 %v5016_v55, %v4557_v45  ;;  %v13047_v45 = vpop.f32.mrf.mxu0  ;;  %v4564_v35 = vadd.f32 %v15315_v12, %v12654_v54 }
 0x425   : > { %v8654_v18 = vpop.f32.mrf.mxu1 }
 0x426   : > { %15301 = vst [vmem:[#allocation307_spill] sm:$0xff] %v13033_v28  ;;  %v13039_v8 = vadd.f32 %v8654_v18, %v4562_v58  ;;  %v4561_v28 = vadd.f32 %v15310_v43, %v15309_v61  ;;  %v15312_v18 = vld [vmem:[#allocation153_spill] sm:$0xff] }
 0x427   : > { %v5029_v52 = vpop.f32.mrf.mxu1 }
 0x428   : > { %15304 = vst [vmem:[#allocation148_spill] sm:$0xff] %v13039_v8  ;;  %v13043_v19 = vadd.f32 %v5029_v52, %v4560_v32  ;;  %v15313_v8 = vld [vmem:[#allocation108_spill] sm:$0xff]  ;;  %v13057_v52 = vpop.f32.mrf.mxu0 }
 0x429   : > { %v8655_v41 = vpop.f32.mrf.mxu1  ;;  %v4566_v57 = vadd.f32 %v15313_v8, %v15312_v18  ;;  %v15319_v8 = vld [vmem:[#allocation165_spill] sm:$0xff] }
 0x42a   : > { %15306 = vst [vmem:[#allocation25_spill] sm:$0xff] %v13043_v19  ;;  %v13049_v55 = vadd.f32 %v8655_v41, %v4563_v9  ;;  %v15317_v41 = vld [vmem:[#allocation121_spill] sm:$0xff]  ;;  %v4565_v18 = vadd.f32 %v15319_v8, %v12662_v42  ;;  %v15323_v42 = vld [vmem:[#allocation118_spill] sm:$0xff] }
 0x42b   : > { %v5032_v51 = vpop.f32.mrf.mxu1  ;;  %v4567_v61 = vadd.f32 %v15317_v41, %v12657_v6  ;;  %v15322_v6 = vld [vmem:[#allocation15_spill] sm:$0xff] }
 0x42c   : > { %15308 = vst [vmem:[#allocation247_spill] sm:$0xff] %v13049_v55  ;;  %v13053_v58 = vadd.f32 %v5032_v51, %v4561_v28  ;;  %v13067_v51 = vpop.f32.mrf.mxu0  ;;  %v5482_v41 = vadd.f32 %v15322_v6, %v12676_v4 }
 0x42d   : > { %v8658_v53 = vpop.f32.mrf.mxu1 }
 0x42e   : > { %15311 = vst [vmem:[#allocation145_spill] sm:$0xff] %v13053_v58  ;;  %v13059_v32 = vadd.f32 %v8658_v53, %v4566_v57  ;;  %v15321_v53 = vld [vmem:[#allocation109_spill] sm:$0xff] }
 0x42f   : > { %v5045_v19 = vpop.f32.mrf.mxu1  ;;  %v5484_v54 = vadd.f32 %v15321_v53, %v12670_v36 }
 0x430   : > { %15314 = vst [vmem:[#allocation341_spill] sm:$0xff] %v13059_v32  ;;  %v13063_v9 = vadd.f32 %v5045_v19, %v4564_v35  ;;  %v13077_v19 = vpop.f32.mrf.mxu0  ;;  %v15326_v32 = vld [vmem:[#allocation131_spill] sm:$0xff] }
 0x431   : > { %v8659_v43 = vpop.f32.mrf.mxu1 }
 0x432   : > { %15316 = vst [vmem:[#allocation309_spill] sm:$0xff] %v13063_v9  ;;  %v13069_v28 = vadd.f32 %v8659_v43, %v4567_v61  ;;  %v13081_v9 = vld [vmem:[#allocation5] ss:$0 sm:$0xff] }
 0x433   : > { %v5048_v58 = vpop.f32.mrf.mxu1 }
 0x434   : > { %15318 = vst [vmem:[#allocation300_spill] sm:$0xff] %v13069_v28  ;;  %v13073_v57 = vadd.f32 %v5048_v58, %v4565_v18  ;;  %v5485_v58 = vadd.f32 %v15323_v42, %v12682_v17  ;;  %v13086_v18 = vpop.f32.mrf.mxu0 }
 0x435   : > { %v8742_v12 = vpop.f32.mrf.mxu1 }
 0x436   : > { %15320 = vst [vmem:[#allocation266_spill] sm:$0xff] %v13073_v57  ;;  %v5920_v35 = vadd.f32 %v8742_v12, %v5484_v54  ;;  %v15324_v12 = vld [vmem:[#allocation122_spill] sm:$0xff] }
 0x437   : > { %v5631_v61 = vpop.f32.mrf.mxu1  ;;  %v5483_v4 = vadd.f32 %v15324_v12, %v12686_v22  ;;  %v15325_v57 = vld [vmem:[#allocation294_spill] sm:$0xff] }
 0x438   : > { %v6352_v43 = vadd.f32 %v12680_v13, %v5920_v35  ;;  %v5918_v28 = vadd.f32 %v5631_v61, %v5482_v41  ;;  %v5488_v13 = vadd.f32 %v15326_v32, %v15325_v57 }
 0x439   : > { %v8743_v8 = vpop.f32.mrf.mxu1 }
 0x43a   : > { %v6431_v36 = vadd.f32 %v13081_v9, %v6352_v43  ;;  %v6350_v53 = vadd.f32 %v12692_v24, %v5918_v28  ;;  %v5921_v54 = vadd.f32 %v8743_v8, %v5485_v58  ;;  %v15327_v43 = vld [vmem:[#allocation19_spill] sm:$0xff]  ;;  %v13098_v24 = vpop.f32.mrf.mxu0  ;;  %v15328_v8 = vld [vmem:[#allocation132_spill] sm:$0xff] }
 0x43b   : > { %v5634_v6 = vpop.f32.mrf.mxu1  ;;  %v5486_v55 = vadd.f32 %v15327_v43, %v12700_v44  ;;  %v15332_v43 = vld [vmem:[#allocation30_spill] sm:$0xff] }
 0x43c   : > { %v6503_v35 = vmax.f32 %v6431_v36, 0.0  ;;  %v6429_v41 = vadd.f32 %v13081_v9, %v6350_v53  ;;  %v6353_v17 = vadd.f32 %v12704_v16, %v5921_v54  ;;  %v5919_v61 = vadd.f32 %v5634_v6, %v5483_v4  ;;  %v15329_v4 = vld [vmem:[#allocation296_spill] sm:$0xff]  ;;  %v15330_v6 = vld [vmem:[#allocation11_spill] sm:$0xff] }
 0x43d   : > { %v8746_v42 = vpop.f32.mrf.mxu1  ;;  %v5489_v36 = vadd.f32 %v15328_v8, %v12706_v21 }
 0x43e   : > { %6576 = vst.msk [vmem:[#allocation2 + $0x10] sm:$0xff] %vm6573_vm6, %v6503_v35  ;;  %v6501_v22 = vmax.f32 %v6429_v41, 0.0  ;;  %v6432_v28 = vadd.f32 %v13081_v9, %v6353_v17  ;;  %v6351_v58 = vadd.f32 %v12716_v31, %v5919_v61  ;;  %v5924_v32 = vadd.f32 %v8746_v42, %v5488_v13  ;;  %v13110_v41 = vpop.f32.mrf.mxu0  ;;  %v15331_v42 = vld [vmem:[#allocation177_spill] sm:$0xff] }
 0x43f   : > { %v5647_v57 = vpop.f32.mrf.mxu1  ;;  %v5487_v35 = vadd.f32 %v15330_v6, %v15329_v4  ;;  %v15334_v6 = vld [vmem:[#allocation24_spill] sm:$0xff] }
 0x440   : > { %6574 = vst.msk [vmem:[#allocation2] sm:$0xff] %vm6573_vm6, %v6501_v22  ;;  %v6504_v16 = vmax.f32 %v6432_v28, 0.0  ;;  %v6430_v53 = vadd.f32 %v13081_v9, %v6351_v58  ;;  %v6356_v44 = vadd.f32 %v12728_v3, %v5924_v32  ;;  %v5922_v54 = vadd.f32 %v5647_v57, %v5486_v55  ;;  %v15333_v57 = vld [vmem:[#allocation12_spill] sm:$0xff] }
 0x441   : > { %v8747_v12 = vpop.f32.mrf.mxu1  ;;  %v5492_v22 = vadd.f32 %v15332_v43, %v15331_v42  ;;  %v5490_v8 = vadd.f32 %v15333_v57, %v12724_v60  ;;  %v15335_v42 = vld [vmem:[#allocation234_spill] sm:$0xff]  ;;  %v15336_v43 = vld [vmem:[#allocation41_spill] sm:$0xff] }
 0x442   : > { %6577 = vst.msk [vmem:[#allocation2 + $0x18] sm:$0xff] %vm6573_vm6, %v6504_v16  ;;  %v6502_v31 = vmax.f32 %v6430_v53, 0.0  ;;  %v6435_v13 = vadd.f32 %v13081_v9, %v6356_v44  ;;  %v6354_v21 = vadd.f32 %v12740_v10, %v5922_v54  ;;  %v5925_v17 = vadd.f32 %v8747_v12, %v5489_v36  ;;  %v13122_v16 = vpop.f32.mrf.mxu0 }
 0x443   : > { %v5650_v61 = vpop.f32.mrf.mxu1 }
 0x444   : > { %6575 = vst.msk [vmem:[#allocation2 + $0x8] sm:$0xff] %vm6573_vm6, %v6502_v31  ;;  %v6507_v3 = vmax.f32 %v6435_v13, 0.0  ;;  %v6433_v55 = vadd.f32 %v13081_v9, %v6354_v21  ;;  %v6357_v28 = vadd.f32 %v12752_v5, %v5925_v17  ;;  %v5923_v58 = vadd.f32 %v5650_v61, %v5487_v35  ;;  %v13132_v13 = vpop.f32.mrf.mxu0 }
 0x445   : > { %v8750_v32 = vpop.f32.mrf.mxu1  ;;  %v5493_v35 = vadd.f32 %v15334_v6, %v12730_v40 }
 0x446   : > { %6580 = vst.msk [vmem:[#allocation2 + $0x30] sm:$0xff] %vm6573_vm6, %v6507_v3  ;;  %v6505_v10 = vmax.f32 %v6433_v55, 0.0  ;;  %v6436_v36 = vadd.f32 %v13081_v9, %v6357_v28  ;;  %v6355_v53 = vadd.f32 %v12764_v56, %v5923_v58  ;;  %v5928_v44 = vadd.f32 %v8750_v32, %v5492_v22  ;;  %v15337_v55 = vld [vmem:[#allocation233_spill] sm:$0xff] }
 0x447   : > { %v5663_v54 = vpop.f32.mrf.mxu1  ;;  %v15338_v28 = vld [vmem:[#allocation53_spill] sm:$0xff] }
 0x448   : > { %6578 = vst.msk [vmem:[#allocation2 + $0x20] sm:$0xff] %vm6573_vm6, %v6505_v10  ;;  %v6508_v5 = vmax.f32 %v6436_v36, 0.0  ;;  %v6434_v12 = vadd.f32 %v13081_v9, %v6355_v53  ;;  %v6360_v4 = vadd.f32 %v12776_v14, %v5928_v44  ;;  %v5926_v60 = vadd.f32 %v5663_v54, %v5490_v8  ;;  %v13145_v10 = vpop.f32.mrf.mxu0  ;;  %v15340_v54 = vld [vmem:[#allocation28_spill] sm:$0xff] }
 0x449   : > { %v8751_v31 = vpop.f32.mrf.mxu1  ;;  %v5491_v14 = vadd.f32 %v15336_v43, %v15335_v42  ;;  %v5496_v58 = vadd.f32 %v15338_v28, %v15337_v55  ;;  %v6720_v36 = vld [vmem:[#allocation2 + $0x11] ss:$2 sm:$0xff] }
 0x44a   : > { %6581 = vst.msk [vmem:[#allocation2 + $0x38] sm:$0xff] %vm6573_vm6, %v6508_v5  ;;  %v6506_v56 = vmax.f32 %v6434_v12, 0.0  ;;  %v6439_v21 = vadd.f32 %v13081_v9, %v6360_v4  ;;  %v6358_v17 = vadd.f32 %v12788_v7, %v5926_v60  ;;  %v5929_v61 = vadd.f32 %v8751_v31, %v5493_v35  ;;  %v6648_v7 = vld [vmem:[#allocation2 + $0x10] ss:$2 sm:$0xff]  ;;  %v15341_v35 = vld [vmem:[#allocation125_spill] sm:$0xff]  ;;  %v13163_v42 = vpop.f32.mrf.mxu0 }
 0x44b   : > { %v5666_v22 = vpop.f32.mrf.mxu1  ;;  %v5497_v31 = vadd.f32 %v15341_v35, %v12754_v0  ;;  %v15344_v28 = vld [vmem:[#allocation298_spill] sm:$0xff] }
 0x44c   : > { %6579 = vst.msk [vmem:[#allocation2 + $0x28] sm:$0xff] %vm6573_vm6, %v6506_v56  ;;  %v6511_v40 = vmax.f32 %v6439_v21, 0.0  ;;  %v6437_v3 = vadd.f32 %v13081_v9, %v6358_v17  ;;  %v6361_v32 = vadd.f32 %v12800_v25, %v5929_v61  ;;  %v5927_v57 = vadd.f32 %v5666_v22, %v5491_v14  ;;  %v15342_v22 = vld [vmem:[#allocation250_spill] sm:$0xff] }
 0x44d   : > { %v8754_v8 = vpop.f32.mrf.mxu1  ;;  %v5494_v25 = vadd.f32 %v15340_v54, %v12748_v26  ;;  %v6790_v56 = vmax.f32 %v6648_v7, %v6720_v36 }
 0x44e   : > { %6584 = vst.msk [vmem:[#allocation2 + $0x50] sm:$0xff] %vm6573_vm6, %v6511_v40  ;;  %v6509_v53 = vmax.f32 %v6437_v3, 0.0  ;;  %v5932_v44 = vadd.f32 %v8754_v8, %v5496_v58  ;;  %v6440_v5 = vadd.f32 %v13081_v9, %v6361_v32  ;;  %v6359_v12 = vadd.f32 %v12812_v30, %v5927_v57  ;;  %v15343_v40 = vld [vmem:[#allocation138_spill] sm:$0xff] }
 0x44f   : > { %v5679_v4 = vpop.f32.mrf.mxu1  ;;  %v5495_v3 = vadd.f32 %v15343_v40, %v15342_v22  ;;  %v15345_v58 = vld [vmem:[#allocation130_spill] sm:$0xff] }
 0x450   : > { %6582 = vst.msk [vmem:[#allocation2 + $0x40] sm:$0xff] %vm6573_vm6, %v6509_v53  ;;  %v6364_v60 = vadd.f32 %v12824_v2, %v5932_v44  ;;  %v5930_v6 = vadd.f32 %v5679_v4, %v5494_v25  ;;  %v6512_v21 = vmax.f32 %v6440_v5, 0.0  ;;  %v6438_v17 = vadd.f32 %v13081_v9, %v6359_v12  ;;  %v6646_v57 = vld [vmem:[#allocation2] ss:$2 sm:$0xff]  ;;  %v6718_v8 = vld [vmem:[#allocation2 + $0x1] ss:$2 sm:$0xff]  ;;  %v13181_v5 = vpop.f32.mrf.mxu0 }
 0x451   : > { %v8755_v61 = vpop.f32.mrf.mxu1  ;;  %v5500_v32 = vadd.f32 %v15345_v58, %v15344_v28  ;;  %v6827_v44 = vrot.slane %v6790_v56, 4  ;;  %v6789_v35 = vmax.f32 %v6646_v57, %v6718_v8  ;;  %v15348_v28 = vld [vmem:[#allocation244_spill] sm:$0xff]  ;;  %v15349_v58 = vld [vmem:[#allocation27_spill] sm:$0xff] }
 0x452   : > { %v6443_v26 = vadd.f32 %v13081_v9, %v6364_v60  ;;  %v6362_v30 = vadd.f32 %v12836_v29, %v5930_v6  ;;  %v5933_v2 = vadd.f32 %v8755_v61, %v5497_v31  ;;  %6585 = vst.msk [vmem:[#allocation2 + $0x58] sm:$0xff] %vm6573_vm6, %v6512_v21  ;;  %v6510_v0 = vmax.f32 %v6438_v17, 0.0  ;;  %v15347_v61 = vld [vmem:[#allocation144_spill] sm:$0xff] }
 0x453   : > { %v6650_v43 = vld [vmem:[#allocation2 + $0x20] ss:$2 sm:$0xff]  ;;  %v6722_v14 = vld [vmem:[#allocation2 + $0x21] ss:$2 sm:$0xff]  ;;  %v5682_v55 = vpop.f32.mrf.mxu1  ;;  %v6652_v57 = vld [vmem:[#allocation2 + $0x30] ss:$2 sm:$0xff] }
 0x454   : > { %v6791_v7 = vmax.f32 %v6650_v43, %v6722_v14  ;;  %v6515_v36 = vmax.f32 %v6443_v26, 0.0  ;;  %v6441_v29 = vadd.f32 %v13081_v9, %v6362_v30  ;;  %v6365_v53 = vadd.f32 %v12848_v33, %v5933_v2  ;;  %6583 = vst.msk [vmem:[#allocation2 + $0x48] sm:$0xff] %vm6573_vm6, %v6510_v0  ;;  %v15346_v33 = vld [vmem:[#allocation129_spill] sm:$0xff]  ;;  %v6724_v8 = vld [vmem:[#allocation2 + $0x31] ss:$2 sm:$0xff] }
 0x455   : > { %v5931_v54 = vadd.f32 %v5682_v55, %v5495_v3  ;;  %v8758_v25 = vpop.f32.mrf.mxu1  ;;  %v5498_v21 = vadd.f32 %v15346_v33, %v12772_v15  ;;  %v5501_v26 = vadd.f32 %v15347_v61, %v12778_v38  ;;  %v13200_v38 = vpop.f32.mrf.mxu0 }
 0x456   : > { %v6828_v12 = vrot.slane %v6791_v7, 4  ;;  %6588 = vst.msk [vmem:[#allocation2 + $0x70] sm:$0xff] %vm6573_vm6, %v6515_v36  ;;  %v6513_v4 = vmax.f32 %v6441_v29, 0.0  ;;  %v6444_v60 = vadd.f32 %v13081_v9, %v6365_v53  ;;  %v5936_v6 = vadd.f32 %v8758_v25, %v5500_v32 }
 0x457   : > { %v6363_v31 = vadd.f32 %v12860_v1, %v5931_v54  ;;  %v5695_v17 = vpop.f32.mrf.mxu1  ;;  %v5499_v32 = vadd.f32 %v15349_v58, %v15348_v28  ;;  %v13216_v61 = vpop.f32.mrf.mxu0 }
 0x458   : > { %v6829_v30 = vsel %vm790_vm0, %v6827_v44, %v6828_v12  ;;  %v6833_v2 = vmax.f32 %v6790_v56, %v6828_v12  ;;  %6586 = vst.msk [vmem:[#allocation2 + $0x60] sm:$0xff] %vm6573_vm6, %v6513_v4  ;;  %v6516_v43 = vmax.f32 %v6444_v60, 0.0  ;;  %v6368_v14 = vadd.f32 %v12872_v46, %v5936_v6  ;;  %v15350_v6 = vld [vmem:[#allocation229_spill] sm:$0xff] }
 0x459   : > { %v6832_v1 = vmax.f32 %v6789_v35, %v6829_v30  ;;  %v6442_v15 = vadd.f32 %v13081_v9, %v6363_v31  ;;  %v5934_v0 = vadd.f32 %v5695_v17, %v5498_v21  ;;  %v8759_v22 = vpop.f32.mrf.mxu1  ;;  %v6656_v40 = vld [vmem:[#allocation2 + $0x50] ss:$2 sm:$0xff]  ;;  %v6728_v3 = vld [vmem:[#allocation2 + $0x51] ss:$2 sm:$0xff]  ;;  %v15351_v35 = vld [vmem:[#allocation157_spill] sm:$0xff]  ;;  %v13229_v58 = vpop.f32.mrf.mxu0 }
 0x45a   : > { %v7680_v56 = vpack.c.bf16 %v6833_v2, %v6833_v2  ;;  %6589 = vst.msk [vmem:[#allocation2 + $0x78] sm:$0xff] %vm6573_vm6, %v6516_v43  ;;  %v6447_v46 = vadd.f32 %v13081_v9, %v6368_v14  ;;  %v5937_v55 = vadd.f32 %v8759_v22, %v5501_v26  ;;  %v6794_v36 = vmax.f32 %v6656_v40, %v6728_v3  ;;  %v15352_v2 = vld [vmem:[#allocation51_spill] sm:$0xff] }
 0x45b   : > { %v7679_v7 = vpack.c.bf16 %v6832_v1, %v6832_v1  ;;  %v6514_v29 = vmax.f32 %v6442_v15, 0.0  ;;  %v6366_v53 = vadd.f32 %v12884_v59, %v5934_v0  ;;  %v5698_v44 = vpop.f32.mrf.mxu1  ;;  %v6654_v54 = vld [vmem:[#allocation2 + $0x40] ss:$2 sm:$0xff]  ;;  %v6726_v25 = vld [vmem:[#allocation2 + $0x41] ss:$2 sm:$0xff]  ;;  %v5504_v31 = vadd.f32 %v15351_v35, %v15350_v6 }
 0x45c   : > { %6845 = vst.msk [vmem:[%s13197_s12 + $0x4] sm:$0x3] %vm6844_vm8, %v7680_v56  ;;  %v6519_v12 = vmax.f32 %v6447_v46, 0.0  ;;  %v6369_v4 = vadd.f32 %v12896_v20, %v5937_v55  ;;  %v5935_v60 = vadd.f32 %v5698_v44, %v5499_v32  ;;  %v6849_v33 = vrot.slane %v6794_v36, 4 }
 0x45d   : > { %6843 = vst.msk [vmem:[%s13197_s12] sm:$0xf] %vm6842_vm7, %v7679_v7  ;;  %v6793_v21 = vmax.f32 %v6654_v54, %v6726_v25  ;;  %v6445_v59 = vadd.f32 %v13081_v9, %v6366_v53  ;;  %v8762_v17 = vpop.f32.mrf.mxu1  ;;  %v5502_v43 = vadd.f32 %v15352_v2, %v12796_v37  ;;  %v6792_v14 = vmax.f32 %v6652_v57, %v6724_v8  ;;  %v15354_v7 = vld [vmem:[#allocation256_spill] sm:$0xff] }
 0x45e   : > { %6587 = vst.msk [vmem:[#allocation2 + $0x68] sm:$0xff] %vm6573_vm6, %v6514_v29  ;;  %6592 = vst.msk [vmem:[#allocation2 + $0x90] sm:$0xff] %vm6573_vm6, %v6519_v12  ;;  %v6448_v26 = vadd.f32 %v13081_v9, %v6369_v4  ;;  %v6367_v20 = vadd.f32 %v12912_v47, %v5935_v60  ;;  %v5940_v30 = vadd.f32 %v8762_v17, %v5504_v31  ;;  %v15353_v47 = vld [vmem:[#allocation50_spill] sm:$0xff]  ;;  %v15356_v4 = vld [vmem:[#allocation173_spill] sm:$0xff] }
 0x45f   : > { %v6848_v1 = vrot.slane %v6793_v21, 4  ;;  %v6854_v15 = vmax.f32 %v6793_v21, %v6849_v33  ;;  %v6517_v0 = vmax.f32 %v6445_v59, 0.0  ;;  %v5711_v22 = vpop.f32.mrf.mxu1  ;;  %v5505_v28 = vadd.f32 %v15353_v47, %v12802_v49  ;;  %v15357_v60 = vld [vmem:[#allocation73_spill] sm:$0xff]  ;;  %v13241_v21 = vpop.f32.mrf.mxu0 }
 0x460   : > { %v6520_v56 = vmax.f32 %v6448_v26, 0.0  ;;  %v6446_v40 = vadd.f32 %v13081_v9, %v6367_v20  ;;  %v6372_v3 = vadd.f32 %v12923_v63, %v5940_v30  ;;  %v5938_v46 = vadd.f32 %v5711_v22, %v5502_v43  ;;  %v15355_v63 = vld [vmem:[#allocation42_spill] sm:$0xff]  ;;  %v15363_v47 = vld [vmem:[#allocation65_spill] sm:$0xff] }
 0x461   : > { %v6850_v55 = vsel %vm790_vm0, %v6848_v1, %v6849_v33  ;;  %6590 = vst.msk [vmem:[#allocation2 + $0x80] sm:$0xff] %vm6573_vm6, %v6517_v0  ;;  %v8763_v37 = vpop.f32.mrf.mxu1  ;;  %v5503_v36 = vadd.f32 %v15355_v63, %v15354_v7  ;;  %v7682_v29 = vpack.c.bf16 %v6854_v15, %v6854_v15  ;;  %v5508_v6 = vadd.f32 %v15357_v60, %v15356_v4  ;;  %v15358_v26 = vld [vmem:[#allocation46_spill] sm:$0xff]  ;;  %v15366_v60 = vld [vmem:[#allocation151_spill] sm:$0xff] }
 0x462   : > { %v6853_v32 = vmax.f32 %v6792_v14, %v6850_v55  ;;  %6593 = vst.msk [vmem:[#allocation2 + $0x98] sm:$0xff] %vm6573_vm6, %v6520_v56  ;;  %v6518_v57 = vmax.f32 %v6446_v40, 0.0  ;;  %v6451_v8 = vadd.f32 %v13081_v9, %v6372_v3  ;;  %v6370_v53 = vadd.f32 %v12937_v39, %v5938_v46  ;;  %v6660_v2 = vld [vmem:[#allocation2 + $0x70] ss:$2 sm:$0xff]  ;;  %v6732_v43 = vld [vmem:[#allocation2 + $0x71] ss:$2 sm:$0xff] }
 0x463   : > { %v5941_v44 = vadd.f32 %v8763_v37, %v5505_v28  ;;  %v5714_v54 = vpop.f32.mrf.mxu1  ;;  %v5506_v20 = vadd.f32 %v15358_v26, %v12820_v50  ;;  %v15361_v40 = vld [vmem:[#allocation79_spill] sm:$0xff]  ;;  %v15362_v55 = vld [vmem:[#allocation297_spill] sm:$0xff]  ;;  %v13263_v37 = vpop.f32.mrf.mxu0  ;;  %v15365_v4 = vld [vmem:[#allocation242_spill] sm:$0xff] }
 0x464   : > { %v7681_v25 = vpack.c.bf16 %v6853_v32, %v6853_v32  ;;  %6591 = vst.msk [vmem:[#allocation2 + $0x88] sm:$0xff] %vm6573_vm6, %v6518_v57  ;;  %v6523_v49 = vmax.f32 %v6451_v8, 0.0  ;;  %v5939_v12 = vadd.f32 %v5714_v54, %v5503_v36  ;;  %v6449_v35 = vadd.f32 %v13081_v9, %v6370_v53 }
 0x465   : > { %v6373_v31 = vadd.f32 %v12947_v62, %v5941_v44  ;;  %v8766_v33 = vpop.f32.mrf.mxu1  ;;  %v6866_v62 = vrot.slane %v7682_v29, 6  ;;  %v5509_v3 = vadd.f32 %v15361_v40, %v12826_v34  ;;  %v5507_v28 = vadd.f32 %v15363_v47, %v15362_v55  ;;  %v15364_v34 = vld [vmem:[#allocation304_spill] sm:$0xff] }
 0x466   : > { %v6864_v39 = vrot.slane %v7681_v25, 6  ;;  %6596 = vst.msk [vmem:[#allocation2 + $0xb0] sm:$0xff] %vm6573_vm6, %v6523_v49  ;;  %v6371_v59 = vadd.f32 %v12957_v11, %v5939_v12  ;;  %v5944_v17 = vadd.f32 %v8766_v33, %v5508_v6  ;;  %v6521_v14 = vmax.f32 %v6449_v35, 0.0  ;;  %v6658_v44 = vld [vmem:[#allocation2 + $0x60] ss:$2 sm:$0xff] }
 0x467   : > { %v6452_v1 = vadd.f32 %v13081_v9, %v6373_v31  ;;  %v5727_v15 = vpop.f32.mrf.mxu1  ;;  %v6796_v57 = vmax.f32 %v6660_v2, %v6732_v43  ;;  %v6730_v54 = vld [vmem:[#allocation2 + $0x61] ss:$2 sm:$0xff]  ;;  %v5512_v6 = vadd.f32 %v15366_v60, %v15365_v4 }
 0x468   : > { %v6865_v0 = vrot.slane %v6864_v39, 4  ;;  %6871 = vst.msk [vmem:[%s13197_s12 + $0x4] sm:$0xc] %vm6870_vm11, %v6864_v39  ;;  %v6450_v11 = vadd.f32 %v13081_v9, %v6371_v59  ;;  %v6376_v50 = vadd.f32 %v12967_v23, %v5944_v17  ;;  %v5942_v22 = vadd.f32 %v5727_v15, %v5506_v20  ;;  %v15367_v31 = vld [vmem:[#allocation241_spill] sm:$0xff]  ;;  %v15368_v59 = vld [vmem:[#allocation248_spill] sm:$0xff]  ;;  %v15369_v17 = vld [vmem:[#allocation159_spill] sm:$0xff]  ;;  %v13279_v20 = vpop.f32.mrf.mxu0 }
 0x469   : > { %6594 = vst.msk [vmem:[#allocation2 + $0xa0] sm:$0xff] %vm6573_vm6, %v6521_v14  ;;  %v6524_v56 = vmax.f32 %v6452_v1, 0.0  ;;  %v8767_v46 = vpop.f32.mrf.mxu1  ;;  %v5510_v26 = vadd.f32 %v15369_v17, %v15368_v59  ;;  %v15370_v43 = vld [vmem:[#allocation228_spill] sm:$0xff]  ;;  %v6795_v15 = vmax.f32 %v6658_v44, %v6730_v54  ;;  %v15378_v59 = vld [vmem:[#allocation162_spill] sm:$0xff] }
 0x46a   : > { %v6867_v32 = vsel %vm13249_vm12, %v6865_v0, %v6866_v62  ;;  %v6522_v8 = vmax.f32 %v6450_v11, 0.0  ;;  %v6455_v23 = vadd.f32 %v13081_v9, %v6376_v50  ;;  %v6374_v36 = vadd.f32 %v15364_v34, %v5942_v22  ;;  %v15371_v22 = vld [vmem:[#allocation258_spill] sm:$0xff]  ;;  %v15373_v47 = vld [vmem:[#allocation308_spill] sm:$0xff]  ;;  %v15375_v34 = vld [vmem:[#allocation143_spill] sm:$0xff] }
 0x46b   : > { %6872 = vst.msk [vmem:[%s13197_s12 + $0x8] sm:$0xf] %vm6842_vm7, %v6867_v32  ;;  %v6662_v7 = vld [vmem:[#allocation2 + $0x80] ss:$2 sm:$0xff]  ;;  %v6734_v63 = vld [vmem:[#allocation2 + $0x81] ss:$2 sm:$0xff]  ;;  %v5945_v29 = vadd.f32 %v8767_v46, %v5509_v3  ;;  %v5730_v53 = vpop.f32.mrf.mxu1 }
 0x46c   : > { %6597 = vst.msk [vmem:[#allocation2 + $0xb8] sm:$0xff] %vm6573_vm6, %v6524_v56  ;;  %v6797_v25 = vmax.f32 %v6662_v7, %v6734_v63  ;;  %6595 = vst.msk [vmem:[#allocation2 + $0xa8] sm:$0xff] %vm6573_vm6, %v6522_v8  ;;  %v6527_v49 = vmax.f32 %v6455_v23, 0.0  ;;  %v5943_v12 = vadd.f32 %v5730_v53, %v5507_v28  ;;  %v6453_v35 = vadd.f32 %v13081_v9, %v6374_v36  ;;  %v15372_v56 = vld [vmem:[#allocation146_spill] sm:$0xff] }
 0x46d   : > { %v6377_v33 = vadd.f32 %v15367_v31, %v5945_v29  ;;  %v8770_v39 = vpop.f32.mrf.mxu1  ;;  %v6875_v62 = vrot.slane %v6796_v57, 4  ;;  %v5513_v40 = vadd.f32 %v15372_v56, %v15371_v22  ;;  %v15374_v63 = vld [vmem:[#allocation254_spill] sm:$0xff]  ;;  %v13292_v29 = vpop.f32.mrf.mxu0 }
 0x46e   : > { %v6876_v2 = vrot.slane %v6797_v25, 4  ;;  %6600 = vst.msk [vmem:[#allocation2 + $0xd0] sm:$0xff] %vm6573_vm6, %v6527_v49  ;;  %v6375_v14 = vadd.f32 %v15370_v43, %v5943_v12  ;;  %v5948_v1 = vadd.f32 %v8770_v39, %v5512_v6  ;;  %v6525_v0 = vmax.f32 %v6453_v35, 0.0  ;;  %v15376_v35 = vld [vmem:[#allocation201_spill] sm:$0xff]  ;;  %v15380_v22 = vld [vmem:[#allocation78_spill] sm:$0xff] }
 0x46f   : > { %v6456_v11 = vadd.f32 %v13081_v9, %v6377_v33  ;;  %v5743_v50 = vpop.f32.mrf.mxu1  ;;  %v5511_v36 = vadd.f32 %v15375_v34, %v15374_v63  ;;  %v15377_v39 = vld [vmem:[#allocation253_spill] sm:$0xff] }
 0x470   : > { %v6877_v3 = vsel %vm790_vm0, %v6875_v62, %v6876_v2  ;;  %v6881_v46 = vmax.f32 %v6796_v57, %v6876_v2  ;;  %v6454_v55 = vadd.f32 %v13081_v9, %v6375_v14  ;;  %v6380_v28 = vadd.f32 %v15373_v47, %v5948_v1  ;;  %6598 = vst.msk [vmem:[#allocation2 + $0xc0] sm:$0xff] %vm6573_vm6, %v6525_v0  ;;  %v6736_v62 = vld [vmem:[#allocation2 + $0x91] ss:$2 sm:$0xff] }
 0x471   : > { %v6880_v32 = vmax.f32 %v6795_v15, %v6877_v3  ;;  %v6528_v8 = vmax.f32 %v6456_v11, 0.0  ;;  %v5946_v23 = vadd.f32 %v5743_v50, %v5510_v26  ;;  %v8771_v7 = vpop.f32.mrf.mxu1  ;;  %v5516_v17 = vadd.f32 %v15378_v59, %v15377_v39  ;;  %v6664_v26 = vld [vmem:[#allocation2 + $0x90] ss:$2 sm:$0xff] }
 0x472   : > { %v7684_v53 = vpack.c.bf16 %v6881_v46, %v6881_v46  ;;  %v6526_v57 = vmax.f32 %v6454_v55, 0.0  ;;  %v6459_v25 = vadd.f32 %v13081_v9, %v6380_v28  ;;  %v5949_v49 = vadd.f32 %v8771_v7, %v5513_v40  ;;  %v15379_v50 = vld [vmem:[#allocation263_spill] sm:$0xff]  ;;  %v13308_v40 = vpop.f32.mrf.mxu0  ;;  %v15382_v7 = vld [vmem:[#allocation174_spill] sm:$0xff] }
 0x473   : > { %v6668_v44 = vld [vmem:[#allocation2 + $0xb0] ss:$2 sm:$0xff]  ;;  %v6740_v54 = vld [vmem:[#allocation2 + $0xb1] ss:$2 sm:$0xff]  ;;  %v7683_v12 = vpack.c.bf16 %v6880_v32, %v6880_v32  ;;  %v6666_v60 = vld [vmem:[#allocation2 + $0xa0] ss:$2 sm:$0xff]  ;;  %v6378_v31 = vadd.f32 %v15376_v35, %v5946_v23  ;;  %v5746_v33 = vpop.f32.mrf.mxu1  ;;  %v5514_v56 = vadd.f32 %v15380_v22, %v15379_v50  ;;  %v6798_v47 = vmax.f32 %v6664_v26, %v6736_v62 }
 0x474   : > { %v6800_v4 = vmax.f32 %v6668_v44, %v6740_v54  ;;  %v6738_v6 = vld [vmem:[#allocation2 + $0xa1] ss:$2 sm:$0xff]  ;;  %6601 = vst.msk [vmem:[#allocation2 + $0xd8] sm:$0xff] %vm6573_vm6, %v6528_v8  ;;  %6599 = vst.msk [vmem:[#allocation2 + $0xc8] sm:$0xff] %vm6573_vm6, %v6526_v57  ;;  %v6531_v43 = vmax.f32 %v6459_v25, 0.0  ;;  %v6381_v14 = vadd.f32 %v13027_v48, %v5949_v49  ;;  %v5947_v1 = vadd.f32 %v5746_v33, %v5511_v36  ;;  %v15381_v23 = vld [vmem:[#allocation203_spill] sm:$0xff]  ;;  %v13319_v25 = vpop.f32.mrf.mxu0 }
 0x475   : > { %6891 = vst.msk [vmem:[%s13197_s12 + $0x10] sm:$0x3] %vm6844_vm8, %v7684_v53  ;;  %v6799_v2 = vmax.f32 %v6666_v60, %v6738_v6  ;;  %v6457_v0 = vadd.f32 %v13081_v9, %v6378_v31  ;;  %v8774_v11 = vpop.f32.mrf.mxu1  ;;  %v5517_v63 = vadd.f32 %v15382_v7, %v15381_v23  ;;  %v15383_v60 = vld [vmem:[#allocation195_spill] sm:$0xff]  ;;  %v15384_v6 = vld [vmem:[#allocation54_spill] sm:$0xff]  ;;  %v15385_v62 = vld [vmem:[#allocation232_spill] sm:$0xff] }
 0x476   : > { %6890 = vst.msk [vmem:[%s13197_s12 + $0xc] sm:$0xf] %vm6842_vm7, %v7683_v12  ;;  %v6895_v15 = vrot.slane %v6800_v4, 4  ;;  %v6460_v46 = vadd.f32 %v13081_v9, %v6381_v14  ;;  %v6379_v55 = vadd.f32 %v13037_v27, %v5947_v1  ;;  %v5952_v48 = vadd.f32 %v8774_v11, %v5516_v17 }
 0x477   : > { %v6894_v3 = vrot.slane %v6799_v2, 4  ;;  %6604 = vst.msk [vmem:[#allocation2 + $0xf0] sm:$0xff] %vm6573_vm6, %v6531_v43  ;;  %v6529_v32 = vmax.f32 %v6457_v0, 0.0  ;;  %v5759_v8 = vpop.f32.mrf.mxu1  ;;  %v5515_v35 = vadd.f32 %v15384_v6, %v15383_v60  ;;  %v13331_v0 = vpop.f32.mrf.mxu0 }
 0x478   : > { %v6900_v28 = vmax.f32 %v6799_v2, %v6895_v15  ;;  %v6532_v36 = vmax.f32 %v6460_v46, 0.0  ;;  %v6458_v53 = vadd.f32 %v13081_v9, %v6379_v55  ;;  %v6384_v44 = vadd.f32 %v13047_v45, %v5952_v48  ;;  %v15386_v2 = vld [vmem:[#allocation99_spill] sm:$0xff] }
 0x479   : > { %v6896_v34 = vsel %vm790_vm0, %v6894_v3, %v6895_v15  ;;  %6602 = vst.msk [vmem:[#allocation2 + $0xe0] sm:$0xff] %vm6573_vm6, %v6529_v32  ;;  %v5950_v57 = vadd.f32 %v5759_v8, %v5514_v56  ;;  %v8775_v27 = vpop.f32.mrf.mxu1  ;;  %v5520_v43 = vadd.f32 %v15386_v2, %v15385_v62  ;;  %v15387_v56 = vld [vmem:[#allocation216_spill] sm:$0xff] }
 0x47a   : > { %v6899_v54 = vmax.f32 %v6798_v47, %v6896_v34  ;;  %6605 = vst.msk [vmem:[#allocation2 + $0xf8] sm:$0xff] %vm6573_vm6, %v6532_v36  ;;  %v6530_v49 = vmax.f32 %v6458_v53, 0.0  ;;  %v6463_v12 = vadd.f32 %v13081_v9, %v6384_v44  ;;  %v5953_v4 = vadd.f32 %v8775_v27, %v5517_v63  ;;  %v15388_v3 = vld [vmem:[#allocation88_spill] sm:$0xff]  ;;  %v15390_v36 = vld [vmem:[#allocation91_spill] sm:$0xff] }
 0x47b   : > { %v7686_v33 = vpack.c.bf16 %v6900_v28, %v6900_v28  ;;  %v6382_v45 = vadd.f32 %v13057_v52, %v5950_v57  ;;  %v5762_v39 = vpop.f32.mrf.mxu1  ;;  %v6672_v11 = vld [vmem:[#allocation2 + $0xd0] ss:$2 sm:$0xff]  ;;  %v6744_v50 = vld [vmem:[#allocation2 + $0xd1] ss:$2 sm:$0xff]  ;;  %v5518_v46 = vadd.f32 %v15388_v3, %v15387_v56 }
 0x47c   : > { %v7685_v31 = vpack.c.bf16 %v6899_v54, %v6899_v54  ;;  %6603 = vst.msk [vmem:[#allocation2 + $0xe8] sm:$0xff] %vm6573_vm6, %v6530_v49  ;;  %v6535_v59 = vmax.f32 %v6463_v12, 0.0  ;;  %v6385_v17 = vadd.f32 %v13067_v51, %v5953_v4  ;;  %v5951_v26 = vadd.f32 %v5762_v39, %v5515_v35  ;;  %v15389_v34 = vld [vmem:[#allocation252_spill] sm:$0xff]  ;;  %v13347_v54 = vpop.f32.mrf.mxu0  ;;  %v15391_v49 = vld [vmem:[#allocation261_spill] sm:$0xff]  ;;  %v15392_v12 = vld [vmem:[#allocation274_spill] sm:$0xff] }
 0x47d   : > { %v6461_v1 = vadd.f32 %v13081_v9, %v6382_v45  ;;  %v8778_v15 = vpop.f32.mrf.mxu1  ;;  %v6909_v48 = vrot.slane %v7686_v33, 6  ;;  %v6802_v63 = vmax.f32 %v6672_v11, %v6744_v50  ;;  %v5521_v53 = vadd.f32 %v15390_v36, %v15389_v34  ;;  %v15393_v33 = vld [vmem:[#allocation301_spill] sm:$0xff]  ;;  %v15394_v45 = vld [vmem:[#allocation160_spill] sm:$0xff]  ;;  %v15395_v3 = vld [vmem:[#allocation214_spill] sm:$0xff] }
 0x47e   : > { %v6907_v14 = vrot.slane %v7685_v31, 6  ;;  %6608 = vst.msk [vmem:[#allocation2 + $0x110] sm:$0xff] %vm6573_vm6, %v6535_v59  ;;  %v6464_v52 = vadd.f32 %v13081_v9, %v6385_v17  ;;  %v6383_v22 = vadd.f32 %v13077_v19, %v5951_v26  ;;  %v5956_v51 = vadd.f32 %v8778_v15, %v5520_v43  ;;  %v6670_v59 = vld [vmem:[#allocation2 + $0xc0] ss:$2 sm:$0xff]  ;;  %v6742_v17 = vld [vmem:[#allocation2 + $0xc1] ss:$2 sm:$0xff]  ;;  %v13361_v15 = vpop.f32.mrf.mxu0 }
 0x47f   : > { %v6533_v47 = vmax.f32 %v6461_v1, 0.0  ;;  %v5775_v28 = vpop.f32.mrf.mxu1  ;;  %v5519_v4 = vadd.f32 %v15392_v12, %v15391_v49  ;;  %v5524_v39 = vadd.f32 %v15394_v45, %v15393_v33 }
 0x480   : > { %v6908_v55 = vrot.slane %v6907_v14, 4  ;;  %6913 = vst.msk [vmem:[%s13197_s12 + $0x10] sm:$0xc] %vm6870_vm11, %v6907_v14  ;;  %v6536_v32 = vmax.f32 %v6464_v52, 0.0  ;;  %v6462_v8 = vadd.f32 %v13081_v9, %v6383_v22  ;;  %v6388_v23 = vadd.f32 %v13086_v18, %v5956_v51  ;;  %v13376_v49 = vpop.f32.mrf.mxu0 }
 0x481   : > { %v5954_v7 = vadd.f32 %v5775_v28, %v5518_v46  ;;  %6606 = vst.msk [vmem:[#allocation2 + $0x100] sm:$0xff] %vm6573_vm6, %v6533_v47  ;;  %v8779_v44 = vpop.f32.mrf.mxu1  ;;  %v6801_v51 = vmax.f32 %v6670_v59, %v6742_v17  ;;  %v15396_v46 = vld [vmem:[#allocation169_spill] sm:$0xff]  ;;  %v15397_v47 = vld [vmem:[#allocation259_spill] sm:$0xff]  ;;  %v15398_v28 = vld [vmem:[#allocation276_spill] sm:$0xff] }
 0x482   : > { %v6910_v19 = vsel %vm13249_vm12, %v6908_v55, %v6909_v48  ;;  %6609 = vst.msk [vmem:[#allocation2 + $0x118] sm:$0xff] %vm6573_vm6, %v6536_v32  ;;  %v6534_v57 = vmax.f32 %v6462_v8, 0.0  ;;  %v6467_v18 = vadd.f32 %v13081_v9, %v6388_v23  ;;  %v5957_v35 = vadd.f32 %v8779_v44, %v5521_v53  ;;  %v15402_v59 = vld [vmem:[#allocation171_spill] sm:$0xff] }
 0x483   : > { %6914 = vst.msk [vmem:[%s13197_s12 + $0x14] sm:$0xf] %vm6842_vm7, %v6910_v19  ;;  %v6386_v27 = vadd.f32 %v13098_v24, %v5954_v7  ;;  %v6674_v60 = vld [vmem:[#allocation2 + $0xe0] ss:$2 sm:$0xff]  ;;  %v6746_v6 = vld [vmem:[#allocation2 + $0xe1] ss:$2 sm:$0xff]  ;;  %v5778_v31 = vpop.f32.mrf.mxu1  ;;  %v5522_v55 = vadd.f32 %v15396_v46, %v15395_v3 }
 0x484   : > { %v6803_v26 = vmax.f32 %v6674_v60, %v6746_v6  ;;  %6607 = vst.msk [vmem:[#allocation2 + $0x108] sm:$0xff] %vm6573_vm6, %v6534_v57  ;;  %v6539_v62 = vmax.f32 %v6467_v18, 0.0  ;;  %v5955_v43 = vadd.f32 %v5778_v31, %v5519_v4  ;;  %v6917_v24 = vrot.slane %v6802_v63, 4  ;;  %v15399_v57 = vld [vmem:[#allocation260_spill] sm:$0xff]  ;;  %v15400_v18 = vld [vmem:[#allocation101_spill] sm:$0xff]  ;;  %v15404_v3 = vld [vmem:[#allocation183_spill] sm:$0xff] }
 0x485   : > { %v6465_v2 = vadd.f32 %v13081_v9, %v6386_v27  ;;  %v6389_v14 = vadd.f32 %v13110_v41, %v5957_v35  ;;  %v8782_v1 = vpop.f32.mrf.mxu1  ;;  %v5525_v41 = vadd.f32 %v15398_v28, %v15397_v47  ;;  %v5523_v27 = vadd.f32 %v15400_v18, %v15399_v57 }
 0x486   : > { %v6918_v11 = vrot.slane %v6803_v26, 4  ;;  %6612 = vst.msk [vmem:[#allocation2 + $0x130] sm:$0xff] %vm6573_vm6, %v6539_v62  ;;  %v6387_v52 = vadd.f32 %v13122_v16, %v5955_v43  ;;  %v5960_v22 = vadd.f32 %v8782_v1, %v5524_v39  ;;  %v15401_v39 = vld [vmem:[#allocation268_spill] sm:$0xff] }
 0x487   : > { %v6537_v50 = vmax.f32 %v6465_v2, 0.0  ;;  %v6468_v56 = vadd.f32 %v13081_v9, %v6389_v14  ;;  %v5791_v48 = vpop.f32.mrf.mxu1  ;;  %v5528_v17 = vadd.f32 %v15402_v59, %v15401_v39  ;;  %v6676_v26 = vld [vmem:[#allocation2 + $0xf0] ss:$2 sm:$0xff]  ;;  %v6748_v62 = vld [vmem:[#allocation2 + $0xf1] ss:$2 sm:$0xff] }
 0x488   : > { %v6919_v32 = vsel %vm790_vm0, %v6917_v24, %v6918_v11  ;;  %v6923_v8 = vmax.f32 %v6802_v63, %v6918_v11  ;;  %v6466_v23 = vadd.f32 %v13081_v9, %v6387_v52  ;;  %v6392_v16 = vadd.f32 %v13132_v13, %v5960_v22 }
 0x489   : > { %6610 = vst.msk [vmem:[#allocation2 + $0x120] sm:$0xff] %vm6573_vm6, %v6537_v50  ;;  %v6922_v7 = vmax.f32 %v6801_v51, %v6919_v32  ;;  %v6680_v19 = vld [vmem:[#allocation2 + $0x110] ss:$2 sm:$0xff]  ;;  %v6752_v34 = vld [vmem:[#allocation2 + $0x111] ss:$2 sm:$0xff]  ;;  %v6540_v36 = vmax.f32 %v6468_v56, 0.0  ;;  %v5958_v53 = vadd.f32 %v5791_v48, %v5522_v55  ;;  %v8783_v44 = vpop.f32.mrf.mxu1  ;;  %v13390_v50 = vpop.f32.mrf.mxu0  ;;  %v6804_v55 = vmax.f32 %v6676_v26, %v6748_v62 }
 0x48a   : > { %v7688_v12 = vpack.c.bf16 %v6923_v8, %v6923_v8  ;;  %v6806_v63 = vmax.f32 %v6680_v19, %v6752_v34  ;;  %v6538_v4 = vmax.f32 %v6466_v23, 0.0  ;;  %v6471_v60 = vadd.f32 %v13081_v9, %v6392_v16  ;;  %v15403_v56 = vld [vmem:[#allocation303_spill] sm:$0xff]  ;;  %v15405_v23 = vld [vmem:[#allocation270_spill] sm:$0xff]  ;;  %v15406_v16 = vld [vmem:[#allocation184_spill] sm:$0xff] }
 0x48b   : > { %v7687_v6 = vpack.c.bf16 %v6922_v7, %v6922_v7  ;;  %v6678_v13 = vld [vmem:[#allocation2 + $0x100] ss:$2 sm:$0xff]  ;;  %v6750_v35 = vld [vmem:[#allocation2 + $0x101] ss:$2 sm:$0xff]  ;;  %6613 = vst.msk [vmem:[#allocation2 + $0x138] sm:$0xff] %vm6573_vm6, %v6540_v36  ;;  %v6390_v31 = vadd.f32 %v13145_v10, %v5958_v53  ;;  %v5961_v33 = vadd.f32 %v8783_v44, %v5525_v41  ;;  %v5794_v45 = vpop.f32.mrf.mxu1  ;;  %v5526_v46 = vadd.f32 %v15404_v3, %v15403_v56  ;;  %v13403_v53 = vpop.f32.mrf.mxu0 }
 0x48c   : > { %6933 = vst.msk [vmem:[%s13197_s12 + $0x1c] sm:$0x3] %vm6844_vm8, %v7688_v12  ;;  %v6937_v2 = vrot.slane %v6806_v63, 4  ;;  %v6805_v43 = vmax.f32 %v6678_v13, %v6750_v35  ;;  %v6543_v24 = vmax.f32 %v6471_v60, 0.0  ;;  %v5959_v14 = vadd.f32 %v5794_v45, %v5523_v27  ;;  %v15407_v27 = vld [vmem:[#allocation226_spill] sm:$0xff]  ;;  %v15408_v12 = vld [vmem:[#allocation113_spill] sm:$0xff] }
 0x48d   : > { %6611 = vst.msk [vmem:[#allocation2 + $0x128] sm:$0xff] %vm6573_vm6, %v6538_v4  ;;  %v6469_v1 = vadd.f32 %v13081_v9, %v6390_v31  ;;  %v6393_v10 = vadd.f32 %v13163_v42, %v5961_v33  ;;  %v8786_v11 = vpop.f32.mrf.mxu1  ;;  %v5529_v7 = vadd.f32 %v15406_v16, %v15405_v23  ;;  %v5527_v63 = vadd.f32 %v15408_v12, %v15407_v27  ;;  %v15409_v33 = vld [vmem:[#allocation305_spill] sm:$0xff]  ;;  %v15410_v45 = vld [vmem:[#allocation112_spill] sm:$0xff]  ;;  %v13415_v62 = vpop.f32.mrf.mxu0  ;;  %v15413_v56 = vld [vmem:[#allocation302_spill] sm:$0xff] }
 0x48e   : > { %6932 = vst.msk [vmem:[%s13197_s12 + $0x18] sm:$0xf] %vm6842_vm7, %v7687_v6  ;;  %v6936_v52 = vrot.slane %v6805_v43, 4  ;;  %v6391_v22 = vadd.f32 %v13181_v5, %v5959_v14  ;;  %v5964_v51 = vadd.f32 %v8786_v11, %v5528_v17  ;;  %v6942_v48 = vmax.f32 %v6805_v43, %v6937_v2  ;;  %v15411_v14 = vld [vmem:[#allocation210_spill] sm:$0xff]  ;;  %v15414_v3 = vld [vmem:[#allocation176_spill] sm:$0xff] }
 0x48f   : > { %6616 = vst.msk [vmem:[#allocation2 + $0x150] sm:$0xff] %vm6573_vm6, %v6543_v24  ;;  %v6541_v47 = vmax.f32 %v6469_v1, 0.0  ;;  %v6472_v28 = vadd.f32 %v13081_v9, %v6393_v10  ;;  %v5807_v41 = vpop.f32.mrf.mxu1  ;;  %v5532_v39 = vadd.f32 %v15410_v45, %v15409_v33  ;;  %v15412_v1 = vld [vmem:[#allocation282_spill] sm:$0xff] }
 0x490   : > { %v6938_v42 = vsel %vm790_vm0, %v6936_v52, %v6937_v2  ;;  %v6470_v32 = vadd.f32 %v13081_v9, %v6391_v22  ;;  %v6396_v8 = vadd.f32 %v13200_v38, %v5964_v51  ;;  %v5962_v34 = vadd.f32 %v5807_v41, %v5526_v46 }
 0x491   : > { %v6941_v5 = vmax.f32 %v6804_v55, %v6938_v42  ;;  %6614 = vst.msk [vmem:[#allocation2 + $0x140] sm:$0xff] %vm6573_vm6, %v6541_v47  ;;  %v6544_v19 = vmax.f32 %v6472_v28, 0.0  ;;  %v8787_v36 = vpop.f32.mrf.mxu1  ;;  %v7690_v38 = vpack.c.bf16 %v6942_v48, %v6942_v48  ;;  %v5530_v10 = vadd.f32 %v15412_v1, %v15411_v14 }
 0x492   : > { %v6542_v44 = vmax.f32 %v6470_v32, 0.0  ;;  %v6475_v57 = vadd.f32 %v13081_v9, %v6396_v8  ;;  %v5965_v18 = vadd.f32 %v8787_v36, %v5529_v7  ;;  %v6394_v60 = vadd.f32 %v13216_v61, %v5962_v34  ;;  %v6684_v2 = vld [vmem:[#allocation2 + $0x130] ss:$2 sm:$0xff]  ;;  %v6756_v43 = vld [vmem:[#allocation2 + $0x131] ss:$2 sm:$0xff]  ;;  %v13431_v32 = vpop.f32.mrf.mxu0 }
 0x493   : > { %v7689_v4 = vpack.c.bf16 %v6941_v5, %v6941_v5  ;;  %6617 = vst.msk [vmem:[#allocation2 + $0x158] sm:$0xff] %vm6573_vm6, %v6544_v19  ;;  %v5810_v6 = vpop.f32.mrf.mxu1  ;;  %v6951_v52 = vrot.slane %v7690_v38, 6  ;;  %v5533_v46 = vadd.f32 %v15414_v3, %v15413_v56  ;;  %v6808_v41 = vmax.f32 %v6684_v2, %v6756_v43  ;;  %v15415_v19 = vld [vmem:[#allocation224_spill] sm:$0xff]  ;;  %v15416_v34 = vld [vmem:[#allocation182_spill] sm:$0xff]  ;;  %v15420_v43 = vld [vmem:[#allocation207_spill] sm:$0xff] }
 0x494   : > { %6615 = vst.msk [vmem:[#allocation2 + $0x148] sm:$0xff] %vm6573_vm6, %v6542_v44  ;;  %v6547_v13 = vmax.f32 %v6475_v57, 0.0  ;;  %v6397_v35 = vadd.f32 %v13229_v58, %v5965_v18  ;;  %v5963_v31 = vadd.f32 %v5810_v6, %v5527_v63  ;;  %v6473_v17 = vadd.f32 %v13081_v9, %v6394_v60  ;;  %v15417_v57 = vld [vmem:[#allocation240_spill] sm:$0xff] }
 0x495   : > { %v6949_v59 = vrot.slane %v7689_v4, 6  ;;  %v8790_v26 = vpop.f32.mrf.mxu1  ;;  %v5531_v36 = vadd.f32 %v15416_v34, %v15415_v19  ;;  %v15418_v18 = vld [vmem:[#allocation196_spill] sm:$0xff]  ;;  %v6959_v6 = vrot.slane %v6808_v41, 4  ;;  %v15425_v19 = vld [vmem:[#allocation227_spill] sm:$0xff]  ;;  %v15426_v34 = vld [vmem:[#allocation150_spill] sm:$0xff] }
 0x496   : > { %6620 = vst.msk [vmem:[#allocation2 + $0x170] sm:$0xff] %vm6573_vm6, %v6547_v13  ;;  %v6476_v61 = vadd.f32 %v13081_v9, %v6397_v35  ;;  %v6395_v24 = vadd.f32 %v13241_v21, %v5963_v31  ;;  %v5968_v58 = vadd.f32 %v8790_v26, %v5532_v39  ;;  %v6545_v22 = vmax.f32 %v6473_v17, 0.0  ;;  %v6682_v12 = vld [vmem:[#allocation2 + $0x120] ss:$2 sm:$0xff]  ;;  %v6754_v63 = vld [vmem:[#allocation2 + $0x121] ss:$2 sm:$0xff]  ;;  %v13447_v31 = vpop.f32.mrf.mxu0 }
 0x497   : > { %v6950_v11 = vrot.slane %v6949_v59, 4  ;;  %6955 = vst.msk [vmem:[%s13197_s12 + $0x1c] sm:$0xc] %vm6870_vm11, %v6949_v59  ;;  %v5823_v51 = vpop.f32.mrf.mxu1  ;;  %v5536_v27 = vadd.f32 %v15418_v18, %v15417_v57  ;;  %v13443_v60 = vld [vmem:[#allocation5] ss:$0 sm:$0xff]  ;;  %v6807_v17 = vmax.f32 %v6682_v12, %v6754_v63 }
 0x498   : > { %v6548_v55 = vmax.f32 %v6476_v61, 0.0  ;;  %v6474_v48 = vadd.f32 %v13081_v9, %v6395_v24  ;;  %v6400_v47 = vadd.f32 %v13263_v37, %v5968_v58  ;;  %v5966_v21 = vadd.f32 %v5823_v51, %v5530_v10  ;;  %6618 = vst.msk [vmem:[#allocation2 + $0x160] sm:$0xff] %vm6573_vm6, %v6545_v22  ;;  %v15419_v2 = vld [vmem:[#allocation336_spill] sm:$0xff] }
 0x499   : > { %v6952_v28 = vsel %vm13249_vm12, %v6950_v11, %v6951_v52  ;;  %v8791_v42 = vpop.f32.mrf.mxu1  ;;  %v5534_v61 = vadd.f32 %v15420_v43, %v15419_v2  ;;  %v15422_v58 = vld [vmem:[#allocation136_spill] sm:$0xff] }
 0x49a   : > { %6956 = vst.msk [vmem:[%s13197_s12 + $0x20] sm:$0xf] %vm6842_vm7, %v6952_v28  ;;  %v6546_v8 = vmax.f32 %v6474_v48, 0.0  ;;  %v6479_v23 = vadd.f32 %v13081_v9, %v6400_v47  ;;  %v6398_v16 = vadd.f32 %v13279_v20, %v5966_v21  ;;  %v5969_v37 = vadd.f32 %v8791_v42, %v5533_v46  ;;  %v15424_v48 = vld [vmem:[#allocation287_spill] sm:$0xff]  ;;  %v13462_v21 = vpop.f32.mrf.mxu0 }
 0x49b   : > { %6621 = vst.msk [vmem:[#allocation2 + $0x178] sm:$0xff] %vm6573_vm6, %v6548_v55  ;;  %v6686_v7 = vld [vmem:[#allocation2 + $0x140] ss:$2 sm:$0xff]  ;;  %v6758_v5 = vld [vmem:[#allocation2 + $0x141] ss:$2 sm:$0xff]  ;;  %v5826_v44 = vpop.f32.mrf.mxu1 }
 0x49c   : > { %v6809_v4 = vmax.f32 %v6686_v7, %v6758_v5  ;;  %6619 = vst.msk [vmem:[#allocation2 + $0x168] sm:$0xff] %vm6573_vm6, %v6546_v8  ;;  %v6551_v38 = vmax.f32 %v6479_v23, 0.0  ;;  %v6477_v9 = vadd.f32 %v13443_v60, %v6398_v16  ;;  %v6401_v20 = vadd.f32 %v13292_v29, %v5969_v37  ;;  %v15421_v29 = vld [vmem:[#allocation269_spill] sm:$0xff]  ;;  %v15423_v55 = vld [vmem:[#allocation166_spill] sm:$0xff] }
 0x49d   : > { %v5967_v13 = vadd.f32 %v5826_v44, %v5531_v36  ;;  %v8794_v35 = vpop.f32.mrf.mxu1  ;;  %v5537_v14 = vadd.f32 %v15422_v58, %v15421_v29  ;;  %v5535_v47 = vadd.f32 %v15424_v48, %v15423_v55  ;;  %v5540_v36 = vadd.f32 %v15426_v34, %v15425_v19  ;;  %v6688_v44 = vld [vmem:[#allocation2 + $0x150] ss:$2 sm:$0xff]  ;;  %v6760_v57 = vld [vmem:[#allocation2 + $0x151] ss:$2 sm:$0xff]  ;;  %v15430_v29 = vld [vmem:[#allocation213_spill] sm:$0xff] }
 0x49e   : > { %v6960_v33 = vrot.slane %v6809_v4, 4  ;;  %6624 = vst.msk [vmem:[#allocation2 + $0x190] sm:$0xff] %vm6573_vm6, %v6551_v38  ;;  %v6549_v45 = vmax.f32 %v6477_v9, 0.0  ;;  %v6480_v39 = vadd.f32 %v13443_v60, %v6401_v20  ;;  %v5972_v59 = vadd.f32 %v8794_v35, %v5536_v27  ;;  %v13476_v9 = vpop.f32.mrf.mxu0  ;;  %v15427_v35 = vld [vmem:[#allocation191_spill] sm:$0xff]  ;;  %v15436_v34 = vld [vmem:[#allocation164_spill] sm:$0xff] }
 0x49f   : > { %v6399_v26 = vadd.f32 %v13308_v40, %v5967_v13  ;;  %v5839_v24 = vpop.f32.mrf.mxu1 }
 0x4a0   : > { %v6961_v1 = vsel %vm790_vm0, %v6959_v6, %v6960_v33  ;;  %v6965_v10 = vmax.f32 %v6808_v41, %v6960_v33  ;;  %6622 = vst.msk [vmem:[#allocation2 + $0x180] sm:$0xff] %vm6573_vm6, %v6549_v45  ;;  %v6552_v11 = vmax.f32 %v6480_v39, 0.0  ;;  %v6404_v52 = vadd.f32 %v13319_v25, %v5972_v59  ;;  %v15428_v33 = vld [vmem:[#allocation198_spill] sm:$0xff] }
 0x4a1   : > { %v6964_v22 = vmax.f32 %v6807_v17, %v6961_v1  ;;  %v6478_v40 = vadd.f32 %v13443_v60, %v6399_v26  ;;  %v5970_v3 = vadd.f32 %v5839_v24, %v5534_v61  ;;  %v8795_v46 = vpop.f32.mrf.mxu1  ;;  %v5538_v45 = vadd.f32 %v15428_v33, %v15427_v35  ;;  %v15429_v24 = vld [vmem:[#allocation338_spill] sm:$0xff] }
 0x4a2   : > { %v6692_v51 = vld [vmem:[#allocation2 + $0x170] ss:$2 sm:$0xff]  ;;  %v6764_v56 = vld [vmem:[#allocation2 + $0x171] ss:$2 sm:$0xff]  ;;  %v7692_v28 = vpack.c.bf16 %v6965_v10, %v6965_v10  ;;  %6625 = vst.msk [vmem:[#allocation2 + $0x198] sm:$0xff] %vm6573_vm6, %v6552_v11  ;;  %v6483_v42 = vadd.f32 %v13443_v60, %v6404_v52  ;;  %v5973_v25 = vadd.f32 %v8795_v46, %v5537_v14  ;;  %v5541_v58 = vadd.f32 %v15430_v29, %v15429_v24  ;;  %v13489_v52 = vpop.f32.mrf.mxu0 }
 0x4a3   : > { %v6812_v41 = vmax.f32 %v6692_v51, %v6764_v56  ;;  %v7691_v8 = vpack.c.bf16 %v6964_v22, %v6964_v22  ;;  %v6690_v23 = vld [vmem:[#allocation2 + $0x160] ss:$2 sm:$0xff]  ;;  %v6762_v16 = vld [vmem:[#allocation2 + $0x161] ss:$2 sm:$0xff]  ;;  %v6550_v37 = vmax.f32 %v6478_v40, 0.0  ;;  %v6402_v7 = vadd.f32 %v13331_v0, %v5970_v3  ;;  %v5842_v5 = vpop.f32.mrf.mxu1 }
 0x4a4   : > { %6975 = vst.msk [vmem:[%s13197_s12 + $0x28] sm:$0x3] %vm6844_vm8, %v7692_v28  ;;  %v6811_v27 = vmax.f32 %v6690_v23, %v6762_v16  ;;  %v6555_v12 = vmax.f32 %v6483_v42, 0.0  ;;  %v6405_v63 = vadd.f32 %v13347_v54, %v5973_v25  ;;  %v5971_v0 = vadd.f32 %v5842_v5, %v5535_v47  ;;  %v15431_v51 = vld [vmem:[#allocation189_spill] sm:$0xff]  ;;  %v15433_v42 = vld [vmem:[#allocation306_spill] sm:$0xff]  ;;  %v15434_v25 = vld [vmem:[#allocation223_spill] sm:$0xff] }
 0x4a5   : > { %v6979_v18 = vrot.slane %v6812_v41, 4  ;;  %6974 = vst.msk [vmem:[%s13197_s12 + $0x24] sm:$0xf] %vm6842_vm7, %v7691_v8  ;;  %v6481_v4 = vadd.f32 %v13443_v60, %v6402_v7  ;;  %v8798_v38 = vpop.f32.mrf.mxu1  ;;  %v6810_v54 = vmax.f32 %v6688_v44, %v6760_v57  ;;  %v15432_v56 = vld [vmem:[#allocation209_spill] sm:$0xff]  ;;  %v5544_v8 = vadd.f32 %v15434_v25, %v15433_v42  ;;  %v13501_v7 = vpop.f32.mrf.mxu0 }
 0x4a6   : > { %6623 = vst.msk [vmem:[#allocation2 + $0x188] sm:$0xff] %vm6573_vm6, %v6550_v37  ;;  %v6978_v20 = vrot.slane %v6811_v27, 4  ;;  %6628 = vst.msk [vmem:[#allocation2 + $0x1b0] sm:$0xff] %vm6573_vm6, %v6555_v12  ;;  %v6484_v6 = vadd.f32 %v13443_v60, %v6405_v63  ;;  %v5976_v13 = vadd.f32 %v8798_v38, %v5540_v36  ;;  %v6403_v17 = vadd.f32 %v13361_v15, %v5971_v0 }
 0x4a7   : > { %v6984_v39 = vmax.f32 %v6811_v27, %v6979_v18  ;;  %v6553_v59 = vmax.f32 %v6481_v4, 0.0  ;;  %v5855_v26 = vpop.f32.mrf.mxu1 }
 0x4a8   : > { %v6980_v2 = vsel %vm790_vm0, %v6978_v20, %v6979_v18  ;;  %v6556_v43 = vmax.f32 %v6484_v6, 0.0  ;;  %v6408_v61 = vadd.f32 %v13376_v49, %v5976_v13  ;;  %v6482_v1 = vadd.f32 %v13443_v60, %v6403_v17  ;;  %v15437_v6 = vld [vmem:[#allocation9_spill] sm:$0xff]  ;;  %v15438_v13 = vld [vmem:[#allocation163_spill] sm:$0xff]  ;;  %v15440_v17 = vld [vmem:[#allocation246_spill] sm:$0xff] }
 0x4a9   : > { %v6983_v14 = vmax.f32 %v6810_v54, %v6980_v2  ;;  %6626 = vst.msk [vmem:[#allocation2 + $0x1a0] sm:$0xff] %vm6573_vm6, %v6553_v59  ;;  %v5974_v10 = vadd.f32 %v5855_v26, %v5538_v45  ;;  %v8799_v11 = vpop.f32.mrf.mxu1  ;;  %v5539_v49 = vadd.f32 %v15432_v56, %v15431_v51  ;;  %v7694_v3 = vpack.c.bf16 %v6984_v39, %v6984_v39  ;;  %v6696_v12 = vld [vmem:[#allocation2 + $0x190] ss:$2 sm:$0xff]  ;;  %v6768_v63 = vld [vmem:[#allocation2 + $0x191] ss:$2 sm:$0xff]  ;;  %v13517_v45 = vpop.f32.mrf.mxu0 }
 0x4aa   : > { %6629 = vst.msk [vmem:[#allocation2 + $0x1b8] sm:$0xff] %vm6573_vm6, %v6556_v43  ;;  %v6487_v15 = vadd.f32 %v13443_v60, %v6408_v61  ;;  %v5977_v22 = vadd.f32 %v8799_v11, %v5541_v58  ;;  %v6554_v46 = vmax.f32 %v6482_v1, 0.0  ;;  %v5545_v35 = vadd.f32 %v15438_v13, %v15437_v6  ;;  %v15439_v59 = vld [vmem:[#allocation307_spill] sm:$0xff] }
 0x4ab   : > { %v7693_v40 = vpack.c.bf16 %v6983_v14, %v6983_v14  ;;  %v6406_v55 = vadd.f32 %v13390_v50, %v5974_v10  ;;  %v5858_v48 = vpop.f32.mrf.mxu1  ;;  %v6993_v57 = vrot.slane %v7694_v3, 6  ;;  %v5543_v26 = vadd.f32 %v15440_v17, %v15439_v59  ;;  %v15441_v10 = vld [vmem:[#allocation148_spill] sm:$0xff]  ;;  %v15442_v11 = vld [vmem:[#allocation219_spill] sm:$0xff] }
 0x4ac   : > { %v6559_v47 = vmax.f32 %v6487_v15, 0.0  ;;  %v6409_v28 = vadd.f32 %v13403_v53, %v5977_v22  ;;  %v5975_v41 = vadd.f32 %v5858_v48, %v5539_v49  ;;  %6627 = vst.msk [vmem:[#allocation2 + $0x1a8] sm:$0xff] %vm6573_vm6, %v6554_v46  ;;  %v15435_v53 = vld [vmem:[#allocation251_spill] sm:$0xff]  ;;  %v6814_v2 = vmax.f32 %v6696_v12, %v6768_v63  ;;  %v15443_v48 = vld [vmem:[#allocation25_spill] sm:$0xff]  ;;  %v15450_v59 = vld [vmem:[#allocation236_spill] sm:$0xff] }
 0x4ad   : > { %v6991_v23 = vrot.slane %v7693_v40, 6  ;;  %v6485_v16 = vadd.f32 %v13443_v60, %v6406_v55  ;;  %v8802_v37 = vpop.f32.mrf.mxu1  ;;  %v5542_v36 = vadd.f32 %v15436_v34, %v15435_v53  ;;  %v5548_v15 = vadd.f32 %v15442_v11, %v15441_v10  ;;  %v6694_v22 = vld [vmem:[#allocation2 + $0x180] ss:$2 sm:$0xff]  ;;  %v6766_v51 = vld [vmem:[#allocation2 + $0x181] ss:$2 sm:$0xff]  ;;  %v6322_v40 = vpop.f32.mrf.mxu0 }
 0x4ae   : > { %6632 = vst.msk [vmem:[#allocation2 + $0x1d0] sm:$0xff] %vm6573_vm6, %v6559_v47  ;;  %v6488_v50 = vadd.f32 %v13443_v60, %v6409_v28  ;;  %v6407_v5 = vadd.f32 %v13415_v62, %v5975_v41  ;;  %v5980_v19 = vadd.f32 %v8802_v37, %v5544_v8  ;;  %v15444_v47 = vld [vmem:[#allocation235_spill] sm:$0xff]  ;;  %v7001_v41 = vrot.slane %v6814_v2, 4 }
 0x4af   : > { %v6992_v44 = vrot.slane %v6991_v23, 4  ;;  %6997 = vst.msk [vmem:[%s13197_s12 + $0x28] sm:$0xc] %vm6870_vm11, %v6991_v23  ;;  %v6557_v18 = vmax.f32 %v6485_v16, 0.0  ;;  %v5871_v27 = vpop.f32.mrf.mxu1  ;;  %v5546_v28 = vadd.f32 %v15444_v47, %v15443_v48  ;;  %v15445_v23 = vld [vmem:[#allocation247_spill] sm:$0xff]  ;;  %v15446_v16 = vld [vmem:[#allocation156_spill] sm:$0xff]  ;;  %v8886_v63 = vpop.f32.mrf.mxu0 }
 0x4b0   : > { %v6560_v4 = vmax.f32 %v6488_v50, 0.0  ;;  %v6486_v0 = vadd.f32 %v13443_v60, %v6407_v5  ;;  %v6412_v38 = vadd.f32 %v13431_v32, %v5980_v19  ;;  %v5978_v20 = vadd.f32 %v5871_v27, %v5542_v36  ;;  %v15448_v27 = vld [vmem:[#allocation220_spill] sm:$0xff] }
 0x4b1   : > { %v6994_v62 = vsel %vm13249_vm12, %v6992_v44, %v6993_v57  ;;  %6630 = vst.msk [vmem:[#allocation2 + $0x1c0] sm:$0xff] %vm6573_vm6, %v6557_v18  ;;  %v8803_v33 = vpop.f32.mrf.mxu1  ;;  %v5549_v37 = vadd.f32 %v15446_v16, %v15445_v23  ;;  %v15447_v18 = vld [vmem:[#allocation145_spill] sm:$0xff]  ;;  %v15453_v47 = vld [vmem:[#allocation300_spill] sm:$0xff] }
 0x4b2   : > { %6998 = vst.msk [vmem:[%s13197_s12 + $0x2c] sm:$0xf] %vm6842_vm7, %v6994_v62  ;;  %v6558_v54 = vmax.f32 %v6486_v0, 0.0  ;;  %v6491_v39 = vadd.f32 %v13443_v60, %v6412_v38  ;;  %v6410_v32 = vadd.f32 %v13447_v31, %v5978_v20  ;;  %v5981_v43 = vadd.f32 %v8803_v33, %v5545_v35 }
 0x4b3   : > { %6633 = vst.msk [vmem:[#allocation2 + $0x1d8] sm:$0xff] %vm6573_vm6, %v6560_v4  ;;  %v5874_v61 = vpop.f32.mrf.mxu1  ;;  %v6698_v24 = vld [vmem:[#allocation2 + $0x1a0] ss:$2 sm:$0xff]  ;;  %v6770_v29 = vld [vmem:[#allocation2 + $0x1a1] ss:$2 sm:$0xff]  ;;  %v5547_v12 = vadd.f32 %v15448_v27, %v15447_v18 }
 0x4b4   : > { %6631 = vst.msk [vmem:[#allocation2 + $0x1c8] sm:$0xff] %vm6573_vm6, %v6558_v54  ;;  %v6563_v58 = vmax.f32 %v6491_v39, 0.0  ;;  %v6489_v14 = vadd.f32 %v13443_v60, %v6410_v32  ;;  %v5979_v1 = vadd.f32 %v5874_v61, %v5543_v26  ;;  %v6815_v31 = vmax.f32 %v6698_v24, %v6770_v29  ;;  %v6700_v4 = vld [vmem:[#allocation2 + $0x1b0] ss:$2 sm:$0xff]  ;;  %v15449_v32 = vld [vmem:[#allocation341_spill] sm:$0xff] }
 0x4b5   : > { %v6413_v56 = vadd.f32 %v13462_v21, %v5981_v43  ;;  %v8806_v49 = vpop.f32.mrf.mxu1  ;;  %v6813_v21 = vmax.f32 %v6694_v22, %v6766_v51  ;;  %v5552_v17 = vadd.f32 %v15450_v59, %v15449_v32  ;;  %v15452_v22 = vld [vmem:[#allocation295_spill] sm:$0xff] }
 0x4b6   : > { %6636 = vst.msk [vmem:[#allocation2 + $0x1f0] sm:$0xff] %vm6573_vm6, %v6563_v58  ;;  %v6561_v3 = vmax.f32 %v6489_v14, 0.0  ;;  %v6411_v46 = vadd.f32 %v13476_v9, %v5979_v1  ;;  %v5984_v55 = vadd.f32 %v8806_v49, %v5548_v15  ;;  %v7002_v42 = vrot.slane %v6815_v31, 4  ;;  %v6335_v14 = vpop.f32.mrf.mxu0  ;;  %v15451_v15 = vld [vmem:[#allocation309_spill] sm:$0xff] }
 0x4b7   : > { %v6492_v25 = vadd.f32 %v13443_v60, %v6413_v56  ;;  %v5887_v8 = vpop.f32.mrf.mxu1  ;;  %v5550_v51 = vadd.f32 %v15452_v22, %v15451_v15 }
 0x4b8   : > { %6634 = vst.msk [vmem:[#allocation2 + $0x1e0] sm:$0xff] %vm6573_vm6, %v6561_v3  ;;  %v6490_v50 = vadd.f32 %v13443_v60, %v6411_v46  ;;  %v6416_v5 = vadd.f32 %v13489_v52, %v5984_v55  ;;  %v5982_v9 = vadd.f32 %v5887_v8, %v5546_v28  ;;  %v7003_v19 = vsel %vm790_vm0, %v7001_v41, %v7002_v42  ;;  %v6772_v52 = vld [vmem:[#allocation2 + $0x1b1] ss:$2 sm:$0xff]  ;;  %v8887_v16 = vpop.f32.mrf.mxu0 }
 0x4b9   : > { %v7007_v53 = vmax.f32 %v6814_v2, %v7002_v42  ;;  %v6564_v44 = vmax.f32 %v6492_v25, 0.0  ;;  %v8807_v57 = vpop.f32.mrf.mxu1  ;;  %v7006_v0 = vmax.f32 %v6813_v21, %v7003_v19  ;;  %v6816_v1 = vmax.f32 %v6700_v4, %v6772_v52  ;;  %v15454_v28 = vld [vmem:[#allocation292_spill] sm:$0xff]  ;;  %v15455_v19 = vld [vmem:[#allocation266_spill] sm:$0xff] }
 0x4ba   : > { %v6704_v34 = vld [vmem:[#allocation2 + $0x1d0] ss:$2 sm:$0xff]  ;;  %v6776_v36 = vld [vmem:[#allocation2 + $0x1d1] ss:$2 sm:$0xff]  ;;  %v6562_v20 = vmax.f32 %v6490_v50, 0.0  ;;  %v6495_v62 = vadd.f32 %v13443_v60, %v6416_v5  ;;  %v6414_v33 = vadd.f32 %v13501_v7, %v5982_v9  ;;  %v5985_v54 = vadd.f32 %v8807_v57, %v5549_v37 }
 0x4bb   : > { %v6818_v38 = vmax.f32 %v6704_v34, %v6776_v36  ;;  %v7696_v6 = vpack.c.bf16 %v7007_v53, %v7007_v53  ;;  %v6702_v13 = vld [vmem:[#allocation2 + $0x1c0] ss:$2 sm:$0xff]  ;;  %v6774_v35 = vld [vmem:[#allocation2 + $0x1c1] ss:$2 sm:$0xff]  ;;  %6637 = vst.msk [vmem:[#allocation2 + $0x1f8] sm:$0xff] %vm6573_vm6, %v6564_v44  ;;  %v5890_v39 = vpop.f32.mrf.mxu1  ;;  %v7695_v26 = vpack.c.bf16 %v7006_v0, %v7006_v0  ;;  %v5553_v41 = vadd.f32 %v15454_v28, %v15453_v47 }
 0x4bc   : > { %v6817_v43 = vmax.f32 %v6702_v13, %v6774_v35  ;;  %6635 = vst.msk [vmem:[#allocation2 + $0x1e8] sm:$0xff] %vm6573_vm6, %v6562_v20  ;;  %v6567_v61 = vmax.f32 %v6495_v62, 0.0  ;;  %v6493_v24 = vadd.f32 %v13443_v60, %v6414_v33  ;;  %v6417_v29 = vadd.f32 %v13517_v45, %v5985_v54  ;;  %v15456_v53 = vld [vmem:[#allocation180_spill] sm:$0xff] }
 0x4bd   : > { %v7021_v2 = vrot.slane %v6818_v38, 4  ;;  %7017 = vst.msk [vmem:[%s13197_s12 + $0x34] sm:$0x3] %vm6844_vm8, %v7696_v6  ;;  %v5983_v58 = vadd.f32 %v5890_v39, %v5547_v12  ;;  %v8810_v7 = vpop.f32.mrf.mxu1  ;;  %v5551_v34 = vadd.f32 %v15456_v53, %v15455_v19 }
 0x4be   : > { %7016 = vst.msk [vmem:[%s13197_s12 + $0x30] sm:$0xf] %vm6842_vm7, %v7695_v26  ;;  %v7020_v10 = vrot.slane %v6817_v43, 4  ;;  %v5988_v11 = vadd.f32 %v8810_v7, %v5552_v17  ;;  %v6565_v56 = vmax.f32 %v6493_v24, 0.0  ;;  %v6496_v49 = vadd.f32 %v13443_v60, %v6417_v29 }
 0x4bf   : > { %6640 = vst.msk [vmem:[#allocation2 + $0x210] sm:$0xff] %vm6573_vm6, %v6567_v61  ;;  %v7026_v31 = vmax.f32 %v6817_v43, %v7021_v2  ;;  %v6415_v3 = vadd.f32 %v6322_v40, %v5983_v58  ;;  %v5903_v46 = vpop.f32.mrf.mxu1 }
 0x4c0   : > { %v7022_v45 = vsel %vm790_vm0, %v7020_v10, %v7021_v2  ;;  %v6420_v55 = vadd.f32 %v8886_v63, %v5988_v11  ;;  %v5986_v48 = vadd.f32 %v5903_v46, %v5550_v51  ;;  %6638 = vst.msk [vmem:[#allocation2 + $0x200] sm:$0xff] %vm6573_vm6, %v6565_v56  ;;  %v6568_v25 = vmax.f32 %v6496_v49, 0.0  ;;  %v6338_v63 = vpop.f32.mrf.mxu0 }
 0x4c1   : > { %v7025_v42 = vmax.f32 %v6816_v1, %v7022_v45  ;;  %v6494_v8 = vadd.f32 %v13443_v60, %v6415_v3  ;;  %v8811_v23 = vpop.f32.mrf.mxu1  ;;  %v7698_v5 = vpack.c.bf16 %v7026_v31, %v7026_v31 }
 0x4c2   : > { %v6499_v37 = vadd.f32 %v13443_v60, %v6420_v55  ;;  %v6418_v21 = vadd.f32 %v6335_v14, %v5986_v48  ;;  %v5989_v40 = vadd.f32 %v8811_v23, %v5553_v41  ;;  %6641 = vst.msk [vmem:[#allocation2 + $0x218] sm:$0xff] %vm6573_vm6, %v6568_v25  ;;  %v6708_v52 = vld [vmem:[#allocation2 + $0x1f0] ss:$2 sm:$0xff]  ;;  %v6780_v6 = vld [vmem:[#allocation2 + $0x1f1] ss:$2 sm:$0xff] }
 0x4c3   : > { %v7697_v50 = vpack.c.bf16 %v7025_v42, %v7025_v42  ;;  %v6566_v9 = vmax.f32 %v6494_v8, 0.0  ;;  %v5906_v36 = vpop.f32.mrf.mxu1  ;;  %v7035_v20 = vrot.slane %v7698_v5, 6  ;;  %v6820_v54 = vmax.f32 %v6708_v52, %v6780_v6  ;;  %v6706_v17 = vld [vmem:[#allocation2 + $0x1e0] ss:$2 sm:$0xff]  ;;  %v6778_v26 = vld [vmem:[#allocation2 + $0x1e1] ss:$2 sm:$0xff] }
 0x4c4   : > { %v6571_v44 = vmax.f32 %v6499_v37, 0.0  ;;  %v6497_v57 = vadd.f32 %v13443_v60, %v6418_v21  ;;  %v6421_v18 = vadd.f32 %v8887_v16, %v5989_v40  ;;  %v5987_v12 = vadd.f32 %v5906_v36, %v5551_v34 }
 0x4c5   : > { %v7033_v27 = vrot.slane %v7697_v50, 6  ;;  %6639 = vst.msk [vmem:[#allocation2 + $0x208] sm:$0xff] %vm6573_vm6, %v6566_v9  ;;  %v7043_v43 = vrot.slane %v6820_v54, 4  ;;  %v6819_v24 = vmax.f32 %v6706_v17, %v6778_v26 }
 0x4c6   : > { %6644 = vst.msk [vmem:[#allocation2 + $0x230] sm:$0xff] %vm6573_vm6, %v6571_v44  ;;  %v6569_v4 = vmax.f32 %v6497_v57, 0.0  ;;  %v6500_v0 = vadd.f32 %v13443_v60, %v6421_v18  ;;  %v6419_v62 = vadd.f32 %v6338_v63, %v5987_v12 }
 0x4c7   : > { %v7034_v38 = vrot.slane %v7033_v27, 4  ;;  %7039 = vst.msk [vmem:[%s13197_s12 + $0x34] sm:$0xc] %vm6870_vm11, %v7033_v27 }
 0x4c8   : > { %6642 = vst.msk [vmem:[#allocation2 + $0x220] sm:$0xff] %vm6573_vm6, %v6569_v4  ;;  %v6572_v13 = vmax.f32 %v6500_v0, 0.0  ;;  %v6498_v33 = vadd.f32 %v13443_v60, %v6419_v62 }
 0x4c9   : > { %v7036_v35 = vsel %vm13249_vm12, %v7034_v38, %v7035_v20  ;;  %v6712_v31 = vld [vmem:[#allocation2 + $0x210] ss:$2 sm:$0xff]  ;;  %v6784_v56 = vld [vmem:[#allocation2 + $0x211] ss:$2 sm:$0xff] }
 0x4ca   : > { %7040 = vst.msk [vmem:[%s13197_s12 + $0x38] sm:$0xf] %vm6842_vm7, %v7036_v35  ;;  %v6570_v39 = vmax.f32 %v6498_v33, 0.0  ;;  %v6822_v46 = vmax.f32 %v6712_v31, %v6784_v56 }
 0x4cb   : > { %6645 = vst.msk [vmem:[#allocation2 + $0x238] sm:$0xff] %vm6573_vm6, %v6572_v13 }
 0x4cc   : > { %v6710_v32 = vld [vmem:[#allocation2 + $0x200] ss:$2 sm:$0xff]  ;;  %v6782_v59 = vld [vmem:[#allocation2 + $0x201] ss:$2 sm:$0xff]  ;;  %6643 = vst.msk [vmem:[#allocation2 + $0x228] sm:$0xff] %vm6573_vm6, %v6570_v39 }
 0x4cd   : > { %v6821_v2 = vmax.f32 %v6710_v32, %v6782_v59 }
 0x4cf   : > { %v7044_v61 = vrot.slane %v6821_v2, 4 }
 0x4d1   : > { %v7045_v60 = vsel %vm790_vm0, %v7043_v43, %v7044_v61  ;;  %v7049_v29 = vmax.f32 %v6820_v54, %v7044_v61 }
 0x4d2   : > { %v6716_v58 = vld [vmem:[#allocation2 + $0x230] ss:$2 sm:$0xff]  ;;  %v6788_v7 = vld [vmem:[#allocation2 + $0x231] ss:$2 sm:$0xff]  ;;  %v7048_v14 = vmax.f32 %v6819_v24, %v7045_v60 }
 0x4d3   : > { %v6824_v1 = vmax.f32 %v6716_v58, %v6788_v7  ;;  %v7700_v10 = vpack.c.bf16 %v7049_v29, %v7049_v29  ;;  %v6714_v22 = vld [vmem:[#allocation2 + $0x220] ss:$2 sm:$0xff]  ;;  %v6786_v51 = vld [vmem:[#allocation2 + $0x221] ss:$2 sm:$0xff] }
 0x4d4   : > { %v7699_v11 = vpack.c.bf16 %v7048_v14, %v7048_v14  ;;  %v6823_v49 = vmax.f32 %v6714_v22, %v6786_v51 }
 0x4d5   : > { %v7063_v15 = vrot.slane %v6824_v1, 4  ;;  %7059 = vst.msk [vmem:[%s13197_s12 + $0x40] sm:$0x3] %vm6844_vm8, %v7700_v10 }
 0x4d6   : > { %7058 = vst.msk [vmem:[%s13197_s12 + $0x3c] sm:$0xf] %vm6842_vm7, %v7699_v11  ;;  %v7062_v3 = vrot.slane %v6823_v49, 4 }
 0x4d7   : > { %v7068_v45 = vmax.f32 %v6823_v49, %v7063_v15 }
 0x4d8   : > { %v7064_v55 = vsel %vm790_vm0, %v7062_v3, %v7063_v15 }
 0x4d9   : > { %v7067_v48 = vmax.f32 %v6822_v46, %v7064_v55  ;;  %v7702_v28 = vpack.c.bf16 %v7068_v45, %v7068_v45 }
 0x4db   : > { %v7701_v47 = vpack.c.bf16 %v7067_v48, %v7067_v48  ;;  %v7077_v25 = vrot.slane %v7702_v28, 6 }
 0x4dd   : > { %v7075_v41 = vrot.slane %v7701_v47, 6 }
 0x4df   : > { %v7076_v42 = vrot.slane %v7075_v41, 4  ;;  %7081 = vst.msk [vmem:[%s13197_s12 + $0x40] sm:$0xc] %vm6870_vm11, %v7075_v41 }
 0x4e1   : > { %v7078_v8 = vsel %vm13249_vm12, %v7076_v42, %v7077_v25 }
 0x4e2   : > { %7082 = vst.msk [vmem:[%s13197_s12 + $0x44] sm:$0xf] %vm6842_vm7, %v7078_v8 }
 0x4e3 PF: > { %s17_s18 = sadd.s32 1, %s9060_s18  }
 0x4e4   : > { %p14_p5 = scmp.ge.s32.totalorder %s17_s18, 4  }
 0x4e6   :  { %16 = sbr.rel (!%p14_p5) target bundleno = 2 (0x2), region = 158 }
 0x4eb   :  { %7105 = vsyncpa [#allocation4], 1 }
 0x4ec   :  { %7107 = vsyncpa [#allocation4 + $0x1], 1 }
 0x4ed   :  { %7108 = vsyncpa [#allocation6], 1 }

</bundles_post_ra>
